<compile_context>
chip_gen: v5e
topology: v5e:2x2
jax: 0.10.0
libtpu: 0.0.40
codegen_flags: <defaults>
</compile_context>

<pallas_src>
import functools

import jax
import jax.numpy as jnp
from jax.experimental import pallas as pl
from jax.experimental.pallas import tpu as pltpu

# Logical model dims (from VAE_b.__init__)
D_IN = 784
D_H = 500
D_Z = 20

# Lane-padded dims (multiples of 128 on the lane axis)
DP_IN = 896          # 784 -> 7 * 128
DP_H = 512           # 500 -> 4 * 128
DP_Z = 128           # 20  -> 1 * 128
DP_HEADS = 2 * DP_Z  # fused [mu | pre_std] width


def _round_up(n, m):
    return (n + m - 1) // m * m


def _vae_b_kernel(
    x_ref, eps_ref,
    w1_ref, b1_ref,
    w2_ref, b2_ref,
    wh_ref, bh_ref,
    w3_ref, b3_ref,
    w4_ref, b4_ref,
    w5_ref, b5_ref,
    recon_ref, heads_ref,
):
    f32 = jnp.float32
    bf16 = jnp.bfloat16

    def dense(h, w_ref, b_ref):
        # bf16 MXU matmul, f32 accumulation, f32 bias add.
        # (x arrives already in bf16, so the astype is a no-op for layer 1.)
        return jnp.dot(h.astype(bf16), w_ref[...],
                       preferred_element_type=f32) + b_ref[...]

    x = x_ref[...]                                      # (BM, 896) bf16

    # ---- encode (dropout == identity in eval) ----
    h1 = jnp.maximum(dense(x, w1_ref, b1_ref), 0.0)     # (BM, 512) f32
    h2 = jnp.maximum(dense(h1, w2_ref, b2_ref), 0.0)    # (BM, 512) f32

    # Fused fc21|fc22 head: lanes [0:128) -> mu, [128:256) -> pre_std.
    heads = dense(h2, wh_ref, bh_ref)                   # (BM, 256) f32
    mu = heads[:, :DP_Z]
    pre_std = heads[:, DP_Z:]
    std = jnp.logaddexp(pre_std, 0.0)                   # softplus, f32

    # ---- reparameterize: z = eps * std + mu ----
    z = eps_ref[...] * std + mu                         # (BM, 128) f32

    # ---- decode ----
    h3 = jnp.maximum(dense(z, w3_ref, b3_ref), 0.0)     # (BM, 512)
    h4 = jnp.maximum(dense(h3, w4_ref, b4_ref), 0.0)    # (BM, 512)
    logits = dense(h4, w5_ref, b5_ref)                  # (BM, 896)

    # recon kept f32 (bf16 would halve the writeback but changes precision
    # seen by the caller; flag separately if acceptable).
    recon_ref[...] = jax.nn.sigmoid(logits)

    # Two 128-lane-aligned slice stores (no concat temp, unmasked vst):
    heads_ref[:, :DP_Z] = mu
    heads_ref[:, DP_Z:] = 2.0 * jnp.log(std)


def init_params(key):
    """nn.Linear-like init (U[-1/sqrt(in), 1/sqrt(in)]).

    Weights stored transposed vs PyTorch, i.e. (in, out); biases (1, out)."""
    dims = [
        ("fc1", D_IN, D_H),
        ("fc2", D_H, D_H),
        ("fc21", D_H, D_Z),
        ("fc22", D_H, D_Z),
        ("fc3", D_Z, D_H),
        ("fc4", D_H, D_H),
        ("fc5", D_H, D_IN),
    ]
    params = {}
    for name, d_in, d_out in dims:
        key, kw, kb = jax.random.split(key, 3)
        bound = 1.0 / float(d_in) ** 0.5
        params[name + "_w"] = jax.random.uniform(
            kw, (d_in, d_out), jnp.float32, minval=-bound, maxval=bound)
        params[name + "_b"] = jax.random.uniform(
            kb, (1, d_out), jnp.float32, minval=-bound, maxval=bound)
    return params


def _pad2(a, rows, cols):
    return jnp.pad(a, ((0, rows - a.shape[0]), (0, cols - a.shape[1])))


def pack_params(params):
    """Zero-pad to lane-aligned dims, fuse fc21|fc22, cast weights to bf16.

    Invariants relied on by the kernel: padded rows of fc3_w are zero (so the
    garbage std=ln2 in padded head lanes never reaches the decoder), and eps
    is zero-padded in the wrapper."""
    bf16 = jnp.bfloat16
    wh = jnp.concatenate([_pad2(params["fc21_w"], DP_H, DP_Z),
                          _pad2(params["fc22_w"], DP_H, DP_Z)], axis=1)
    bh = jnp.concatenate([_pad2(params["fc21_b"], 1, DP_Z),
                          _pad2(params["fc22_b"], 1, DP_Z)], axis=1)
    return dict(
        w1=_pad2(params["fc1_w"], DP_IN, DP_H).astype(bf16),
        b1=_pad2(params["fc1_b"], 1, DP_H),
        w2=_pad2(params["fc2_w"], DP_H, DP_H).astype(bf16),
        b2=_pad2(params["fc2_b"], 1, DP_H),
        wh=wh.astype(bf16),
        bh=bh,
        w3=_pad2(params["fc3_w"], DP_Z, DP_H).astype(bf16),
        b3=_pad2(params["fc3_b"], 1, DP_H),
        w4=_pad2(params["fc4_w"], DP_H, DP_H).astype(bf16),
        b4=_pad2(params["fc4_b"], 1, DP_H),
        w5=_pad2(params["fc5_w"], DP_H, DP_IN).astype(bf16),
        b5=_pad2(params["fc5_b"], 1, DP_IN),
    )


@functools.partial(jax.jit, static_argnames=("block_m", "unpad"))
def vae_b_forward(x_nchw, eps, packed, block_m=256, unpad=True):
    """Forward pass of VAE_b.

    Returns (recon, mu, 2*log(std)) at logical shapes when unpad=True;
    with unpad=False returns the padded (B_pad, 896) recon and (B_pad, 256)
    [mu | logvar] slabs directly (skips the wrapper-side slicing HBM pass)."""
    B = x_nchw.shape[0]

    # Batch tile: sublane-aligned, <= block_m, and (when the batch allows)
    # split so the grid has >= 2 steps -- keeps both v7x TensorCores busy and
    # gives the pipeline something to overlap.
    bm = min(block_m, _round_up(max(B, 1), 8))
    if B >= 16 and _round_up(B, bm) // bm < 2:
        bm = _round_up((B + 1) // 2, 8)
    b_pad = _round_up(B, bm)

    # Single fused reshape + bf16 cast + zero-pad pass; x streams to the MXU
    # as bf16 (halves the largest per-tile input DMA, no accuracy change).
    x = jnp.pad(x_nchw.reshape(B, D_IN).astype(jnp.bfloat16),
                ((0, b_pad - B), (0, DP_IN - D_IN)))          # (B_pad, 896)
    eps_p = jnp.pad(eps.astype(jnp.float32),
                    ((0, b_pad - B), (0, DP_Z - D_Z)))        # (B_pad, 128)

    def batch_spec(cols):
        return pl.BlockSpec((bm, cols), lambda i: (i, 0))

    # Weights/biases: whole-array, resident in VMEM for the entire kernel --
    # one copy, never re-DMA'd, and no double-buffer pair allocated.
    pinned = pl.BlockSpec(memory_space=pltpu.MemorySpace.VMEM)

    inputs = (
        x, eps_p,
        packed["w1"], packed["b1"],
        packed["w2"], packed["b2"],
        packed["wh"], packed["bh"],
        packed["w3"], packed["b3"],
        packed["w4"], packed["b4"],
        packed["w5"], packed["b5"],
    )
    in_specs = [batch_spec(DP_IN), batch_spec(DP_Z)] + [pinned] * 12

    recon_p, heads = pl.pallas_call(
        _vae_b_kernel,
        out_shape=(
            jax.ShapeDtypeStruct((b_pad, DP_IN), jnp.float32),
            jax.ShapeDtypeStruct((b_pad, DP_HEADS), jnp.float32),
        ),
        grid=(b_pad // bm,),
        in_specs=in_specs,
        out_specs=(batch_spec(DP_IN), batch_spec(DP_HEADS)),
        compiler_params=pltpu.CompilerParams(
            dimension_semantics=("parallel",),
            # 32 MiB is safe on all generations (v7x scoped default); raise
            # toward 48-64 MiB on v5e/v6e only if sweeping block_m >= 512.
            vmem_limit_bytes=32 << 20,
        ),
    )(*inputs)

    if not unpad:
        return recon_p, heads

    recon = recon_p[:B, :D_IN]
    mu = heads[:B, :D_Z]
    logvar = heads[:B, DP_Z:DP_Z + D_Z]
    return recon, mu, logvar


def _reference_forward(x_nchw, eps, params):
    """Pure-JAX f32 reference (matches the PyTorch module in eval mode)."""
    B = x_nchw.shape[0]
    x = x_nchw.reshape(B, D_IN).astype(jnp.float32)
    relu = jax.nn.relu
    h1 = relu(x @ params["fc1_w"] + params["fc1_b"])
    h2 = relu(h1 @ params["fc2_w"] + params["fc2_b"])
    mu = h2 @ params["fc21_w"] + params["fc21_b"]
    std = jax.nn.softplus(h2 @ params["fc22_w"] + params["fc22_b"])
    z = eps * std + mu
    h3 = relu(z @ params["fc3_w"] + params["fc3_b"])
    h4 = relu(h3 @ params["fc4_w"] + params["fc4_b"])
    recon = jax.nn.sigmoid(h4 @ params["fc5_w"] + params["fc5_b"])
    return recon, mu, 2.0 * jnp.log(std)


if __name__ == "__main__":
    key = jax.random.PRNGKey(0)
    k_param, k_x, k_eps = jax.random.split(key, 3)

    # Small demo: B=24; the wrapper auto-picks bm=16 -> 2 pipelined grid steps.
    B = 24
    params = init_params(k_param)
    packed = pack_params(params)
    x = jax.random.uniform(k_x, (B, 1, 28, 28), jnp.float32)   # MNIST-like NCHW
    eps = jax.random.normal(k_eps, (B, D_Z), jnp.float32)      # torch.randn_like(std)

    recon, mu, logvar = vae_b_forward(x, eps, packed)
    jax.block_until_ready((recon, mu, logvar))

    # Correctness vs pure-f32 reference (kernel uses bf16 MXU operands with
    # f32 accumulation; mu/logvar carry ~1e-2-level bf16 error).
    r_ref, mu_ref, lv_ref = _reference_forward(x, eps, params)
    assert recon.shape == (B, D_IN) and mu.shape == (B, D_Z) and logvar.shape == (B, D_Z)
    assert jnp.allclose(recon, r_ref, atol=5e-2, rtol=5e-2), \
        float(jnp.max(jnp.abs(recon - r_ref)))
    assert jnp.allclose(mu, mu_ref, atol=5e-2, rtol=5e-2), \
        float(jnp.max(jnp.abs(mu - mu_ref)))
    assert jnp.allclose(logvar, lv_ref, atol=5e-2, rtol=5e-2), \
        float(jnp.max(jnp.abs(logvar - lv_ref)))

    # TODO(synk): training-mode Dropout(0.1) parity would need in-kernel PRNG
    # (pltpu.prng_seed / prng_random_bits); eval semantics (identity) used here.
    # TODO(synk): optional weight quantization (int8 on v5e/v6e, fp8 on v7x)
    # would halve the resident weight DMA for small-batch serving.

    print("KERNEL_OK")
</pallas_src>

<mosaic_0001>
module attributes {stable_mosaic.version = 11 : i64} {
  func.func @_vae_b_kernel(%arg0: i32, %arg1: memref<16x896xbf16, #tpu.memory_space<vmem>>, %arg2: memref<16x128xf32, #tpu.memory_space<vmem>>, %arg3: memref<896x512xbf16, #tpu.memory_space<vmem>>, %arg4: memref<1x512xf32, #tpu.memory_space<vmem>>, %arg5: memref<512x512xbf16, #tpu.memory_space<vmem>>, %arg6: memref<1x512xf32, #tpu.memory_space<vmem>>, %arg7: memref<512x256xbf16, #tpu.memory_space<vmem>>, %arg8: memref<1x256xf32, #tpu.memory_space<vmem>>, %arg9: memref<128x512xbf16, #tpu.memory_space<vmem>>, %arg10: memref<1x512xf32, #tpu.memory_space<vmem>>, %arg11: memref<512x512xbf16, #tpu.memory_space<vmem>>, %arg12: memref<1x512xf32, #tpu.memory_space<vmem>>, %arg13: memref<512x896xbf16, #tpu.memory_space<vmem>>, %arg14: memref<1x896xf32, #tpu.memory_space<vmem>>, %arg15: memref<16x896xf32, #tpu.memory_space<vmem>>, %arg16: memref<16x256xf32, #tpu.memory_space<vmem>>) attributes {dimension_semantics = [#tpu.dimension_semantics<parallel>], iteration_bounds = array<i64: 2>, scalar_prefetch = 0 : i64, scratch_operands = 0 : i64, tpu.core_type = #tpu.core_type<tc>, window_params = [{transform_indices = @transform_0, window_bounds = array<i64: 16, 896>}, {transform_indices = @transform_1, window_bounds = array<i64: 16, 128>}, {pipeline_mode = #tpu.pipeline_mode<synchronous>, transform_indices = @transform_2, window_bounds = array<i64: 896, 512>}, {pipeline_mode = #tpu.pipeline_mode<synchronous>, transform_indices = @transform_3, window_bounds = array<i64: 1, 512>}, {pipeline_mode = #tpu.pipeline_mode<synchronous>, transform_indices = @transform_4, window_bounds = array<i64: 512, 512>}, {pipeline_mode = #tpu.pipeline_mode<synchronous>, transform_indices = @transform_5, window_bounds = array<i64: 1, 512>}, {pipeline_mode = #tpu.pipeline_mode<synchronous>, transform_indices = @transform_6, window_bounds = array<i64: 512, 256>}, {pipeline_mode = #tpu.pipeline_mode<synchronous>, transform_indices = @transform_7, window_bounds = array<i64: 1, 256>}, {pipeline_mode = #tpu.pipeline_mode<synchronous>, transform_indices = @transform_8, window_bounds = array<i64: 128, 512>}, {pipeline_mode = #tpu.pipeline_mode<synchronous>, transform_indices = @transform_9, window_bounds = array<i64: 1, 512>}, {pipeline_mode = #tpu.pipeline_mode<synchronous>, transform_indices = @transform_10, window_bounds = array<i64: 512, 512>}, {pipeline_mode = #tpu.pipeline_mode<synchronous>, transform_indices = @transform_11, window_bounds = array<i64: 1, 512>}, {pipeline_mode = #tpu.pipeline_mode<synchronous>, transform_indices = @transform_12, window_bounds = array<i64: 512, 896>}, {pipeline_mode = #tpu.pipeline_mode<synchronous>, transform_indices = @transform_13, window_bounds = array<i64: 1, 896>}, {transform_indices = @transform_14, window_bounds = array<i64: 16, 896>}, {transform_indices = @transform_15, window_bounds = array<i64: 16, 256>}]} {
    %c0 = arith.constant 0 : index
    %c0_0 = arith.constant 0 : index
    %0 = vector.load %arg1[%c0, %c0_0] : memref<16x896xbf16, #tpu.memory_space<vmem>>, vector<16x896xbf16>
    %c0_1 = arith.constant 0 : index
    %c0_2 = arith.constant 0 : index
    %1 = vector.load %arg3[%c0_1, %c0_2] : memref<896x512xbf16, #tpu.memory_space<vmem>>, vector<896x512xbf16>
    %cst = arith.constant dense<0.000000e+00> : vector<16x512xf32>
    %2 = tpu.matmul %0, %1, %cst {dimension_numbers = #tpu.dot_dimension_numbers<[1], [0], [0], [1], [0, 0, 1, 1], [], []>} : vector<16x896xbf16>, vector<896x512xbf16>, vector<16x512xf32> -> vector<16x512xf32>
    %c0_3 = arith.constant 0 : index
    %c0_4 = arith.constant 0 : index
    %3 = vector.load %arg4[%c0_3, %c0_4] : memref<1x512xf32, #tpu.memory_space<vmem>>, vector<1x512xf32>
    %4 = vector.broadcast %3 : vector<1x512xf32> to vector<16x512xf32>
    %5 = arith.addf %2, %4 : vector<16x512xf32>
    %cst_5 = arith.constant 0.000000e+00 : f32
    %6 = vector.broadcast %cst_5 : f32 to vector<16x512xf32>
    %7 = arith.maximumf %5, %6 : vector<16x512xf32>
    %8 = arith.truncf %7 : vector<16x512xf32> to vector<16x512xbf16>
    %c0_6 = arith.constant 0 : index
    %c0_7 = arith.constant 0 : index
    %9 = vector.load %arg5[%c0_6, %c0_7] : memref<512x512xbf16, #tpu.memory_space<vmem>>, vector<512x512xbf16>
    %cst_8 = arith.constant dense<0.000000e+00> : vector<16x512xf32>
    %10 = tpu.matmul %8, %9, %cst_8 {dimension_numbers = #tpu.dot_dimension_numbers<[1], [0], [0], [1], [0, 0, 1, 1], [], []>} : vector<16x512xbf16>, vector<512x512xbf16>, vector<16x512xf32> -> vector<16x512xf32>
    %c0_9 = arith.constant 0 : index
    %c0_10 = arith.constant 0 : index
    %11 = vector.load %arg6[%c0_9, %c0_10] : memref<1x512xf32, #tpu.memory_space<vmem>>, vector<1x512xf32>
    %12 = vector.broadcast %11 : vector<1x512xf32> to vector<16x512xf32>
    %13 = arith.addf %10, %12 : vector<16x512xf32>
    %cst_11 = arith.constant 0.000000e+00 : f32
    %14 = vector.broadcast %cst_11 : f32 to vector<16x512xf32>
    %15 = arith.maximumf %13, %14 : vector<16x512xf32>
    %16 = arith.truncf %15 : vector<16x512xf32> to vector<16x512xbf16>
    %c0_12 = arith.constant 0 : index
    %c0_13 = arith.constant 0 : index
    %17 = vector.load %arg7[%c0_12, %c0_13] : memref<512x256xbf16, #tpu.memory_space<vmem>>, vector<512x256xbf16>
    %cst_14 = arith.constant dense<0.000000e+00> : vector<16x256xf32>
    %18 = tpu.matmul %16, %17, %cst_14 {dimension_numbers = #tpu.dot_dimension_numbers<[1], [0], [0], [1], [0, 0, 1, 1], [], []>} : vector<16x512xbf16>, vector<512x256xbf16>, vector<16x256xf32> -> vector<16x256xf32>
    %c0_15 = arith.constant 0 : index
    %c0_16 = arith.constant 0 : index
    %19 = vector.load %arg8[%c0_15, %c0_16] : memref<1x256xf32, #tpu.memory_space<vmem>>, vector<1x256xf32>
    %20 = vector.broadcast %19 : vector<1x256xf32> to vector<16x256xf32>
    %21 = arith.addf %18, %20 : vector<16x256xf32>
    %22 = vector.extract_strided_slice %21 {offsets = [0, 0], sizes = [16, 128], strides = [1, 1]} : vector<16x256xf32> to vector<16x128xf32>
    %23 = vector.extract_strided_slice %21 {offsets = [0, 128], sizes = [16, 128], strides = [1, 1]} : vector<16x256xf32> to vector<16x128xf32>
    %cst_17 = arith.constant 0.000000e+00 : f32
    %24 = vector.broadcast %cst_17 : f32 to vector<16x128xf32>
    %25 = arith.maximumf %23, %24 : vector<16x128xf32>
    %26 = vector.broadcast %cst_17 : f32 to vector<16x128xf32>
    %27 = arith.subf %23, %26 : vector<16x128xf32>
    %28 = arith.cmpf one, %27, %27 : vector<16x128xf32>
    %29 = vector.broadcast %cst_17 : f32 to vector<16x128xf32>
    %30 = arith.addf %23, %29 : vector<16x128xf32>
    %31 = math.absf %27 : vector<16x128xf32>
    %cst_18 = arith.constant 0.000000e+00 : f32
    %32 = vector.broadcast %cst_18 : f32 to vector<16x128xf32>
    %33 = arith.subf %32, %31 : vector<16x128xf32>
    %34 = math.exp %33 : vector<16x128xf32>
    %35 = math.log1p %34 : vector<16x128xf32>
    %36 = arith.addf %25, %35 : vector<16x128xf32>
    %37 = arith.select %28, %30, %36 : vector<16x128xi1>, vector<16x128xf32>
    %c0_19 = arith.constant 0 : index
    %c0_20 = arith.constant 0 : index
    %38 = vector.load %arg2[%c0_19, %c0_20] : memref<16x128xf32, #tpu.memory_space<vmem>>, vector<16x128xf32>
    %39 = arith.mulf %38, %37 : vector<16x128xf32>
    %40 = arith.addf %39, %22 : vector<16x128xf32>
    %41 = arith.truncf %40 : vector<16x128xf32> to vector<16x128xbf16>
    %c0_21 = arith.constant 0 : index
    %c0_22 = arith.constant 0 : index
    %42 = vector.load %arg9[%c0_21, %c0_22] : memref<128x512xbf16, #tpu.memory_space<vmem>>, vector<128x512xbf16>
    %cst_23 = arith.constant dense<0.000000e+00> : vector<16x512xf32>
    %43 = tpu.matmul %41, %42, %cst_23 {dimension_numbers = #tpu.dot_dimension_numbers<[1], [0], [0], [1], [0, 0, 1, 1], [], []>} : vector<16x128xbf16>, vector<128x512xbf16>, vector<16x512xf32> -> vector<16x512xf32>
    %c0_24 = arith.constant 0 : index
    %c0_25 = arith.constant 0 : index
    %44 = vector.load %arg10[%c0_24, %c0_25] : memref<1x512xf32, #tpu.memory_space<vmem>>, vector<1x512xf32>
    %45 = vector.broadcast %44 : vector<1x512xf32> to vector<16x512xf32>
    %46 = arith.addf %43, %45 : vector<16x512xf32>
    %cst_26 = arith.constant 0.000000e+00 : f32
    %47 = vector.broadcast %cst_26 : f32 to vector<16x512xf32>
    %48 = arith.maximumf %46, %47 : vector<16x512xf32>
    %49 = arith.truncf %48 : vector<16x512xf32> to vector<16x512xbf16>
    %c0_27 = arith.constant 0 : index
    %c0_28 = arith.constant 0 : index
    %50 = vector.load %arg11[%c0_27, %c0_28] : memref<512x512xbf16, #tpu.memory_space<vmem>>, vector<512x512xbf16>
    %cst_29 = arith.constant dense<0.000000e+00> : vector<16x512xf32>
    %51 = tpu.matmul %49, %50, %cst_29 {dimension_numbers = #tpu.dot_dimension_numbers<[1], [0], [0], [1], [0, 0, 1, 1], [], []>} : vector<16x512xbf16>, vector<512x512xbf16>, vector<16x512xf32> -> vector<16x512xf32>
    %c0_30 = arith.constant 0 : index
    %c0_31 = arith.constant 0 : index
    %52 = vector.load %arg12[%c0_30, %c0_31] : memref<1x512xf32, #tpu.memory_space<vmem>>, vector<1x512xf32>
    %53 = vector.broadcast %52 : vector<1x512xf32> to vector<16x512xf32>
    %54 = arith.addf %51, %53 : vector<16x512xf32>
    %cst_32 = arith.constant 0.000000e+00 : f32
    %55 = vector.broadcast %cst_32 : f32 to vector<16x512xf32>
    %56 = arith.maximumf %54, %55 : vector<16x512xf32>
    %57 = arith.truncf %56 : vector<16x512xf32> to vector<16x512xbf16>
    %c0_33 = arith.constant 0 : index
    %c0_34 = arith.constant 0 : index
    %58 = vector.load %arg13[%c0_33, %c0_34] : memref<512x896xbf16, #tpu.memory_space<vmem>>, vector<512x896xbf16>
    %cst_35 = arith.constant dense<0.000000e+00> : vector<16x896xf32>
    %59 = tpu.matmul %57, %58, %cst_35 {dimension_numbers = #tpu.dot_dimension_numbers<[1], [0], [0], [1], [0, 0, 1, 1], [], []>} : vector<16x512xbf16>, vector<512x896xbf16>, vector<16x896xf32> -> vector<16x896xf32>
    %c0_36 = arith.constant 0 : index
    %c0_37 = arith.constant 0 : index
    %60 = vector.load %arg14[%c0_36, %c0_37] : memref<1x896xf32, #tpu.memory_space<vmem>>, vector<1x896xf32>
    %61 = vector.broadcast %60 : vector<1x896xf32> to vector<16x896xf32>
    %62 = arith.addf %59, %61 : vector<16x896xf32>
    %63 = arith.negf %62 : vector<16x896xf32>
    %64 = math.exp %63 : vector<16x896xf32>
    %cst_38 = arith.constant 1.000000e+00 : f32
    %65 = vector.broadcast %cst_38 : f32 to vector<16x896xf32>
    %66 = arith.addf %65, %64 : vector<16x896xf32>
    %67 = arith.divf %65, %66 : vector<16x896xf32>
    %c0_39 = arith.constant 0 : index
    %c0_40 = arith.constant 0 : index
    %68 = vector.load %arg15[%c0_39, %c0_40] : memref<16x896xf32, #tpu.memory_space<vmem>>, vector<16x896xf32>
    tpu.vector_store %arg15[%c0_39, %c0_40], %67 {strides = array<i32>} : memref<16x896xf32, #tpu.memory_space<vmem>>, vector<16x896xf32>,
    %c0_41 = arith.constant 0 : index
    %c0_42 = arith.constant 0 : index
    %69 = vector.load %arg16[%c0_41, %c0_42] : memref<16x256xf32, #tpu.memory_space<vmem>>, vector<16x128xf32>
    tpu.vector_store %arg16[%c0_41, %c0_42], %22 {strides = array<i32>} : memref<16x256xf32, #tpu.memory_space<vmem>>, vector<16x128xf32>,
    %70 = math.log %37 : vector<16x128xf32>
    %cst_43 = arith.constant 2.000000e+00 : f32
    %71 = vector.broadcast %cst_43 : f32 to vector<16x128xf32>
    %72 = arith.mulf %71, %70 : vector<16x128xf32>
    %c0_44 = arith.constant 0 : index
    %c128 = arith.constant 128 : index
    %73 = vector.load %arg16[%c0_44, %c128] : memref<16x256xf32, #tpu.memory_space<vmem>>, vector<16x128xf32>
    tpu.vector_store %arg16[%c0_44, %c128], %72 {strides = array<i32>} : memref<16x256xf32, #tpu.memory_space<vmem>>, vector<16x128xf32>,
    return
  }
  func.func @transform_0(%arg0: i32) -> (i32, i32) {
    %c0_i32 = arith.constant 0 : i32
    %c0_i32_0 = arith.constant 0 : i32
    return %arg0, %c0_i32 : i32, i32
  }
  func.func @transform_1(%arg0: i32) -> (i32, i32) {
    %c0_i32 = arith.constant 0 : i32
    %c0_i32_0 = arith.constant 0 : i32
    return %arg0, %c0_i32 : i32, i32
  }
  func.func @transform_2(%arg0: i32) -> (i32, i32) {
    %c0_i32 = arith.constant 0 : i32
    %c0_i32_0 = arith.constant 0 : i32
    %c0_i32_1 = arith.constant 0 : i32
    return %c0_i32, %c0_i32_0 : i32, i32
  }
  func.func @transform_3(%arg0: i32) -> (i32, i32) {
    %c0_i32 = arith.constant 0 : i32
    %c0_i32_0 = arith.constant 0 : i32
    %c0_i32_1 = arith.constant 0 : i32
    return %c0_i32, %c0_i32_0 : i32, i32
  }
  func.func @transform_4(%arg0: i32) -> (i32, i32) {
    %c0_i32 = arith.constant 0 : i32
    %c0_i32_0 = arith.constant 0 : i32
    %c0_i32_1 = arith.constant 0 : i32
    return %c0_i32, %c0_i32_0 : i32, i32
  }
  func.func @transform_5(%arg0: i32) -> (i32, i32) {
    %c0_i32 = arith.constant 0 : i32
    %c0_i32_0 = arith.constant 0 : i32
    %c0_i32_1 = arith.constant 0 : i32
    return %c0_i32, %c0_i32_0 : i32, i32
  }
  func.func @transform_6(%arg0: i32) -> (i32, i32) {
    %c0_i32 = arith.constant 0 : i32
    %c0_i32_0 = arith.constant 0 : i32
    %c0_i32_1 = arith.constant 0 : i32
    return %c0_i32, %c0_i32_0 : i32, i32
  }
  func.func @transform_7(%arg0: i32) -> (i32, i32) {
    %c0_i32 = arith.constant 0 : i32
    %c0_i32_0 = arith.constant 0 : i32
    %c0_i32_1 = arith.constant 0 : i32
    return %c0_i32, %c0_i32_0 : i32, i32
  }
  func.func @transform_8(%arg0: i32) -> (i32, i32) {
    %c0_i32 = arith.constant 0 : i32
    %c0_i32_0 = arith.constant 0 : i32
    %c0_i32_1 = arith.constant 0 : i32
    return %c0_i32, %c0_i32_0 : i32, i32
  }
  func.func @transform_9(%arg0: i32) -> (i32, i32) {
    %c0_i32 = arith.constant 0 : i32
    %c0_i32_0 = arith.constant 0 : i32
    %c0_i32_1 = arith.constant 0 : i32
    return %c0_i32, %c0_i32_0 : i32, i32
  }
  func.func @transform_10(%arg0: i32) -> (i32, i32) {
    %c0_i32 = arith.constant 0 : i32
    %c0_i32_0 = arith.constant 0 : i32
    %c0_i32_1 = arith.constant 0 : i32
    return %c0_i32, %c0_i32_0 : i32, i32
  }
  func.func @transform_11(%arg0: i32) -> (i32, i32) {
    %c0_i32 = arith.constant 0 : i32
    %c0_i32_0 = arith.constant 0 : i32
    %c0_i32_1 = arith.constant 0 : i32
    return %c0_i32, %c0_i32_0 : i32, i32
  }
  func.func @transform_12(%arg0: i32) -> (i32, i32) {
    %c0_i32 = arith.constant 0 : i32
    %c0_i32_0 = arith.constant 0 : i32
    %c0_i32_1 = arith.constant 0 : i32
    return %c0_i32, %c0_i32_0 : i32, i32
  }
  func.func @transform_13(%arg0: i32) -> (i32, i32) {
    %c0_i32 = arith.constant 0 : i32
    %c0_i32_0 = arith.constant 0 : i32
    %c0_i32_1 = arith.constant 0 : i32
    return %c0_i32, %c0_i32_0 : i32, i32
  }
  func.func @transform_14(%arg0: i32) -> (i32, i32) {
    %c0_i32 = arith.constant 0 : i32
    %c0_i32_0 = arith.constant 0 : i32
    return %arg0, %c0_i32 : i32, i32
  }
  func.func @transform_15(%arg0: i32) -> (i32, i32) {
    %c0_i32 = arith.constant 0 : i32
    %c0_i32_0 = arith.constant 0 : i32
    return %arg0, %c0_i32 : i32, i32
  }
}

</mosaic_0001>

<bundles_post_ra>
// kernel: vae_b_forward.1
= control target key start
LH: loop header
LB: loop body
LE: loop exit
PB: predicated region body
PF: predicated region fallthrough
CT: control target
= control target key end

     0   :  { %s13469_s0 = inlined_call_operand.vmem [shape: bf16[32,896], index: 0, kind: input, shape index: {}]   ;;  %s13470_s1 = inlined_call_operand.vmem [shape: f32[32,128], index: 1, kind: input, shape index: {}]   ;;  %s13471_s2 = inlined_call_operand.hbm [shape: bf16[896,512], index: 2, kind: input, shape index: {}]   ;;  %s13472_s3 = inlined_call_operand.vmem [shape: f32[1,512], index: 3, kind: input, shape index: {}]   ;;  %s13473_s4 = inlined_call_operand.vmem [shape: bf16[512,512], index: 4, kind: input, shape index: {}]   ;;  %s13474_s5 = inlined_call_operand.vmem [shape: f32[1,512], index: 5, kind: input, shape index: {}]   ;;  %s13475_s6 = inlined_call_operand.vmem [shape: bf16[512,256], index: 6, kind: input, shape index: {}]   ;;  %s13476_s7 = inlined_call_operand.vmem [shape: f32[1,256], index: 7, kind: input, shape index: {}]   ;;  %s13477_s8 = inlined_call_operand.hbm [shape: bf16[128,512], index: 8, kind: input, shape index: {}]   ;;  %s13478_s9 = inlined_call_operand.vmem [shape: f32[1,512], index: 9, kind: input, shape index: {}]   ;;  %s13479_s10 = inlined_call_operand.hbm [shape: bf16[512,512], index: 10, kind: input, shape index: {}]   ;;  %s13480_s11 = inlined_call_operand.vmem [shape: f32[1,512], index: 11, kind: input, shape index: {}]   ;;  %s13481_s12 = inlined_call_operand.hbm [shape: bf16[512,896], index: 12, kind: input, shape index: {}]   ;;  %s13482_s13 = inlined_call_operand.vmem [shape: f32[1,896], index: 13, kind: input, shape index: {}]   ;;  %s13483_s14 = inlined_call_operand.vmem [shape: f32[32,896], index: 14, kind: output, shape index: {0}]   ;;  %s13484_s15 = inlined_call_operand.vmem [shape: f32[32,256], index: 15, kind: output, shape index: {1}]  }
   0x1   :  { %13486 = sst [smem:[#allocation12_spill]] %s13471_s2 }
   0x2   :  { %13487 = sst [smem:[#allocation13_spill]] %s13477_s8 }
   0x3   :  { %13488 = sst [smem:[#allocation14_spill]] %s13479_s10 }
   0x4   :  { %13489 = sst [smem:[#allocation15_spill]] %s13482_s13 }
   0x5   :  { %13490 = sst [smem:[#allocation16_spill]] %s13483_s14 }
   0x6   :  { %21 = vsyncpa [#allocation3], 0 }
   0x7   :  { %22 = vsyncpa [#allocation5], 0 }
   0x8   :  { %23 = vsyncpa [#allocation8], 0  ;;  %s11932_s18 = smov 0  }
   0x9 LB: > { %s13485_s19 = sadd.s32 4294967295, %s11842_s18   ;;  %p7508_p0 = scmp.ge.s32.totalorder %s11842_s18, 1  ;;  %s11842_s18 = sphi %s11932_s18, %s29_s18  }
   0xa   : > { %p390_p1 = scmp.lt.s32.totalorder %s11842_s18, 3  ;;  %p11942_p2 = scmp.eq.s32.totalorder %s13485_s19, 0 }
   0xb   : > { %s13492_s8 = sld [smem:[#allocation13_spill]]  ;;  %s11844_s28 = smov [#allocation4]  }
   0xc   : > { %p11949_p3 = pnand %p7508_p0, %p390_p1  ;;  %s13494_s2 = sld [smem:[#allocation12_spill]] }
   0xd   : > { %s432_s29 = sshll.u32 %s11844_s28, 4  ;;  %s11845_s16 = smov [#allocation2]   ;;  %s433_s29 = int_to_ptr.vmem [resolvable:$true] %s432_s29 }
   0xe   : > { %p11598_p4 = pneg %p11949_p3  ;;  %s403_s17 = sshll.u32 %s11845_s16, 4  ;;  %s404_s17 = int_to_ptr.vmem [resolvable:$true] %s403_s17 }
   0xf   : > { %s13496_s10 = sld [smem:[#allocation14_spill]]  ;;  %s11846_s26 = smov 256  }
  0x10   : > { %p11960_p5 = pnand %p11942_p2, %p11598_p4  ;;  %s11847_s28 = smov 16  }
  0x11   : > { %s430_s23 = sshll.u32 %s13492_s8, 4  ;;  %s11848_s19 = smov [#allocation6]   ;;  %s431_s23 = int_to_ptr.hbm [resolvable:$true] %s430_s23 }
  0x12   : > { %s401_s27 = sshll.u32 %s13494_s2, 4  ;;  %s449_s2 = sshll.u32 %s11848_s19, 4  ;;  %s402_s27 = int_to_ptr.hbm [resolvable:$true] %s401_s27  ;;  %s450_s2 = int_to_ptr.vmem [resolvable:$true] %s449_s2 }
  0x13   : > { %11604 = dma.hbm_to_vmem [thread:$0]  (!%p11960_p5), %s431_s23, 4096, %s433_s29, [#allocation5], %s11846_s26, %s11846_s26, %s11847_s28  }
  0x14   : > { %11601 = dma.hbm_to_vmem [thread:$0]  (!%p11960_p5), %s402_s27, 28672, %s404_s17, [#allocation3], %s11846_s26, %s11846_s26, %s11847_s28  }
  0x15   : > { %s447_s25 = sshll.u32 %s13496_s10, 4  ;;  %s464_s13 = sshll.u32 %s13481_s12, 4  ;;  %s448_s25 = int_to_ptr.hbm [resolvable:$true] %s447_s25  ;;  %s465_s13 = int_to_ptr.hbm [resolvable:$true] %s464_s13 }
  0x16   : > { %11607 = dma.hbm_to_vmem [thread:$0]  (!%p11960_p5), %s448_s25, 16384, %s450_s2, [#allocation5], %s11846_s26, %s11846_s26, %s11847_s28  }
  0x17   : > { %s11849_s16 = smov [#allocation7]   ;;  %s11850_s22 = smov 448  }
  0x18   : > { %s466_s21 = sshll.u32 %s11849_s16, 4  ;;  %s11851_s10 = smov 28   ;;  %s467_s21 = int_to_ptr.vmem [resolvable:$true] %s466_s21 }
  0x19   : > { %11610 = dma.hbm_to_vmem [thread:$0]  (!%p11960_p5), %s465_s13, 28672, %s467_s21, [#allocation8], %s11850_s22, %s11850_s22, %s11851_s10  }
  0x1a   : > { %504 = sbr.rel (%p11949_p3) target bundleno = 1504 (0x5e0), region = 76 }
  0x1f   : > { %11829 = dma.done.wait (%p11942_p2), [#allocation3], 28672  }
  0x20   : > { %11831 = vsyncadd (%p11942_p2), [#allocation3], 4294938624 }
  0x21   : > { %11833 = dma.done.wait (%p11942_p2), [#allocation5], 20480  }
  0x22   : > { %11835 = vsyncadd (%p11942_p2), [#allocation5], 4294946816 }
  0x23   : > { %11837 = dma.done.wait (%p11942_p2), [#allocation8], 28672  }
  0x24   : > { %11839 = vsyncadd (%p11942_p2), [#allocation8], 4294938624  ;;  %v7670_v0 = vld [vmem:[#allocation2 + $0xe0] sm:$0xf]  ;;  %v10810_v1 = vld [vmem:[#allocation2 + $0xec] sm:$0xf0] }
  0x25   : > { %v7798_v2 = vld [vmem:[#allocation2 + $0x1e0] sm:$0xf]  ;;  %v7671_v3 = vor.u32 %v10810_v1, %v7670_v0  ;;  %v10842_v4 = vld [vmem:[#allocation2 + $0x1ec] sm:$0xf0]  ;;  %s13497_s2 = sadd.s32 4294967295, %s11842_s18   ;;  %s13502_s14 = sld [smem:[#allocation15_spill]] }
  0x26   : > { %v7926_v5 = vld [vmem:[#allocation2 + $0x2e0] sm:$0xf]  ;;  %v10874_v6 = vld [vmem:[#allocation2 + $0x2ec] sm:$0xf0]  ;;  %v7799_v7 = vor.u32 %v10842_v4, %v7798_v2  ;;  %s11994_s8 = sshll.u32 %s13497_s2, 1 }
  0x27   : > { %v7927_v8 = vor.u32 %v10874_v6, %v7926_v5  ;;  %v8054_v9 = vld [vmem:[#allocation2 + $0x3e0] sm:$0xf]  ;;  %v10906_v10 = vld [vmem:[#allocation2 + $0x3ec] sm:$0xf0]  ;;  %2006 = vmatpush.bf16.msra.mxu0 %v7671_v3  ;;  %p582_p6 = scmp.lt.s32.totalorder %s11994_s8, 3 }
  0x28   : > { %v7654_v11 = vld [vmem:[#allocation2 + $0xc0] sm:$0xf]  ;;  %v8055_v12 = vor.u32 %v10906_v10, %v8054_v9  ;;  %v10806_v13 = vld [vmem:[#allocation2 + $0xcc] sm:$0xf0]  ;;  %2020 = vmatpush.bf16.msra.mxu1 %v7799_v7 }
  0x29   : > { %v7782_v14 = vld [vmem:[#allocation2 + $0x1c0] sm:$0xf]  ;;  %v10838_v15 = vld [vmem:[#allocation2 + $0x1cc] sm:$0xf0]  ;;  %2034 = vmatpush.bf16.msra.mxu2 %v7927_v8  ;;  %v7655_v16 = vor.u32 %v10806_v13, %v7654_v11  ;;  %s13505_s8 = smov (!%p582_p6, %s11994_s8), 3 }
  0x2a   : > { %v7783_v17 = vor.u32 %v10838_v15, %v7782_v14  ;;  %v7910_v18 = vld [vmem:[#allocation2 + $0x2c0] sm:$0xf]  ;;  %v10870_v19 = vld [vmem:[#allocation2 + $0x2cc] sm:$0xf0]  ;;  %2048 = vmatpush.bf16.msra.mxu3 %v8055_v12  ;;  %s11580_s10 = smul.u32 28, %s13505_s8  ;;  %s10772_s24 = sshll.u32 %s13505_s8, 4 }
  0x2b   : > { %v8038_v20 = vld [vmem:[#allocation2 + $0x3c0] sm:$0xf]  ;;  %v7911_v21 = vor.u32 %v10870_v19, %v7910_v18  ;;  %v10902_v22 = vld [vmem:[#allocation2 + $0x3cc] sm:$0xf0]  ;;  %2007 = vmatpush.bf16.msra.mxu0 %v7655_v16  ;;  %s13303_s30 = scalar_lea.vmem %s13484_s15, %s10772_s24  ;;  %s7522_s17 = sshll.u32 %s13505_s8, 3 }
  0x2c   : > { %v7638_v23 = vld [vmem:[#allocation2 + $0xa0] sm:$0xf]  ;;  %v10802_v24 = vld [vmem:[#allocation2 + $0xac] sm:$0xf0]  ;;  %v8039_v25 = vor.u32 %v10902_v22, %v8038_v20  ;;  %2021 = vmatpush.bf16.msra.mxu1 %v7783_v17  ;;  %s12008_s19 = scalar_lea.vmem %s13469_s0, %s11580_s10  ;;  %s13340_s28 = scalar_lea.vmem %s13470_s1, %s7522_s17 }
  0x2d   : > { %v7766_v26 = vld [vmem:[#allocation2 + $0x1a0] sm:$0xf]  ;;  %v10834_v27 = vld [vmem:[#allocation2 + $0x1ac] sm:$0xf0]  ;;  %v7639_v29 = vor.u32 %v10802_v24, %v7638_v23  ;;  %2035 = vmatpush.bf16.msra.mxu2 %v7911_v21  ;;  %s13503_s24 = sld [smem:[#allocation16_spill]] }
  0x2e   : > { %v7894_v28 = vld [vmem:[#allocation2 + $0x2a0] sm:$0xf]  ;;  %v10866_v30 = vld [vmem:[#allocation2 + $0x2ac] sm:$0xf0]  ;;  %v7767_v33 = vor.u32 %v10834_v27, %v7766_v26  ;;  %2049 = vmatpush.bf16.msra.mxu3 %v8039_v25 }
  0x2f   : > { %v8022_v31 = vld [vmem:[#allocation2 + $0x3a0] sm:$0xf]  ;;  %v10898_v32 = vld [vmem:[#allocation2 + $0x3ac] sm:$0xf0]  ;;  %v7895_v34 = vor.u32 %v10866_v30, %v7894_v28  ;;  %2008 = vmatpush.bf16.msra.mxu0 %v7639_v29 }
  0x30   : > { %v7622_v35 = vld [vmem:[#allocation2 + $0x80] sm:$0xf]  ;;  %v10798_v36 = vld [vmem:[#allocation2 + $0x8c] sm:$0xf0]  ;;  %v8023_v38 = vor.u32 %v10898_v32, %v8022_v31  ;;  %2022 = vmatpush.bf16.msra.mxu1 %v7767_v33 }
  0x31   : > { %v7750_v37 = vld [vmem:[#allocation2 + $0x180] sm:$0xf]  ;;  %v10830_v39 = vld [vmem:[#allocation2 + $0x18c] sm:$0xf0]  ;;  %v7623_v44 = vor.u32 %v10798_v36, %v7622_v35  ;;  %2036 = vmatpush.bf16.msra.mxu2 %v7895_v34 }
  0x32   : > { %v7878_v40 = vld [vmem:[#allocation2 + $0x280] sm:$0xf]  ;;  %v10862_v41 = vld [vmem:[#allocation2 + $0x28c] sm:$0xf0]  ;;  %v7751_v45 = vor.u32 %v10830_v39, %v7750_v37  ;;  %2050 = vmatpush.bf16.msra.mxu3 %v8023_v38  ;;  %v10808_v37 = vld [vmem:[#allocation2 + $0xe4] sm:$0xf] }
  0x33   : > { %v8006_v42 = vld [vmem:[#allocation2 + $0x380] sm:$0xf]  ;;  %v10894_v43 = vld [vmem:[#allocation2 + $0x38c] sm:$0xf0]  ;;  %v7879_v46 = vor.u32 %v10862_v41, %v7878_v40  ;;  %2009 = vmatpush.bf16.msra.mxu0 %v7623_v44  ;;  %v7672_v38 = vld [vmem:[#allocation2 + $0xf0] sm:$0xf0] }
  0x34   : > { %v7606_v47 = vld [vmem:[#allocation2 + $0x60] sm:$0xf]  ;;  %v10794_v48 = vld [vmem:[#allocation2 + $0x6c] sm:$0xf0]  ;;  %v8007_v50 = vor.u32 %v10894_v43, %v8006_v42  ;;  %2023 = vmatpush.bf16.msra.mxu1 %v7751_v45 }
  0x35   : > { %v7734_v49 = vld [vmem:[#allocation2 + $0x160] sm:$0xf]  ;;  %v10826_v51 = vld [vmem:[#allocation2 + $0x16c] sm:$0xf0]  ;;  %v7607_v56 = vor.u32 %v10794_v48, %v7606_v47  ;;  %2037 = vmatpush.bf16.msra.mxu2 %v7879_v46  ;;  %v7675_v48 = vor.u32 %v10808_v37, %v7672_v38 }
  0x36   : > { %v7862_v52 = vld [vmem:[#allocation2 + $0x260] sm:$0xf]  ;;  %v10858_v53 = vld [vmem:[#allocation2 + $0x26c] sm:$0xf0]  ;;  %v7735_v57 = vor.u32 %v10826_v51, %v7734_v49  ;;  %2051 = vmatpush.bf16.msra.mxu3 %v8007_v50  ;;  %v10804_v50 = vld [vmem:[#allocation2 + $0xc4] sm:$0xf] }
  0x37   : > { %v7990_v54 = vld [vmem:[#allocation2 + $0x360] sm:$0xf]  ;;  %v10890_v55 = vld [vmem:[#allocation2 + $0x36c] sm:$0xf0]  ;;  %v7863_v58 = vor.u32 %v10858_v53, %v7862_v52  ;;  %2010 = vmatpush.bf16.msra.mxu0 %v7607_v56  ;;  %v7656_v51 = vld [vmem:[#allocation2 + $0xd0] sm:$0xf0] }
  0x38   : > { %v7590_v59 = vld [vmem:[#allocation2 + $0x40] sm:$0xf]  ;;  %v10790_v60 = vld [vmem:[#allocation2 + $0x4c] sm:$0xf0]  ;;  %v7991_v62 = vor.u32 %v10890_v55, %v7990_v54  ;;  %2024 = vmatpush.bf16.msra.mxu1 %v7735_v57  ;;  %v10776_v53 = vld [vmem:[%s12008_s19 + $0x18] sm:$0xf0] }
  0x39   : > { %v7718_v61 = vld [vmem:[#allocation2 + $0x140] sm:$0xf]  ;;  %v10822_v63 = vld [vmem:[#allocation2 + $0x14c] sm:$0xf0]  ;;  %v7591_v4 = vor.u32 %v10790_v60, %v7590_v59  ;;  %2038 = vmatpush.bf16.msra.mxu2 %v7863_v58  ;;  %v7538_v54 = vld [vmem:[%s12008_s19 + $0x8] sm:$0xf] }
  0x3a   : > { %v7846_v0 = vld [vmem:[#allocation2 + $0x240] sm:$0xf]  ;;  %v10854_v1 = vld [vmem:[#allocation2 + $0x24c] sm:$0xf0]  ;;  %v7719_v5 = vor.u32 %v10822_v63, %v7718_v61  ;;  %2052 = vmatpush.bf16.msra.mxu3 %v7991_v62  ;;  %v10777_v58 = vld [vmem:[%s12008_s19 + $0x20] sm:$0xf0] }
  0x3b   : > { %v7974_v2 = vld [vmem:[#allocation2 + $0x340] sm:$0xf]  ;;  %v10886_v3 = vld [vmem:[#allocation2 + $0x34c] sm:$0xf0]  ;;  %v7847_v6 = vor.u32 %v10854_v1, %v7846_v0  ;;  %2011 = vmatpush.bf16.msra.mxu0 %v7591_v4  ;;  %v12016_v0 = vor.u32 %v10777_v58, %v7538_v54  ;;  %v7659_v1 = vor.u32 %v10804_v50, %v7656_v51  ;;  %v10800_v4 = vld [vmem:[#allocation2 + $0xa4] sm:$0xf] }
  0x3c   : > { %v7574_v7 = vld [vmem:[#allocation2 + $0x20] sm:$0xf]  ;;  %v10786_v8 = vld [vmem:[#allocation2 + $0x2c] sm:$0xf0]  ;;  %v7975_v10 = vor.u32 %v10886_v3, %v7974_v2  ;;  %2025 = vmatpush.bf16.msra.mxu1 %v7719_v5  ;;  %v7640_v5 = vld [vmem:[#allocation2 + $0xb0] sm:$0xf0] }
  0x3d   : > { %v7702_v9 = vld [vmem:[#allocation2 + $0x120] sm:$0xf]  ;;  %v10818_v11 = vld [vmem:[#allocation2 + $0x12c] sm:$0xf0]  ;;  %v7575_v16 = vor.u32 %v10786_v8, %v7574_v7  ;;  %2039 = vmatpush.bf16.msra.mxu2 %v7847_v6  ;;  %v10773_v6 = vld [vmem:[%s12008_s19 + $0x4] sm:$0xf] }
  0x3e   : > { %v7830_v12 = vld [vmem:[#allocation2 + $0x220] sm:$0xf]  ;;  %v10850_v13 = vld [vmem:[#allocation2 + $0x22c] sm:$0xf0]  ;;  %v7703_v19 = vor.u32 %v10818_v11, %v7702_v9  ;;  %2053 = vmatpush.bf16.msra.mxu3 %v7975_v10 }
  0x3f   : > { %v7958_v14 = vld [vmem:[#allocation2 + $0x320] sm:$0xf]  ;;  %v10882_v15 = vld [vmem:[#allocation2 + $0x32c] sm:$0xf0]  ;;  %v7831_v20 = vor.u32 %v10850_v13, %v7830_v12  ;;  %2012 = vmatpush.bf16.msra.mxu0 %v7575_v16 }
  0x40   : > { %v7558_v17 = vld [vmem:[#allocation2] sm:$0xf]  ;;  %v10782_v18 = vld [vmem:[#allocation2 + $0xc] sm:$0xf0]  ;;  %v7959_v24 = vor.u32 %v10882_v15, %v7958_v14  ;;  %2026 = vmatpush.bf16.msra.mxu1 %v7703_v19  ;;  %v10774_v19 = vld [vmem:[%s12008_s19 + $0xc] sm:$0xf] }
  0x41   : > { %v7686_v21 = vld [vmem:[#allocation2 + $0x100] sm:$0xf]  ;;  %v10814_v22 = vld [vmem:[#allocation2 + $0x10c] sm:$0xf0]  ;;  %v7559_v31 = vor.u32 %v10782_v18, %v7558_v17  ;;  %2040 = vmatpush.bf16.msra.mxu2 %v7831_v20  ;;  %v7643_v17 = vor.u32 %v10800_v4, %v7640_v5  ;;  %v7540_v20 = vld [vmem:[%s12008_s19 + $0x24] sm:$0xf0] }
  0x42   : > { %v7814_v23 = vld [vmem:[#allocation2 + $0x200] sm:$0xf]  ;;  %v10846_v25 = vld [vmem:[#allocation2 + $0x20c] sm:$0xf0]  ;;  %v7687_v35 = vor.u32 %v10814_v22, %v7686_v21  ;;  %2054 = vmatpush.bf16.msra.mxu3 %v7959_v24  ;;  %v10796_v21 = vld [vmem:[#allocation2 + $0x84] sm:$0xf] }
  0x43   : > { %v7942_v26 = vld [vmem:[#allocation2 + $0x300] sm:$0xf]  ;;  %v10878_v27 = vld [vmem:[#allocation2 + $0x30c] sm:$0xf0]  ;;  %v7815_v36 = vor.u32 %v10846_v25, %v7814_v23  ;;  %2013 = vmatpush.bf16.msra.mxu0 %v7559_v31  ;;  %v7624_v22 = vld [vmem:[#allocation2 + $0x90] sm:$0xf0]  ;;  %v12027_v23 = vor.u32 %v10774_v19, %v7540_v20 }
  0x44   : > { %v8182_v28 = vld [vmem:[#allocation2 + $0x4e0] sm:$0xf]  ;;  %v10938_v29 = vld [vmem:[#allocation2 + $0x4ec] sm:$0xf0]  ;;  %v7943_v39 = vor.u32 %v10878_v27, %v7942_v26  ;;  %2027 = vmatpush.bf16.msra.mxu1 %v7687_v35  ;;  %v7608_v35 = vld [vmem:[#allocation2 + $0x70] sm:$0xf0] }
  0x45   : > { %v8310_v30 = vld [vmem:[#allocation2 + $0x5e0] sm:$0xf]  ;;  %v10970_v32 = vld [vmem:[#allocation2 + $0x5ec] sm:$0xf0]  ;;  %v8183_v40 = vor.u32 %v10938_v29, %v8182_v28  ;;  %2041 = vmatpush.bf16.msra.mxu2 %v7815_v36  ;;  %v8184_v19 = vld [vmem:[#allocation2 + $0x4f0] sm:$0xf0] }
  0x46   : > { %v8438_v33 = vld [vmem:[#allocation2 + $0x6e0] sm:$0xf]  ;;  %v11002_v34 = vld [vmem:[#allocation2 + $0x6ec] sm:$0xf0]  ;;  %v8311_v43 = vor.u32 %v10970_v32, %v8310_v30  ;;  %2055 = vmatpush.bf16.msra.mxu3 %v7943_v39  ;;  %v7627_v30 = vor.u32 %v10796_v21, %v7624_v22 }
  0x47   : > { %v8166_v41 = vld [vmem:[#allocation2 + $0x4c0] sm:$0xf]  ;;  %v10934_v42 = vld [vmem:[#allocation2 + $0x4cc] sm:$0xf0]  ;;  %v8439_v44 = vor.u32 %v11002_v34, %v8438_v33  ;;  %2062 = vmatpush.bf16.msrb.mxu0 %v8183_v40  ;;  %v10792_v34 = vld [vmem:[#allocation2 + $0x64] sm:$0xf] }
  0x48   : > { %v8294_v45 = vld [vmem:[#allocation2 + $0x5c0] sm:$0xf]  ;;  %v10966_v46 = vld [vmem:[#allocation2 + $0x5cc] sm:$0xf0]  ;;  %v8167_v55 = vor.u32 %v10934_v42, %v8166_v41  ;;  %2076 = vmatpush.bf16.msrb.mxu1 %v8311_v43  ;;  %2042 = vmatmul.bf16.vlgmr.msra.gmra.mxu2 %v12016_v0  ;;  %v7611_v42 = vor.u32 %v10792_v34, %v7608_v35  ;;  %v7784_v34 = vld [vmem:[#allocation2 + $0x1d0] sm:$0xf0] }
  0x49   : > { %v8422_v47 = vld [vmem:[#allocation2 + $0x6c0] sm:$0xf]  ;;  %v10998_v49 = vld [vmem:[#allocation2 + $0x6cc] sm:$0xf0]  ;;  %2090 = vmatpush.bf16.msrb.mxu2 %v8439_v44  ;;  %v8295_v59 = vor.u32 %v10966_v46, %v8294_v45  ;;  %2056 = vmatmul.bf16.vlgmr.msra.gmra.mxu3 %v12027_v23  ;;  %v10788_v46 = vld [vmem:[#allocation2 + $0x44] sm:$0xf] }
  0x4a   : > { %v7530_v52 = vld [vmem:[%s12008_s19] sm:$0xf]  ;;  %v8423_v60 = vor.u32 %v10998_v49, %v8422_v47  ;;  %v10930_v61 = vld [vmem:[#allocation2 + $0x4ac] sm:$0xf0]  ;;  %2104 = vmatpush.bf16.msrb.mxu3 %v7675_v48  ;;  %v7592_v47 = vld [vmem:[#allocation2 + $0x50] sm:$0xf0] }
  0x4b   : > { %v8150_v56 = vld [vmem:[#allocation2 + $0x4a0] sm:$0xf]  ;;  %v12013_v57 = vor.u32 %v10776_v53, %v7530_v52  ;;  %v10962_v63 = vld [vmem:[#allocation2 + $0x5ac] sm:$0xf0]  ;;  %2063 = vmatpush.bf16.msrb.mxu0 %v8167_v55  ;;  %v7595_v54 = vor.u32 %v10788_v46, %v7592_v47  ;;  %v10868_v35 = vld [vmem:[#allocation2 + $0x2c4] sm:$0xf] }
  0x4c   : > { %v8278_v62 = vld [vmem:[#allocation2 + $0x5a0] sm:$0xf]  ;;  %v10994_v3 = vld [vmem:[#allocation2 + $0x6ac] sm:$0xf0]  ;;  %v8151_v8 = vor.u32 %v10930_v61, %v8150_v56  ;;  %2077 = vmatpush.bf16.msrb.mxu1 %v8295_v59  ;;  %v10784_v59 = vld [vmem:[#allocation2 + $0x24] sm:$0xf] }
  0x4d   : > { %v8406_v2 = vld [vmem:[#allocation2 + $0x6a0] sm:$0xf]  ;;  %2014 = vmatmul.bf16.vlgmr.msra.gmra.mxu0 %v12013_v57  ;;  %v10926_v10 = vld [vmem:[#allocation2 + $0x48c] sm:$0xf0]  ;;  %2091 = vmatpush.bf16.msrb.mxu2 %v8423_v60  ;;  %v8279_v12 = vor.u32 %v10962_v63, %v8278_v62  ;;  %v7576_v60 = vld [vmem:[#allocation2 + $0x30] sm:$0xf0] }
  0x4e   : > { %v7532_v7 = vld [vmem:[%s12008_s19 + $0x1c] sm:$0xf0]  ;;  %v8407_v13 = vor.u32 %v10994_v3, %v8406_v2  ;;  %v10958_v15 = vld [vmem:[#allocation2 + $0x58c] sm:$0xf0]  ;;  %2105 = vmatpush.bf16.msrb.mxu3 %v7659_v1 }
  0x4f   : > { %v8134_v9 = vld [vmem:[#allocation2 + $0x480] sm:$0xf]  ;;  %v12022_v11 = vor.u32 %v10773_v6, %v7532_v7  ;;  %v10990_v18 = vld [vmem:[#allocation2 + $0x68c] sm:$0xf0]  ;;  %2064 = vmatpush.bf16.msrb.mxu0 %v8151_v8  ;;  %v10780_v7 = vld [vmem:[#allocation2 + $0x4] sm:$0xf]  ;;  %v7579_v8 = vor.u32 %v10784_v59, %v7576_v60 }
  0x50   : > { %v8262_v14 = vld [vmem:[#allocation2 + $0x580] sm:$0xf]  ;;  %v8135_v24 = vor.u32 %v10926_v10, %v8134_v9  ;;  %2078 = vmatpush.bf16.msrb.mxu1 %v8279_v12  ;;  %v10922_v28 = vld [vmem:[#allocation2 + $0x46c] sm:$0xf0]  ;;  %v7560_v9 = vld [vmem:[#allocation2 + $0x10] sm:$0xf0] }
  0x51   : > { %v8390_v16 = vld [vmem:[#allocation2 + $0x680] sm:$0xf]  ;;  %2028 = vmatmul.bf16.vlgmr.msra.gmra.mxu1 %v12022_v11  ;;  %2092 = vmatpush.bf16.msrb.mxu2 %v8407_v13  ;;  %v8263_v25 = vor.u32 %v10958_v15, %v8262_v14  ;;  %v10954_v31 = vld [vmem:[#allocation2 + $0x56c] sm:$0xf0]  ;;  %v10840_v10 = vld [vmem:[#allocation2 + $0x1e4] sm:$0xf] }
  0x52   : > { %v8391_v26 = vor.u32 %v10990_v18, %v8390_v16  ;;  %v8118_v27 = vld [vmem:[#allocation2 + $0x460] sm:$0xf]  ;;  %2106 = vmatpush.bf16.msrb.mxu3 %v7643_v17  ;;  %v10986_v33 = vld [vmem:[#allocation2 + $0x66c] sm:$0xf0]  ;;  %v7800_v12 = vld [vmem:[#allocation2 + $0x1f0] sm:$0xf0] }
  0x53   : > { %v8246_v29 = vld [vmem:[#allocation2 + $0x560] sm:$0xf]  ;;  %2065 = vmatpush.bf16.msrb.mxu0 %v8135_v24  ;;  %v8119_v36 = vor.u32 %v10922_v28, %v8118_v27  ;;  %v10918_v40 = vld [vmem:[#allocation2 + $0x44c] sm:$0xf0]  ;;  %v10872_v13 = vld [vmem:[#allocation2 + $0x2e4] sm:$0xf]  ;;  %v7803_v27 = vor.u32 %v10840_v10, %v7800_v12 }
  0x54   : > { %v8374_v32 = vld [vmem:[#allocation2 + $0x660] sm:$0xf]  ;;  %2079 = vmatpush.bf16.msrb.mxu1 %v8263_v25  ;;  %v8247_v37 = vor.u32 %v10954_v31, %v8246_v29  ;;  %v10950_v43 = vld [vmem:[#allocation2 + $0x54c] sm:$0xf0]  ;;  %v7928_v14 = vld [vmem:[#allocation2 + $0x2f0] sm:$0xf0] }
  0x55   : > { %2093 = vmatpush.bf16.msrb.mxu2 %v8391_v26  ;;  %v8375_v38 = vor.u32 %v10986_v33, %v8374_v32  ;;  %v8102_v39 = vld [vmem:[#allocation2 + $0x440] sm:$0xf]  ;;  %v10982_v45 = vld [vmem:[#allocation2 + $0x64c] sm:$0xf0]  ;;  %v10904_v15 = vld [vmem:[#allocation2 + $0x3e4] sm:$0xf]  ;;  %v7563_v26 = vor.u32 %v10780_v7, %v7560_v9  ;;  %v7931_v31 = vor.u32 %v10872_v13, %v7928_v14 }
  0x56   : > { %v8230_v41 = vld [vmem:[#allocation2 + $0x540] sm:$0xf]  ;;  %2107 = vmatpush.bf16.msrb.mxu3 %v7627_v30  ;;  %v8103_v48 = vor.u32 %v10918_v40, %v8102_v39  ;;  %v10914_v52 = vld [vmem:[#allocation2 + $0x42c] sm:$0xf0]  ;;  %v8056_v17 = vld [vmem:[#allocation2 + $0x3f0] sm:$0xf0] }
  0x57   : > { %v8358_v44 = vld [vmem:[#allocation2 + $0x640] sm:$0xf]  ;;  %2066 = vmatpush.bf16.msrb.mxu0 %v8119_v36  ;;  %v8231_v49 = vor.u32 %v10950_v43, %v8230_v41  ;;  %v10946_v55 = vld [vmem:[#allocation2 + $0x52c] sm:$0xf0]  ;;  %v10936_v18 = vld [vmem:[#allocation2 + $0x4e4] sm:$0xf]  ;;  %v8059_v32 = vor.u32 %v10904_v15, %v8056_v17 }
  0x58   : > { %2080 = vmatpush.bf16.msrb.mxu1 %v8247_v37  ;;  %v8359_v50 = vor.u32 %v10982_v45, %v8358_v44  ;;  %v8086_v51 = vld [vmem:[#allocation2 + $0x420] sm:$0xf]  ;;  %v10978_v58 = vld [vmem:[#allocation2 + $0x62c] sm:$0xf0]  ;;  %v10778_v24 = vld [vmem:[%s12008_s19 + $0x28] sm:$0xf0]  ;;  %v8187_v36 = vor.u32 %v10936_v18, %v8184_v19 }
  0x59   : > { %2094 = vmatpush.bf16.msrb.mxu2 %v8375_v38  ;;  %v8214_v53 = vld [vmem:[#allocation2 + $0x520] sm:$0xf]  ;;  %v8087_v62 = vor.u32 %v10914_v52, %v8086_v51  ;;  %v10910_v63 = vld [vmem:[#allocation2 + $0x40c] sm:$0xf0]  ;;  %v7554_v25 = vld [vmem:[%s12008_s19 + $0x18] sm:$0xf] }
  0x5a   : > { %2108 = vmatpush.bf16.msrb.mxu3 %v7611_v42  ;;  %v8342_v56 = vld [vmem:[#allocation2 + $0x620] sm:$0xf]  ;;  %v10942_v2 = vld [vmem:[#allocation2 + $0x50c] sm:$0xf0]  ;;  %v8215_v3 = vor.u32 %v10946_v55, %v8214_v53  ;;  %v10779_v28 = vld [vmem:[%s12008_s19 + $0x30] sm:$0xf0] }
  0x5b   : > { %v8070_v61 = vld [vmem:[#allocation2 + $0x400] sm:$0xf]  ;;  %2067 = vmatpush.bf16.msrb.mxu0 %v8103_v48  ;;  %v8343_v4 = vor.u32 %v10978_v58, %v8342_v56  ;;  %v10974_v6 = vld [vmem:[#allocation2 + $0x60c] sm:$0xf0]  ;;  %v10775_v29 = vld [vmem:[%s12008_s19 + $0x14] sm:$0xf]  ;;  %v12038_v41 = vor.u32 %v10779_v28, %v7554_v25 }
  0x5c   : > { %v8198_v1 = vld [vmem:[#allocation2 + $0x500] sm:$0xf]  ;;  %2081 = vmatpush.bf16.msrb.mxu1 %v8231_v49  ;;  %v8071_v16 = vor.u32 %v10910_v63, %v8070_v61  ;;  %v7546_v22 = vld [vmem:[%s12008_s19 + $0x10] sm:$0xf]  ;;  %v10836_v33 = vld [vmem:[#allocation2 + $0x1c4] sm:$0xf] }
  0x5d   : > { %2095 = vmatpush.bf16.msrb.mxu2 %v8359_v50  ;;  %v8326_v5 = vld [vmem:[#allocation2 + $0x600] sm:$0xf]  ;;  %v8199_v20 = vor.u32 %v10942_v2, %v8198_v1  ;;  %v7548_v30 = vld [vmem:[%s12008_s19 + $0x2c] sm:$0xf0]  ;;  %v12036_v37 = vor.u32 %v10778_v24, %v7546_v22  ;;  %v7912_v38 = vld [vmem:[#allocation2 + $0x2d0] sm:$0xf0]  ;;  %v7787_v45 = vor.u32 %v10836_v33, %v7784_v34 }
  0x5e   : > { %2109 = vmatpush.bf16.msrb.mxu3 %v7595_v54  ;;  %v8327_v21 = vor.u32 %v10974_v6, %v8326_v5  ;;  %v10900_v39 = vld [vmem:[#allocation2 + $0x3c4] sm:$0xf]  ;;  %v8040_v40 = vld [vmem:[#allocation2 + $0x3d0] sm:$0xf0]  ;;  %v12040_v42 = vor.u32 %v10775_v29, %v7548_v30  ;;  %v7915_v46 = vor.u32 %v10868_v35, %v7912_v38  ;;  %s11581_s19 = smul.u32 56, %s13505_s8 }
  0x5f   : > { %2068 = vmatpush.bf16.msrb.mxu0 %v8087_v62  ;;  %v10932_v43 = vld [vmem:[#allocation2 + $0x4c4] sm:$0xf]  ;;  %v8168_v44 = vld [vmem:[#allocation2 + $0x4d0] sm:$0xf0]  ;;  %v8043_v47 = vor.u32 %v10900_v39, %v8040_v40 }
  0x60   : > { %2082 = vmatpush.bf16.msrb.mxu1 %v8215_v3  ;;  %v10832_v48 = vld [vmem:[#allocation2 + $0x1a4] sm:$0xf]  ;;  %v7768_v49 = vld [vmem:[#allocation2 + $0x1b0] sm:$0xf0]  ;;  %v8171_v51 = vor.u32 %v10932_v43, %v8168_v44  ;;  %s13446_s27 = scalar_lea.vmem %s13503_s24, %s11581_s19 }
  0x61   : > { %2096 = vmatpush.bf16.msrb.mxu2 %v8343_v4  ;;  %v10864_v50 = vld [vmem:[#allocation2 + $0x2a4] sm:$0xf]  ;;  %v7896_v52 = vld [vmem:[#allocation2 + $0x2b0] sm:$0xf0]  ;;  %v7771_v58 = vor.u32 %v10832_v48, %v7768_v49 }
  0x62   : > { %2110 = vmatpush.bf16.msrb.mxu3 %v7579_v8  ;;  %v10896_v53 = vld [vmem:[#allocation2 + $0x3a4] sm:$0xf]  ;;  %v8024_v54 = vld [vmem:[#allocation2 + $0x3b0] sm:$0xf0]  ;;  %v7899_v59 = vor.u32 %v10864_v50, %v7896_v52 }
  0x63   : > { %2069 = vmatpush.bf16.msrb.mxu0 %v8071_v16  ;;  %v10928_v55 = vld [vmem:[#allocation2 + $0x4a4] sm:$0xf]  ;;  %v8152_v56 = vld [vmem:[#allocation2 + $0x4b0] sm:$0xf0]  ;;  %v8027_v60 = vor.u32 %v10896_v53, %v8024_v54 }
  0x64   : > { %2083 = vmatpush.bf16.msrb.mxu1 %v8199_v20  ;;  %v10828_v61 = vld [vmem:[#allocation2 + $0x184] sm:$0xf]  ;;  %v7752_v62 = vld [vmem:[#allocation2 + $0x190] sm:$0xf0]  ;;  %v8155_v1 = vor.u32 %v10928_v55, %v8152_v56 }
  0x65   : > { %2097 = vmatpush.bf16.msrb.mxu2 %v8327_v21  ;;  %v10860_v63 = vld [vmem:[#allocation2 + $0x284] sm:$0xf]  ;;  %v7880_v2 = vld [vmem:[#allocation2 + $0x290] sm:$0xf0]  ;;  %v7755_v7 = vor.u32 %v10828_v61, %v7752_v62 }
  0x66   : > { %2111 = vmatpush.bf16.msrb.mxu3 %v7563_v26  ;;  %2070 = vmatmul.bf16.vlgmr.msrb.gmra.mxu0 %v12036_v37  ;;  %v10892_v3 = vld [vmem:[#allocation2 + $0x384] sm:$0xf]  ;;  %v8008_v4 = vld [vmem:[#allocation2 + $0x390] sm:$0xf0]  ;;  %v7883_v8 = vor.u32 %v10860_v63, %v7880_v2 }
  0x67   : > { %2118 = vmatpush.bf16.msra.mxu0 %v7803_v27  ;;  %2084 = vmatmul.bf16.vlgmr.msrb.gmra.mxu1 %v12040_v42  ;;  %v10924_v5 = vld [vmem:[#allocation2 + $0x484] sm:$0xf]  ;;  %v8136_v6 = vld [vmem:[#allocation2 + $0x490] sm:$0xf0]  ;;  %v8011_v9 = vor.u32 %v10892_v3, %v8008_v4  ;;  %v7678_v3 = vld [vmem:[#allocation2 + $0xe8] sm:$0xf] }
  0x68   : > { %2132 = vmatpush.bf16.msra.mxu1 %v7931_v31  ;;  %2098 = vmatmul.bf16.vlgmr.msrb.gmra.mxu2 %v12038_v41  ;;  %v10824_v10 = vld [vmem:[#allocation2 + $0x164] sm:$0xf]  ;;  %v7736_v12 = vld [vmem:[#allocation2 + $0x170] sm:$0xf0]  ;;  %v8139_v14 = vor.u32 %v10924_v5, %v8136_v6  ;;  %v10811_v4 = vld [vmem:[#allocation2 + $0xf4] sm:$0xf0] }
  0x69   : > { %2146 = vmatpush.bf16.msra.mxu2 %v8059_v32  ;;  %2112 = vmatmul.bf16.vlgmr.msrb.gmra.mxu3 %v12013_v57  ;;  %v10856_v13 = vld [vmem:[#allocation2 + $0x264] sm:$0xf]  ;;  %v7864_v15 = vld [vmem:[#allocation2 + $0x270] sm:$0xf0]  ;;  %v7739_v20 = vor.u32 %v10824_v10, %v7736_v12 }
  0x6a   : > { %2160 = vmatpush.bf16.msra.mxu3 %v8187_v36  ;;  %v10888_v16 = vld [vmem:[#allocation2 + $0x364] sm:$0xf]  ;;  %v7992_v17 = vld [vmem:[#allocation2 + $0x370] sm:$0xf0]  ;;  %v7867_v21 = vor.u32 %v10856_v13, %v7864_v15  ;;  %v7679_v13 = vor.u32 %v10811_v4, %v7678_v3 }
  0x6b   : > { %2119 = vmatpush.bf16.msra.mxu0 %v7787_v45  ;;  %v10920_v18 = vld [vmem:[#allocation2 + $0x464] sm:$0xf]  ;;  %v8120_v19 = vld [vmem:[#allocation2 + $0x470] sm:$0xf0]  ;;  %v7995_v22 = vor.u32 %v10888_v16, %v7992_v17 }
  0x6c   : > { %2133 = vmatpush.bf16.msra.mxu1 %v7915_v46  ;;  %v10820_v24 = vld [vmem:[#allocation2 + $0x144] sm:$0xf]  ;;  %v7720_v25 = vld [vmem:[#allocation2 + $0x150] sm:$0xf0]  ;;  %v8123_v27 = vor.u32 %v10920_v18, %v8120_v19  ;;  %v7662_v19 = vld [vmem:[#allocation2 + $0xc8] sm:$0xf] }
  0x6d   : > { %2147 = vmatpush.bf16.msra.mxu2 %v8043_v47  ;;  %v10852_v26 = vld [vmem:[#allocation2 + $0x244] sm:$0xf]  ;;  %v7848_v28 = vld [vmem:[#allocation2 + $0x250] sm:$0xf0]  ;;  %v7723_v33 = vor.u32 %v10820_v24, %v7720_v25 }
  0x6e   : > { %2161 = vmatpush.bf16.msra.mxu3 %v8171_v51  ;;  %v10884_v29 = vld [vmem:[#allocation2 + $0x344] sm:$0xf]  ;;  %v7976_v30 = vld [vmem:[#allocation2 + $0x350] sm:$0xf0]  ;;  %v7851_v34 = vor.u32 %v10852_v26, %v7848_v28 }
  0x6f   : > { %2120 = vmatpush.bf16.msra.mxu0 %v7771_v58  ;;  %v10916_v31 = vld [vmem:[#allocation2 + $0x444] sm:$0xf]  ;;  %v8104_v32 = vld [vmem:[#allocation2 + $0x450] sm:$0xf0]  ;;  %v7979_v35 = vor.u32 %v10884_v29, %v7976_v30 }
  0x70   : > { %2134 = vmatpush.bf16.msra.mxu1 %v7899_v59  ;;  %v10816_v36 = vld [vmem:[#allocation2 + $0x124] sm:$0xf]  ;;  %v7704_v38 = vld [vmem:[#allocation2 + $0x130] sm:$0xf0]  ;;  %v8107_v40 = vor.u32 %v10916_v31, %v8104_v32  ;;  %v7646_v32 = vld [vmem:[#allocation2 + $0xa8] sm:$0xf] }
  0x71   : > { %2148 = vmatpush.bf16.msra.mxu2 %v8027_v60  ;;  %v10848_v39 = vld [vmem:[#allocation2 + $0x224] sm:$0xf]  ;;  %v7832_v43 = vld [vmem:[#allocation2 + $0x230] sm:$0xf0]  ;;  %v7707_v48 = vor.u32 %v10816_v36, %v7704_v38 }
  0x72   : > { %2162 = vmatpush.bf16.msra.mxu3 %v8155_v1  ;;  %v10880_v44 = vld [vmem:[#allocation2 + $0x324] sm:$0xf]  ;;  %v7960_v45 = vld [vmem:[#allocation2 + $0x330] sm:$0xf0]  ;;  %v7835_v51 = vor.u32 %v10848_v39, %v7832_v43 }
  0x73   : > { %2121 = vmatpush.bf16.msra.mxu0 %v7755_v7  ;;  %v10912_v46 = vld [vmem:[#allocation2 + $0x424] sm:$0xf]  ;;  %v8088_v47 = vld [vmem:[#allocation2 + $0x430] sm:$0xf0]  ;;  %v7963_v52 = vor.u32 %v10880_v44, %v7960_v45  ;;  %v7806_v7 = vld [vmem:[#allocation2 + $0x1e8] sm:$0xf] }
  0x74   : > { %2135 = vmatpush.bf16.msra.mxu1 %v7883_v8  ;;  %v10812_v49 = vld [vmem:[#allocation2 + $0x104] sm:$0xf]  ;;  %v7688_v50 = vld [vmem:[#allocation2 + $0x110] sm:$0xf0]  ;;  %v8091_v56 = vor.u32 %v10912_v46, %v8088_v47  ;;  %v10843_v8 = vld [vmem:[#allocation2 + $0x1f4] sm:$0xf0] }
  0x75   : > { %2149 = vmatpush.bf16.msra.mxu2 %v8011_v9  ;;  %v10844_v53 = vld [vmem:[#allocation2 + $0x204] sm:$0xf]  ;;  %v7816_v54 = vld [vmem:[#allocation2 + $0x210] sm:$0xf0]  ;;  %v7691_v1 = vor.u32 %v10812_v49, %v7688_v50  ;;  %v7807_v17 = vor.u32 %v10843_v8, %v7806_v7  ;;  %v7630_v47 = vld [vmem:[#allocation2 + $0x88] sm:$0xf] }
  0x76   : > { %2163 = vmatpush.bf16.msra.mxu3 %v8139_v14  ;;  %v10876_v55 = vld [vmem:[#allocation2 + $0x304] sm:$0xf]  ;;  %v7944_v58 = vld [vmem:[#allocation2 + $0x310] sm:$0xf0]  ;;  %v7819_v5 = vor.u32 %v10844_v53, %v7816_v54  ;;  %v7758_v49 = vld [vmem:[#allocation2 + $0x188] sm:$0xf] }
  0x77   : > { %2122 = vmatpush.bf16.msra.mxu0 %v7739_v20  ;;  %v10908_v59 = vld [vmem:[#allocation2 + $0x404] sm:$0xf]  ;;  %v8072_v60 = vld [vmem:[#allocation2 + $0x410] sm:$0xf0]  ;;  %v7947_v6 = vor.u32 %v10876_v55, %v7944_v58  ;;  %v10807_v20 = vld [vmem:[#allocation2 + $0xd4] sm:$0xf0] }
  0x78   : > { %2136 = vmatpush.bf16.msra.mxu1 %v7867_v21  ;;  %v10968_v61 = vld [vmem:[#allocation2 + $0x5e4] sm:$0xf]  ;;  %v8312_v62 = vld [vmem:[#allocation2 + $0x5f0] sm:$0xf0]  ;;  %v8075_v9 = vor.u32 %v10908_v59, %v8072_v60  ;;  %v7790_v21 = vld [vmem:[#allocation2 + $0x1c8] sm:$0xf]  ;;  %v7663_v26 = vor.u32 %v10807_v20, %v7662_v19 }
  0x79   : > { %2150 = vmatpush.bf16.msra.mxu2 %v7995_v22  ;;  %v11000_v63 = vld [vmem:[#allocation2 + $0x6e4] sm:$0xf]  ;;  %v8440_v2 = vld [vmem:[#allocation2 + $0x6f0] sm:$0xf0]  ;;  %v8315_v10 = vor.u32 %v10968_v61, %v8312_v62  ;;  %v10839_v22 = vld [vmem:[#allocation2 + $0x1d4] sm:$0xf0] }
  0x7a   : > { %2164 = vmatpush.bf16.msra.mxu3 %v8123_v27  ;;  %v8443_v12 = vor.u32 %v11000_v63, %v8440_v2  ;;  %v10964_v14 = vld [vmem:[#allocation2 + $0x5c4] sm:$0xf]  ;;  %v8296_v15 = vld [vmem:[#allocation2 + $0x5d0] sm:$0xf0]  ;;  %v7791_v30 = vor.u32 %v10839_v22, %v7790_v21  ;;  %v10831_v50 = vld [vmem:[#allocation2 + $0x194] sm:$0xf0] }
  0x7b   : > { %2123 = vmatpush.bf16.msra.mxu0 %v7723_v33  ;;  %v10996_v16 = vld [vmem:[#allocation2 + $0x6c4] sm:$0xf]  ;;  %v8424_v18 = vld [vmem:[#allocation2 + $0x6d0] sm:$0xf0]  ;;  %v8299_v24 = vor.u32 %v10964_v14, %v8296_v15  ;;  %v10803_v33 = vld [vmem:[#allocation2 + $0xb4] sm:$0xf0]  ;;  %v7759_v58 = vor.u32 %v10831_v50, %v7758_v49 }
  0x7c   : > { %2137 = vmatpush.bf16.msra.mxu1 %v7851_v34  ;;  %v8427_v25 = vor.u32 %v10996_v16, %v8424_v18  ;;  %v10960_v27 = vld [vmem:[#allocation2 + $0x5a4] sm:$0xf]  ;;  %v8280_v28 = vld [vmem:[#allocation2 + $0x5b0] sm:$0xf0]  ;;  %v7774_v34 = vld [vmem:[#allocation2 + $0x1a8] sm:$0xf]  ;;  %v7647_v39 = vor.u32 %v10803_v33, %v7646_v32 }
  0x7d   : > { %2151 = vmatpush.bf16.msra.mxu2 %v7979_v35  ;;  %v10992_v29 = vld [vmem:[#allocation2 + $0x6a4] sm:$0xf]  ;;  %v8408_v31 = vld [vmem:[#allocation2 + $0x6b0] sm:$0xf0]  ;;  %v10835_v35 = vld [vmem:[#allocation2 + $0x1b4] sm:$0xf0]  ;;  %v8283_v36 = vor.u32 %v10960_v27, %v8280_v28 }
  0x7e   : > { %2165 = vmatpush.bf16.msra.mxu3 %v8107_v40  ;;  %v8411_v38 = vor.u32 %v10992_v29, %v8408_v31  ;;  %v10956_v40 = vld [vmem:[#allocation2 + $0x584] sm:$0xf]  ;;  %v8264_v43 = vld [vmem:[#allocation2 + $0x590] sm:$0xf0]  ;;  %v7775_v45 = vor.u32 %v10835_v35, %v7774_v34  ;;  %v7614_v60 = vld [vmem:[#allocation2 + $0x68] sm:$0xf] }
  0x7f   : > { %2124 = vmatpush.bf16.msra.mxu0 %v7707_v48  ;;  %v10988_v44 = vld [vmem:[#allocation2 + $0x684] sm:$0xf]  ;;  %v8392_v46 = vld [vmem:[#allocation2 + $0x690] sm:$0xf0]  ;;  %v10799_v48 = vld [vmem:[#allocation2 + $0x94] sm:$0xf0] }
  0x80   : > { %2138 = vmatpush.bf16.msra.mxu1 %v7835_v51  ;;  %v8267_v51 = vor.u32 %v10956_v40, %v8264_v43  ;;  %v7631_v53 = vor.u32 %v10799_v48, %v7630_v47  ;;  %v10952_v54 = vld [vmem:[#allocation2 + $0x564] sm:$0xf]  ;;  %v8248_v55 = vld [vmem:[#allocation2 + $0x570] sm:$0xf0]  ;;  %v10795_v61 = vld [vmem:[#allocation2 + $0x74] sm:$0xf0] }
  0x81   : > { %2152 = vmatpush.bf16.msra.mxu2 %v7963_v52  ;;  %v8395_v52 = vor.u32 %v10988_v44, %v8392_v46  ;;  %v8376_v59 = vld [vmem:[#allocation2 + $0x670] sm:$0xf0]  ;;  %v7742_v62 = vld [vmem:[#allocation2 + $0x168] sm:$0xf]  ;;  %v10827_v63 = vld [vmem:[#allocation2 + $0x174] sm:$0xf0]  ;;  %v7615_v3 = vor.u32 %v10795_v61, %v7614_v60 }
  0x82   : > { %2166 = vmatpush.bf16.msra.mxu3 %v8091_v56  ;;  %v10984_v56 = vld [vmem:[#allocation2 + $0x664] sm:$0xf]  ;;  %v7743_v7 = vor.u32 %v10827_v63, %v7742_v62  ;;  %v8360_v8 = vld [vmem:[#allocation2 + $0x650] sm:$0xf0]  ;;  %v7582_v22 = vld [vmem:[#allocation2 + $0x28] sm:$0xf] }
  0x83   : > { %2125 = vmatpush.bf16.msra.mxu0 %v7691_v1  ;;  %v8251_v1 = vor.u32 %v10952_v54, %v8248_v55  ;;  %v8379_v2 = vor.u32 %v10984_v56, %v8376_v59  ;;  %v10948_v4 = vld [vmem:[#allocation2 + $0x544] sm:$0xf]  ;;  %v8216_v18 = vld [vmem:[#allocation2 + $0x530] sm:$0xf0]  ;;  %v7566_v34 = vld [vmem:[#allocation2 + $0x8] sm:$0xf] }
  0x84   : > { %2139 = vmatpush.bf16.msra.mxu1 %v7819_v5  ;;  %v8232_v5 = vld [vmem:[#allocation2 + $0x550] sm:$0xf0]  ;;  %v10976_v19 = vld [vmem:[#allocation2 + $0x624] sm:$0xf]  ;;  %v7934_v40 = vld [vmem:[#allocation2 + $0x2e8] sm:$0xf] }
  0x85   : > { %2153 = vmatpush.bf16.msra.mxu2 %v7947_v6  ;;  %v10980_v6 = vld [vmem:[#allocation2 + $0x644] sm:$0xf]  ;;  %v8235_v14 = vor.u32 %v10948_v4, %v8232_v5  ;;  %v8344_v21 = vld [vmem:[#allocation2 + $0x630] sm:$0xf0]  ;;  %v10875_v43 = vld [vmem:[#allocation2 + $0x2f4] sm:$0xf0] }
  0x86   : > { %2167 = vmatpush.bf16.msra.mxu3 %v8075_v9  ;;  %2126 = vmatmul.bf16.vlgmr.msra.gmra.mxu0 %v12022_v11  ;;  %v7598_v9 = vld [vmem:[#allocation2 + $0x48] sm:$0xf]  ;;  %v8363_v15 = vor.u32 %v10980_v6, %v8360_v8  ;;  %v10940_v28 = vld [vmem:[#allocation2 + $0x504] sm:$0xf]  ;;  %v8200_v29 = vld [vmem:[#allocation2 + $0x510] sm:$0xf0]  ;;  %v7935_v54 = vor.u32 %v10875_v43, %v7934_v40 }
  0x87   : > { %2174 = vmatpush.bf16.msrb.mxu0 %v8315_v10  ;;  %2140 = vmatmul.bf16.vlgmr.msra.gmra.mxu1 %v12016_v0  ;;  %v10791_v10 = vld [vmem:[#allocation2 + $0x54] sm:$0xf0]  ;;  %v10972_v32 = vld [vmem:[#allocation2 + $0x604] sm:$0xf]  ;;  %v8328_v33 = vld [vmem:[#allocation2 + $0x610] sm:$0xf0] }
  0x88   : > { %2188 = vmatpush.bf16.msrb.mxu1 %v8443_v12  ;;  %2154 = vmatmul.bf16.vlgmr.msra.gmra.mxu2 %v12027_v23  ;;  %v7726_v12 = vld [vmem:[#allocation2 + $0x148] sm:$0xf]  ;;  %v7599_v16 = vor.u32 %v10791_v10, %v7598_v9  ;;  %v10907_v46 = vld [vmem:[#allocation2 + $0x3f4] sm:$0xf0]  ;;  %v8331_v49 = vor.u32 %v10972_v32, %v8328_v33 }
  0x89   : > { %2202 = vmatpush.bf16.msrb.mxu2 %v7679_v13  ;;  %2168 = vmatmul.bf16.vlgmr.msra.gmra.mxu3 %v12036_v37  ;;  %v10823_v13 = vld [vmem:[#allocation2 + $0x154] sm:$0xf0]  ;;  %v8062_v44 = vld [vmem:[#allocation2 + $0x3e8] sm:$0xf] }
  0x8a   : > { %2216 = vmatpush.bf16.msrb.mxu3 %v7807_v17  ;;  %v10944_v17 = vld [vmem:[#allocation2 + $0x524] sm:$0xf]  ;;  %v7727_v20 = vor.u32 %v10823_v13, %v7726_v12  ;;  %v8190_v47 = vld [vmem:[#allocation2 + $0x4e8] sm:$0xf]  ;;  %v10939_v48 = vld [vmem:[#allocation2 + $0x4f4] sm:$0xf0]  ;;  %v8063_v55 = vor.u32 %v10907_v46, %v8062_v44 }
  0x8b   : > { %2175 = vmatpush.bf16.msrb.mxu0 %v8299_v24  ;;  %v10787_v24 = vld [vmem:[#allocation2 + $0x34] sm:$0xf0]  ;;  %v8219_v27 = vor.u32 %v10944_v17, %v8216_v18  ;;  %v8191_v56 = vor.u32 %v10939_v48, %v8190_v47  ;;  %v8046_v60 = vld [vmem:[#allocation2 + $0x3c8] sm:$0xf] }
  0x8c   : > { %2189 = vmatpush.bf16.msrb.mxu1 %v8427_v25  ;;  %v7710_v25 = vld [vmem:[#allocation2 + $0x128] sm:$0xf]  ;;  %v7583_v31 = vor.u32 %v10787_v24, %v7582_v22  ;;  %v10871_v59 = vld [vmem:[#allocation2 + $0x2d4] sm:$0xf0] }
  0x8d   : > { %2203 = vmatpush.bf16.msrb.mxu2 %v7663_v26  ;;  %v10819_v26 = vld [vmem:[#allocation2 + $0x134] sm:$0xf0]  ;;  %v8174_v63 = vld [vmem:[#allocation2 + $0x4c8] sm:$0xf] }
  0x8e   : > { %2217 = vmatpush.bf16.msrb.mxu3 %v7791_v30  ;;  %v8347_v30 = vor.u32 %v10976_v19, %v8344_v21  ;;  %v7711_v35 = vor.u32 %v10819_v26, %v7710_v25  ;;  %v10903_v62 = vld [vmem:[#allocation2 + $0x3d4] sm:$0xf0]  ;;  %v8030_v9 = vld [vmem:[#allocation2 + $0x3a8] sm:$0xf] }
  0x8f   : > { %2176 = vmatpush.bf16.msrb.mxu0 %v8283_v36  ;;  %v10783_v36 = vld [vmem:[#allocation2 + $0x14] sm:$0xf0]  ;;  %v8047_v5 = vor.u32 %v10903_v62, %v8046_v60  ;;  %v8158_v13 = vld [vmem:[#allocation2 + $0x4a8] sm:$0xf] }
  0x90   : > { %2190 = vmatpush.bf16.msrb.mxu1 %v8411_v38  ;;  %v7694_v38 = vld [vmem:[#allocation2 + $0x108] sm:$0xf]  ;;  %v7567_v50 = vor.u32 %v10783_v36, %v7566_v34  ;;  %v10867_v8 = vld [vmem:[#allocation2 + $0x2b4] sm:$0xf0] }
  0x91   : > { %2204 = vmatpush.bf16.msrb.mxu2 %v7647_v39  ;;  %v10815_v39 = vld [vmem:[#allocation2 + $0x114] sm:$0xf0]  ;;  %v8014_v22 = vld [vmem:[#allocation2 + $0x388] sm:$0xf] }
  0x92   : > { %2218 = vmatpush.bf16.msrb.mxu3 %v7775_v45  ;;  %v8203_v45 = vor.u32 %v10940_v28, %v8200_v29  ;;  %v10899_v12 = vld [vmem:[#allocation2 + $0x3b4] sm:$0xf0]  ;;  %v8142_v26 = vld [vmem:[#allocation2 + $0x488] sm:$0xf] }
  0x93   : > { %2177 = vmatpush.bf16.msrb.mxu0 %v8267_v51  ;;  %v8318_v51 = vld [vmem:[#allocation2 + $0x5e8] sm:$0xf]  ;;  %v8031_v18 = vor.u32 %v10899_v12, %v8030_v9  ;;  %v10863_v21 = vld [vmem:[#allocation2 + $0x294] sm:$0xf0] }
  0x94   : > { %2191 = vmatpush.bf16.msrb.mxu1 %v8395_v52  ;;  %v10971_v52 = vld [vmem:[#allocation2 + $0x5f4] sm:$0xf0]  ;;  %v8270_v28 = vld [vmem:[#allocation2 + $0x588] sm:$0xf] }
  0x95   : > { %2205 = vmatpush.bf16.msrb.mxu2 %v7631_v53  ;;  %v7695_v53 = vor.u32 %v10815_v39, %v7694_v38  ;;  %v8319_v61 = vor.u32 %v10971_v52, %v8318_v51  ;;  %v10895_v25 = vld [vmem:[#allocation2 + $0x394] sm:$0xf0]  ;;  %v7870_v33 = vld [vmem:[#allocation2 + $0x268] sm:$0xf] }
  0x96   : > { %2219 = vmatpush.bf16.msrb.mxu3 %v7759_v58  ;;  %v7918_v58 = vld [vmem:[#allocation2 + $0x2c8] sm:$0xf]  ;;  %v10959_v29 = vld [vmem:[#allocation2 + $0x594] sm:$0xf0] }
  0x97   : > { %2178 = vmatpush.bf16.msrb.mxu0 %v8251_v1  ;;  %v10935_v1 = vld [vmem:[#allocation2 + $0x4d4] sm:$0xf0]  ;;  %v7919_v4 = vor.u32 %v10871_v59, %v7918_v58  ;;  %v8271_v36 = vor.u32 %v10959_v29, %v8270_v28  ;;  %v8126_v39 = vld [vmem:[#allocation2 + $0x468] sm:$0xf] }
  0x98   : > { %2192 = vmatpush.bf16.msrb.mxu1 %v8379_v2  ;;  %v8302_v2 = vld [vmem:[#allocation2 + $0x5c8] sm:$0xf]  ;;  %v8175_v6 = vor.u32 %v10935_v1, %v8174_v63  ;;  %v10859_v34 = vld [vmem:[#allocation2 + $0x274] sm:$0xf0] }
  0x99   : > { %2206 = vmatpush.bf16.msrb.mxu2 %v7615_v3  ;;  %v10967_v3 = vld [vmem:[#allocation2 + $0x5d4] sm:$0xf0]  ;;  %v8254_v43 = vld [vmem:[#allocation2 + $0x568] sm:$0xf] }
  0x9a   : > { %2220 = vmatpush.bf16.msrb.mxu3 %v7743_v7  ;;  %v7902_v7 = vld [vmem:[#allocation2 + $0x2a8] sm:$0xf]  ;;  %v8303_v10 = vor.u32 %v10967_v3, %v8302_v2  ;;  %v10891_v38 = vld [vmem:[#allocation2 + $0x374] sm:$0xf0] }
  0x9b   : > { %2179 = vmatpush.bf16.msrb.mxu0 %v8235_v14  ;;  %v10931_v14 = vld [vmem:[#allocation2 + $0x4b4] sm:$0xf0]  ;;  %v7903_v17 = vor.u32 %v10867_v8, %v7902_v7  ;;  %v7854_v48 = vld [vmem:[#allocation2 + $0x248] sm:$0xf] }
  0x9c   : > { %2193 = vmatpush.bf16.msrb.mxu1 %v8363_v15  ;;  %v8286_v15 = vld [vmem:[#allocation2 + $0x5a8] sm:$0xf]  ;;  %v8159_v19 = vor.u32 %v10931_v14, %v8158_v13  ;;  %v10923_v40 = vld [vmem:[#allocation2 + $0x474] sm:$0xf0] }
  0x9d   : > { %2207 = vmatpush.bf16.msrb.mxu2 %v7599_v16  ;;  %v10963_v16 = vld [vmem:[#allocation2 + $0x5b4] sm:$0xf0]  ;;  %v8127_v47 = vor.u32 %v10923_v40, %v8126_v39  ;;  %v7966_v63 = vld [vmem:[#allocation2 + $0x328] sm:$0xf]  ;;  %v10805_v39 = vld [vmem:[#allocation2 + $0xcc] sm:$0xf] }
  0x9e   : > { %2221 = vmatpush.bf16.msrb.mxu3 %v7727_v20  ;;  %v7886_v20 = vld [vmem:[#allocation2 + $0x288] sm:$0xf]  ;;  %v8287_v24 = vor.u32 %v10963_v16, %v8286_v15  ;;  %v10955_v44 = vld [vmem:[#allocation2 + $0x574] sm:$0xf0] }
  0x9f   : > { %2180 = vmatpush.bf16.msrb.mxu0 %v8219_v27  ;;  %v10927_v27 = vld [vmem:[#allocation2 + $0x494] sm:$0xf0]  ;;  %v8255_v51 = vor.u32 %v10955_v44, %v8254_v43  ;;  %v8094_v3 = vld [vmem:[#allocation2 + $0x428] sm:$0xf]  ;;  %v7664_v43 = vld [vmem:[#allocation2 + $0xd8] sm:$0xf0] }
  0xa0   : > { %2194 = vmatpush.bf16.msrb.mxu1 %v8347_v30  ;;  %v7887_v30 = vor.u32 %v10863_v21, %v7886_v20  ;;  %v8143_v32 = vor.u32 %v10927_v27, %v8142_v26  ;;  %v10887_v52 = vld [vmem:[#allocation2 + $0x354] sm:$0xf0]  ;;  %v7822_v8 = vld [vmem:[#allocation2 + $0x208] sm:$0xf]  ;;  %v10841_v26 = vld [vmem:[#allocation2 + $0x1ec] sm:$0xf] }
  0xa1   : > { %2208 = vmatpush.bf16.msrb.mxu2 %v7583_v31  ;;  %v8015_v31 = vor.u32 %v10895_v25, %v8014_v22  ;;  %v10851_v62 = vld [vmem:[#allocation2 + $0x234] sm:$0xf0]  ;;  %v7950_v13 = vld [vmem:[#allocation2 + $0x308] sm:$0xf]  ;;  %v10809_v22 = vld [vmem:[#allocation2 + $0xec] sm:$0xf] }
  0xa2   : > { %2222 = vmatpush.bf16.msrb.mxu3 %v7711_v35  ;;  %v7998_v35 = vld [vmem:[#allocation2 + $0x368] sm:$0xf]  ;;  %v10883_v2 = vld [vmem:[#allocation2 + $0x334] sm:$0xf0]  ;;  %v7680_v25 = vld [vmem:[#allocation2 + $0xf8] sm:$0xf0] }
  0xa3   : > { %2181 = vmatpush.bf16.msrb.mxu0 %v8203_v45  ;;  %v7871_v45 = vor.u32 %v10859_v34, %v7870_v33  ;;  %v7999_v46 = vor.u32 %v10891_v38, %v7998_v35  ;;  %v10847_v9 = vld [vmem:[#allocation2 + $0x214] sm:$0xf0]  ;;  %v8078_v15 = vld [vmem:[#allocation2 + $0x408] sm:$0xf]  ;;  %v7808_v27 = vld [vmem:[#allocation2 + $0x1f8] sm:$0xf0]  ;;  %v7683_v34 = vor.u32 %v10809_v22, %v7680_v25 }
  0xa4   : > { %2195 = vmatpush.bf16.msrb.mxu1 %v8331_v49  ;;  %v10855_v49 = vld [vmem:[#allocation2 + $0x254] sm:$0xf0]  ;;  %v8446_v20 = vld [vmem:[#allocation2 + $0x6e8] sm:$0xf]  ;;  %v7811_v35 = vor.u32 %v10841_v26, %v7808_v27  ;;  %v10837_v44 = vld [vmem:[#allocation2 + $0x1cc] sm:$0xf] }
  0xa5   : > { %2209 = vmatpush.bf16.msrb.mxu2 %v7567_v50  ;;  %v7982_v50 = vld [vmem:[#allocation2 + $0x348] sm:$0xf]  ;;  %v7855_v58 = vor.u32 %v10855_v49, %v7854_v48  ;;  %v10879_v14 = vld [vmem:[#allocation2 + $0x314] sm:$0xf0]  ;;  %v7667_v49 = vor.u32 %v10805_v39, %v7664_v43  ;;  %v7872_v22 = vld [vmem:[#allocation2 + $0x278] sm:$0xf0] }
  0xa6   : > { %2223 = vmatpush.bf16.msrb.mxu3 %v7695_v53  ;;  %2182 = vmatmul.bf16.vlgmr.msrb.gmra.mxu0 %v12040_v42  ;;  %v8110_v53 = vld [vmem:[#allocation2 + $0x448] sm:$0xf]  ;;  %v7983_v59 = vor.u32 %v10887_v52, %v7982_v50  ;;  %v11003_v21 = vld [vmem:[#allocation2 + $0x6f4] sm:$0xf0]  ;;  %v7951_v28 = vor.u32 %v10879_v14, %v7950_v13 }
  0xa7   : > { %2230 = vmatpush.bf16.msra.mxu0 %v7935_v54  ;;  %2196 = vmatmul.bf16.vlgmr.msrb.gmra.mxu1 %v12038_v41  ;;  %v10919_v54 = vld [vmem:[#allocation2 + $0x454] sm:$0xf0]  ;;  %v8447_v33 = vor.u32 %v11003_v21, %v8446_v20  ;;  %v8382_v14 = vld [vmem:[#allocation2 + $0x668] sm:$0xf]  ;;  %v7744_v20 = vld [vmem:[#allocation2 + $0x178] sm:$0xf0] }
  0xa8   : > { %2244 = vmatpush.bf16.msra.mxu1 %v8063_v55  ;;  %2210 = vmatmul.bf16.vlgmr.msrb.gmra.mxu2 %v12013_v57  ;;  %v8238_v55 = vld [vmem:[#allocation2 + $0x548] sm:$0xf]  ;;  %v8111_v60 = vor.u32 %v10919_v54, %v8110_v53  ;;  %v10999_v38 = vld [vmem:[#allocation2 + $0x6d4] sm:$0xf0]  ;;  %v10801_v53 = vld [vmem:[#allocation2 + $0xac] sm:$0xf] }
  0xa9   : > { %2258 = vmatpush.bf16.msra.mxu2 %v8191_v56  ;;  %2224 = vmatmul.bf16.vlgmr.msrb.gmra.mxu3 %v12022_v11  ;;  %v10951_v56 = vld [vmem:[#allocation2 + $0x554] sm:$0xf0]  ;;  %v10857_v21 = vld [vmem:[#allocation2 + $0x26c] sm:$0xf]  ;;  %v8366_v27 = vld [vmem:[#allocation2 + $0x648] sm:$0xf] }
  0xaa   : > { %2272 = vmatpush.bf16.msra.mxu3 %v8319_v61  ;;  %v7838_v61 = vld [vmem:[#allocation2 + $0x228] sm:$0xf]  ;;  %v8239_v1 = vor.u32 %v10951_v56, %v8238_v55  ;;  %v10995_v52 = vld [vmem:[#allocation2 + $0x6b4] sm:$0xf0]  ;;  %v7648_v55 = vld [vmem:[#allocation2 + $0xb8] sm:$0xf0] }
  0xab   : > { %2231 = vmatpush.bf16.msra.mxu0 %v7919_v4  ;;  %v10915_v4 = vld [vmem:[#allocation2 + $0x434] sm:$0xf0]  ;;  %v7839_v7 = vor.u32 %v10851_v62, %v7838_v61  ;;  %v10833_v56 = vld [vmem:[#allocation2 + $0x1ac] sm:$0xf]  ;;  %v7651_v62 = vor.u32 %v10801_v53, %v7648_v55 }
  0xac   : > { %2245 = vmatpush.bf16.msra.mxu1 %v8047_v5  ;;  %v8222_v5 = vld [vmem:[#allocation2 + $0x528] sm:$0xf]  ;;  %v8095_v12 = vor.u32 %v10915_v4, %v8094_v3  ;;  %v10797_v3 = vld [vmem:[#allocation2 + $0x8c] sm:$0xf]  ;;  %v10979_v43 = vld [vmem:[#allocation2 + $0x634] sm:$0xf0] }
  0xad   : > { %2259 = vmatpush.bf16.msra.mxu2 %v8175_v6  ;;  %v10947_v6 = vld [vmem:[#allocation2 + $0x534] sm:$0xf0] }
  0xae   : > { %2273 = vmatpush.bf16.msra.mxu3 %v8303_v10  ;;  %v7967_v10 = vor.u32 %v10883_v2, %v7966_v63  ;;  %v8223_v16 = vor.u32 %v10947_v6, %v8222_v5  ;;  %v10991_v2 = vld [vmem:[#allocation2 + $0x694] sm:$0xf0]  ;;  %v7632_v5 = vld [vmem:[#allocation2 + $0x98] sm:$0xf0]  ;;  %v10829_v6 = vld [vmem:[#allocation2 + $0x18c] sm:$0xf] }
  0xaf   : > { %2232 = vmatpush.bf16.msra.mxu0 %v7903_v17  ;;  %v10911_v17 = vld [vmem:[#allocation2 + $0x414] sm:$0xf0] }
  0xb0   : > { %2246 = vmatpush.bf16.msra.mxu1 %v8031_v18  ;;  %v8206_v18 = vld [vmem:[#allocation2 + $0x508] sm:$0xf]  ;;  %v8079_v29 = vor.u32 %v10911_v17, %v8078_v15  ;;  %v10987_v15 = vld [vmem:[#allocation2 + $0x674] sm:$0xf0] }
  0xb1   : > { %2260 = vmatpush.bf16.msra.mxu2 %v8159_v19  ;;  %v10943_v19 = vld [vmem:[#allocation2 + $0x514] sm:$0xf0] }
  0xb2   : > { %2274 = vmatpush.bf16.msra.mxu3 %v8287_v24  ;;  %v7823_v24 = vor.u32 %v10847_v9, %v7822_v8  ;;  %v10861_v8 = vld [vmem:[#allocation2 + $0x28c] sm:$0xf]  ;;  %v7888_v9 = vld [vmem:[#allocation2 + $0x298] sm:$0xf0]  ;;  %v10975_v53 = vld [vmem:[#allocation2 + $0x614] sm:$0xf0] }
  0xb3   : > { %2233 = vmatpush.bf16.msra.mxu0 %v7887_v30  ;;  %v10873_v30 = vld [vmem:[#allocation2 + $0x2ec] sm:$0xf]  ;;  %v7891_v17 = vor.u32 %v10861_v8, %v7888_v9 }
  0xb4   : > { %2247 = vmatpush.bf16.msra.mxu1 %v8015_v31  ;;  %v7936_v31 = vld [vmem:[#allocation2 + $0x2f8] sm:$0xf0] }
  0xb5   : > { %2261 = vmatpush.bf16.msra.mxu2 %v8143_v32  ;;  %v8207_v32 = vor.u32 %v10943_v19, %v8206_v18  ;;  %v7939_v40 = vor.u32 %v10873_v30, %v7936_v31  ;;  %v7616_v18 = vld [vmem:[#allocation2 + $0x78] sm:$0xf0]  ;;  %v10825_v19 = vld [vmem:[#allocation2 + $0x16c] sm:$0xf]  ;;  %v7875_v30 = vor.u32 %v10857_v21, %v7872_v22 }
  0xb6   : > { %2275 = vmatpush.bf16.msra.mxu3 %v8271_v36  ;;  %v8430_v36 = vld [vmem:[#allocation2 + $0x6c8] sm:$0xf]  ;;  %v7747_v26 = vor.u32 %v10825_v19, %v7744_v20  ;;  %v7600_v31 = vld [vmem:[#allocation2 + $0x58] sm:$0xf0]  ;;  %v10933_v19 = vld [vmem:[#allocation2 + $0x4cc] sm:$0xf] }
  0xb7   : > { %2234 = vmatpush.bf16.msra.mxu0 %v7871_v45  ;;  %v7792_v45 = vld [vmem:[#allocation2 + $0x1d8] sm:$0xf0]  ;;  %v8431_v48 = vor.u32 %v10999_v38, %v8430_v36  ;;  %v10965_v22 = vld [vmem:[#allocation2 + $0x5cc] sm:$0xf] }
  0xb8   : > { %2248 = vmatpush.bf16.msra.mxu1 %v7999_v46  ;;  %v10869_v46 = vld [vmem:[#allocation2 + $0x2cc] sm:$0xf]  ;;  %v7795_v50 = vor.u32 %v10837_v44, %v7792_v45  ;;  %v8176_v21 = vld [vmem:[#allocation2 + $0x4d8] sm:$0xf0] }
  0xb9   : > { %2262 = vmatpush.bf16.msra.mxu2 %v8127_v47  ;;  %v7920_v47 = vld [vmem:[#allocation2 + $0x2d8] sm:$0xf0]  ;;  %v10785_v44 = vld [vmem:[#allocation2 + $0x2c] sm:$0xf] }
  0xba   : > { %2276 = vmatpush.bf16.msra.mxu3 %v8255_v51  ;;  %v8414_v51 = vld [vmem:[#allocation2 + $0x6a8] sm:$0xf]  ;;  %v7923_v54 = vor.u32 %v10869_v46, %v7920_v47  ;;  %v7584_v46 = vld [vmem:[#allocation2 + $0x38] sm:$0xf0]  ;;  %v10817_v47 = vld [vmem:[#allocation2 + $0x12c] sm:$0xf] }
  0xbb   : > { %2235 = vmatpush.bf16.msra.mxu0 %v7855_v58  ;;  %v7776_v58 = vld [vmem:[#allocation2 + $0x1b8] sm:$0xf0]  ;;  %v8415_v61 = vor.u32 %v10995_v52, %v8414_v51  ;;  %v8334_v52 = vld [vmem:[#allocation2 + $0x608] sm:$0xf] }
  0xbc   : > { %2249 = vmatpush.bf16.msra.mxu1 %v7983_v59  ;;  %v10865_v59 = vld [vmem:[#allocation2 + $0x2ac] sm:$0xf]  ;;  %v7779_v63 = vor.u32 %v10833_v56, %v7776_v58  ;;  %v7568_v58 = vld [vmem:[#allocation2 + $0x18] sm:$0xf0] }
  0xbd   : > { %2263 = vmatpush.bf16.msra.mxu2 %v8111_v60  ;;  %v7904_v60 = vld [vmem:[#allocation2 + $0x2b8] sm:$0xf0]  ;;  %v10781_v56 = vld [vmem:[#allocation2 + $0xc] sm:$0xf] }
  0xbe   : > { %2277 = vmatpush.bf16.msra.mxu3 %v8239_v1  ;;  %v8398_v1 = vld [vmem:[#allocation2 + $0x688] sm:$0xf]  ;;  %v7907_v4 = vor.u32 %v10865_v59, %v7904_v60  ;;  %v10813_v59 = vld [vmem:[#allocation2 + $0x10c] sm:$0xf]  ;;  %v7571_v8 = vor.u32 %v10781_v56, %v7568_v58 }
  0xbf   : > { %2236 = vmatpush.bf16.msra.mxu0 %v7839_v7  ;;  %v7760_v7 = vld [vmem:[#allocation2 + $0x198] sm:$0xf0]  ;;  %v10921_v56 = vld [vmem:[#allocation2 + $0x46c] sm:$0xf] }
  0xc0   : > { %2250 = vmatpush.bf16.msra.mxu1 %v7967_v10  ;;  %v8399_v10 = vor.u32 %v10991_v2, %v8398_v1  ;;  %v7763_v13 = vor.u32 %v10829_v6, %v7760_v7  ;;  %v10905_v1 = vld [vmem:[#allocation2 + $0x3ec] sm:$0xf]  ;;  %v8064_v2 = vld [vmem:[#allocation2 + $0x3f8] sm:$0xf0] }
  0xc1   : > { %2264 = vmatpush.bf16.msra.mxu2 %v8095_v12  ;;  %v7635_v12 = vor.u32 %v10797_v3, %v7632_v5  ;;  %v10937_v3 = vld [vmem:[#allocation2 + $0x4ec] sm:$0xf]  ;;  %v8192_v5 = vld [vmem:[#allocation2 + $0x4f8] sm:$0xf0] }
  0xc2   : > { %2278 = vmatpush.bf16.msra.mxu3 %v8223_v16  ;;  %v10793_v16 = vld [vmem:[#allocation2 + $0x6c] sm:$0xf]  ;;  %v8320_v7 = vld [vmem:[#allocation2 + $0x5f8] sm:$0xf0] }
  0xc3   : > { %2237 = vmatpush.bf16.msra.mxu0 %v7823_v24  ;;  %v8383_v24 = vor.u32 %v10987_v15, %v8382_v14  ;;  %v7619_v25 = vor.u32 %v10793_v16, %v7616_v18  ;;  %v10969_v6 = vld [vmem:[#allocation2 + $0x5ec] sm:$0xf]  ;;  %v8067_v14 = vor.u32 %v10905_v1, %v8064_v2  ;;  %v8195_v15 = vor.u32 %v10937_v3, %v8192_v5  ;;  %v8048_v18 = vld [vmem:[#allocation2 + $0x3d8] sm:$0xf0] }
  0xc4   : > { %2251 = vmatpush.bf16.msra.mxu1 %v7951_v28  ;;  %v10983_v28 = vld [vmem:[#allocation2 + $0x654] sm:$0xf0]  ;;  %v8323_v16 = vor.u32 %v10969_v6, %v8320_v7  ;;  %v8384_v1 = vld [vmem:[#allocation2 + $0x678] sm:$0xf0]  ;;  %v10885_v6 = vld [vmem:[#allocation2 + $0x34c] sm:$0xf] }
  0xc5   : > { %2265 = vmatpush.bf16.msra.mxu2 %v8079_v29  ;;  %v10789_v29 = vld [vmem:[#allocation2 + $0x4c] sm:$0xf]  ;;  %v8367_v36 = vor.u32 %v10983_v28, %v8366_v27  ;;  %v8179_v28 = vor.u32 %v10933_v19, %v8176_v21  ;;  %v7984_v7 = vld [vmem:[#allocation2 + $0x358] sm:$0xf0] }
  0xc6   : > { %2279 = vmatpush.bf16.msra.mxu3 %v8207_v32  ;;  %2238 = vmatmul.bf16.vlgmr.msra.gmra.mxu0 %v12016_v0  ;;  %v10821_v32 = vld [vmem:[#allocation2 + $0x14c] sm:$0xf]  ;;  %v7603_v38 = vor.u32 %v10789_v29, %v7600_v31  ;;  %v8032_v31 = vld [vmem:[#allocation2 + $0x3b8] sm:$0xf0] }
  0xc7   : > { %2286 = vmatpush.bf16.msrb.mxu0 %v8447_v33  ;;  %2252 = vmatmul.bf16.vlgmr.msra.gmra.mxu1 %v12027_v23  ;;  %v7728_v33 = vld [vmem:[#allocation2 + $0x158] sm:$0xf0]  ;;  %v10881_v19 = vld [vmem:[#allocation2 + $0x32c] sm:$0xf] }
  0xc8   : > { %2300 = vmatpush.bf16.msrb.mxu1 %v7683_v34  ;;  %2266 = vmatmul.bf16.vlgmr.msra.gmra.mxu2 %v12036_v37  ;;  %v10853_v34 = vld [vmem:[#allocation2 + $0x24c] sm:$0xf]  ;;  %v7731_v39 = vor.u32 %v10821_v32, %v7728_v33 }
  0xc9   : > { %2314 = vmatpush.bf16.msrb.mxu2 %v7811_v35  ;;  %2280 = vmatmul.bf16.vlgmr.msra.gmra.mxu3 %v12040_v42  ;;  %v7856_v35 = vld [vmem:[#allocation2 + $0x258] sm:$0xf0]  ;;  %v10929_v32 = vld [vmem:[#allocation2 + $0x4ac] sm:$0xf] }
  0xca   : > { %2328 = vmatpush.bf16.msrb.mxu3 %v7939_v40  ;;  %v8350_v40 = vld [vmem:[#allocation2 + $0x628] sm:$0xf]  ;;  %v7859_v45 = vor.u32 %v10853_v34, %v7856_v35  ;;  %v8160_v34 = vld [vmem:[#allocation2 + $0x4b8] sm:$0xf0]  ;;  %v10961_v35 = vld [vmem:[#allocation2 + $0x5ac] sm:$0xf] }
  0xcb   : > { %2287 = vmatpush.bf16.msrb.mxu0 %v8431_v48  ;;  %v7712_v48 = vld [vmem:[#allocation2 + $0x138] sm:$0xf0]  ;;  %v8351_v51 = vor.u32 %v10979_v43, %v8350_v40  ;;  %v8163_v43 = vor.u32 %v10929_v32, %v8160_v34  ;;  %v10913_v21 = vld [vmem:[#allocation2 + $0x42c] sm:$0xf] }
  0xcc   : > { %2301 = vmatpush.bf16.msrb.mxu1 %v7667_v49  ;;  %v10849_v49 = vld [vmem:[#allocation2 + $0x22c] sm:$0xf]  ;;  %v7715_v55 = vor.u32 %v10817_v47, %v7712_v48 }
  0xcd   : > { %2315 = vmatpush.bf16.msrb.mxu2 %v7795_v50  ;;  %v7840_v50 = vld [vmem:[#allocation2 + $0x238] sm:$0xf0]  ;;  %v10925_v47 = vld [vmem:[#allocation2 + $0x48c] sm:$0xf] }
  0xce   : > { %2329 = vmatpush.bf16.msrb.mxu3 %v7923_v54  ;;  %v7587_v54 = vor.u32 %v10785_v44, %v7584_v46  ;;  %v7843_v60 = vor.u32 %v10849_v49, %v7840_v50  ;;  %v8016_v46 = vld [vmem:[#allocation2 + $0x398] sm:$0xf0]  ;;  %v10957_v50 = vld [vmem:[#allocation2 + $0x58c] sm:$0xf]  ;;  %v12064_v2 = vpop.f32.mrf.mxu1 }
  0xcf   : > { %2288 = vmatpush.bf16.msrb.mxu0 %v8415_v61  ;;  %v7696_v61 = vld [vmem:[#allocation2 + $0x118] sm:$0xf0]  ;;  %v10877_v32 = vld [vmem:[#allocation2 + $0x30c] sm:$0xf] }
  0xd0   : > { %2302 = vmatpush.bf16.msrb.mxu1 %v7651_v62  ;;  %v10845_v62 = vld [vmem:[#allocation2 + $0x20c] sm:$0xf]  ;;  %v7699_v9 = vor.u32 %v10813_v59, %v7696_v61  ;;  %v8144_v49 = vld [vmem:[#allocation2 + $0x498] sm:$0xf0] }
  0xd1   : > { %2316 = vmatpush.bf16.msrb.mxu2 %v7779_v63  ;;  %v7824_v63 = vld [vmem:[#allocation2 + $0x218] sm:$0xf0] }
  0xd2   : > { %2330 = vmatpush.bf16.msrb.mxu3 %v7907_v4  ;;  %v8335_v4 = vor.u32 %v10975_v53, %v8334_v52  ;;  %v8400_v52 = vld [vmem:[#allocation2 + $0x698] sm:$0xf0]  ;;  %v8147_v53 = vor.u32 %v10925_v47, %v8144_v49  ;;  %v12073_v47 = vpop.f32.mrf.mxu3  ;;  %v8566_v49 = vld [vmem:[%s13473_s4 + $0xe0] sm:$0xf] }
  0xd3   : > { %2289 = vmatpush.bf16.msrb.mxu0 %v8399_v10  ;;  %v11001_v10 = vld [vmem:[#allocation2 + $0x6ec] sm:$0xf]  ;;  %v8128_v59 = vld [vmem:[#allocation2 + $0x478] sm:$0xf0] }
  0xd4   : > { %2303 = vmatpush.bf16.msrb.mxu1 %v7635_v12  ;;  %v8448_v12 = vld [vmem:[#allocation2 + $0x6f8] sm:$0xf0] }
  0xd5   : > { %2317 = vmatpush.bf16.msrb.mxu2 %v7763_v13  ;;  %v7827_v13 = vor.u32 %v10845_v62, %v7824_v63  ;;  %v8451_v20 = vor.u32 %v11001_v10, %v8448_v12  ;;  %v8256_v61 = vld [vmem:[#allocation2 + $0x578] sm:$0xf0]  ;;  %v12062_v62 = vpop.f32.mrf.mxu0  ;;  %v10985_v63 = vld [vmem:[#allocation2 + $0x66c] sm:$0xf] }
  0xd6   : > { %2331 = vmatpush.bf16.msrb.mxu3 %v7891_v17  ;;  %v10901_v17 = vld [vmem:[#allocation2 + $0x3cc] sm:$0xf]  ;;  %v8112_v10 = vld [vmem:[#allocation2 + $0x458] sm:$0xf0] }
  0xd7   : > { %2290 = vmatpush.bf16.msrb.mxu0 %v8383_v24  ;;  %v8304_v24 = vld [vmem:[#allocation2 + $0x5d8] sm:$0xf0]  ;;  %v8051_v27 = vor.u32 %v10901_v17, %v8048_v18  ;;  %v10949_v12 = vld [vmem:[#allocation2 + $0x54c] sm:$0xf] }
  0xd8   : > { %2304 = vmatpush.bf16.msrb.mxu1 %v7619_v25  ;;  %v10997_v25 = vld [vmem:[#allocation2 + $0x6cc] sm:$0xf]  ;;  %v8307_v29 = vor.u32 %v10965_v22, %v8304_v24  ;;  %v12066_v22 = vpop.f32.mrf.mxu2 }
  0xd9   : > { %2318 = vmatpush.bf16.msrb.mxu2 %v7747_v26  ;;  %v8432_v26 = vld [vmem:[#allocation2 + $0x6d8] sm:$0xf0] }
  0xda   : > { %2332 = vmatpush.bf16.msrb.mxu3 %v7875_v30  ;;  %v10897_v30 = vld [vmem:[#allocation2 + $0x3ac] sm:$0xf]  ;;  %v8435_v33 = vor.u32 %v10997_v25, %v8432_v26  ;;  %v8096_v25 = vld [vmem:[#allocation2 + $0x438] sm:$0xf0] }
  0xdb   : > { %2291 = vmatpush.bf16.msrb.mxu0 %v8367_v36  ;;  %v8288_v36 = vld [vmem:[#allocation2 + $0x5b8] sm:$0xf0]  ;;  %v8035_v40 = vor.u32 %v10897_v30, %v8032_v31  ;;  %v10945_v26 = vld [vmem:[#allocation2 + $0x52c] sm:$0xf]  ;;  %v12071_v30 = vld [vmem:[%s13472_s3] sm:$0xf]  ;;  %v8099_v34 = vor.u32 %v10913_v21, %v8096_v25 }
  0xdc   : > { %2305 = vmatpush.bf16.msrb.mxu1 %v7603_v38  ;;  %v10993_v38 = vld [vmem:[#allocation2 + $0x6ac] sm:$0xf]  ;;  %v8291_v44 = vor.u32 %v10961_v35, %v8288_v36  ;;  %v7952_v36 = vld [vmem:[#allocation2 + $0x318] sm:$0xf0]  ;;  %v8502_v21 = vld [vmem:[%s13473_s4 + $0x60] sm:$0xf] }
  0xdd   : > { %2319 = vmatpush.bf16.msrb.mxu2 %v7731_v39  ;;  %v8416_v39 = vld [vmem:[#allocation2 + $0x6b8] sm:$0xf0]  ;;  %v8630_v25 = vld [vmem:[%s13473_s4 + $0x160] sm:$0xf] }
  0xde   : > { %2333 = vmatpush.bf16.msrb.mxu3 %v7859_v45  ;;  %v10893_v45 = vld [vmem:[#allocation2 + $0x38c] sm:$0xf]  ;;  %v8419_v48 = vor.u32 %v10993_v38, %v8416_v39  ;;  %v8080_v39 = vld [vmem:[#allocation2 + $0x418] sm:$0xf0] }
  0xdf   : > { %2292 = vmatpush.bf16.msrb.mxu0 %v8351_v51  ;;  %v10989_v51 = vld [vmem:[#allocation2 + $0x68c] sm:$0xf] }
  0xe0   : > { %2306 = vmatpush.bf16.msrb.mxu1 %v7587_v54  ;;  %v10889_v54 = vld [vmem:[#allocation2 + $0x36c] sm:$0xf]  ;;  %v8403_v58 = vor.u32 %v10989_v51, %v8400_v52  ;;  %v8694_v51 = vld [vmem:[%s13473_s4 + $0x1e0] sm:$0xf]  ;;  %v11066_v52 = vld [vmem:[%s13473_s4 + $0x1ec] sm:$0xf0] }
  0xe1   : > { %2320 = vmatpush.bf16.msrb.mxu2 %v7715_v55  ;;  %v8000_v55 = vld [vmem:[#allocation2 + $0x378] sm:$0xf0]  ;;  %v10909_v38 = vld [vmem:[#allocation2 + $0x40c] sm:$0xf] }
  0xe2   : > { %2334 = vmatpush.bf16.msrb.mxu3 %v7843_v60  ;;  %v10953_v60 = vld [vmem:[#allocation2 + $0x56c] sm:$0xf]  ;;  %v8003_v3 = vor.u32 %v10889_v54, %v8000_v55 }
  0xe3   : > { %2293 = vmatpush.bf16.msrb.mxu0 %v8335_v4  ;;  %v8131_v4 = vor.u32 %v10921_v56, %v8128_v59  ;;  %v8259_v5 = vor.u32 %v10953_v60, %v8256_v61  ;;  %v8695_v56 = vor.u32 %v11066_v52, %v8694_v51  ;;  %v11030_v59 = vld [vmem:[%s13473_s4 + $0xcc] sm:$0xf0]  ;;  %v2045_v60 = vpop.f32.mrf.mxu2  ;;  %v8678_v61 = vld [vmem:[%s13473_s4 + $0x1c0] sm:$0xf]  ;;  %v843_v52 = vperm.slane %v12071_v30, 1 }
  0xe4   : > { %2307 = vmatpush.bf16.msrb.mxu1 %v7571_v8  ;;  %v10917_v8 = vld [vmem:[#allocation2 + $0x44c] sm:$0xf] }
  0xe5   : > { %2321 = vmatpush.bf16.msrb.mxu2 %v7699_v9  ;;  %v8387_v9 = vor.u32 %v10985_v63, %v8384_v1  ;;  %v8115_v17 = vor.u32 %v10917_v8, %v8112_v10  ;;  %v11062_v63 = vld [vmem:[%s13473_s4 + $0x1cc] sm:$0xf0] }
  0xe6   : > { %2335 = vmatpush.bf16.msrb.mxu3 %v7827_v13  ;;  %2294 = vmatmul.bf16.vlgmr.msrb.gmra.mxu0 %v12038_v41  ;;  %v8240_v13 = vld [vmem:[#allocation2 + $0x558] sm:$0xf0]  ;;  %v11026_v8 = vld [vmem:[%s13473_s4 + $0xac] sm:$0xf0] }
  0xe7   : > { %2342 = vmatpush.bf16.msra.mxu0 %v8067_v14  ;;  %2308 = vmatmul.bf16.vlgmr.msrb.gmra.mxu1 %v12013_v57  ;;  %v10981_v14 = vld [vmem:[#allocation2 + $0x64c] sm:$0xf]  ;;  %v8243_v18 = vor.u32 %v10949_v12, %v8240_v13  ;;  %v2059_v13 = vpop.f32.mrf.mxu3 }
  0xe8   : > { %2356 = vmatpush.bf16.msra.mxu1 %v8195_v15  ;;  %2322 = vmatmul.bf16.vlgmr.msrb.gmra.mxu2 %v12022_v11  ;;  %v8272_v11 = vld [vmem:[#allocation2 + $0x598] sm:$0xf0] }
  0xe9   : > { %2370 = vmatpush.bf16.msra.mxu2 %v8323_v16  ;;  %2336 = vmatmul.bf16.vlgmr.msrb.gmra.mxu3 %v12016_v0  ;;  %v8019_v0 = vor.u32 %v10893_v45, %v8016_v46  ;;  %v8275_v57 = vor.u32 %v10957_v50, %v8272_v11  ;;  %v8368_v15 = vld [vmem:[#allocation2 + $0x658] sm:$0xf0]  ;;  %v7987_v16 = vor.u32 %v10885_v6, %v7984_v7  ;;  %v10973_v46 = vld [vmem:[#allocation2 + $0x60c] sm:$0xf]  ;;  %v11034_v50 = vld [vmem:[%s13473_s4 + $0xec] sm:$0xf0] }
  0xea   : > { %2384 = vmatpush.bf16.msra.mxu3 %v8451_v20  ;;  %v7968_v20 = vld [vmem:[#allocation2 + $0x338] sm:$0xf0]  ;;  %v8371_v24 = vor.u32 %v10981_v14, %v8368_v15  ;;  %v7955_v11 = vor.u32 %v10877_v32, %v7952_v36  ;;  %v8567_v55 = vor.u32 %v11034_v50, %v8566_v49  ;;  %v8679_v6 = vor.u32 %v11062_v63, %v8678_v61  ;;  %v8534_v7 = vld [vmem:[%s13473_s4 + $0xa0] sm:$0xf]  ;;  %v11022_v15 = vld [vmem:[%s13473_s4 + $0x8c] sm:$0xf0] }
  0xeb   : > { %2343 = vmatpush.bf16.msra.mxu0 %v8051_v27  ;;  %v8224_v27 = vld [vmem:[#allocation2 + $0x538] sm:$0xf0]  ;;  %v7971_v31 = vor.u32 %v10881_v19, %v7968_v20  ;;  %v8535_v14 = vor.u32 %v11026_v8, %v8534_v7  ;;  %v8614_v36 = vld [vmem:[%s13473_s4 + $0x140] sm:$0xf]  ;;  %v11042_v49 = vld [vmem:[%s13473_s4 + $0x12c] sm:$0xf0] }
  0xec   : > { %2357 = vmatpush.bf16.msra.mxu1 %v8179_v28  ;;  %v10977_v28 = vld [vmem:[#allocation2 + $0x62c] sm:$0xf]  ;;  %v8227_v35 = vor.u32 %v10945_v26, %v8224_v27  ;;  %v8208_v45 = vld [vmem:[#allocation2 + $0x518] sm:$0xf0]  ;;  %v11098_v61 = vld [vmem:[%s13473_s4 + $0x2ec] sm:$0xf0] }
  0xed   : > { %2371 = vmatpush.bf16.msra.mxu2 %v8307_v29  ;;  %v8352_v29 = vld [vmem:[#allocation2 + $0x638] sm:$0xf0]  ;;  %v11038_v63 = vld [vmem:[%s13473_s4 + $0x10c] sm:$0xf0]  ;;  %v8696_v7 = vld [vmem:[%s13473_s4 + $0x1f0] sm:$0xf0] }
  0xee   : > { %2385 = vmatpush.bf16.msra.mxu3 %v8435_v33  ;;  %v2017_v33 = vpop.f32.mrf.mxu0 }
  0xef   : > { %2344 = vmatpush.bf16.msra.mxu0 %v8035_v40  ;;  %v2031_v40 = vpop.f32.mrf.mxu1 }
  0xf0   : > { %2358 = vmatpush.bf16.msra.mxu1 %v8163_v43  ;;  %v8355_v43 = vor.u32 %v10977_v28, %v8352_v29  ;;  %v2113_v29 = vpop.f32.mrf.mxu3 }
  0xf1   : > { %2372 = vmatpush.bf16.msra.mxu2 %v8291_v44  ;;  %v10941_v44 = vld [vmem:[#allocation2 + $0x50c] sm:$0xf]  ;;  %v2114_v8 = vadd.f32 %v2113_v29, %v843_v52  ;;  %v8536_v29 = vld [vmem:[%s13473_s4 + $0xb0] sm:$0xf0] }
  0xf2   : > { %2386 = vmatpush.bf16.msra.mxu3 %v8419_v48  ;;  %v8336_v48 = vld [vmem:[#allocation2 + $0x618] sm:$0xf0] }
  0xf3   : > { %2345 = vmatpush.bf16.msra.mxu0 %v8019_v0  ;;  %v842_v0 = vperm.slane %v12071_v30, 0  ;;  %v8339_v54 = vor.u32 %v10973_v46, %v8336_v48  ;;  %v11010_v46 = vld [vmem:[%s13473_s4 + $0x2c] sm:$0xf0]  ;;  %v8598_v48 = vld [vmem:[%s13473_s4 + $0x120] sm:$0xf] }
  0xf4   : > { %2359 = vmatpush.bf16.msra.mxu1 %v8147_v53  ;;  %v8083_v53 = vor.u32 %v10909_v38, %v8080_v39  ;;  %v11046_v38 = vld [vmem:[%s13473_s4 + $0x14c] sm:$0xf0] }
  0xf5   : > { %2373 = vmatpush.bf16.msra.mxu2 %v8275_v57  ;;  %v8211_v57 = vor.u32 %v10941_v44, %v8208_v45  ;;  %v2016_v1 = vadd.f32 %v12062_v62, %v842_v0  ;;  %v8615_v44 = vor.u32 %v11046_v38, %v8614_v36  ;;  %v8470_v45 = vld [vmem:[%s13473_s4 + $0x20] sm:$0xf] }
  0xf6   : > { %2387 = vmatpush.bf16.msra.mxu3 %v8403_v58  ;;  %v8550_v58 = vld [vmem:[%s13473_s4 + $0xc0] sm:$0xf] }
  0xf7   : > { %2346 = vmatpush.bf16.msra.mxu0 %v8003_v3  ;;  %v2018_v3 = vadd.f32 %v2017_v33, %v842_v0  ;;  %v2085_v62 = vpop.f32.mrf.mxu1  ;;  %v2030_v10 = vadd.f32 %v12064_v2, %v2016_v1  ;;  %v8646_v2 = vld [vmem:[%s13473_s4 + $0x180] sm:$0xf]  ;;  %v11032_v1 = vld [vmem:[%s13473_s4 + $0xe4] sm:$0xf] }
  0xf8   : > { %2360 = vmatpush.bf16.msra.mxu1 %v8131_v4  ;;  %v8551_v4 = vor.u32 %v11030_v59, %v8550_v58  ;;  %v8599_v58 = vor.u32 %v11042_v49, %v8598_v48  ;;  %v8582_v59 = vld [vmem:[%s13473_s4 + $0x100] sm:$0xf]  ;;  %v8648_v48 = vld [vmem:[%s13473_s4 + $0x190] sm:$0xf0] }
  0xf9   : > { %2374 = vmatpush.bf16.msra.mxu2 %v8259_v5  ;;  %v2071_v5 = vpop.f32.mrf.mxu0  ;;  %v2032_v12 = vadd.f32 %v2031_v40, %v2018_v3  ;;  %v8568_v3 = vld [vmem:[%s13473_s4 + $0xf0] sm:$0xf0]  ;;  %v8774_v38 = vld [vmem:[%s13473_s4 + $0x280] sm:$0xf] }
  0xfa   : > { %2388 = vmatpush.bf16.msra.mxu3 %v8387_v9  ;;  %v8662_v9 = vld [vmem:[%s13473_s4 + $0x1a0] sm:$0xf] }
  0xfb   : > { %2347 = vmatpush.bf16.msra.mxu0 %v7987_v16  ;;  %v2044_v16 = vadd.f32 %v12066_v22, %v2030_v10  ;;  %v11050_v22 = vld [vmem:[%s13473_s4 + $0x16c] sm:$0xf0]  ;;  %v8571_v10 = vor.u32 %v11032_v1, %v8568_v3 }
  0xfc   : > { %2361 = vmatpush.bf16.msra.mxu1 %v8115_v17  ;;  %v2046_v17 = vadd.f32 %v2045_v60, %v2032_v12  ;;  %v8631_v33 = vor.u32 %v11050_v22, %v8630_v25  ;;  %v8822_v60 = vld [vmem:[%s13473_s4 + $0x2e0] sm:$0xf]  ;;  %v11090_v25 = vld [vmem:[%s13473_s4 + $0x2ac] sm:$0xf0] }
  0xfd   : > { %2375 = vmatpush.bf16.msra.mxu2 %v8243_v18  ;;  %v2099_v18 = vpop.f32.mrf.mxu2  ;;  %v2058_v26 = vadd.f32 %v12073_v47, %v2044_v16  ;;  %v8806_v12 = vld [vmem:[%s13473_s4 + $0x2c0] sm:$0xf]  ;;  %v8680_v16 = vld [vmem:[%s13473_s4 + $0x1d0] sm:$0xf0] }
  0xfe   : > { %2389 = vmatpush.bf16.msra.mxu3 %v8371_v24  ;;  %v11018_v24 = vld [vmem:[%s13473_s4 + $0x6c] sm:$0xf0]  ;;  %v2060_v27 = vadd.f32 %v2059_v13, %v2046_v17 }
  0xff   : > { %2348 = vmatpush.bf16.msra.mxu0 %v7971_v31  ;;  %v2087_v31 = vpop.f32.mrf.mxu1  ;;  %v8503_v32 = vor.u32 %v11018_v24, %v8502_v21  ;;  %v2072_v39 = vadd.f32 %v2071_v5, %v2058_v26  ;;  %v8790_v24 = vld [vmem:[%s13473_s4 + $0x2a0] sm:$0xf] }
 0x100   : > { %2362 = vmatpush.bf16.msra.mxu1 %v8099_v34  ;;  %v8486_v34 = vld [vmem:[%s13473_s4 + $0x40] sm:$0xf] }
 0x101   : > { %2376 = vmatpush.bf16.msra.mxu2 %v8227_v35  ;;  %v2073_v28 = vpop.f32.mrf.mxu0  ;;  %v11014_v35 = vld [vmem:[%s13473_s4 + $0x4c] sm:$0xf0]  ;;  %v2086_v50 = vadd.f32 %v2085_v62, %v2072_v39 }
 0x102   : > { %2390 = vmatpush.bf16.msra.mxu3 %v8355_v43  ;;  %v2074_v40 = vadd.f32 %v2073_v28, %v2060_v27  ;;  %v8487_v43 = vor.u32 %v11014_v35, %v8486_v34  ;;  %v11024_v28 = vld [vmem:[%s13473_s4 + $0xa4] sm:$0xf]  ;;  %v8664_v34 = vld [vmem:[%s13473_s4 + $0x1b0] sm:$0xf0]  ;;  %v11086_v39 = vld [vmem:[%s13473_s4 + $0x28c] sm:$0xf0] }
 0x103   : > { %2349 = vmatpush.bf16.msra.mxu0 %v7955_v11  ;;  %v2100_v5 = vadd.f32 %v2099_v18, %v2086_v50  ;;  %v8539_v36 = vor.u32 %v11024_v28, %v8536_v29  ;;  %v11036_v28 = vld [vmem:[%s13473_s4 + $0x104] sm:$0xf]  ;;  %v8710_v29 = vld [vmem:[%s13473_s4 + $0x200] sm:$0xf] }
 0x104   : > { %2363 = vmatpush.bf16.msra.mxu1 %v8083_v53  ;;  %v2088_v11 = vadd.f32 %v2087_v31, %v2074_v40  ;;  %v8471_v53 = vor.u32 %v11010_v46, %v8470_v45  ;;  %v8791_v31 = vor.u32 %v11090_v25, %v8790_v24  ;;  %v8520_v45 = vld [vmem:[%s13473_s4 + $0x90] sm:$0xf0]  ;;  %v8775_v46 = vor.u32 %v11086_v39, %v8774_v38 }
 0x105   : > { %2377 = vmatpush.bf16.msra.mxu2 %v8211_v57  ;;  %v2101_v47 = vpop.f32.mrf.mxu2  ;;  %v8454_v57 = vld [vmem:[%s13473_s4] sm:$0xf]  ;;  %v8600_v24 = vld [vmem:[%s13473_s4 + $0x130] sm:$0xf0] }
 0x106   : > { %2391 = vmatpush.bf16.msra.mxu3 %v8339_v54  ;;  %2350 = vmatmul.bf16.vlgmr.msra.gmra.mxu0 %v12027_v23  ;;  %v11058_v23 = vld [vmem:[%s13473_s4 + $0x1ac] sm:$0xf0]  ;;  %v8824_v38 = vld [vmem:[%s13473_s4 + $0x2f0] sm:$0xf0] }
 0x107   : > { %3188 = vmatpush.bf16.msrb.mxu0 %v8567_v55  ;;  %2364 = vmatmul.bf16.vlgmr.msra.gmra.mxu1 %v12036_v37  ;;  %v8663_v37 = vor.u32 %v11058_v23, %v8662_v9  ;;  %v2141_v0 = vpop.f32.mrf.mxu1  ;;  %v11006_v54 = vld [vmem:[%s13473_s4 + $0xc] sm:$0xf0]  ;;  %v2102_v55 = vadd.f32 %v2101_v47, %v2088_v11  ;;  %v8583_v23 = vor.u32 %v11038_v63, %v8582_v59  ;;  %v11052_v47 = vld [vmem:[%s13473_s4 + $0x184] sm:$0xf]  ;;  %v8584_v39 = vld [vmem:[%s13473_s4 + $0x110] sm:$0xf0] }
 0x108   : > { %3202 = vmatpush.bf16.msrb.mxu1 %v8695_v56  ;;  %2378 = vmatmul.bf16.vlgmr.msra.gmra.mxu2 %v12040_v42  ;;  %v8518_v42 = vld [vmem:[%s13473_s4 + $0x80] sm:$0xf]  ;;  %v2115_v56 = vpop.f32.mrf.mxu3  ;;  %v8455_v62 = vor.u32 %v11006_v54, %v8454_v57  ;;  %v8651_v57 = vor.u32 %v11052_v47, %v8648_v48  ;;  %v11048_v59 = vld [vmem:[%s13473_s4 + $0x164] sm:$0xf]  ;;  %v11067_v47 = vld [vmem:[%s13473_s4 + $0x1f4] sm:$0xf0] }
 0x109   : > { %2392 = vmatmul.bf16.vlgmr.msra.gmra.mxu3 %v12038_v41  ;;  %v11054_v41 = vld [vmem:[%s13473_s4 + $0x18c] sm:$0xf0]  ;;  %v8519_v19 = vor.u32 %v11022_v15, %v8518_v42  ;;  %v2127_v51 = vpop.f32.mrf.mxu0  ;;  %v2402_v9 = vmax.f32 %v2102_v55, 0.0  ;;  %v2398_v15 = vmax.f32 %v2100_v5, 0.0  ;;  %v2116_v22 = vadd.f32 %v2115_v56, %v843_v52  ;;  %v8758_v52 = vld [vmem:[%s13473_s4 + $0x260] sm:$0xf] }
 0x10a   : > { %v8647_v20 = vor.u32 %v11054_v41, %v8646_v2  ;;  %v11094_v42 = vld [vmem:[%s13473_s4 + $0x2cc] sm:$0xf0]  ;;  %v11060_v41 = vld [vmem:[%s13473_s4 + $0x1c4] sm:$0xf]  ;;  %v2128_v18 = vadd.f32 %v2127_v51, %v2114_v8  ;;  %v8504_v56 = vld [vmem:[%s13473_s4 + $0x70] sm:$0xf0] }
 0x10b   : > { %3189 = vmatpush.bf16.msrb.mxu0 %v8551_v4  ;;  %v8823_v4 = vor.u32 %v11098_v61, %v8822_v60  ;;  %v8807_v17 = vor.u32 %v11094_v42, %v8806_v12  ;;  %v8683_v27 = vor.u32 %v11060_v41, %v8680_v16  ;;  %v11016_v55 = vld [vmem:[%s13473_s4 + $0x64] sm:$0xf]  ;;  %v8632_v60 = vld [vmem:[%s13473_s4 + $0x170] sm:$0xf0]  ;;  %v8742_v5 = vld [vmem:[%s13473_s4 + $0x240] sm:$0xf] }
 0x10c   : > { %3203 = vmatpush.bf16.msrb.mxu1 %v8679_v6  ;;  %v11064_v6 = vld [vmem:[%s13473_s4 + $0x1e4] sm:$0xf]  ;;  %v2142_v35 = vadd.f32 %v2141_v0, %v2128_v18  ;;  %v11082_v0 = vld [vmem:[%s13473_s4 + $0x26c] sm:$0xf0]  ;;  %v8507_v3 = vor.u32 %v11016_v55, %v8504_v56  ;;  %v8635_v8 = vor.u32 %v11048_v59, %v8632_v60  ;;  %v8726_v42 = vld [vmem:[%s13473_s4 + $0x220] sm:$0xf] }
 0x10d   : > { %3216 = vmatpush.bf16.msrb.mxu2 %v8823_v4  ;;  %v8699_v13 = vor.u32 %v11064_v6, %v8696_v7  ;;  %v2155_v2 = vpop.f32.mrf.mxu2  ;;  %v11012_v4 = vld [vmem:[%s13473_s4 + $0x44] sm:$0xf]  ;;  %v11078_v6 = vld [vmem:[%s13473_s4 + $0x24c] sm:$0xf0]  ;;  %v8472_v18 = vld [vmem:[%s13473_s4 + $0x30] sm:$0xf0] }
 0x10e   : > { %v2156_v49 = vadd.f32 %v2155_v2, %v2142_v35  ;;  %v8950_v59 = vld [vmem:[%s13473_s4 + $0x3e0] sm:$0xf]  ;;  %v11130_v60 = vld [vmem:[%s13473_s4 + $0x3ec] sm:$0xf0] }
 0x10f   : > { %3190 = vmatpush.bf16.msrb.mxu0 %v8535_v14  ;;  %v11028_v14 = vld [vmem:[%s13473_s4 + $0xc4] sm:$0xf]  ;;  %v2143_v26 = vpop.f32.mrf.mxu1 }
 0x110   : > { %3204 = vmatpush.bf16.msrb.mxu1 %v8663_v37  ;;  %v8552_v37 = vld [vmem:[%s13473_s4 + $0xd0] sm:$0xf0] }
 0x111   : > { %v8555_v21 = vor.u32 %v11028_v14, %v8552_v37  ;;  %3217 = vmatpush.bf16.msrb.mxu2 %v8807_v17  ;;  %v11008_v17 = vld [vmem:[%s13473_s4 + $0x24] sm:$0xf] }
 0x113   : > { %3191 = vmatpush.bf16.msrb.mxu0 %v8519_v19  ;;  %v12217_v19 = vpack.c.bf16 %v2402_v9, %v2398_v15  ;;  %v11044_v9 = vld [vmem:[%s13473_s4 + $0x144] sm:$0xf]  ;;  %v11074_v15 = vld [vmem:[%s13473_s4 + $0x22c] sm:$0xf0] }
 0x114   : > { %3205 = vmatpush.bf16.msrb.mxu1 %v8647_v20  ;;  %v2129_v20 = vpop.f32.mrf.mxu0 }
 0x115   : > { %v2130_v40 = vadd.f32 %v2129_v20, %v2116_v22  ;;  %3218 = vmatpush.bf16.msrb.mxu2 %v8791_v31  ;;  %v2157_v50 = vpop.f32.mrf.mxu2  ;;  %v8727_v20 = vor.u32 %v11074_v15, %v8726_v42  ;;  %v11004_v22 = vld [vmem:[%s13473_s4 + $0x4] sm:$0xf]  ;;  %v11070_v31 = vld [vmem:[%s13473_s4 + $0x20c] sm:$0xf0]  ;;  %v8654_v42 = vld [vmem:[%s13473_s4 + $0x188] sm:$0xf] }
 0x116   : > { %v8711_v35 = vor.u32 %v11070_v31, %v8710_v29  ;;  %v11055_v15 = vld [vmem:[%s13473_s4 + $0x194] sm:$0xf0] }
 0x117   : > { %3192 = vmatpush.bf16.msrb.mxu0 %v8503_v32  ;;  %v2169_v32 = vpop.f32.mrf.mxu3 }
 0x118   : > { %3206 = vmatpush.bf16.msrb.mxu1 %v8631_v33  ;;  %v11056_v33 = vld [vmem:[%s13473_s4 + $0x1a4] sm:$0xf]  ;;  %v2170_v61 = vadd.f32 %v2169_v32, %v2156_v49  ;;  %v8587_v49 = vor.u32 %v11036_v28, %v8584_v39  ;;  %v11051_v28 = vld [vmem:[%s13473_s4 + $0x174] sm:$0xf0] }
 0x119   : > { %3219 = vmatpush.bf16.msrb.mxu2 %v8775_v46  ;;  %v8702_v46 = vld [vmem:[%s13473_s4 + $0x1e8] sm:$0xf]  ;;  %v11015_v39 = vld [vmem:[%s13473_s4 + $0x54] sm:$0xf0] }
 0x11b   : > { %3193 = vmatpush.bf16.msrb.mxu0 %v8487_v43  ;;  %v8667_v43 = vor.u32 %v11056_v33, %v8664_v34 }
 0x11c   : > { %3207 = vmatpush.bf16.msrb.mxu1 %v8615_v44  ;;  %v11020_v44 = vld [vmem:[%s13473_s4 + $0x84] sm:$0xf] }
 0x11d   : > { %v8523_v51 = vor.u32 %v11020_v44, %v8520_v45 }
 0x11f   : > { %3194 = vmatpush.bf16.msrb.mxu0 %v8471_v53  ;;  %v2144_v53 = vadd.f32 %v2143_v26, %v2130_v40  ;;  %v2171_v1 = vpop.f32.mrf.mxu3  ;;  %v8456_v26 = vld [vmem:[%s13473_s4 + $0x10] sm:$0xf0]  ;;  %v8574_v40 = vld [vmem:[%s13473_s4 + $0xe8] sm:$0xf] }
 0x120   : > { %3208 = vmatpush.bf16.msrb.mxu1 %v8599_v58  ;;  %v8759_v58 = vor.u32 %v11082_v0, %v8758_v52  ;;  %v8459_v48 = vor.u32 %v11004_v22, %v8456_v26  ;;  %v8558_v52 = vld [vmem:[%s13473_s4 + $0xc8] sm:$0xf]  ;;  %v11031_v0 = vld [vmem:[%s13473_s4 + $0xd4] sm:$0xf0]  ;;  %v11080_v22 = vld [vmem:[%s13473_s4 + $0x264] sm:$0xf] }
 0x121   : > { %v2158_v63 = vadd.f32 %v2157_v50, %v2144_v53  ;;  %v8808_v53 = vld [vmem:[%s13473_s4 + $0x2d0] sm:$0xf0]  ;;  %v8559_v56 = vor.u32 %v11031_v0, %v8558_v52  ;;  %v11011_v52 = vld [vmem:[%s13473_s4 + $0x34] sm:$0xf0] }
 0x122   : > { %3220 = vmatpush.bf16.msrb.mxu2 %v8759_v58  ;;  %v8542_v58 = vld [vmem:[%s13473_s4 + $0xa8] sm:$0xf]  ;;  %v8760_v26 = vld [vmem:[%s13473_s4 + $0x270] sm:$0xf0] }
 0x123   : > { %3195 = vmatpush.bf16.msrb.mxu0 %v8455_v62  ;;  %v2183_v11 = vpop.f32.mrf.mxu0  ;;  %v8488_v62 = vld [vmem:[%s13473_s4 + $0x50] sm:$0xf0]  ;;  %v2172_v12 = vadd.f32 %v2171_v1, %v2158_v63  ;;  %v11027_v63 = vld [vmem:[%s13473_s4 + $0xb4] sm:$0xf0]  ;;  %v8951_v1 = vor.u32 %v11130_v60, %v8950_v59  ;;  %v8763_v29 = vor.u32 %v11080_v22, %v8760_v26  ;;  %v8462_v60 = vld [vmem:[%s13473_s4 + $0x8] sm:$0xf] }
 0x124   : > { %3209 = vmatpush.bf16.msrb.mxu1 %v8583_v23  ;;  %v2197_v54 = vpop.f32.mrf.mxu1  ;;  %v2184_v7 = vadd.f32 %v2183_v11, %v2170_v61  ;;  %v8616_v23 = vld [vmem:[%s13473_s4 + $0x150] sm:$0xf0]  ;;  %v8491_v14 = vor.u32 %v11012_v4, %v8488_v62  ;;  %v11092_v11 = vld [vmem:[%s13473_s4 + $0x2c4] sm:$0xf]  ;;  %v8934_v62 = vld [vmem:[%s13473_s4 + $0x3c0] sm:$0xf] }
 0x125   : > { %v8619_v37 = vor.u32 %v11044_v9, %v8616_v23  ;;  %v8811_v55 = vor.u32 %v11092_v11, %v8808_v53  ;;  %v8792_v4 = vld [vmem:[%s13473_s4 + $0x2b0] sm:$0xf0]  ;;  %3230 = vmatpush.bf16.msrb.mxu3 %v8951_v1  ;;  %v11126_v9 = vld [vmem:[%s13473_s4 + $0x3cc] sm:$0xf0]  ;;  %v11084_v23 = vld [vmem:[%s13473_s4 + $0x284] sm:$0xf] }
 0x126   : > { %3196 = vmatmul.bf16.vlgmr.msrb.gmra.mxu0 %v12217_v19  ;;  %v2198_v2 = vadd.f32 %v2197_v54, %v2184_v7  ;;  %v11063_v54 = vld [vmem:[%s13473_s4 + $0x1d4] sm:$0xf0]  ;;  %v11114_v11 = vld [vmem:[%s13473_s4 + $0x36c] sm:$0xf0]  ;;  %v11072_v53 = vld [vmem:[%s13473_s4 + $0x224] sm:$0xf] }
 0x127   : > { %3244 = vmatpush.bf16.msra.mxu0 %v8571_v10  ;;  %v8743_v10 = vor.u32 %v11078_v6, %v8742_v5  ;;  %v8670_v5 = vld [vmem:[%s13473_s4 + $0x1a8] sm:$0xf]  ;;  %v11059_v6 = vld [vmem:[%s13473_s4 + $0x1b4] sm:$0xf0]  ;;  %v8688_v22 = vld [vmem:[%s13473_s4 + $0x1d8] sm:$0xf0] }
 0x128   : > { %3258 = vmatpush.bf16.msra.mxu1 %v8699_v13  ;;  %v2399_v32 = vmax.f32 %v2198_v2, 0.0  ;;  %v8590_v1 = vld [vmem:[%s13473_s4 + $0x108] sm:$0xf] }
 0x129   : > { %3221 = vmatpush.bf16.msrb.mxu2 %v8743_v10  ;;  %v8671_v10 = vor.u32 %v11059_v6, %v8670_v5  ;;  %v11110_v5 = vld [vmem:[%s13473_s4 + $0x34c] sm:$0xf0]  ;;  %v11068_v6 = vld [vmem:[%s13473_s4 + $0x204] sm:$0xf] }
 0x12b   : > { %3245 = vmatpush.bf16.msra.mxu0 %v8555_v21  ;;  %v2185_v13 = vpop.f32.mrf.mxu0  ;;  %v11040_v21 = vld [vmem:[%s13473_s4 + $0x124] sm:$0xf] }
 0x12c   : > { %3259 = vmatpush.bf16.msra.mxu1 %v8683_v27  ;;  %v2186_v41 = vadd.f32 %v2185_v13, %v2172_v12  ;;  %v2199_v16 = vpop.f32.mrf.mxu1  ;;  %v8475_v27 = vor.u32 %v11008_v17, %v8472_v18  ;;  %v8603_v34 = vor.u32 %v11040_v21, %v8600_v24  ;;  %v8526_v12 = vld [vmem:[%s13473_s4 + $0x88] sm:$0xf]  ;;  %v11023_v13 = vld [vmem:[%s13473_s4 + $0x94] sm:$0xf0]  ;;  %v8918_v17 = vld [vmem:[%s13473_s4 + $0x3a0] sm:$0xf]  ;;  %v8655_v21 = vor.u32 %v11055_v15, %v8654_v42 }
 0x12d   : > { %3222 = vmatpush.bf16.msrb.mxu2 %v8727_v20  ;;  %v11122_v18 = vld [vmem:[%s13473_s4 + $0x3ac] sm:$0xf0]  ;;  %v12425_v20 = vpop.f32.mrf.mxu2  ;;  %v11019_v24 = vld [vmem:[%s13473_s4 + $0x74] sm:$0xf0]  ;;  %v8854_v15 = vld [vmem:[%s13473_s4 + $0x320] sm:$0xf] }
 0x12e   : > { %v2200_v25 = vadd.f32 %v2199_v16, %v2186_v41  ;;  %v8527_v41 = vor.u32 %v11023_v13, %v8526_v12  ;;  %v8510_v16 = vld [vmem:[%s13473_s4 + $0x68] sm:$0xf]  ;;  %v11065_v13 = vld [vmem:[%s13473_s4 + $0x1ec] sm:$0xf] }
 0x12f   : > { %3246 = vmatpush.bf16.msra.mxu0 %v8539_v36  ;;  %v11096_v36 = vld [vmem:[%s13473_s4 + $0x2e4] sm:$0xf]  ;;  %v8511_v31 = vor.u32 %v11019_v24, %v8510_v16 }
 0x130   : > { %3260 = vmatpush.bf16.msra.mxu1 %v8667_v43  ;;  %v2403_v33 = vmax.f32 %v2200_v25, 0.0  ;;  %v11035_v43 = vld [vmem:[%s13473_s4 + $0xf4] sm:$0xf0]  ;;  %v8827_v44 = vor.u32 %v11096_v36, %v8824_v38  ;;  %v8919_v25 = vor.u32 %v11122_v18, %v8918_v17  ;;  %v8494_v38 = vld [vmem:[%s13473_s4 + $0x48] sm:$0xf] }
 0x131   : > { %v8575_v50 = vor.u32 %v11035_v43, %v8574_v40  ;;  %3223 = vmatpush.bf16.msrb.mxu2 %v8711_v35  ;;  %v12451_v35 = vpop.f32.mrf.mxu3  ;;  %v8744_v43 = vld [vmem:[%s13473_s4 + $0x250] sm:$0xf0] }
 0x132   : > { %v12340_v45 = vpack.c.bf16 %v2403_v33, %v2399_v32  ;;  %v8902_v32 = vld [vmem:[%s13473_s4 + $0x380] sm:$0xf]  ;;  %v11118_v33 = vld [vmem:[%s13473_s4 + $0x38c] sm:$0xf0] }
 0x133   : > { %3247 = vmatpush.bf16.msra.mxu0 %v8523_v51  ;;  %v8703_v51 = vor.u32 %v11067_v47, %v8702_v46  ;;  %v8903_v40 = vor.u32 %v11118_v33, %v8902_v32  ;;  %v11047_v46 = vld [vmem:[%s13473_s4 + $0x154] sm:$0xf0] }
 0x134   : > { %3261 = vmatpush.bf16.msra.mxu1 %v8651_v57  ;;  %v8686_v57 = vld [vmem:[%s13473_s4 + $0x1c8] sm:$0xf] }
 0x135   : > { %3210 = vmatmul.bf16.vlgmr.msrb.gmra.mxu1 %v12340_v45  ;;  %3272 = vmatpush.bf16.msra.mxu2 %v8827_v44  ;;  %v8687_v61 = vor.u32 %v11063_v54, %v8686_v57  ;;  %v8622_v44 = vld [vmem:[%s13473_s4 + $0x148] sm:$0xf]  ;;  %v8728_v57 = vld [vmem:[%s13473_s4 + $0x230] sm:$0xf0]  ;;  %v2213_v59 = vpop.f32.mrf.mxu2 }
 0x136   : > { %v8606_v54 = vld [vmem:[%s13473_s4 + $0x128] sm:$0xf] }
 0x137   : > { %3248 = vmatpush.bf16.msra.mxu0 %v8507_v3  ;;  %v11088_v3 = vld [vmem:[%s13473_s4 + $0x2a4] sm:$0xf] }
 0x138   : > { %3262 = vmatpush.bf16.msra.mxu1 %v8635_v8  ;;  %v8795_v7 = vor.u32 %v11088_v3, %v8792_v4  ;;  %v8543_v8 = vor.u32 %v11027_v63, %v8542_v58  ;;  %v844_v58 = vperm.slane %v12071_v30, 2  ;;  %v11007_v63 = vld [vmem:[%s13473_s4 + $0x14] sm:$0xf0]  ;;  %v8870_v30 = vld [vmem:[%s13473_s4 + $0x340] sm:$0xf] }
 0x139   : > { %3273 = vmatpush.bf16.msra.mxu2 %v8811_v55  ;;  %v11043_v55 = vld [vmem:[%s13473_s4 + $0x134] sm:$0xf0]  ;;  %v2227_v12 = vpop.f32.mrf.mxu3  ;;  %v8463_v42 = vor.u32 %v11007_v63, %v8462_v60  ;;  %v8920_v63 = vld [vmem:[%s13473_s4 + $0x3b0] sm:$0xf0] }
 0x13a   : > { %v8607_v4 = vor.u32 %v11043_v55, %v8606_v54  ;;  %v11053_v54 = vld [vmem:[%s13473_s4 + $0x18c] sm:$0xf]  ;;  %v8656_v55 = vld [vmem:[%s13473_s4 + $0x198] sm:$0xf0] }
 0x13b   : > { %3249 = vmatpush.bf16.msra.mxu0 %v8491_v14  ;;  %v8935_v14 = vor.u32 %v11126_v9, %v8934_v62  ;;  %v11033_v62 = vld [vmem:[%s13473_s4 + $0xec] sm:$0xf]  ;;  %v8576_v9 = vld [vmem:[%s13473_s4 + $0xf8] sm:$0xf0] }
 0x13c   : > { %3263 = vmatpush.bf16.msra.mxu1 %v8619_v37  ;;  %v8776_v37 = vld [vmem:[%s13473_s4 + $0x290] sm:$0xf0]  ;;  %v8579_v16 = vor.u32 %v11033_v62, %v8576_v9 }
 0x13d   : > { %3274 = vmatpush.bf16.msra.mxu2 %v8795_v7  ;;  %v8779_v2 = vor.u32 %v11084_v23, %v8776_v37  ;;  %3231 = vmatpush.bf16.msrb.mxu3 %v8935_v14  ;;  %v8712_v7 = vld [vmem:[%s13473_s4 + $0x210] sm:$0xf0]  ;;  %v8871_v23 = vor.u32 %v11110_v5, %v8870_v30  ;;  %v8704_v14 = vld [vmem:[%s13473_s4 + $0x1f8] sm:$0xf0]  ;;  %v2212_v37 = vadd.f32 %v12425_v20, %v844_v58  ;;  %v11029_v20 = vld [vmem:[%s13473_s4 + $0xcc] sm:$0xf] }
 0x13e   : > { %v8707_v18 = vor.u32 %v11065_v13, %v8704_v14  ;;  %v11017_v30 = vld [vmem:[%s13473_s4 + $0x6c] sm:$0xf] }
 0x13f   : > { %3250 = vmatpush.bf16.msra.mxu0 %v8475_v27  ;;  %v8638_v27 = vld [vmem:[%s13473_s4 + $0x168] sm:$0xf]  ;;  %v2226_v26 = vadd.f32 %v12451_v35, %v2212_v37  ;;  %v8952_v35 = vld [vmem:[%s13473_s4 + $0x3f0] sm:$0xf0]  ;;  %v11013_v37 = vld [vmem:[%s13473_s4 + $0x4c] sm:$0xf] }
 0x140   : > { %3264 = vmatpush.bf16.msra.mxu1 %v8603_v34  ;;  %v11076_v34 = vld [vmem:[%s13473_s4 + $0x244] sm:$0xf]  ;;  %v8639_v36 = vor.u32 %v11051_v28, %v8638_v27  ;;  %v2214_v27 = vadd.f32 %v2213_v59, %v844_v58  ;;  %v8838_v28 = vld [vmem:[%s13473_s4 + $0x300] sm:$0xf] }
 0x141   : > { %3275 = vmatpush.bf16.msra.mxu2 %v8779_v2  ;;  %3232 = vmatpush.bf16.msrb.mxu3 %v8919_v25  ;;  %v8747_v47 = vor.u32 %v11076_v34, %v8744_v43  ;;  %v11106_v2 = vld [vmem:[%s13473_s4 + $0x32c] sm:$0xf0]  ;;  %v11061_v25 = vld [vmem:[%s13473_s4 + $0x1cc] sm:$0xf]  ;;  %v11128_v34 = vld [vmem:[%s13473_s4 + $0x3e4] sm:$0xf] }
 0x142   : > { %v8855_v17 = vor.u32 %v11106_v2, %v8854_v15  ;;  %v8955_v43 = vor.u32 %v11128_v34, %v8952_v35  ;;  %v8830_v34 = vld [vmem:[%s13473_s4 + $0x2e8] sm:$0xf]  ;;  %v11099_v35 = vld [vmem:[%s13473_s4 + $0x2f4] sm:$0xf0] }
 0x143   : > { %3251 = vmatpush.bf16.msra.mxu0 %v8459_v48  ;;  %v8495_v48 = vor.u32 %v11015_v39, %v8494_v38  ;;  %v2239_v3 = vpop.f32.mrf.mxu0  ;;  %v11025_v38 = vld [vmem:[%s13473_s4 + $0xac] sm:$0xf]  ;;  %v8544_v39 = vld [vmem:[%s13473_s4 + $0xb8] sm:$0xf0] }
 0x144   : > { %3265 = vmatpush.bf16.msra.mxu1 %v8587_v49  ;;  %v8478_v49 = vld [vmem:[%s13473_s4 + $0x28] sm:$0xf]  ;;  %v2253_v24 = vpop.f32.mrf.mxu1 }
 0x145   : > { %3276 = vmatpush.bf16.msra.mxu2 %v8763_v29  ;;  %3233 = vmatpush.bf16.msrb.mxu3 %v8903_v40  ;;  %v11102_v29 = vld [vmem:[%s13473_s4 + $0x30c] sm:$0xf0]  ;;  %v11057_v40 = vld [vmem:[%s13473_s4 + $0x1ac] sm:$0xf] }
 0x146   : > { %3252 = vmatmul.bf16.vlgmr.msra.gmra.mxu0 %v12217_v19  ;;  %v8839_v33 = vor.u32 %v11102_v29, %v8838_v28 }
 0x147   : > { %3300 = vmatpush.bf16.msrb.mxu0 %v8575_v50  ;;  %3266 = vmatmul.bf16.vlgmr.msra.gmra.mxu1 %v12340_v45  ;;  %v8886_v50 = vld [vmem:[%s13473_s4 + $0x360] sm:$0xf] }
 0x148   : > { %3314 = vmatpush.bf16.msrb.mxu1 %v8703_v51  ;;  %v8623_v51 = vor.u32 %v11047_v46, %v8622_v44  ;;  %v8887_v0 = vor.u32 %v11114_v11, %v8886_v50  ;;  %v8672_v46 = vld [vmem:[%s13473_s4 + $0x1b8] sm:$0xf0]  ;;  %v2240_v50 = vadd.f32 %v2239_v3, %v2226_v26  ;;  %v11009_v26 = vld [vmem:[%s13473_s4 + $0x2c] sm:$0xf] }
 0x149   : > { %3277 = vmatpush.bf16.msra.mxu2 %v8747_v47  ;;  %v11124_v47 = vld [vmem:[%s13473_s4 + $0x3c4] sm:$0xf]  ;;  %v8512_v3 = vld [vmem:[%s13473_s4 + $0x78] sm:$0xf0] }
 0x14a   : > { %3234 = vmatpush.bf16.msrb.mxu3 %v8887_v0  ;;  %v8675_v0 = vor.u32 %v11057_v40, %v8672_v46  ;;  %v11005_v46 = vld [vmem:[%s13473_s4 + $0xc] sm:$0xf] }
 0x14b   : > { %3301 = vmatpush.bf16.msrb.mxu0 %v8559_v56  ;;  %v8731_v56 = vor.u32 %v11072_v53, %v8728_v57  ;;  %v2241_v44 = vpop.f32.mrf.mxu0  ;;  %v11021_v53 = vld [vmem:[%s13473_s4 + $0x8c] sm:$0xf]  ;;  %v8528_v57 = vld [vmem:[%s13473_s4 + $0x98] sm:$0xf0] }
 0x14c   : > { %3315 = vmatpush.bf16.msrb.mxu1 %v8687_v61  ;;  %v8479_v61 = vor.u32 %v11011_v52, %v8478_v49  ;;  %v2228_v49 = vadd.f32 %v2227_v12, %v2214_v27  ;;  %v2281_v11 = vpop.f32.mrf.mxu3  ;;  %v2255_v59 = vpop.f32.mrf.mxu1  ;;  %v8531_v60 = vor.u32 %v11021_v53, %v8528_v57  ;;  %v8904_v12 = vld [vmem:[%s13473_s4 + $0x390] sm:$0xf0]  ;;  %v8480_v27 = vld [vmem:[%s13473_s4 + $0x38] sm:$0xf0] }
 0x14d   : > { %3278 = vmatpush.bf16.msra.mxu2 %v8731_v56  ;;  %v2254_v56 = vadd.f32 %v2253_v24, %v2240_v50  ;;  %v11037_v50 = vld [vmem:[%s13473_s4 + $0x10c] sm:$0xf] }
 0x14e   : > { %3235 = vmatpush.bf16.msrb.mxu3 %v8871_v23  ;;  %v2242_v58 = vadd.f32 %v2241_v44, %v2228_v49  ;;  %v8515_v23 = vor.u32 %v11017_v30, %v8512_v3  ;;  %v8831_v49 = vor.u32 %v11099_v35, %v8830_v34  ;;  %v8840_v30 = vld [vmem:[%s13473_s4 + $0x310] sm:$0xf0]  ;;  %v8832_v34 = vld [vmem:[%s13473_s4 + $0x2f8] sm:$0xf0] }
 0x14f   : > { %3302 = vmatpush.bf16.msrb.mxu0 %v8543_v8  ;;  %v11039_v8 = vld [vmem:[%s13473_s4 + $0x114] sm:$0xf0] }
 0x150   : > { %3316 = vmatpush.bf16.msrb.mxu1 %v8671_v10  ;;  %v8715_v10 = vor.u32 %v11068_v6, %v8712_v7  ;;  %v11049_v7 = vld [vmem:[%s13473_s4 + $0x16c] sm:$0xf]  ;;  %v2256_v9 = vadd.f32 %v2255_v59, %v2242_v58 }
 0x152   : > { %3279 = vmatpush.bf16.msra.mxu2 %v8715_v10  ;;  %3236 = vmatpush.bf16.msrb.mxu3 %v8855_v17  ;;  %v11116_v10 = vld [vmem:[%s13473_s4 + $0x384] sm:$0xf] }
 0x153   : > { %3303 = vmatpush.bf16.msrb.mxu0 %v8527_v41  ;;  %v8591_v41 = vor.u32 %v11039_v8, %v8590_v1  ;;  %v8659_v1 = vor.u32 %v11053_v54, %v8656_v55  ;;  %v8640_v8 = vld [vmem:[%s13473_s4 + $0x178] sm:$0xf0]  ;;  %v8907_v15 = vor.u32 %v11116_v10, %v8904_v12  ;;  %v11104_v54 = vld [vmem:[%s13473_s4 + $0x324] sm:$0xf]  ;;  %v8856_v55 = vld [vmem:[%s13473_s4 + $0x330] sm:$0xf0] }
 0x154   : > { %3317 = vmatpush.bf16.msrb.mxu1 %v8655_v21  ;;  %v8560_v21 = vld [vmem:[%s13473_s4 + $0xd8] sm:$0xf0]  ;;  %v8643_v14 = vor.u32 %v11049_v7, %v8640_v8  ;;  %v2283_v2 = vpop.f32.mrf.mxu3  ;;  %v8859_v58 = vor.u32 %v11104_v54, %v8856_v55  ;;  %v8782_v8 = vld [vmem:[%s13473_s4 + $0x288] sm:$0xf]  ;;  %v11131_v55 = vld [vmem:[%s13473_s4 + $0x3f4] sm:$0xf0] }
 0x155   : > { %v8563_v32 = vor.u32 %v11029_v20, %v8560_v21  ;;  %v11112_v20 = vld [vmem:[%s13473_s4 + $0x364] sm:$0xf]  ;;  %v8888_v21 = vld [vmem:[%s13473_s4 + $0x370] sm:$0xf0]  ;;  %v8766_v12 = vld [vmem:[%s13473_s4 + $0x268] sm:$0xf] }
 0x156   : > { %3237 = vmatpush.bf16.msrb.mxu3 %v8839_v33  ;;  %v8891_v28 = vor.u32 %v11112_v20, %v8888_v21  ;;  %v8734_v21 = vld [vmem:[%s13473_s4 + $0x228] sm:$0xf] }
 0x157   : > { %3304 = vmatpush.bf16.msrb.mxu0 %v8511_v31  ;;  %v2267_v31 = vpop.f32.mrf.mxu2  ;;  %v8958_v54 = vld [vmem:[%s13473_s4 + $0x3e8] sm:$0xf] }
 0x158   : > { %3318 = vmatpush.bf16.msrb.mxu1 %v8639_v36  ;;  %v8691_v36 = vor.u32 %v11061_v25, %v8688_v22  ;;  %v2268_v62 = vadd.f32 %v2267_v31, %v2254_v56  ;;  %v11041_v31 = vld [vmem:[%s13473_s4 + $0x12c] sm:$0xf] }
 0x15a   : > { %3286 = vmatpush.bf16.msra.mxu3 %v8955_v43  ;;  %v2282_v17 = vadd.f32 %v2281_v11, %v2268_v62  ;;  %v8592_v11 = vld [vmem:[%s13473_s4 + $0x118] sm:$0xf0]  ;;  %v11087_v62 = vld [vmem:[%s13473_s4 + $0x294] sm:$0xf0] }
 0x15b   : > { %3305 = vmatpush.bf16.msrb.mxu0 %v8495_v48  ;;  %v8936_v48 = vld [vmem:[%s13473_s4 + $0x3d0] sm:$0xf0]  ;;  %v8595_v56 = vor.u32 %v11037_v50, %v8592_v11 }
 0x15c   : > { %3319 = vmatpush.bf16.msrb.mxu1 %v8623_v51  ;;  %v8547_v51 = vor.u32 %v11025_v38, %v8544_v39  ;;  %v8939_v52 = vor.u32 %v11124_v47, %v8936_v48  ;;  %v11108_v38 = vld [vmem:[%s13473_s4 + $0x344] sm:$0xf]  ;;  %v8872_v39 = vld [vmem:[%s13473_s4 + $0x350] sm:$0xf0]  ;;  %v8464_v47 = vld [vmem:[%s13473_s4 + $0x18] sm:$0xf0] }
 0x15d   : > { %v8875_v48 = vor.u32 %v11108_v38, %v8872_v39  ;;  %v8467_v57 = vor.u32 %v11005_v46, %v8464_v47  ;;  %v8816_v46 = vld [vmem:[%s13473_s4 + $0x2d8] sm:$0xf0] }
 0x15e   : > { %3287 = vmatpush.bf16.msra.mxu3 %v8939_v52  ;;  %v8814_v52 = vld [vmem:[%s13473_s4 + $0x2c8] sm:$0xf] }
 0x15f   : > { %3306 = vmatpush.bf16.msrb.mxu0 %v8479_v61  ;;  %v11120_v61 = vld [vmem:[%s13473_s4 + $0x3a4] sm:$0xf]  ;;  %v2269_v5 = vpop.f32.mrf.mxu2 }
 0x160   : > { %3320 = vmatpush.bf16.msrb.mxu1 %v8607_v4  ;;  %v8923_v4 = vor.u32 %v11120_v61, %v8920_v63  ;;  %v2270_v13 = vadd.f32 %v2269_v5, %v2256_v9  ;;  %v11091_v61 = vld [vmem:[%s13473_s4 + $0x2b4] sm:$0xf0] }
 0x162   : > { %3288 = vmatpush.bf16.msra.mxu3 %v8923_v4  ;;  %v2284_v24 = vadd.f32 %v2283_v2, %v2270_v13  ;;  %v8750_v2 = vld [vmem:[%s13473_s4 + $0x248] sm:$0xf] }
 0x163   : > { %3307 = vmatpush.bf16.msrb.mxu0 %v8463_v42  ;;  %v2295_v6 = vpop.f32.mrf.mxu0  ;;  %v8496_v42 = vld [vmem:[%s13473_s4 + $0x58] sm:$0xf0] }
 0x164   : > { %3321 = vmatpush.bf16.msrb.mxu1 %v8591_v41  ;;  %v11045_v41 = vld [vmem:[%s13473_s4 + $0x14c] sm:$0xf]  ;;  %v2296_v25 = vadd.f32 %v2295_v6, %v2282_v17  ;;  %v2309_v53 = vpop.f32.mrf.mxu1  ;;  %v11703_v6 = vld [vmem:[%s13472_s3] sm:$0xf] }
 0x165   : > { %v845_v7 = vperm.slane %v11703_v6, 3  ;;  %v11081_v6 = vld [vmem:[%s13473_s4 + $0x26c] sm:$0xf] }
 0x166   : > { %3308 = vmatmul.bf16.vlgmr.msrb.gmra.mxu0 %v12217_v19  ;;  %3289 = vmatpush.bf16.msra.mxu3 %v8907_v15  ;;  %v2400_v40 = vmax.f32 %v2296_v25, 0.0 }
 0x167   : > { %3356 = vmatpush.bf16.msra.mxu0 %v8579_v16  ;;  %3322 = vmatmul.bf16.vlgmr.msrb.gmra.mxu1 %v12340_v45  ;;  %v8624_v16 = vld [vmem:[%s13473_s4 + $0x158] sm:$0xf0]  ;;  %v2310_v10 = vadd.f32 %v2309_v53, %v845_v7 }
 0x168   : > { %3370 = vmatpush.bf16.msra.mxu1 %v8707_v18  ;;  %v8499_v18 = vor.u32 %v11013_v37, %v8496_v42  ;;  %v8627_v22 = vor.u32 %v11045_v41, %v8624_v16  ;;  %v11079_v41 = vld [vmem:[%s13473_s4 + $0x254] sm:$0xf0]  ;;  %v8800_v53 = vld [vmem:[%s13473_s4 + $0x2b8] sm:$0xf0] }
 0x169   : > { %v8751_v17 = vor.u32 %v11079_v41, %v8750_v2  ;;  %v11115_v2 = vld [vmem:[%s13473_s4 + $0x374] sm:$0xf0] }
 0x16a   : > { %3290 = vmatpush.bf16.msra.mxu3 %v8891_v28 }
 0x16b   : > { %3357 = vmatpush.bf16.msra.mxu0 %v8563_v32  ;;  %v2297_v29 = vpop.f32.mrf.mxu0  ;;  %v8608_v32 = vld [vmem:[%s13473_s4 + $0x138] sm:$0xf0]  ;;  %v2323_v63 = vpop.f32.mrf.mxu2 }
 0x16c   : > { %3371 = vmatpush.bf16.msra.mxu1 %v8691_v36  ;;  %v2298_v33 = vadd.f32 %v2297_v29, %v2284_v24  ;;  %v8483_v36 = vor.u32 %v11009_v26, %v8480_v27  ;;  %v8611_v44 = vor.u32 %v11041_v31, %v8608_v32  ;;  %v2337_v3 = vpop.f32.mrf.mxu3  ;;  %v2311_v9 = vpop.f32.mrf.mxu1  ;;  %v2324_v37 = vadd.f32 %v2323_v63, %v2310_v10  ;;  %v11075_v24 = vld [vmem:[%s13473_s4 + $0x234] sm:$0xf0]  ;;  %v8718_v31 = vld [vmem:[%s13473_s4 + $0x208] sm:$0xf]  ;;  %v8784_v63 = vld [vmem:[%s13473_s4 + $0x298] sm:$0xf0] }
 0x16d   : > { %v2312_v42 = vadd.f32 %v2311_v9, %v845_v7  ;;  %v8735_v26 = vor.u32 %v11075_v24, %v8734_v21  ;;  %v11071_v32 = vld [vmem:[%s13473_s4 + $0x214] sm:$0xf0]  ;;  %v8768_v7 = vld [vmem:[%s13473_s4 + $0x278] sm:$0xf0]  ;;  %v11077_v10 = vld [vmem:[%s13473_s4 + $0x24c] sm:$0xf] }
 0x16e   : > { %v2404_v43 = vmax.f32 %v2298_v33, 0.0  ;;  %3291 = vmatpush.bf16.msra.mxu3 %v8875_v48  ;;  %v11097_v33 = vld [vmem:[%s13473_s4 + $0x2ec] sm:$0xf]  ;;  %v8719_v38 = vor.u32 %v11071_v32, %v8718_v31  ;;  %v8771_v9 = vor.u32 %v11081_v6, %v8768_v7  ;;  %v11111_v21 = vld [vmem:[%s13473_s4 + $0x354] sm:$0xf0] }
 0x16f   : > { %3358 = vmatpush.bf16.msra.mxu0 %v8547_v51  ;;  %v11129_v31 = vld [vmem:[%s13473_s4 + $0x3ec] sm:$0xf]  ;;  %v8960_v32 = vld [vmem:[%s13473_s4 + $0x3f8] sm:$0xf0]  ;;  %v11141_v6 = vld [vmem:[%s13475_s6 + $0x44] sm:$0xf0] }
 0x170   : > { %3372 = vmatpush.bf16.msra.mxu1 %v8675_v0  ;;  %v12672_v51 = vpack.c.bf16 %v2404_v43, %v2400_v40  ;;  %v11095_v0 = vld [vmem:[%s13473_s4 + $0x2d4] sm:$0xf0]  ;;  %v8835_v40 = vor.u32 %v11097_v33, %v8832_v34  ;;  %v8963_v34 = vor.u32 %v11129_v31, %v8960_v32  ;;  %v9054_v31 = vld [vmem:[%s13475_s6 + $0xb0] sm:$0xf] }
 0x171   : > { %v8815_v59 = vor.u32 %v11095_v0, %v8814_v52  ;;  %v11089_v0 = vld [vmem:[%s13473_s4 + $0x2ac] sm:$0xf]  ;;  %v11155_v32 = vld [vmem:[%s13475_s6 + $0xb4] sm:$0xf0] }
 0x172   : > { %3224 = vmatmul.bf16.vlgmr.msrb.gmra.mxu2 %v12672_v51  ;;  %3292 = vmatpush.bf16.msra.mxu3 %v8859_v58 }
 0x173   : > { %3359 = vmatpush.bf16.msra.mxu0 %v8531_v60  ;;  %3328 = vmatpush.bf16.msrb.mxu2 %v8831_v49  ;;  %v8798_v60 = vld [vmem:[%s13473_s4 + $0x2a8] sm:$0xf]  ;;  %v2325_v13 = vpop.f32.mrf.mxu2 }
 0x174   : > { %3373 = vmatpush.bf16.msra.mxu1 %v8659_v1  ;;  %v11100_v1 = vld [vmem:[%s13473_s4 + $0x304] sm:$0xf]  ;;  %v8799_v5 = vor.u32 %v11091_v61, %v8798_v60  ;;  %v2339_v15 = vpop.f32.mrf.mxu3  ;;  %v2326_v20 = vadd.f32 %v2325_v13, %v2312_v42  ;;  %v8959_v60 = vor.u32 %v11131_v55, %v8958_v54  ;;  %v11085_v61 = vld [vmem:[%s13473_s4 + $0x28c] sm:$0xf]  ;;  %v11119_v13 = vld [vmem:[%s13473_s4 + $0x394] sm:$0xf0] }
 0x175   : > { %v8843_v4 = vor.u32 %v11100_v1, %v8840_v30  ;;  %v8942_v30 = vld [vmem:[%s13473_s4 + $0x3c8] sm:$0xf]  ;;  %v11073_v42 = vld [vmem:[%s13473_s4 + $0x22c] sm:$0xf]  ;;  %v8848_v55 = vld [vmem:[%s13473_s4 + $0x318] sm:$0xf0] }
 0x176   : > { %v2340_v27 = vadd.f32 %v2339_v15, %v2326_v20  ;;  %v8736_v15 = vld [vmem:[%s13473_s4 + $0x238] sm:$0xf0]  ;;  %v8878_v20 = vld [vmem:[%s13473_s4 + $0x348] sm:$0xf]  ;;  %v11101_v54 = vld [vmem:[%s13473_s4 + $0x30c] sm:$0xf] }
 0x177   : > { %3360 = vmatpush.bf16.msra.mxu0 %v8515_v23  ;;  %3329 = vmatpush.bf16.msrb.mxu2 %v8815_v59  ;;  %v8783_v23 = vor.u32 %v11087_v62, %v8782_v8  ;;  %v8803_v59 = vor.u32 %v11089_v0, %v8800_v53  ;;  %v8926_v8 = vld [vmem:[%s13473_s4 + $0x3a8] sm:$0xf]  ;;  %v11123_v62 = vld [vmem:[%s13473_s4 + $0x3b4] sm:$0xf0]  ;;  %v8739_v41 = vor.u32 %v11073_v42, %v8736_v15  ;;  %v11105_v0 = vld [vmem:[%s13473_s4 + $0x32c] sm:$0xf] }
 0x178   : > { %3374 = vmatpush.bf16.msra.mxu1 %v8643_v14  ;;  %3293 = vmatpush.bf16.msra.mxu3 %v8843_v4  ;;  %v8787_v4 = vor.u32 %v11085_v61, %v8784_v63  ;;  %v8864_v53 = vld [vmem:[%s13473_s4 + $0x338] sm:$0xf0]  ;;  %v9014_v61 = vld [vmem:[%s13475_s6 + $0x60] sm:$0xf]  ;;  %v11145_v63 = vld [vmem:[%s13475_s6 + $0x64] sm:$0xf0] }
 0x179   : > { %v11161_v42 = vld [vmem:[%s13475_s6 + $0xe4] sm:$0xf0] }
 0x17b   : > { %3361 = vmatpush.bf16.msra.mxu0 %v8499_v18  ;;  %3330 = vmatpush.bf16.msrb.mxu2 %v8799_v5  ;;  %v2338_v18 = vadd.f32 %v2337_v3, %v2324_v37  ;;  %v11127_v3 = vld [vmem:[%s13473_s4 + $0x3d4] sm:$0xf0] }
 0x17c   : > { %3375 = vmatpush.bf16.msra.mxu1 %v8627_v22  ;;  %v8943_v5 = vor.u32 %v11127_v3, %v8942_v30  ;;  %v9015_v30 = vor.u32 %v11145_v63, %v9014_v61  ;;  %v11143_v3 = vld [vmem:[%s13475_s6 + $0x54] sm:$0xf0]  ;;  %v11149_v61 = vld [vmem:[%s13475_s6 + $0x84] sm:$0xf0]  ;;  %v9126_v63 = vld [vmem:[%s13475_s6 + $0x140] sm:$0xf] }
 0x17f   : > { %3362 = vmatpush.bf16.msra.mxu0 %v8483_v36  ;;  %3331 = vmatpush.bf16.msrb.mxu2 %v8783_v23  ;;  %v8927_v23 = vor.u32 %v11123_v62, %v8926_v8  ;;  %v8990_v8 = vld [vmem:[%s13475_s6 + $0x30] sm:$0xf]  ;;  %v11139_v62 = vld [vmem:[%s13475_s6 + $0x34] sm:$0xf0] }
 0x180   : > { %3376 = vmatpush.bf16.msra.mxu1 %v8611_v44  ;;  %v11093_v44 = vld [vmem:[%s13473_s4 + $0x2cc] sm:$0xf] }
 0x181   : > { %v8819_v11 = vor.u32 %v11093_v44, %v8816_v46  ;;  %v8912_v44 = vld [vmem:[%s13473_s4 + $0x398] sm:$0xf0] }
 0x182   : > { %3280 = vmatmul.bf16.vlgmr.msra.gmra.mxu2 %v12672_v51 }
 0x183   : > { %3363 = vmatpush.bf16.msra.mxu0 %v8467_v57 }
 0x184   : > { %3377 = vmatpush.bf16.msra.mxu1 %v8595_v56  ;;  %v2365_v16 = vpop.f32.mrf.mxu1 }
 0x186   : > { %3364 = vmatmul.bf16.vlgmr.msra.gmra.mxu0 %v12217_v19  ;;  %v11083_v19 = vld [vmem:[%s13473_s4 + $0x274] sm:$0xf0] }
 0x187   : > { %3378 = vmatmul.bf16.vlgmr.msra.gmra.mxu1 %v12340_v45  ;;  %v8767_v14 = vor.u32 %v11083_v19, %v8766_v12  ;;  %v2351_v45 = vpop.f32.mrf.mxu0  ;;  %v8752_v12 = vld [vmem:[%s13473_s4 + $0x258] sm:$0xf0]  ;;  %v8910_v19 = vld [vmem:[%s13473_s4 + $0x388] sm:$0xf] }
 0x188   : > { %v2352_v25 = vadd.f32 %v2351_v45, %v2338_v18  ;;  %v8911_v37 = vor.u32 %v11119_v13, %v8910_v19  ;;  %v8894_v45 = vld [vmem:[%s13473_s4 + $0x368] sm:$0xf]  ;;  %v8720_v18 = vld [vmem:[%s13473_s4 + $0x218] sm:$0xf0]  ;;  %v8982_v19 = vld [vmem:[%s13475_s6 + $0x20] sm:$0xf] }
 0x189   : > { %3332 = vmatpush.bf16.msrb.mxu2 %v8767_v14  ;;  %v8755_v14 = vor.u32 %v11077_v10, %v8752_v12  ;;  %v11163_v10 = vld [vmem:[%s13475_s6 + $0xf4] sm:$0xf0]  ;;  %v11137_v13 = vld [vmem:[%s13475_s6 + $0x24] sm:$0xf0] }
 0x18a   : > { %v2366_v35 = vadd.f32 %v2365_v16, %v2352_v25  ;;  %v8895_v16 = vor.u32 %v11115_v2, %v8894_v45  ;;  %v8879_v25 = vor.u32 %v11111_v21, %v8878_v20  ;;  %v8974_v45 = vld [vmem:[%s13475_s6 + $0x10] sm:$0xf]  ;;  %v11135_v2 = vld [vmem:[%s13475_s6 + $0x14] sm:$0xf0]  ;;  %v8966_v20 = vld [vmem:[%s13475_s6] sm:$0xf] }
 0x18b   : > { %v2379_v22 = vpop.f32.mrf.mxu2  ;;  %v11133_v21 = vld [vmem:[%s13475_s6 + $0x4] sm:$0xf0] }
 0x18c   : > { %v2393_v28 = vpop.f32.mrf.mxu3  ;;  %v2380_v39 = vadd.f32 %v2379_v22, %v2366_v35  ;;  %v2367_v43 = vpop.f32.mrf.mxu1  ;;  %v8862_v22 = vld [vmem:[%s13473_s4 + $0x328] sm:$0xf]  ;;  %v11125_v35 = vld [vmem:[%s13473_s4 + $0x3cc] sm:$0xf] }
 0x18d   : > { %3333 = vmatpush.bf16.msrb.mxu2 %v8751_v17  ;;  %v11069_v17 = vld [vmem:[%s13473_s4 + $0x20c] sm:$0xf] }
 0x18e   : > { %v2394_v49 = vadd.f32 %v2393_v28, %v2380_v39  ;;  %v8723_v24 = vor.u32 %v11069_v17, %v8720_v18  ;;  %v8846_v28 = vld [vmem:[%s13473_s4 + $0x308] sm:$0xf]  ;;  %v8928_v39 = vld [vmem:[%s13473_s4 + $0x3b8] sm:$0xf0]  ;;  %v11159_v17 = vld [vmem:[%s13475_s6 + $0xd4] sm:$0xf0] }
 0x18f   : > { %v2353_v29 = vpop.f32.mrf.mxu0 }
 0x190   : > { %v2354_v36 = vadd.f32 %v2353_v29, %v2340_v27  ;;  %v2401_v56 = vmax.f32 %v2394_v49, 0.0  ;;  %v11103_v29 = vld [vmem:[%s13473_s4 + $0x314] sm:$0xf0] }
 0x191   : > { %3334 = vmatpush.bf16.msrb.mxu2 %v8735_v26  ;;  %v11107_v26 = vld [vmem:[%s13473_s4 + $0x334] sm:$0xf0]  ;;  %v8847_v33 = vor.u32 %v11103_v29, %v8846_v28  ;;  %v9024_v28 = vld [vmem:[%s13475_s6 + $0x78] sm:$0xf0] }
 0x192   : > { %v2368_v47 = vadd.f32 %v2367_v43, %v2354_v36  ;;  %v8863_v27 = vor.u32 %v11107_v26, %v8862_v22  ;;  %v8944_v36 = vld [vmem:[%s13473_s4 + $0x3d8] sm:$0xf0]  ;;  %v11117_v43 = vld [vmem:[%s13473_s4 + $0x38c] sm:$0xf]  ;;  %v11157_v22 = vld [vmem:[%s13475_s6 + $0xc4] sm:$0xf0] }
 0x193   : > { %v2381_v48 = vpop.f32.mrf.mxu2  ;;  %v8915_v46 = vor.u32 %v11117_v43, %v8912_v44  ;;  %v11153_v43 = vld [vmem:[%s13475_s6 + $0xa4] sm:$0xf0]  ;;  %v9142_v44 = vld [vmem:[%s13475_s6 + $0x160] sm:$0xf] }
 0x194   : > { %v2382_v50 = vadd.f32 %v2381_v48, %v2368_v47  ;;  %v2395_v52 = vpop.f32.mrf.mxu3  ;;  %v11113_v47 = vld [vmem:[%s13473_s4 + $0x36c] sm:$0xf]  ;;  %v8896_v48 = vld [vmem:[%s13473_s4 + $0x378] sm:$0xf0] }
 0x195   : > { %3335 = vmatpush.bf16.msrb.mxu2 %v8719_v38  ;;  %v11121_v38 = vld [vmem:[%s13473_s4 + $0x3ac] sm:$0xf]  ;;  %v8899_v49 = vor.u32 %v11113_v47, %v8896_v48 }
 0x196   : > { %v2396_v57 = vadd.f32 %v2395_v52, %v2382_v50  ;;  %v11109_v50 = vld [vmem:[%s13473_s4 + $0x34c] sm:$0xf] }
 0x198   : > { %3336 = vmatmul.bf16.vlgmr.msrb.gmra.mxu2 %v12672_v51  ;;  %v2405_v58 = vmax.f32 %v2396_v57, 0.0  ;;  %v8867_v57 = vor.u32 %v11105_v0, %v8864_v53  ;;  %v11151_v0 = vld [vmem:[%s13475_s6 + $0x94] sm:$0xf0]  ;;  %v9134_v53 = vld [vmem:[%s13475_s6 + $0x150] sm:$0xf] }
 0x199   : > { %3384 = vmatpush.bf16.msra.mxu2 %v8835_v40  ;;  %v8931_v40 = vor.u32 %v11121_v38, %v8928_v39 }
 0x19a   : > { %v12766_v1 = vpack.c.bf16 %v2405_v58, %v2401_v56  ;;  %v8851_v56 = vor.u32 %v11101_v54, %v8848_v55  ;;  %v9022_v58 = vld [vmem:[%s13475_s6 + $0x70] sm:$0xf]  ;;  %v11175_v54 = vld [vmem:[%s13475_s6 + $0x154] sm:$0xf0]  ;;  %v11140_v55 = vld [vmem:[%s13475_s6 + $0x44] sm:$0xf] }
 0x19c   : > { %3238 = vmatmul.bf16.vlgmr.msrb.gmra.mxu3 %v12766_v1 }
 0x19d   : > { %3385 = vmatpush.bf16.msra.mxu2 %v8819_v11  ;;  %3342 = vmatpush.bf16.msrb.mxu3 %v8959_v60  ;;  %v8880_v11 = vld [vmem:[%s13473_s4 + $0x358] sm:$0xf0] }
 0x19e   : > { %v8883_v52 = vor.u32 %v11109_v50, %v8880_v11  ;;  %v9008_v50 = vld [vmem:[%s13475_s6 + $0x58] sm:$0xf0] }
 0x1a1   : > { %3386 = vmatpush.bf16.msra.mxu2 %v8803_v59  ;;  %3343 = vmatpush.bf16.msrb.mxu3 %v8943_v5  ;;  %v11147_v59 = vld [vmem:[%s13475_s6 + $0x74] sm:$0xf0]  ;;  %v8998_v5 = vld [vmem:[%s13475_s6 + $0x40] sm:$0xf] }
 0x1a2   : > { %v9023_v60 = vor.u32 %v11147_v59, %v9022_v58  ;;  %v8999_v7 = vor.u32 %v11141_v6, %v8998_v5  ;;  %v9135_v58 = vor.u32 %v11175_v54, %v9134_v53  ;;  %v9152_v53 = vld [vmem:[%s13475_s6 + $0x178] sm:$0xf0] }
 0x1a4   : > { %3814 = vmatpush.bf16.msrb.mxu0 %v9023_v60  ;;  %v9030_v60 = vld [vmem:[%s13475_s6 + $0x80] sm:$0xf] }
 0x1a5   : > { %3387 = vmatpush.bf16.msra.mxu2 %v8787_v4  ;;  %3344 = vmatpush.bf16.msrb.mxu3 %v8927_v23  ;;  %v8991_v23 = vor.u32 %v11139_v62, %v8990_v8  ;;  %v9088_v8 = vld [vmem:[%s13475_s6 + $0xf8] sm:$0xf0]  ;;  %v3197_v62 = vpop.f32.mrf.mxu0 }
 0x1a8   : > { %3815 = vmatpush.bf16.msrb.mxu0 %v9015_v30  ;;  %v9031_v30 = vor.u32 %v11149_v61, %v9030_v60  ;;  %v11152_v61 = vld [vmem:[%s13475_s6 + $0xa4] sm:$0xf] }
 0x1a9   : > { %3388 = vmatpush.bf16.msra.mxu2 %v8771_v9  ;;  %3345 = vmatpush.bf16.msrb.mxu3 %v8911_v37  ;;  %v9086_v9 = vld [vmem:[%s13475_s6 + $0xf0] sm:$0xf]  ;;  %v8983_v37 = vor.u32 %v11137_v13, %v8982_v19 }
 0x1aa   : > { %v9087_v12 = vor.u32 %v11163_v10, %v9086_v9  ;;  %v9118_v10 = vld [vmem:[%s13475_s6 + $0x130] sm:$0xf] }
 0x1ac   : > { %3294 = vmatmul.bf16.vlgmr.msra.gmra.mxu3 %v12766_v1  ;;  %3828 = vmatpush.bf16.msrb.mxu1 %v9087_v12  ;;  %v11171_v12 = vld [vmem:[%s13475_s6 + $0x134] sm:$0xf0] }
 0x1ad   : > { %3389 = vmatpush.bf16.msra.mxu2 %v8755_v14  ;;  %3346 = vmatpush.bf16.msrb.mxu3 %v8895_v16  ;;  %v9078_v14 = vld [vmem:[%s13475_s6 + $0xe0] sm:$0xf]  ;;  %v8975_v16 = vor.u32 %v11135_v2, %v8974_v45  ;;  %v9119_v13 = vor.u32 %v11171_v12, %v9118_v10  ;;  %v9080_v45 = vld [vmem:[%s13475_s6 + $0xe8] sm:$0xf0] }
 0x1ae   : > { %v9079_v15 = vor.u32 %v11161_v42, %v9078_v14  ;;  %v11136_v14 = vld [vmem:[%s13475_s6 + $0x24] sm:$0xf] }
 0x1af   : > { %v11160_v42 = vld [vmem:[%s13475_s6 + $0xe4] sm:$0xf] }
 0x1b0   : > { %3829 = vmatpush.bf16.msrb.mxu1 %v9079_v15  ;;  %v9083_v2 = vor.u32 %v11160_v42, %v9080_v45  ;;  %v9136_v45 = vld [vmem:[%s13475_s6 + $0x158] sm:$0xf0] }
 0x1b1   : > { %3390 = vmatpush.bf16.msra.mxu2 %v8739_v41  ;;  %3347 = vmatpush.bf16.msrb.mxu3 %v8879_v25  ;;  %v9070_v41 = vld [vmem:[%s13475_s6 + $0xd0] sm:$0xf]  ;;  %v8967_v25 = vor.u32 %v11133_v21, %v8966_v20  ;;  %v8976_v20 = vld [vmem:[%s13475_s6 + $0x18] sm:$0xf0]  ;;  %v11158_v21 = vld [vmem:[%s13475_s6 + $0xd4] sm:$0xf] }
 0x1b2   : > { %v9071_v18 = vor.u32 %v11159_v17, %v9070_v41  ;;  %v9110_v41 = vld [vmem:[%s13475_s6 + $0x120] sm:$0xf] }
 0x1b4   : > { %3830 = vmatpush.bf16.msrb.mxu1 %v9071_v18  ;;  %v11134_v18 = vld [vmem:[%s13475_s6 + $0x14] sm:$0xf] }
 0x1b5   : > { %3391 = vmatpush.bf16.msra.mxu2 %v8723_v24  ;;  %3348 = vmatpush.bf16.msrb.mxu3 %v8863_v27  ;;  %v9062_v24 = vld [vmem:[%s13475_s6 + $0xc0] sm:$0xf]  ;;  %v11146_v27 = vld [vmem:[%s13475_s6 + $0x74] sm:$0xf] }
 0x1b6   : > { %v9063_v26 = vor.u32 %v11157_v22, %v9062_v24  ;;  %v9027_v29 = vor.u32 %v11146_v27, %v9024_v28  ;;  %v8979_v24 = vor.u32 %v11134_v18, %v8976_v20  ;;  %v9102_v27 = vld [vmem:[%s13475_s6 + $0x110] sm:$0xf]  ;;  %v11167_v28 = vld [vmem:[%s13475_s6 + $0x114] sm:$0xf0]  ;;  %v11189_v18 = vld [vmem:[%s13475_s6 + $0x1c4] sm:$0xf0] }
 0x1b8   : > { %3392 = vmatmul.bf16.vlgmr.msra.gmra.mxu2 %v12672_v51  ;;  %v8947_v51 = vor.u32 %v11125_v35, %v8944_v36  ;;  %3831 = vmatpush.bf16.msrb.mxu1 %v9063_v26  ;;  %v11179_v35 = vld [vmem:[%s13475_s6 + $0x174] sm:$0xf0]  ;;  %v11144_v36 = vld [vmem:[%s13475_s6 + $0x64] sm:$0xf]  ;;  %v13086_v26 = vld [vmem:[%s13474_s5] sm:$0xf] }
 0x1b9   : > { %3349 = vmatpush.bf16.msrb.mxu3 %v8847_v33  ;;  %v9150_v33 = vld [vmem:[%s13475_s6 + $0x170] sm:$0xf] }
 0x1ba   : > { %v9151_v38 = vor.u32 %v11179_v35, %v9150_v33  ;;  %v8968_v33 = vld [vmem:[%s13475_s6 + $0x8] sm:$0xf0] }
 0x1bc   : > { %3350 = vmatmul.bf16.vlgmr.msrb.gmra.mxu3 %v12766_v1  ;;  %3842 = vmatpush.bf16.msrb.mxu2 %v9151_v38  ;;  %v2540_v38 = vperm.slane %v13086_v26, 0 }
 0x1bd   : > { %3398 = vmatpush.bf16.msra.mxu3 %v8963_v34  ;;  %v9055_v34 = vor.u32 %v11155_v32, %v9054_v31  ;;  %v9103_v31 = vor.u32 %v11167_v28, %v9102_v27  ;;  %v11132_v32 = vld [vmem:[%s13475_s6 + $0x4] sm:$0xf] }
 0x1bf   : > { %3832 = vmatpush.bf16.msrb.mxu1 %v9055_v34  ;;  %v11156_v34 = vld [vmem:[%s13475_s6 + $0xc4] sm:$0xf] }
 0x1c1   : > { %3399 = vmatpush.bf16.msra.mxu3 %v8947_v51  ;;  %v9016_v51 = vld [vmem:[%s13475_s6 + $0x68] sm:$0xf0] }
 0x1c2   : > { %v9019_v39 = vor.u32 %v11144_v36, %v9016_v51  ;;  %v8971_v36 = vor.u32 %v11132_v32, %v8968_v33  ;;  %v9064_v51 = vld [vmem:[%s13475_s6 + $0xc8] sm:$0xf0]  ;;  %v2541_v33 = vperm.slane %v13086_v26, 1 }
 0x1c5   : > { %3400 = vmatpush.bf16.msra.mxu3 %v8931_v40  ;;  %v9046_v40 = vld [vmem:[%s13475_s6 + $0xa0] sm:$0xf] }
 0x1c6   : > { %v9047_v47 = vor.u32 %v11153_v43, %v9046_v40  ;;  %v9067_v40 = vor.u32 %v11156_v34, %v9064_v51  ;;  %v9094_v43 = vld [vmem:[%s13475_s6 + $0x100] sm:$0xf] }
 0x1c8   : > { %3833 = vmatpush.bf16.msrb.mxu1 %v9047_v47 }
 0x1c9   : > { %3401 = vmatpush.bf16.msra.mxu3 %v8915_v46  ;;  %v11177_v46 = vld [vmem:[%s13475_s6 + $0x164] sm:$0xf0] }
 0x1ca   : > { %v9143_v48 = vor.u32 %v11177_v46, %v9142_v44  ;;  %v11165_v44 = vld [vmem:[%s13475_s6 + $0x104] sm:$0xf0]  ;;  %v9214_v46 = vld [vmem:[%s13475_s6 + $0x1f0] sm:$0xf] }
 0x1cb   : > { %v9095_v47 = vor.u32 %v11165_v44, %v9094_v43  ;;  %v9174_v44 = vld [vmem:[%s13475_s6 + $0x1a0] sm:$0xf] }
 0x1cc   : > { %3843 = vmatpush.bf16.msrb.mxu2 %v9143_v48  ;;  %v11195_v48 = vld [vmem:[%s13475_s6 + $0x1f4] sm:$0xf0] }
 0x1cd   : > { %3402 = vmatpush.bf16.msra.mxu3 %v8899_v49  ;;  %v11142_v49 = vld [vmem:[%s13475_s6 + $0x54] sm:$0xf] }
 0x1ce   : > { %v9011_v11 = vor.u32 %v11142_v49, %v9008_v50  ;;  %v11154_v49 = vld [vmem:[%s13475_s6 + $0xb4] sm:$0xf]  ;;  %v9056_v50 = vld [vmem:[%s13475_s6 + $0xb8] sm:$0xf0] }
 0x1d0   : > { %3844 = vmatpush.bf16.msrb.mxu2 %v9135_v58  ;;  %v11193_v58 = vld [vmem:[%s13475_s6 + $0x1e4] sm:$0xf0] }
 0x1d1   : > { %3403 = vmatpush.bf16.msra.mxu3 %v8883_v52  ;;  %v9038_v52 = vld [vmem:[%s13475_s6 + $0x90] sm:$0xf] }
 0x1d5   : > { %3404 = vmatpush.bf16.msra.mxu3 %v8867_v57  ;;  %v9039_v57 = vor.u32 %v11151_v0, %v9038_v52  ;;  %v9059_v52 = vor.u32 %v11154_v49, %v9056_v50  ;;  %v11178_v0 = vld [vmem:[%s13475_s6 + $0x174] sm:$0xf]  ;;  %v9112_v50 = vld [vmem:[%s13475_s6 + $0x128] sm:$0xf0] }
 0x1d6   : > { %v9155_v54 = vor.u32 %v11178_v0, %v9152_v53  ;;  %v9166_v53 = vld [vmem:[%s13475_s6 + $0x190] sm:$0xf] }
 0x1d7   : > { %3834 = vmatpush.bf16.msrb.mxu1 %v9039_v57 }
 0x1d9   : > { %3405 = vmatpush.bf16.msra.mxu3 %v8851_v56  ;;  %v9000_v56 = vld [vmem:[%s13475_s6 + $0x48] sm:$0xf0] }
 0x1da   : > { %v9003_v59 = vor.u32 %v11140_v55, %v9000_v56  ;;  %v3198_v55 = vadd.f32 %v3197_v62, %v2540_v38  ;;  %v9206_v56 = vld [vmem:[%s13475_s6 + $0x1e0] sm:$0xf] }
 0x1db   : > { %3835 = vmatpush.bf16.msrb.mxu1 %v9031_v30  ;;  %v9207_v60 = vor.u32 %v11193_v58, %v9206_v56  ;;  %v11176_v30 = vld [vmem:[%s13475_s6 + $0x164] sm:$0xf]  ;;  %v11166_v56 = vld [vmem:[%s13475_s6 + $0x114] sm:$0xf]  ;;  %v9104_v58 = vld [vmem:[%s13475_s6 + $0x118] sm:$0xf0] }
 0x1dc   : > { %3406 = vmatmul.bf16.vlgmr.msra.gmra.mxu3 %v12766_v1  ;;  %v9006_v1 = vld [vmem:[%s13475_s6 + $0x50] sm:$0xf] }
 0x1dd   : > { %v9007_v4 = vor.u32 %v11143_v3, %v9006_v1  ;;  %v11173_v1 = vld [vmem:[%s13475_s6 + $0x144] sm:$0xf0]  ;;  %v11138_v3 = vld [vmem:[%s13475_s6 + $0x34] sm:$0xf] }
 0x1de   : > { %v9127_v5 = vor.u32 %v11173_v1, %v9126_v63  ;;  %v9048_v63 = vld [vmem:[%s13475_s6 + $0xa8] sm:$0xf0] }
 0x1df   : > { %3816 = vmatpush.bf16.msrb.mxu0 %v9007_v4  ;;  %v8992_v4 = vld [vmem:[%s13475_s6 + $0x38] sm:$0xf0] }
 0x1e0   : > { %v8995_v6 = vor.u32 %v11138_v3, %v8992_v4  ;;  %3845 = vmatpush.bf16.msrb.mxu2 %v9127_v5  ;;  %v9051_v4 = vor.u32 %v11152_v61, %v9048_v63  ;;  %v9144_v5 = vld [vmem:[%s13475_s6 + $0x168] sm:$0xf0] }
 0x1e3   : > { %3817 = vmatpush.bf16.msrb.mxu0 %v8999_v7  ;;  %v11162_v7 = vld [vmem:[%s13475_s6 + $0xf4] sm:$0xf] }
 0x1e4   : > { %v9091_v9 = vor.u32 %v11162_v7, %v9088_v8  ;;  %3846 = vmatpush.bf16.msrb.mxu2 %v9119_v13  ;;  %v9147_v7 = vor.u32 %v11176_v30, %v9144_v5  ;;  %v11191_v8 = vld [vmem:[%s13475_s6 + $0x1d4] sm:$0xf0]  ;;  %v11150_v13 = vld [vmem:[%s13475_s6 + $0x94] sm:$0xf]  ;;  %v9107_v30 = vor.u32 %v11166_v56, %v9104_v58 }
 0x1e6   : > { %3884 = vmatpush.bf16.msra.mxu1 %v9091_v9 }
 0x1e7   : > { %3818 = vmatpush.bf16.msrb.mxu0 %v8991_v23  ;;  %v13043_v23 = vpop.f32.mrf.mxu1 }
 0x1e8   : > { %v3212_v3 = vadd.f32 %v13043_v23, %v3198_v55 }
 0x1ea   : > { %3885 = vmatpush.bf16.msra.mxu1 %v9083_v2 }
 0x1eb   : > { %3819 = vmatpush.bf16.msrb.mxu0 %v8983_v37  ;;  %v8984_v37 = vld [vmem:[%s13475_s6 + $0x28] sm:$0xf0] }
 0x1ec   : > { %v8987_v15 = vor.u32 %v11136_v14, %v8984_v37  ;;  %v9040_v14 = vld [vmem:[%s13475_s6 + $0x98] sm:$0xf0]  ;;  %v11174_v37 = vld [vmem:[%s13475_s6 + $0x154] sm:$0xf] }
 0x1ef   : > { %3820 = vmatpush.bf16.msrb.mxu0 %v8975_v16  ;;  %v11169_v16 = vld [vmem:[%s13475_s6 + $0x124] sm:$0xf0]  ;;  %v3213_v35 = vpop.f32.mrf.mxu1 }
 0x1f0   : > { %v9111_v17 = vor.u32 %v11169_v16, %v9110_v41  ;;  %v9139_v41 = vor.u32 %v11174_v37, %v9136_v45 }
 0x1f2   : > { %3847 = vmatpush.bf16.msrb.mxu2 %v9111_v17  ;;  %v9190_v17 = vld [vmem:[%s13475_s6 + $0x1c0] sm:$0xf] }
 0x1f3   : > { %3821 = vmatpush.bf16.msrb.mxu0 %v8967_v25  ;;  %v9072_v25 = vld [vmem:[%s13475_s6 + $0xd8] sm:$0xf0]  ;;  %v9191_v20 = vor.u32 %v11189_v18, %v9190_v17 }
 0x1f4   : > { %v9075_v22 = vor.u32 %v11158_v21, %v9072_v25  ;;  %v11148_v21 = vld [vmem:[%s13475_s6 + $0x84] sm:$0xf] }
 0x1f5   : > { %v13051_v19 = vpop.f32.mrf.mxu2  ;;  %v11172_v25 = vld [vmem:[%s13475_s6 + $0x144] sm:$0xf] }
 0x1f6   : > { %3886 = vmatpush.bf16.msra.mxu1 %v9075_v22  ;;  %3848 = vmatpush.bf16.msrb.mxu2 %v9103_v31  ;;  %v3226_v10 = vadd.f32 %v13051_v19, %v3212_v3  ;;  %v9043_v19 = vor.u32 %v11150_v13, %v9040_v14  ;;  %v11181_v3 = vld [vmem:[%s13475_s6 + $0x184] sm:$0xf0]  ;;  %v2542_v13 = vperm.slane %v13086_v26, 2 }
 0x1f7   : > { %3870 = vmatpush.bf16.msra.mxu0 %v9027_v29  ;;  %v3199_v29 = vpop.f32.mrf.mxu0  ;;  %v3267_v9 = vpop.f32.mrf.mxu1 }
 0x1f8   : > { %v3200_v1 = vadd.f32 %v3199_v29, %v2540_v38  ;;  %v9128_v29 = vld [vmem:[%s13475_s6 + $0x148] sm:$0xf0]  ;;  %v11170_v38 = vld [vmem:[%s13475_s6 + $0x134] sm:$0xf] }
 0x1f9   : > { %v9131_v32 = vor.u32 %v11172_v25, %v9128_v29  ;;  %v9200_v25 = vld [vmem:[%s13475_s6 + $0x1d8] sm:$0xf0] }
 0x1fa   : > { %3887 = vmatpush.bf16.msra.mxu1 %v9067_v40  ;;  %3849 = vmatpush.bf16.msrb.mxu2 %v9095_v47  ;;  %v3214_v62 = vadd.f32 %v3213_v35, %v3200_v1  ;;  %v9182_v35 = vld [vmem:[%s13475_s6 + $0x1b0] sm:$0xf]  ;;  %v11168_v47 = vld [vmem:[%s13475_s6 + $0x124] sm:$0xf]  ;;  %v9158_v1 = vld [vmem:[%s13475_s6 + $0x180] sm:$0xf] }
 0x1fb   : > { %3871 = vmatpush.bf16.msra.mxu0 %v9019_v39  ;;  %v9115_v0 = vor.u32 %v11168_v47, %v9112_v50 }
 0x1fd   : > { %v3227_v39 = vpop.f32.mrf.mxu2 }
 0x1fe   : > { %3888 = vmatpush.bf16.msra.mxu1 %v9059_v52  ;;  %3898 = vmatpush.bf16.msra.mxu2 %v9155_v54  ;;  %v3228_v42 = vadd.f32 %v3227_v39, %v3214_v62  ;;  %v9120_v39 = vld [vmem:[%s13475_s6 + $0x138] sm:$0xf0] }
 0x1ff   : > { %3872 = vmatpush.bf16.msra.mxu0 %v9011_v11  ;;  %v9215_v11 = vor.u32 %v11195_v48, %v9214_v46  ;;  %v3269_v40 = vpop.f32.mrf.mxu1  ;;  %v9123_v43 = vor.u32 %v11170_v38, %v9120_v39  ;;  %v11185_v46 = vld [vmem:[%s13475_s6 + $0x1a4] sm:$0xf0] }
 0x200   : > { %v9175_v52 = vor.u32 %v11185_v46, %v9174_v44 }
 0x201   : > { %3856 = vmatpush.bf16.msrb.mxu3 %v9215_v11 }
 0x202   : > { %3889 = vmatpush.bf16.msra.mxu1 %v9051_v4  ;;  %3899 = vmatpush.bf16.msra.mxu2 %v9147_v7 }
 0x203   : > { %3873 = vmatpush.bf16.msra.mxu0 %v9003_v59  ;;  %v13137_v59 = vpop.f32.mrf.mxu0 }
 0x204   : > { %v3254_v11 = vadd.f32 %v13137_v59, %v2541_v33 }
 0x205   : > { %3857 = vmatpush.bf16.msrb.mxu3 %v9207_v60  ;;  %v3281_v12 = vpop.f32.mrf.mxu2 }
 0x206   : > { %3890 = vmatpush.bf16.msra.mxu1 %v9043_v19  ;;  %3900 = vmatpush.bf16.msra.mxu2 %v9139_v41  ;;  %v3268_v55 = vadd.f32 %v3267_v9, %v3254_v11  ;;  %v11192_v41 = vld [vmem:[%s13475_s6 + $0x1e4] sm:$0xf] }
 0x207   : > { %3874 = vmatpush.bf16.msra.mxu0 %v8995_v6  ;;  %v9198_v6 = vld [vmem:[%s13475_s6 + $0x1d0] sm:$0xf]  ;;  %v3323_v62 = vpop.f32.mrf.mxu1 }
 0x208   : > { %v9199_v23 = vor.u32 %v11191_v8, %v9198_v6  ;;  %v3282_v61 = vadd.f32 %v3281_v12, %v3268_v55  ;;  %v9159_v8 = vor.u32 %v11181_v3, %v9158_v1  ;;  %v11194_v12 = vld [vmem:[%s13475_s6 + $0x1f4] sm:$0xf]  ;;  %v9160_v55 = vld [vmem:[%s13475_s6 + $0x188] sm:$0xf0] }
 0x20a   : > { %3858 = vmatpush.bf16.msrb.mxu3 %v9199_v23  ;;  %3901 = vmatpush.bf16.msra.mxu2 %v9131_v32  ;;  %v9096_v23 = vld [vmem:[%s13475_s6 + $0x108] sm:$0xf0] }
 0x20b   : > { %3875 = vmatpush.bf16.msra.mxu0 %v8987_v15  ;;  %v3255_v31 = vpop.f32.mrf.mxu0 }
 0x20c   : > { %v3256_v54 = vadd.f32 %v3255_v31, %v2541_v33  ;;  %v11188_v33 = vld [vmem:[%s13475_s6 + $0x1c4] sm:$0xf] }
 0x20d   : > { %v3283_v48 = vpop.f32.mrf.mxu2 }
 0x20e   : > { %3859 = vmatpush.bf16.msrb.mxu3 %v9191_v20  ;;  %3902 = vmatpush.bf16.msra.mxu2 %v9123_v43  ;;  %v3270_v60 = vadd.f32 %v3269_v40, %v3256_v54  ;;  %v11186_v40 = vld [vmem:[%s13475_s6 + $0x1b4] sm:$0xf]  ;;  %v9184_v43 = vld [vmem:[%s13475_s6 + $0x1b8] sm:$0xf0]  ;;  %v11180_v54 = vld [vmem:[%s13475_s6 + $0x184] sm:$0xf] }
 0x20f   : > { %3876 = vmatpush.bf16.msra.mxu0 %v8979_v24  ;;  %v9032_v24 = vld [vmem:[%s13475_s6 + $0x88] sm:$0xf0]  ;;  %v9187_v47 = vor.u32 %v11186_v40, %v9184_v43  ;;  %v9163_v56 = vor.u32 %v11180_v54, %v9160_v55  ;;  %v9326_v40 = vld [vmem:[#allocation4 + $0xc8] sm:$0xf]  ;;  %v11223_v43 = vld [vmem:[#allocation4 + $0xd4] sm:$0xf0] }
 0x210   : > { %v9035_v28 = vor.u32 %v11148_v21, %v9032_v24  ;;  %v3284_v4 = vadd.f32 %v3283_v48, %v3270_v60  ;;  %v11190_v24 = vld [vmem:[%s13475_s6 + $0x1d4] sm:$0xf]  ;;  %v11184_v48 = vld [vmem:[%s13475_s6 + $0x1a4] sm:$0xf]  ;;  %v2543_v60 = vperm.slane %v13086_v26, 3 }
 0x211   : > { %v9304_v54 = vld [vmem:[#allocation4 + $0xb0] sm:$0xf0]  ;;  %v9310_v55 = vld [vmem:[#allocation4 + $0xa8] sm:$0xf] }
 0x212   : > { %3891 = vmatpush.bf16.msra.mxu1 %v9035_v28  ;;  %3903 = vmatpush.bf16.msra.mxu2 %v9115_v0  ;;  %v3325_v28 = vpop.f32.mrf.mxu1  ;;  %v9168_v0 = vld [vmem:[%s13475_s6 + $0x198] sm:$0xf0] }
 0x213   : > { %3877 = vmatpush.bf16.msra.mxu0 %v8971_v36  ;;  %v11187_v36 = vld [vmem:[%s13475_s6 + $0x1b4] sm:$0xf0]  ;;  %v3309_v59 = vpop.f32.mrf.mxu0 }
 0x214   : > { %v9183_v51 = vor.u32 %v11187_v36, %v9182_v35  ;;  %v3310_v17 = vadd.f32 %v3309_v59, %v2542_v13 }
 0x216   : > { %3860 = vmatpush.bf16.msrb.mxu3 %v9183_v51  ;;  %3904 = vmatpush.bf16.msra.mxu2 %v9107_v30 }
 0x21a   : > { %3861 = vmatpush.bf16.msrb.mxu3 %v9175_v52  ;;  %v11182_v52 = vld [vmem:[%s13475_s6 + $0x194] sm:$0xf]  ;;  %v3379_v58 = vpop.f32.mrf.mxu1 }
 0x21b   : > { %v3337_v9 = vpop.f32.mrf.mxu2 }
 0x21f   : > { %v3239_v57 = vpop.f32.mrf.mxu3 }
 0x220   : > { %v3240_v15 = vadd.f32 %v3239_v57, %v3226_v10  ;;  %v11183_v57 = vld [vmem:[%s13475_s6 + $0x194] sm:$0xf0]  ;;  %v11164_v10 = vld [vmem:[%s13475_s6 + $0x104] sm:$0xf] }
 0x221   : > { %v9167_v63 = vor.u32 %v11183_v57, %v9166_v53  ;;  %v9171_v57 = vor.u32 %v11182_v52, %v9168_v0  ;;  %v9302_v52 = vld [vmem:[#allocation4 + $0xa0] sm:$0xf]  ;;  %v11218_v0 = vld [vmem:[#allocation4 + $0xac] sm:$0xf0] }
 0x222   : > { %v3412_v22 = vmax.f32 %v3240_v15, 0.0  ;;  %v9216_v15 = vld [vmem:[%s13475_s6 + $0x1f8] sm:$0xf0] }
 0x223   : > { %3862 = vmatpush.bf16.msrb.mxu3 %v9167_v63  ;;  %v9219_v19 = vor.u32 %v11194_v12, %v9216_v15  ;;  %v3339_v29 = vpop.f32.mrf.mxu2 }
 0x227   : > { %v3241_v2 = vpop.f32.mrf.mxu3  ;;  %3863 = vmatpush.bf16.msrb.mxu3 %v9159_v8 }
 0x228   : > { %v3242_v16 = vadd.f32 %v3241_v2, %v3228_v42  ;;  %v9099_v42 = vor.u32 %v11164_v10, %v9096_v23  ;;  %v3311_v2 = vpop.f32.mrf.mxu0 }
 0x229   : > { %v3312_v21 = vadd.f32 %v3311_v2, %v2542_v13  ;;  %v11226_v2 = vld [vmem:[#allocation4 + $0xec] sm:$0xf0] }
 0x22a   : > { %v3416_v27 = vmax.f32 %v3242_v16, 0.0  ;;  %3905 = vmatpush.bf16.msra.mxu2 %v9099_v42  ;;  %v9208_v16 = vld [vmem:[%s13475_s6 + $0x1e8] sm:$0xf0] }
 0x22b   : > { %3912 = vmatpush.bf16.msra.mxu3 %v9219_v19  ;;  %v9211_v18 = vor.u32 %v11192_v41, %v9208_v16  ;;  %v3326_v31 = vadd.f32 %v3325_v28, %v3312_v21  ;;  %v11224_v41 = vld [vmem:[#allocation4 + $0xe4] sm:$0xf]  ;;  %v11227_v21 = vld [vmem:[#allocation4 + $0xf4] sm:$0xf0]  ;;  %v9344_v28 = vld [vmem:[#allocation4 + $0xf8] sm:$0xf0] }
 0x22c   : > { %v13190_v34 = vpack.c.bf16 %v3416_v27, %v3412_v22  ;;  %v3324_v22 = vadd.f32 %v3323_v62, %v3310_v17  ;;  %v9203_v27 = vor.u32 %v11190_v24, %v9200_v25 }
 0x22d   : > { %v3340_v35 = vadd.f32 %v3339_v29, %v3326_v31 }
 0x22e   : > { %3822 = vmatmul.bf16.vlgmr.msrb.gmra.mxu0 %v13190_v34  ;;  %v3338_v32 = vadd.f32 %v3337_v9, %v3324_v22 }
 0x22f   : > { %v3295_v49 = vpop.f32.mrf.mxu3  ;;  %3913 = vmatpush.bf16.msra.mxu3 %v9211_v18  ;;  %v9336_v18 = vld [vmem:[#allocation4 + $0xf0] sm:$0xf0] }
 0x230   : > { %v3296_v5 = vadd.f32 %v3295_v49, %v3282_v61  ;;  %v9176_v49 = vld [vmem:[%s13475_s6 + $0x1a8] sm:$0xf0]  ;;  %v3365_v53 = vpop.f32.mrf.mxu0  ;;  %v9339_v25 = vor.u32 %v11224_v41, %v9336_v18  ;;  %v9270_v41 = vld [vmem:[#allocation4 + $0x60] sm:$0xf]  ;;  %v11208_v18 = vld [vmem:[#allocation4 + $0x64] sm:$0xf] }
 0x231   : > { %v9179_v11 = vor.u32 %v11184_v48, %v9176_v49  ;;  %v3366_v63 = vadd.f32 %v3365_v53, %v2543_v60  ;;  %v11221_v48 = vld [vmem:[#allocation4 + $0xcc] sm:$0xf]  ;;  %v9328_v49 = vld [vmem:[#allocation4 + $0xd8] sm:$0xf0]  ;;  %v11216_v53 = vld [vmem:[#allocation4 + $0xa4] sm:$0xf] }
 0x232   : > { %v3413_v14 = vmax.f32 %v3296_v5, 0.0 }
 0x233   : > { %3914 = vmatpush.bf16.msra.mxu3 %v9203_v27  ;;  %v3380_v3 = vadd.f32 %v3379_v58, %v3366_v63  ;;  %v11225_v27 = vld [vmem:[#allocation4 + $0xec] sm:$0xf]  ;;  %v9312_v63 = vld [vmem:[#allocation4 + $0xb8] sm:$0xf0] }
 0x234   : > { %v9347_v31 = vor.u32 %v11225_v27, %v9344_v28  ;;  %v11209_v27 = vld [vmem:[#allocation4 + $0x6c] sm:$0xf]  ;;  %v9280_v28 = vld [vmem:[#allocation4 + $0x78] sm:$0xf0] }
 0x237   : > { %v3297_v6 = vpop.f32.mrf.mxu3 }
 0x238   : > { %v3298_v7 = vadd.f32 %v3297_v6, %v3284_v4  ;;  %v3367_v61 = vpop.f32.mrf.mxu0  ;;  %v3381_v4 = vpop.f32.mrf.mxu1 }
 0x239   : > { %v3368_v1 = vadd.f32 %v3367_v61, %v2543_v60  ;;  %v11217_v61 = vld [vmem:[#allocation4 + $0xac] sm:$0xf] }
 0x23a   : > { %v3417_v37 = vmax.f32 %v3298_v7, 0.0 }
 0x23b   : > { %v3393_v59 = vpop.f32.mrf.mxu2  ;;  %v3382_v6 = vadd.f32 %v3381_v4, %v3368_v1 }
 0x23c   : > { %v3421_v45 = vpack.c.bf16 %v3417_v37, %v3413_v14  ;;  %v3394_v7 = vadd.f32 %v3393_v59, %v3380_v3  ;;  %v13296_v14 = vld [vmem:[%s13476_s7] sm:$0x3]  ;;  %v9307_v59 = vor.u32 %v11216_v53, %v9304_v54  ;;  %v9315_v3 = vor.u32 %v11217_v61, %v9312_v63 }
 0x23d   : > { %v3490_v15 = vperm.slane %v13296_v14, 0 }
 0x23e   : > { %3836 = vmatmul.bf16.vlgmr.msrb.gmra.mxu1 %v3421_v45  ;;  %3878 = vmatmul.bf16.vlgmr.msra.gmra.mxu0 %v13190_v34  ;;  %v9192_v34 = vld [vmem:[%s13475_s6 + $0x1c8] sm:$0xf0] }
 0x23f   : > { %v3351_v20 = vpop.f32.mrf.mxu3  ;;  %v9195_v51 = vor.u32 %v11188_v33, %v9192_v34  ;;  %4185 = vmatpush.bf16.msrb.mxu1 %v9339_v25  ;;  %v9318_v33 = vld [vmem:[#allocation4 + $0xc0] sm:$0xf]  ;;  %v11222_v34 = vld [vmem:[#allocation4 + $0xcc] sm:$0xf0] }
 0x240   : > { %v3352_v36 = vadd.f32 %v3351_v20, %v3338_v32  ;;  %v9342_v20 = vld [vmem:[#allocation4 + $0xe8] sm:$0xf] }
 0x241   : > { %3915 = vmatpush.bf16.msra.mxu3 %v9195_v51  ;;  %v9343_v22 = vor.u32 %v11227_v21, %v9342_v20  ;;  %v9272_v20 = vld [vmem:[#allocation4 + $0x70] sm:$0xf0]  ;;  %v9278_v21 = vld [vmem:[#allocation4 + $0x68] sm:$0xf] }
 0x242   : > { %v3414_v44 = vmax.f32 %v3352_v36, 0.0  ;;  %v9275_v25 = vor.u32 %v11208_v18, %v9272_v20 }
 0x243   : > { %v3395_v5 = vpop.f32.mrf.mxu2 }
 0x244   : > { %v3396_v8 = vadd.f32 %v3395_v5, %v3382_v6  ;;  %v9286_v5 = vld [vmem:[#allocation4 + $0x80] sm:$0xf]  ;;  %v11214_v6 = vld [vmem:[#allocation4 + $0x8c] sm:$0xf0] }
 0x245   : > { %3916 = vmatpush.bf16.msra.mxu3 %v9187_v47  ;;  %v9327_v47 = vor.u32 %v11223_v43, %v9326_v40  ;;  %v9262_v40 = vld [vmem:[#allocation4 + $0x48] sm:$0xf]  ;;  %v11207_v43 = vld [vmem:[#allocation4 + $0x54] sm:$0xf0] }
 0x247   : > { %v3353_v38 = vpop.f32.mrf.mxu3 }
 0x248   : > { %v3354_v39 = vadd.f32 %v3353_v38, %v3340_v35  ;;  %v11220_v35 = vld [vmem:[#allocation4 + $0xc4] sm:$0xf]  ;;  %v9319_v38 = vor.u32 %v11222_v34, %v9318_v33  ;;  %v9254_v33 = vld [vmem:[#allocation4 + $0x40] sm:$0xf]  ;;  %v11206_v34 = vld [vmem:[#allocation4 + $0x4c] sm:$0xf0] }
 0x249   : > { %3917 = vmatpush.bf16.msra.mxu3 %v9179_v11 }
 0x24a   : > { %v3418_v46 = vmax.f32 %v3354_v39, 0.0  ;;  %v9320_v39 = vld [vmem:[#allocation4 + $0xd0] sm:$0xf0] }
 0x24c   : > { %v3422_v50 = vpack.c.bf16 %v3418_v46, %v3414_v44  ;;  %v9323_v46 = vor.u32 %v11220_v35, %v9320_v39  ;;  %v11204_v35 = vld [vmem:[#allocation4 + $0x44] sm:$0xf]  ;;  %v9256_v39 = vld [vmem:[#allocation4 + $0x50] sm:$0xf0] }
 0x24d   : > { %3918 = vmatpush.bf16.msra.mxu3 %v9171_v57  ;;  %v9303_v57 = vor.u32 %v11218_v0, %v9302_v52 }
 0x24e   : > { %3850 = vmatmul.bf16.vlgmr.msrb.gmra.mxu2 %v3422_v50  ;;  %3892 = vmatmul.bf16.vlgmr.msra.gmra.mxu1 %v3421_v45  ;;  %v9334_v45 = vld [vmem:[#allocation4 + $0xe0] sm:$0xf] }
 0x24f   : > { %v9335_v17 = vor.u32 %v11226_v2, %v9334_v45  ;;  %4199 = vmatpush.bf16.msrb.mxu2 %v9343_v22  ;;  %4186 = vmatpush.bf16.msrb.mxu1 %v9323_v46  ;;  %v11211_v22 = vld [vmem:[#allocation4 + $0x74] sm:$0xf0] }
 0x251   : > { %3919 = vmatpush.bf16.msra.mxu3 %v9163_v56  ;;  %4171 = vmatpush.bf16.msrb.mxu0 %v9335_v17  ;;  %v11219_v56 = vld [vmem:[#allocation4 + $0xb4] sm:$0xf0] }
 0x252   : > { %v9311_v60 = vor.u32 %v11219_v56, %v9310_v55  ;;  %v11202_v55 = vld [vmem:[#allocation4 + $0x2c] sm:$0xf0]  ;;  %v11200_v56 = vld [vmem:[#allocation4 + $0x24] sm:$0xf] }
 0x253   : > { %4200 = vmatpush.bf16.msrb.mxu2 %v9327_v47  ;;  %4187 = vmatpush.bf16.msrb.mxu1 %v9307_v59  ;;  %v9259_v47 = vor.u32 %v11204_v35, %v9256_v39  ;;  %v11286_v39 = vld [vmem:[#allocation6 + $0x1cc] sm:$0xf0] }
 0x255   : > { %4172 = vmatpush.bf16.msrb.mxu0 %v9319_v38  ;;  %v9255_v38 = vor.u32 %v11206_v34, %v9254_v33  ;;  %v11290_v33 = vld [vmem:[#allocation6 + $0x1ec] sm:$0xf0] }
 0x257   : > { %4201 = vmatpush.bf16.msrb.mxu2 %v9311_v60 }
 0x259   : > { %4173 = vmatpush.bf16.msrb.mxu0 %v9303_v57  ;;  %v9238_v57 = vld [vmem:[#allocation4 + $0x20] sm:$0xf] }
 0x25a   : > { %v9239_v61 = vor.u32 %v11202_v55, %v9238_v57  ;;  %v11250_v57 = vld [vmem:[#allocation6 + $0xac] sm:$0xf0] }
 0x25b   : > { %v11282_v55 = vld [vmem:[#allocation6 + $0x1ac] sm:$0xf0] }
 0x25e   : > { %3906 = vmatmul.bf16.vlgmr.msra.gmra.mxu2 %v3422_v50  ;;  %v9331_v50 = vor.u32 %v11221_v48, %v9328_v49  ;;  %v9263_v48 = vor.u32 %v11207_v43, %v9262_v40  ;;  %v11205_v49 = vld [vmem:[#allocation4 + $0x4c] sm:$0xf]  ;;  %v9718_v40 = vld [vmem:[#allocation6 + $0x2e0] sm:$0xf]  ;;  %v11322_v43 = vld [vmem:[#allocation6 + $0x2ec] sm:$0xf0] }
 0x25f   : > { %v3407_v30 = vpop.f32.mrf.mxu3 }
 0x260   : > { %v3408_v62 = vadd.f32 %v3407_v30, %v3394_v7  ;;  %v3491_v30 = vperm.slane %v13296_v14, 1  ;;  %v11212_v7 = vld [vmem:[#allocation4 + $0x84] sm:$0xf]  ;;  %v9248_v14 = vld [vmem:[#allocation4 + $0x38] sm:$0xf0] }
 0x262   : > { %v3415_v23 = vmax.f32 %v3408_v62, 0.0 }
 0x267   : > { %v3409_v9 = vpop.f32.mrf.mxu3 }
 0x268   : > { %v3410_v10 = vadd.f32 %v3409_v9, %v3396_v8  ;;  %v9287_v9 = vor.u32 %v11214_v6, %v9286_v5  ;;  %v11201_v5 = vld [vmem:[#allocation4 + $0x2c] sm:$0xf] }
 0x26a   : > { %v3419_v12 = vmax.f32 %v3410_v10, 0.0  ;;  %v9288_v10 = vld [vmem:[#allocation4 + $0x90] sm:$0xf0]  ;;  %4174 = vmatpush.bf16.msrb.mxu0 %v9287_v9 }
 0x26c   : > { %v3423_v13 = vpack.c.bf16 %v3419_v12, %v3415_v23  ;;  %v9294_v23 = vld [vmem:[#allocation4 + $0x88] sm:$0xf]  ;;  %v11215_v12 = vld [vmem:[#allocation4 + $0x94] sm:$0xf0] }
 0x26e   : > { %3864 = vmatmul.bf16.vlgmr.msrb.gmra.mxu3 %v3423_v13 }
 0x26f   : > { %4213 = vmatpush.bf16.msrb.mxu3 %v9347_v31  ;;  %v9283_v31 = vor.u32 %v11209_v27, %v9280_v28  ;;  %v9798_v28 = vld [vmem:[#allocation6 + $0x380] sm:$0xf] }
 0x273   : > { %4214 = vmatpush.bf16.msrb.mxu3 %v9331_v50  ;;  %v9264_v50 = vld [vmem:[#allocation4 + $0x58] sm:$0xf0] }
 0x274   : > { %v9267_v52 = vor.u32 %v11205_v49, %v9264_v50  ;;  %v9719_v49 = vor.u32 %v11322_v43, %v9718_v40  ;;  %v9846_v50 = vld [vmem:[#allocation6 + $0x3e0] sm:$0xf] }
 0x277   : > { %4215 = vmatpush.bf16.msrb.mxu3 %v9315_v3  ;;  %v11203_v3 = vld [vmem:[#allocation4 + $0x34] sm:$0xf0] }
 0x27e   : > { %3920 = vmatmul.bf16.vlgmr.msra.gmra.mxu3 %v3423_v13 }
 0x2ab   : > { %v3823_v26 = vpop.f32.mrf.mxu0 }
 0x2ac   : > { %v3824_v19 = vadd.f32 %v3823_v26, %v3490_v15  ;;  %v9291_v26 = vor.u32 %v11212_v7, %v9288_v10  ;;  %v9251_v7 = vor.u32 %v11201_v5, %v9248_v14  ;;  %v9830_v5 = vld [vmem:[#allocation6 + $0x3c0] sm:$0xf] }
 0x2ae   : > { %4188 = vmatpush.bf16.msrb.mxu1 %v9291_v26  ;;  %v9230_v26 = vld [vmem:[#allocation4 + $0x8] sm:$0xf] }
 0x2b2   : > { %4189 = vmatpush.bf16.msrb.mxu1 %v9275_v25 }
 0x2b3   : > { %v3825_v16 = vpop.f32.mrf.mxu0 }
 0x2b4   : > { %v3826_v11 = vadd.f32 %v3825_v16, %v3490_v15  ;;  %v9296_v15 = vld [vmem:[#allocation4 + $0x98] sm:$0xf0]  ;;  %v11210_v16 = vld [vmem:[#allocation4 + $0x6c] sm:$0xf0] }
 0x2b5   : > { %v9271_v17 = vor.u32 %v11210_v16, %v9270_v41 }
 0x2b6   : > { %4190 = vmatpush.bf16.msrb.mxu1 %v9259_v47 }
 0x2b7   : > { %4175 = vmatpush.bf16.msrb.mxu0 %v9271_v17 }
 0x2bb   : > { %v3837_v37 = vpop.f32.mrf.mxu1  ;;  %v3879_v1 = vpop.f32.mrf.mxu0  ;;  %4176 = vmatpush.bf16.msrb.mxu0 %v9255_v38  ;;  %v9574_v38 = vld [vmem:[#allocation6 + $0x1c0] sm:$0xf] }
 0x2bc   : > { %v3838_v24 = vadd.f32 %v3837_v37, %v3824_v19  ;;  %v9295_v37 = vor.u32 %v11215_v12, %v9294_v23  ;;  %v3880_v2 = vadd.f32 %v3879_v1, %v3491_v30  ;;  %v9246_v1 = vld [vmem:[#allocation4 + $0x28] sm:$0xf]  ;;  %v11196_v23 = vld [vmem:[#allocation4 + $0x4] sm:$0xf]  ;;  %v9224_v12 = vld [vmem:[#allocation4 + $0x10] sm:$0xf0] }
 0x2be   : > { %4202 = vmatpush.bf16.msrb.mxu2 %v9295_v37 }
 0x2bf   : > { %4177 = vmatpush.bf16.msrb.mxu0 %v9239_v61  ;;  %v9702_v61 = vld [vmem:[#allocation6 + $0x2c0] sm:$0xf] }
 0x2c3   : > { %v3839_v29 = vpop.f32.mrf.mxu1 }
 0x2c4   : > { %v3840_v58 = vadd.f32 %v3839_v29, %v3826_v11  ;;  %v9279_v29 = vor.u32 %v11211_v22, %v9278_v21 }
 0x2c6   : > { %4203 = vmatpush.bf16.msrb.mxu2 %v9279_v29  ;;  %v9462_v29 = vld [vmem:[#allocation6 + $0xe0] sm:$0xf] }
 0x2ca   : > { %4204 = vmatpush.bf16.msrb.mxu2 %v9263_v48  ;;  %v9575_v48 = vor.u32 %v11286_v39, %v9574_v38  ;;  %v9382_v38 = vld [vmem:[#allocation6 + $0x40] sm:$0xf]  ;;  %v11238_v39 = vld [vmem:[#allocation6 + $0x4c] sm:$0xf0] }
 0x2cb   : > { %v3893_v8 = vpop.f32.mrf.mxu1 }
 0x2d1   : > { %v3851_v42 = vpop.f32.mrf.mxu2 }
 0x2d2   : > { %v3852_v32 = vadd.f32 %v3851_v42, %v3838_v24  ;;  %v11213_v42 = vld [vmem:[#allocation4 + $0x8c] sm:$0xf]  ;;  %v3894_v24 = vadd.f32 %v3893_v8, %v3880_v2  ;;  %v9222_v8 = vld [vmem:[#allocation4] sm:$0xf] }
 0x2d3   : > { %v9299_v45 = vor.u32 %v11213_v42, %v9296_v15  ;;  %v3895_v11 = vpop.f32.mrf.mxu1  ;;  %v9227_v42 = vor.u32 %v11196_v23, %v9224_v12  ;;  %v11199_v15 = vld [vmem:[#allocation4 + $0x14] sm:$0xf0]  ;;  %v9542_v23 = vld [vmem:[#allocation6 + $0x180] sm:$0xf] }
 0x2d4   : > { %v9231_v2 = vor.u32 %v11199_v15, %v9230_v26  ;;  %v11278_v26 = vld [vmem:[#allocation6 + $0x18c] sm:$0xf0] }
 0x2d5   : > { %4216 = vmatpush.bf16.msrb.mxu3 %v9299_v45  ;;  %v9232_v45 = vld [vmem:[#allocation4 + $0x18] sm:$0xf0]  ;;  %v11314_v15 = vld [vmem:[#allocation6 + $0x2ac] sm:$0xf0] }
 0x2d9   : > { %v3853_v36 = vpop.f32.mrf.mxu2  ;;  %4217 = vmatpush.bf16.msrb.mxu3 %v9283_v31  ;;  %v11258_v31 = vld [vmem:[#allocation6 + $0xec] sm:$0xf0] }
 0x2da   : > { %v3854_v4 = vadd.f32 %v3853_v36, %v3840_v58  ;;  %v3881_v36 = vpop.f32.mrf.mxu0  ;;  %v9240_v58 = vld [vmem:[#allocation4 + $0x30] sm:$0xf0]  ;;  %v9463_v34 = vor.u32 %v11258_v31, %v9462_v29  ;;  %v3962_v31 = vld [vmem:[%s13340_s28] sm:$0xff] }
 0x2db   : > { %v3882_v0 = vadd.f32 %v3881_v36, %v3491_v30  ;;  %v9243_v63 = vor.u32 %v11200_v56, %v9240_v58  ;;  %v9446_v36 = vld [vmem:[#allocation6 + $0xc0] sm:$0xf] }
 0x2dd   : > { %4218 = vmatpush.bf16.msrb.mxu3 %v9267_v52  ;;  %v3896_v59 = vadd.f32 %v3895_v11, %v3882_v0  ;;  %4191 = vmatpush.bf16.msrb.mxu1 %v9243_v63  ;;  %v11354_v11 = vld [vmem:[#allocation6 + $0x3ec] sm:$0xf0]  ;;  %v9430_v52 = vld [vmem:[#allocation6 + $0xa0] sm:$0xf] }
 0x2e1   : > { %v3907_v19 = vpop.f32.mrf.mxu2  ;;  %4219 = vmatpush.bf16.msrb.mxu3 %v9251_v7  ;;  %4192 = vmatpush.bf16.msrb.mxu1 %v9227_v42  ;;  %v11350_v7 = vld [vmem:[#allocation6 + $0x3cc] sm:$0xf0]  ;;  %v9686_v42 = vld [vmem:[#allocation6 + $0x2a0] sm:$0xf] }
 0x2e9   : > { %v3909_v54 = vpop.f32.mrf.mxu2 }
 0x2ea   : > { %v3910_v30 = vadd.f32 %v3909_v54, %v3896_v59  ;;  %v9558_v54 = vld [vmem:[#allocation6 + $0x1a0] sm:$0xf] }
 0x2f1   : > { %v3865_v51 = vpop.f32.mrf.mxu3 }
 0x2f2   : > { %v13305_v44 = vadd.f32 %v3865_v51, %v3852_v32  ;;  %v3908_v32 = vadd.f32 %v3907_v19, %v3894_v24  ;;  %v11197_v19 = vld [vmem:[#allocation4 + $0xc] sm:$0xf] }
 0x2f3   : > { %v9235_v41 = vor.u32 %v11197_v19, %v9232_v45  ;;  %v9687_v45 = vor.u32 %v11314_v15, %v9686_v42 }
 0x2f4   : > { %7349 = vst [vmem:[%s13303_s30] sm:$0xff] %v13305_v44 }
 0x2f5   : > { %4220 = vmatpush.bf16.msrb.mxu3 %v9235_v41  ;;  %v11346_v41 = vld [vmem:[#allocation6 + $0x3ac] sm:$0xf0] }
 0x2f9   : > { %v3867_v62 = vpop.f32.mrf.mxu3 }
 0x2fa   : > { %v13310_v13 = vadd.f32 %v3867_v62, %v3854_v4  ;;  %v9247_v4 = vor.u32 %v11203_v3, %v9246_v1  ;;  %v11198_v62 = vld [vmem:[#allocation4 + $0xc] sm:$0xf0]  ;;  %v9431_v3 = vor.u32 %v11250_v57, %v9430_v52 }
 0x2fb   : > { %v9223_v10 = vor.u32 %v11198_v62, %v9222_v8  ;;  %v9831_v62 = vor.u32 %v11350_v7, %v9830_v5  ;;  %v11270_v52 = vld [vmem:[#allocation6 + $0x14c] sm:$0xf0]  ;;  %v9366_v5 = vld [vmem:[#allocation6 + $0x20] sm:$0xf] }
 0x2fc   : > { %7350 = vst [vmem:[%s13303_s30 + $0x10] sm:$0xff] %v13310_v13  ;;  %4205 = vmatpush.bf16.msrb.mxu2 %v9247_v4  ;;  %v11318_v4 = vld [vmem:[#allocation6 + $0x2cc] sm:$0xf0] }
 0x2fd   : > { %4178 = vmatpush.bf16.msrb.mxu0 %v9223_v10  ;;  %v11246_v10 = vld [vmem:[#allocation6 + $0x8c] sm:$0xf0] }
 0x2fe   : > { %v11266_v7 = vld [vmem:[#allocation6 + $0x12c] sm:$0xf0] }
 0x300   : > { %4206 = vmatpush.bf16.msrb.mxu2 %v9231_v2  ;;  %v9814_v2 = vld [vmem:[#allocation6 + $0x3a0] sm:$0xf] }
 0x301   : > { %v3921_v51 = vpop.f32.mrf.mxu3  ;;  %5017 = vmatpush.bf16.msra.mxu0 %v9463_v34  ;;  %v11342_v34 = vld [vmem:[#allocation6 + $0x38c] sm:$0xf0] }
 0x302   : > { %v13316_v46 = vadd.f32 %v3921_v51, %v3908_v32  ;;  %v9590_v32 = vld [vmem:[#allocation6 + $0x1e0] sm:$0xf]  ;;  %v11254_v51 = vld [vmem:[#allocation6 + $0xcc] sm:$0xf0] }
 0x303   : > { %v9591_v35 = vor.u32 %v11290_v33, %v9590_v32  ;;  %v9447_v47 = vor.u32 %v11254_v51, %v9446_v36  ;;  %v9799_v51 = vor.u32 %v11342_v34, %v9798_v28  ;;  %v11294_v28 = vld [vmem:[#allocation6 + $0x20c] sm:$0xf0]  ;;  %v9720_v33 = vld [vmem:[#allocation6 + $0x2f0] sm:$0xf0] }
 0x304   : > { %v3932_v53 = vand.u32 2147483647, %v13316_v46  ;;  %v3926_v22 = vmax.f32 %v13316_v46, 0.0  ;;  %5045 = vmatpush.bf16.msra.mxu2 %v9719_v49  ;;  %vm3928_vm1 = vcmp.ne.f32.partialorder %v13316_v46, %v13316_v46  ;;  %v9782_v49 = vld [vmem:[#allocation6 + $0x360] sm:$0xf] }
 0x305   : > { %5031 = vmatpush.bf16.msra.mxu1 %v9591_v35  ;;  %5018 = vmatpush.bf16.msra.mxu0 %v9447_v47  ;;  %v9654_v47 = vld [vmem:[#allocation6 + $0x260] sm:$0xf] }
 0x306   : > { %v3934_v60 = vsub.f32 0.0, %v3932_v53  ;;  %v9847_v53 = vor.u32 %v11354_v11, %v9846_v50  ;;  %v9510_v11 = vld [vmem:[#allocation6 + $0x140] sm:$0xf] }
 0x308   : > { %v3936_v6 = vmul.f32 1.442695, %v3934_v60  ;;  %5059 = vmatpush.bf16.msra.mxu3 %v9847_v53  ;;  %v11338_v53 = vld [vmem:[#allocation6 + $0x36c] sm:$0xf0] }
 0x309   : > { %v3923_v9 = vpop.f32.mrf.mxu3  ;;  %5032 = vmatpush.bf16.msra.mxu1 %v9575_v48  ;;  %5019 = vmatpush.bf16.msra.mxu0 %v9431_v3  ;;  %v11306_v48 = vld [vmem:[#allocation6 + $0x26c] sm:$0xf0]  ;;  %v9511_v3 = vor.u32 %v11270_v52, %v9510_v11  ;;  %v9848_v11 = vld [vmem:[#allocation6 + $0x3f0] sm:$0xf0]  ;;  %v11316_v52 = vld [vmem:[#allocation6 + $0x2c4] sm:$0xf] }
 0x30a   : > { %11635 = vpow2.f32 %v3936_v6  ;;  %v13321_v37 = vadd.f32 %v3923_v9, %v3910_v30  ;;  %v9559_v30 = vor.u32 %v11282_v55, %v9558_v54  ;;  %v9703_v6 = vor.u32 %v11318_v4, %v9702_v61  ;;  %v9414_v9 = vld [vmem:[#allocation6 + $0x80] sm:$0xf] }
 0x30b   : > { %v9415_v19 = vor.u32 %v11246_v10, %v9414_v9  ;;  %v9655_v54 = vor.u32 %v11306_v48, %v9654_v47  ;;  %v9734_v47 = vld [vmem:[#allocation6 + $0x300] sm:$0xf]  ;;  %v11326_v48 = vld [vmem:[#allocation6 + $0x30c] sm:$0xf0] }
 0x30c   : > { %v3933_v16 = vand.u32 2147483647, %v13321_v37  ;;  %5046 = vmatpush.bf16.msra.mxu2 %v9703_v6  ;;  %5060 = vmatpush.bf16.msra.mxu3 %v9831_v62  ;;  %v3927_v32 = vmax.f32 %v13321_v37, 0.0  ;;  %vm3929_vm3 = vcmp.ne.f32.partialorder %v13321_v37, %v13321_v37  ;;  %v9766_v62 = vld [vmem:[#allocation6 + $0x340] sm:$0xf] }
 0x30d   : > { %5033 = vmatpush.bf16.msra.mxu1 %v9559_v30  ;;  %5020 = vmatpush.bf16.msra.mxu0 %v9415_v19  ;;  %v9494_v30 = vld [vmem:[#allocation6 + $0x120] sm:$0xf] }
 0x30e   : > { %v3935_v17 = vsub.f32 0.0, %v3933_v16  ;;  %v9398_v16 = vld [vmem:[#allocation6 + $0x60] sm:$0xf]  ;;  %v9495_v19 = vor.u32 %v11266_v7, %v9494_v30  ;;  %v11276_v30 = vld [vmem:[#allocation6 + $0x184] sm:$0xf] }
 0x310   : > { %v11636_v18 = vpop.eup %11635  ;;  %v3938_v20 = vmul.f32 1.442695, %v3935_v17  ;;  %5047 = vmatpush.bf16.msra.mxu2 %v9687_v45  ;;  %v11230_v45 = vld [vmem:[#allocation6 + $0xc] sm:$0xf0] }
 0x311   : > { %v3940_v21 = vadd.f32 1.0, %v11636_v18  ;;  %v3943_v24 = vmul.f32 -0.5, %v11636_v18  ;;  %v3946_v25 = vand.u32 2147483647, %v11636_v18 }
 0x312   : > { %11637 = vpow2.f32 %v3938_v20  ;;  %v9815_v20 = vor.u32 %v11346_v41, %v9814_v2  ;;  %v9478_v2 = vld [vmem:[#allocation6 + $0x100] sm:$0xf]  ;;  %v11262_v41 = vld [vmem:[#allocation6 + $0x10c] sm:$0xf0] }
 0x313   : > { %11639 = vlog2.f32 %v3940_v21  ;;  %v3944_v27 = vadd.f32 1.0, %v3943_v24  ;;  %vm13325_vm0 = vcmp.lt.f32.partialorder %v3946_v25, 0.0004427343  ;;  %v11242_v21 = vld [vmem:[#allocation6 + $0x6c] sm:$0xf0] }
 0x314   : > { %v9526_v24 = vld [vmem:[#allocation6 + $0x160] sm:$0xf]  ;;  %v11274_v25 = vld [vmem:[#allocation6 + $0x16c] sm:$0xf0]  ;;  %5061 = vmatpush.bf16.msra.mxu3 %v9815_v20  ;;  %v9399_v40 = vor.u32 %v11242_v21, %v9398_v16  ;;  %v9592_v21 = vld [vmem:[#allocation6 + $0x1f0] sm:$0xf0] }
 0x315   : > { %v3945_v1 = vmul.f32 %v11636_v18, %v3944_v27  ;;  %v9543_v18 = vor.u32 %v11278_v26, %v9542_v23  ;;  %v11310_v27 = vld [vmem:[#allocation6 + $0x28c] sm:$0xf0]  ;;  %v9527_v43 = vor.u32 %v11274_v25, %v9526_v24  ;;  %v9622_v23 = vld [vmem:[#allocation6 + $0x220] sm:$0xf] }
 0x316   : > { %5021 = vmatpush.bf16.msra.mxu0 %v9399_v40  ;;  %v9350_v26 = vld [vmem:[#allocation6] sm:$0xf]  ;;  %v11330_v25 = vld [vmem:[#allocation6 + $0x32c] sm:$0xf0]  ;;  %v9576_v40 = vld [vmem:[#allocation6 + $0x1d0] sm:$0xf0] }
 0x317   : > { %5034 = vmatpush.bf16.msra.mxu1 %v9543_v18  ;;  %v11288_v18 = vld [vmem:[#allocation6 + $0x1e4] sm:$0xf]  ;;  %v9750_v24 = vld [vmem:[#allocation6 + $0x320] sm:$0xf] }
 0x318   : > { %v13329_v0 = vpop.eup %11637  ;;  %5062 = vmatpush.bf16.msra.mxu3 %v9799_v51  ;;  %v9448_v51 = vld [vmem:[#allocation6 + $0xd0] sm:$0xf0] }
 0x319   : > { %v11640_v56 = vpop.eup %11639  ;;  %v3949_v58 = vadd.f32 1.0, %v13329_v0  ;;  %v3952_v59 = vmul.f32 -0.5, %v13329_v0  ;;  %v3955_v60 = vand.u32 2147483647, %v13329_v0 }
 0x31a   : > { %v3942_v63 = vmul.f32 0.6931472, %v11640_v56 }
 0x31b   : > { %11641 = vlog2.f32 %v3949_v58  ;;  %v3953_v14 = vadd.f32 1.0, %v3952_v59  ;;  %vm13347_vm2 = vcmp.lt.f32.partialorder %v3955_v60, 0.0004427343  ;;  %v9783_v58 = vor.u32 %v11338_v53, %v9782_v49  ;;  %v9638_v59 = vld [vmem:[#allocation6 + $0x240] sm:$0xf]  ;;  %5035 = vmatpush.bf16.msra.mxu1 %v9527_v43 }
 0x31c   : > { %v3948_v8 = vsel %vm13325_vm0, %v3945_v1, %v3942_v63  ;;  %v11302_v60 = vld [vmem:[#allocation6 + $0x24c] sm:$0xf0]  ;;  %v9383_v1 = vor.u32 %v11238_v39, %v9382_v38  ;;  %v9751_v38 = vor.u32 %v11330_v25, %v9750_v24  ;;  %v11284_v39 = vld [vmem:[#allocation6 + $0x1c4] sm:$0xf]  ;;  %v9704_v53 = vld [vmem:[#allocation6 + $0x2d0] sm:$0xf0] }
 0x31d   : > { %v3958_v12 = vadd.f32 %v3948_v8, %v3926_v22  ;;  %v9670_v22 = vld [vmem:[#allocation6 + $0x280] sm:$0xf]  ;;  %v3954_v36 = vmul.f32 %v13329_v0, %v3953_v14  ;;  %v3963_v0 = vld [vmem:[%s13340_s28 + $0x8] sm:$0xff]  ;;  %v11234_v14 = vld [vmem:[#allocation6 + $0x2c] sm:$0xf0]  ;;  %v9639_v8 = vor.u32 %v11302_v60, %v9638_v59  ;;  %5063 = vmatpush.bf16.msra.mxu3 %v9783_v58 }
 0x31e   : > { %5022 = vmatpush.bf16.msra.mxu0 %v9383_v1  ;;  %v9367_v15 = vor.u32 %v11234_v14, %v9366_v5  ;;  %v11280_v58 = vld [vmem:[#allocation6 + $0x1a4] sm:$0xf]  ;;  %v9560_v59 = vld [vmem:[#allocation6 + $0x1b0] sm:$0xf0] }
 0x31f   : > { %v3960_v17 = vsel %vm3928_vm1, %v13316_v46, %v3958_v12  ;;  %v9671_v46 = vor.u32 %v11310_v27, %v9670_v22  ;;  %v11298_v12 = vld [vmem:[#allocation6 + $0x22c] sm:$0xf0]  ;;  %5036 = vmatpush.bf16.msra.mxu1 %v9511_v3  ;;  %v9606_v27 = vld [vmem:[#allocation6 + $0x200] sm:$0xf]  ;;  %v9832_v1 = vld [vmem:[#allocation6 + $0x3d0] sm:$0xf0] }
 0x320   : > { %11643 = vlog2.f32 %v3960_v17  ;;  %v3964_v56 = vmul.f32 %v3962_v31, %v3960_v17  ;;  %v11256_v17 = vld [vmem:[#allocation6 + $0xe4] sm:$0xf]  ;;  %v9479_v31 = vor.u32 %v11262_v41, %v9478_v2  ;;  %v9607_v43 = vor.u32 %v11294_v28, %v9606_v27  ;;  %v9416_v14 = vld [vmem:[#allocation6 + $0x90] sm:$0xf0] }
 0x321   : > { %v11642_v29 = vpop.eup %11641  ;;  %5048 = vmatpush.bf16.msra.mxu2 %v9671_v46  ;;  %v11244_v5 = vld [vmem:[#allocation6 + $0x84] sm:$0xf]  ;;  %v9528_v2 = vld [vmem:[#allocation6 + $0x170] sm:$0xf0] }
 0x322   : > { %v3951_v35 = vmul.f32 0.6931472, %v11642_v29  ;;  %v3966_v9 = vadd.f32 %v3964_v56, %v13305_v44  ;;  %v9464_v44 = vld [vmem:[#allocation6 + $0xf0] sm:$0xf0]  ;;  %5023 = vmatpush.bf16.msra.mxu0 %v9367_v15  ;;  %v9351_v29 = vor.u32 %v11230_v45, %v9350_v26  ;;  %v11272_v45 = vld [vmem:[#allocation6 + $0x164] sm:$0xf] }
 0x323   : > { %5037 = vmatpush.bf16.msra.mxu1 %v9495_v19  ;;  %v9467_v34 = vor.u32 %v11256_v17, %v9464_v44  ;;  %v9432_v56 = vld [vmem:[#allocation6 + $0xb0] sm:$0xf0]  ;;  %v9531_v41 = vor.u32 %v11272_v45, %v9528_v2  ;;  %v11340_v44 = vld [vmem:[#allocation6 + $0x384] sm:$0xf]  ;;  %v11259_v2 = vld [vmem:[#allocation6 + $0xf4] sm:$0xf0] }
 0x324   : > { %v3957_v50 = vsel %vm13347_vm2, %v3954_v36, %v3951_v35  ;;  %v9595_v35 = vor.u32 %v11288_v18, %v9592_v21  ;;  %v11252_v36 = vld [vmem:[#allocation6 + $0xc4] sm:$0xf]  ;;  %v9400_v15 = vld [vmem:[#allocation6 + $0x70] sm:$0xf0] }
 0x325   : > { %v3959_v57 = vadd.f32 %v3957_v50, %v3927_v32  ;;  %5049 = vmatpush.bf16.msra.mxu2 %v9655_v54  ;;  %v11320_v32 = vld [vmem:[#allocation6 + $0x2e4] sm:$0xf]  ;;  %v9672_v17 = vld [vmem:[#allocation6 + $0x290] sm:$0xf0] }
 0x326   : > { %v11644_v55 = vpop.eup %11643  ;;  %v9723_v49 = vor.u32 %v11320_v32, %v9720_v33  ;;  %v11352_v50 = vld [vmem:[#allocation6 + $0x3e4] sm:$0xf]  ;;  %5024 = vmatpush.bf16.msra.mxu0 %v9351_v29  ;;  %v9384_v24 = vld [vmem:[#allocation6 + $0x50] sm:$0xf0] }
 0x327   : > { %v7352_v61 = vmul.f32 0.6931472, %v11644_v55  ;;  %v3961_v63 = vsel %vm3929_vm3, %v13321_v37, %v3959_v57  ;;  %v11334_v37 = vld [vmem:[#allocation6 + $0x34c] sm:$0xf0]  ;;  %5038 = vmatpush.bf16.msra.mxu1 %v9479_v31  ;;  %v9451_v57 = vor.u32 %v11252_v36, %v9448_v51  ;;  %v11248_v54 = vld [vmem:[#allocation6 + $0xa4] sm:$0xf]  ;;  %v9735_v55 = vor.u32 %v11326_v48, %v9734_v47 }
 0x328   : > { %v3965_v4 = vmul.f32 %v3963_v0, %v3961_v63  ;;  %11645 = vlog2.f32 %v3961_v63  ;;  %v9767_v16 = vor.u32 %v11334_v37, %v9766_v62  ;;  %v9579_v0 = vor.u32 %v11284_v39, %v9576_v40  ;;  %v11348_v63 = vld [vmem:[#allocation6 + $0x3c4] sm:$0xf]  ;;  %v9512_v27 = vld [vmem:[#allocation6 + $0x150] sm:$0xf0] }
 0x329   : > { %v7355_v6 = vmul.f32 2.0, %v7352_v61  ;;  %5050 = vmatpush.bf16.msra.mxu2 %v9639_v8  ;;  %v9851_v60 = vor.u32 %v11352_v50, %v9848_v11  ;;  %v9707_v61 = vor.u32 %v11316_v52, %v9704_v53  ;;  %v9435_v3 = vor.u32 %v11248_v54, %v9432_v56  ;;  %v11344_v37 = vld [vmem:[#allocation6 + $0x3a4] sm:$0xf]  ;;  %v9656_v31 = vld [vmem:[#allocation6 + $0x270] sm:$0xf0] }
 0x32a   : > { %v3967_v10 = vadd.f32 %v3965_v4, %v13310_v13  ;;  %v9623_v13 = vor.u32 %v11298_v12, %v9622_v23  ;;  %5064 = vmatpush.bf16.msra.mxu3 %v9767_v16  ;;  %v9563_v4 = vor.u32 %v11280_v58, %v9560_v59  ;;  %v9835_v7 = vor.u32 %v11348_v63, %v9832_v1  ;;  %v9816_v12 = vld [vmem:[#allocation6 + $0x3b0] sm:$0xf0]  ;;  %v11308_v16 = vld [vmem:[#allocation6 + $0x284] sm:$0xf] }
 0x32b   : > { %7357 = vst [vmem:[%s13303_s30 + $0x8] sm:$0xff] %v7355_v6  ;;  %v9544_v6 = vld [vmem:[#allocation6 + $0x190] sm:$0xf0]  ;;  %v9419_v8 = vor.u32 %v11244_v5, %v9416_v14  ;;  %v9819_v26 = vor.u32 %v11344_v37, %v9816_v12  ;;  %v9675_v18 = vor.u32 %v11308_v16, %v9672_v17  ;;  %v11236_v21 = vld [vmem:[#allocation6 + $0x44] sm:$0xf] }
 0x32c   : > { %v3968_v42 = vpack.c.bf16 %v3967_v10, %v3966_v9  ;;  %v9547_v62 = vor.u32 %v11276_v30, %v9544_v6  ;;  %v11312_v9 = vld [vmem:[#allocation6 + $0x2a4] sm:$0xf]  ;;  %v9688_v10 = vld [vmem:[#allocation6 + $0x2b0] sm:$0xf0]  ;;  %v4001_v6 = vld [vmem:[%s13478_s9] sm:$0xf] }
 0x32d   : > { %5051 = vmatpush.bf16.msra.mxu2 %v9623_v13  ;;  %v9691_v23 = vor.u32 %v11312_v9, %v9688_v10  ;;  %v9800_v13 = vld [vmem:[#allocation6 + $0x390] sm:$0xf0]  ;;  %v11268_v25 = vld [vmem:[#allocation6 + $0x144] sm:$0xf]  ;;  %v4004_v9 = vperm.slane %v4001_v6, 1  ;;  %v4005_v17 = vperm.slane %v4001_v6, 2 }
 0x32e   : > { %v11646_v20 = vpop.eup %11645  ;;  %4179 = vmatmul.bf16.vlgmr.msrb.gmra.mxu0 %v3968_v42  ;;  %4193 = vmatmul.bf16.vlgmr.msrb.gmra.mxu1 %v3968_v42  ;;  %v9515_v28 = vor.u32 %v11268_v25, %v9512_v27  ;;  %v11304_v29 = vld [vmem:[#allocation6 + $0x264] sm:$0xf]  ;;  %v9368_v36 = vld [vmem:[#allocation6 + $0x30] sm:$0xf0]  ;;  %v11291_v16 = vld [vmem:[#allocation6 + $0x1f4] sm:$0xf0] }
 0x32f   : > { %v7354_v22 = vmul.f32 0.6931472, %v11646_v20  ;;  %4207 = vmatmul.bf16.vlgmr.msrb.gmra.mxu2 %v3968_v42  ;;  %4221 = vmatmul.bf16.vlgmr.msrb.gmra.mxu3 %v3968_v42  ;;  %v11240_v42 = vld [vmem:[#allocation6 + $0x64] sm:$0xf]  ;;  %v9803_v20 = vor.u32 %v11340_v44, %v9800_v13  ;;  %v9659_v32 = vor.u32 %v11304_v29, %v9656_v31  ;;  %v9496_v39 = vld [vmem:[#allocation6 + $0x130] sm:$0xf0] }
 0x330   : > { %5073 = vmatpush.bf16.msrb.mxu0 %v9467_v34  ;;  %5087 = vmatpush.bf16.msrb.mxu1 %v9595_v35  ;;  %v9403_v19 = vor.u32 %v11240_v42, %v9400_v15  ;;  %v11336_v33 = vld [vmem:[#allocation6 + $0x364] sm:$0xf]  ;;  %v9640_v47 = vld [vmem:[#allocation6 + $0x250] sm:$0xf0]  ;;  %v9470_v15 = vld [vmem:[#allocation6 + $0xe8] sm:$0xf] }
 0x331   : > { %v7356_v46 = vmul.f32 2.0, %v7354_v22  ;;  %5065 = vmatpush.bf16.msra.mxu3 %v9751_v38  ;;  %5052 = vmatpush.bf16.msra.mxu2 %v9607_v43  ;;  %v9387_v22 = vor.u32 %v11236_v21, %v9384_v24  ;;  %v11232_v35 = vld [vmem:[#allocation6 + $0x24] sm:$0xf]  ;;  %v9768_v50 = vld [vmem:[#allocation6 + $0x350] sm:$0xf0]  ;;  %v4006_v44 = vperm.slane %v4001_v6, 3  ;;  %v9471_v24 = vor.u32 %v11259_v2, %v9470_v15 }
 0x332   : > { %v11264_v51 = vld [vmem:[#allocation6 + $0x124] sm:$0xf]  ;;  %v9371_v38 = vor.u32 %v11232_v35, %v9368_v36  ;;  %v9352_v53 = vld [vmem:[#allocation6 + $0x10] sm:$0xf0]  ;;  %v11255_v27 = vld [vmem:[#allocation6 + $0xd4] sm:$0xf0] }
 0x333   : > { %7358 = vst [vmem:[%s13303_s30 + $0x18] sm:$0xff] %v7356_v46  ;;  %v9784_v46 = vld [vmem:[#allocation6 + $0x370] sm:$0xf0]  ;;  %v9499_v40 = vor.u32 %v11264_v51, %v9496_v39  ;;  %v11300_v43 = vld [vmem:[#allocation6 + $0x244] sm:$0xf] }
 0x334   : > { %5074 = vmatpush.bf16.msrb.mxu0 %v9451_v57  ;;  %5088 = vmatpush.bf16.msrb.mxu1 %v9579_v0  ;;  %v9787_v34 = vor.u32 %v11336_v33, %v9784_v46  ;;  %v11332_v48 = vld [vmem:[#allocation6 + $0x344] sm:$0xf]  ;;  %v9480_v54 = vld [vmem:[#allocation6 + $0x110] sm:$0xf0]  ;;  %v9582_v31 = vld [vmem:[#allocation6 + $0x1c8] sm:$0xf] }
 0x335   : > { %5101 = vmatpush.bf16.msrb.mxu2 %v9723_v49  ;;  %5066 = vmatpush.bf16.msra.mxu3 %v9735_v55  ;;  %v9643_v49 = vor.u32 %v11300_v43, %v9640_v47  ;;  %v9771_v11 = vor.u32 %v11332_v48, %v9768_v50  ;;  %v11228_v52 = vld [vmem:[#allocation6 + $0x4] sm:$0xf]  ;;  %v9624_v58 = vld [vmem:[#allocation6 + $0x230] sm:$0xf0]  ;;  %v9726_v51 = vld [vmem:[#allocation6 + $0x2e8] sm:$0xf] }
 0x336   : > { %v11260_v57 = vld [vmem:[#allocation6 + $0x104] sm:$0xf]  ;;  %v9355_v0 = vor.u32 %v11228_v52, %v9352_v53  ;;  %v9736_v14 = vld [vmem:[#allocation6 + $0x310] sm:$0xf0]  ;;  %v9854_v39 = vld [vmem:[#allocation6 + $0x3e8] sm:$0xf] }
 0x337   : > { %v9483_v55 = vor.u32 %v11260_v57, %v9480_v54  ;;  %v11296_v56 = vld [vmem:[#allocation6 + $0x224] sm:$0xf]  ;;  %v11355_v48 = vld [vmem:[#allocation6 + $0x3f4] sm:$0xf0]  ;;  %v9534_v15 = vld [vmem:[#allocation6 + $0x168] sm:$0xf] }
 0x338   : > { %5075 = vmatpush.bf16.msrb.mxu0 %v9435_v3  ;;  %5089 = vmatpush.bf16.msrb.mxu1 %v9563_v4  ;;  %v11328_v59 = vld [vmem:[#allocation6 + $0x324] sm:$0xf]  ;;  %v9608_v3 = vld [vmem:[#allocation6 + $0x210] sm:$0xf0]  ;;  %v11251_v50 = vld [vmem:[#allocation6 + $0xb4] sm:$0xf0] }
 0x339   : > { %5115 = vmatpush.bf16.msrb.mxu3 %v9851_v60  ;;  %5102 = vmatpush.bf16.msrb.mxu2 %v9707_v61  ;;  %v9752_v60 = vld [vmem:[#allocation6 + $0x330] sm:$0xf0]  ;;  %v9627_v61 = vor.u32 %v11296_v56, %v9624_v58  ;;  %v11292_v1 = vld [vmem:[#allocation6 + $0x204] sm:$0xf]  ;;  %v11283_v52 = vld [vmem:[#allocation6 + $0x1b4] sm:$0xf0]  ;;  %v9855_v56 = vor.u32 %v11355_v48, %v9854_v39 }
 0x33a   : > { %v9755_v63 = vor.u32 %v11328_v59, %v9752_v60  ;;  %v9611_v4 = vor.u32 %v11292_v1, %v9608_v3  ;;  %v11324_v5 = vld [vmem:[#allocation6 + $0x304] sm:$0xf]  ;;  %v9710_v59 = vld [vmem:[#allocation6 + $0x2c8] sm:$0xf]  ;;  %v11319_v60 = vld [vmem:[#allocation6 + $0x2d4] sm:$0xf0] }
 0x33b   : > { %v9739_v30 = vor.u32 %v11324_v5, %v9736_v14  ;;  %v9838_v3 = vld [vmem:[#allocation6 + $0x3c8] sm:$0xf]  ;;  %v11247_v14 = vld [vmem:[#allocation6 + $0x94] sm:$0xf0] }
 0x33c   : > { %5076 = vmatpush.bf16.msrb.mxu0 %v9419_v8  ;;  %5090 = vmatpush.bf16.msrb.mxu1 %v9547_v62  ;;  %v4003_v62 = vperm.slane %v4001_v6, 0  ;;  %v9422_v5 = vld [vmem:[#allocation6 + $0x88] sm:$0xf]  ;;  %v11279_v6 = vld [vmem:[#allocation6 + $0x194] sm:$0xf0] }
 0x33d   : > { %5116 = vmatpush.bf16.msrb.mxu3 %v9835_v7  ;;  %5103 = vmatpush.bf16.msrb.mxu2 %v9691_v23  ;;  %v11267_v39 = vld [vmem:[#allocation6 + $0x134] sm:$0xf0] }
 0x33e   : > { %v11303_v48 = vld [vmem:[#allocation6 + $0x254] sm:$0xf0] }
 0x340   : > { %5077 = vmatpush.bf16.msrb.mxu0 %v9403_v19  ;;  %5091 = vmatpush.bf16.msrb.mxu1 %v9531_v41  ;;  %v9598_v41 = vld [vmem:[#allocation6 + $0x1e8] sm:$0xf] }
 0x341   : > { %5117 = vmatpush.bf16.msrb.mxu3 %v9819_v26  ;;  %5104 = vmatpush.bf16.msrb.mxu2 %v9675_v18  ;;  %v9599_v25 = vor.u32 %v11291_v16, %v9598_v41  ;;  %v9678_v41 = vld [vmem:[#allocation6 + $0x288] sm:$0xf]  ;;  %v11311_v16 = vld [vmem:[#allocation6 + $0x294] sm:$0xf0] }
 0x344   : > { %5078 = vmatpush.bf16.msrb.mxu0 %v9387_v22  ;;  %5092 = vmatpush.bf16.msrb.mxu1 %v9515_v28  ;;  %v9454_v22 = vld [vmem:[#allocation6 + $0xc8] sm:$0xf] }
 0x345   : > { %5118 = vmatpush.bf16.msrb.mxu3 %v9803_v20  ;;  %5105 = vmatpush.bf16.msrb.mxu2 %v9659_v32  ;;  %v11287_v32 = vld [vmem:[#allocation6 + $0x1d4] sm:$0xf0]  ;;  %v9455_v36 = vor.u32 %v11255_v27, %v9454_v22  ;;  %v9679_v22 = vor.u32 %v11311_v16, %v9678_v41  ;;  %v11353_v41 = vld [vmem:[#allocation6 + $0x3ec] sm:$0xf]  ;;  %v9856_v16 = vld [vmem:[#allocation6 + $0x3f8] sm:$0xf0] }
 0x346   : > { %v9583_v47 = vor.u32 %v11287_v32, %v9582_v31  ;;  %v9662_v31 = vld [vmem:[#allocation6 + $0x268] sm:$0xf]  ;;  %v11307_v32 = vld [vmem:[#allocation6 + $0x274] sm:$0xf0] }
 0x348   : > { %5079 = vmatpush.bf16.msrb.mxu0 %v9371_v38  ;;  %5093 = vmatpush.bf16.msrb.mxu1 %v9499_v40  ;;  %v11323_v38 = vld [vmem:[#allocation6 + $0x2f4] sm:$0xf0] }
 0x349   : > { %5119 = vmatpush.bf16.msrb.mxu3 %v9787_v34  ;;  %5106 = vmatpush.bf16.msrb.mxu2 %v9643_v49  ;;  %v9438_v49 = vld [vmem:[#allocation6 + $0xa8] sm:$0xf] }
 0x34a   : > { %v9439_v58 = vor.u32 %v11251_v50, %v9438_v49  ;;  %v9774_v49 = vld [vmem:[#allocation6 + $0x348] sm:$0xf]  ;;  %v11335_v50 = vld [vmem:[#allocation6 + $0x354] sm:$0xf0] }
 0x34c   : > { %5080 = vmatpush.bf16.msrb.mxu0 %v9355_v0  ;;  %5094 = vmatpush.bf16.msrb.mxu1 %v9483_v55  ;;  %v9727_v55 = vor.u32 %v11323_v38, %v9726_v51  ;;  %v11235_v51 = vld [vmem:[#allocation6 + $0x34] sm:$0xf0]  ;;  %v9502_v38 = vld [vmem:[#allocation6 + $0x128] sm:$0xf] }
 0x34d   : > { %5120 = vmatpush.bf16.msrb.mxu3 %v9771_v11  ;;  %5107 = vmatpush.bf16.msrb.mxu2 %v9627_v61  ;;  %v9566_v11 = vld [vmem:[#allocation6 + $0x1a8] sm:$0xf] }
 0x34e   : > { %v9567_v1 = vor.u32 %v11283_v52, %v9566_v11  ;;  %v9503_v52 = vor.u32 %v11267_v39, %v9502_v38  ;;  %v11277_v38 = vld [vmem:[#allocation6 + $0x18c] sm:$0xf]  ;;  %v9552_v39 = vld [vmem:[#allocation6 + $0x198] sm:$0xf0] }
 0x351   : > { %5121 = vmatpush.bf16.msrb.mxu3 %v9755_v63  ;;  %5108 = vmatpush.bf16.msrb.mxu2 %v9611_v4  ;;  %v11351_v4 = vld [vmem:[#allocation6 + $0x3d4] sm:$0xf0] }
 0x355   : > { %5122 = vmatpush.bf16.msrb.mxu3 %v9739_v30  ;;  %v9550_v30 = vld [vmem:[#allocation6 + $0x188] sm:$0xf] }
 0x3ab   : > { %v4180_v7 = vpop.f32.mrf.mxu0  ;;  %v4194_v8 = vpop.f32.mrf.mxu1 }
 0x3ac   : > { %v4181_v10 = vadd.f32 %v4180_v7, %v4003_v62  ;;  %v4195_v37 = vadd.f32 %v4194_v8, %v4004_v9  ;;  %v9711_v7 = vor.u32 %v11319_v60, %v9710_v59  ;;  %v9839_v8 = vor.u32 %v11351_v4, %v9838_v3  ;;  %v11289_v60 = vld [vmem:[#allocation6 + $0x1ec] sm:$0xf]  ;;  %v9630_v3 = vld [vmem:[#allocation6 + $0x228] sm:$0xf]  ;;  %v11299_v4 = vld [vmem:[#allocation6 + $0x234] sm:$0xf0] }
 0x3ad   : > { %v9775_v59 = vor.u32 %v11335_v50, %v9774_v49  ;;  %v11345_v49 = vld [vmem:[#allocation6 + $0x3ac] sm:$0xf]  ;;  %v9824_v50 = vld [vmem:[#allocation6 + $0x3b8] sm:$0xf0] }
 0x3ae   : > { %v4227_v18 = vmax.f32 %v4181_v10, 0.0  ;;  %v4228_v13 = vmax.f32 %v4195_v37, 0.0  ;;  %v9551_v10 = vor.u32 %v11279_v6, %v9550_v30  ;;  %v11315_v37 = vld [vmem:[#allocation6 + $0x2b4] sm:$0xf0] }
 0x3b2   : > { %v4208_v23 = vpop.f32.mrf.mxu2  ;;  %v4222_v12 = vpop.f32.mrf.mxu3 }
 0x3b3   : > { %v4182_v26 = vpop.f32.mrf.mxu0  ;;  %v4196_v42 = vpop.f32.mrf.mxu1  ;;  %v4209_v33 = vadd.f32 %v4208_v23, %v4005_v17  ;;  %v4223_v46 = vadd.f32 %v4222_v12, %v4006_v44  ;;  %v9822_v23 = vld [vmem:[#allocation6 + $0x3a8] sm:$0xf]  ;;  %v11347_v12 = vld [vmem:[#allocation6 + $0x3b4] sm:$0xf0] }
 0x3b4   : > { %v4183_v19 = vadd.f32 %v4182_v26, %v4003_v62  ;;  %v4197_v45 = vadd.f32 %v4196_v42, %v4004_v9  ;;  %v9694_v62 = vld [vmem:[#allocation6 + $0x2a8] sm:$0xf]  ;;  %v9423_v9 = vor.u32 %v11247_v14, %v9422_v5  ;;  %v11243_v42 = vld [vmem:[#allocation6 + $0x74] sm:$0xf0]  ;;  %v9823_v2 = vor.u32 %v11347_v12, %v9822_v23  ;;  %v9584_v12 = vld [vmem:[#allocation6 + $0x1d8] sm:$0xf0] }
 0x3b5   : > { %v4229_v53 = vmax.f32 %v4209_v33, 0.0  ;;  %v4230_v57 = vmax.f32 %v4223_v46, 0.0  ;;  %v9406_v26 = vld [vmem:[#allocation6 + $0x68] sm:$0xf]  ;;  %v11339_v46 = vld [vmem:[#allocation6 + $0x374] sm:$0xf0] }
 0x3b6   : > { %v4231_v20 = vmax.f32 %v4183_v19, 0.0  ;;  %v4232_v21 = vmax.f32 %v4197_v45, 0.0  ;;  %v11275_v19 = vld [vmem:[#allocation6 + $0x174] sm:$0xf0]  ;;  %v9695_v45 = vor.u32 %v11315_v37, %v9694_v62  ;;  %v9790_v33 = vld [vmem:[#allocation6 + $0x368] sm:$0xf]  ;;  %v9631_v37 = vor.u32 %v11299_v4, %v9630_v3 }
 0x3b7   : > { %v9758_v5 = vld [vmem:[#allocation6 + $0x328] sm:$0xf]  ;;  %v11331_v14 = vld [vmem:[#allocation6 + $0x334] sm:$0xf0]  ;;  %v11253_v62 = vld [vmem:[#allocation6 + $0xcc] sm:$0xf] }
 0x3b8   : > { %v13365_v28 = vpack.c.bf16 %v4231_v20, %v4227_v18  ;;  %v13367_v29 = vpack.c.bf16 %v4232_v21, %v4228_v13  ;;  %v9407_v18 = vor.u32 %v11243_v42, %v9406_v26  ;;  %v9535_v13 = vor.u32 %v11275_v19, %v9534_v15  ;;  %v9390_v20 = vld [vmem:[#allocation6 + $0x48] sm:$0xf]  ;;  %v11239_v21 = vld [vmem:[#allocation6 + $0x54] sm:$0xf0] }
 0x3b9   : > { %v9759_v23 = vor.u32 %v11331_v14, %v9758_v5  ;;  %v9614_v26 = vld [vmem:[#allocation6 + $0x208] sm:$0xf]  ;;  %v11295_v42 = vld [vmem:[#allocation6 + $0x214] sm:$0xf0]  ;;  %v11237_v5 = vld [vmem:[#allocation6 + $0x4c] sm:$0xf] }
 0x3ba   : > { %v4210_v34 = vpop.f32.mrf.mxu2  ;;  %v4224_v35 = vpop.f32.mrf.mxu3  ;;  %5025 = vmatmul.bf16.vlgmr.msra.gmra.mxu0 %v13365_v28  ;;  %5039 = vmatmul.bf16.vlgmr.msra.gmra.mxu1 %v13367_v29  ;;  %v9742_v15 = vld [vmem:[#allocation6 + $0x308] sm:$0xf]  ;;  %v11327_v19 = vld [vmem:[#allocation6 + $0x314] sm:$0xf0]  ;;  %v9392_v14 = vld [vmem:[#allocation6 + $0x58] sm:$0xf0] }
 0x3bb   : > { %v4211_v40 = vadd.f32 %v4210_v34, %v4005_v17  ;;  %v4225_v43 = vadd.f32 %v4224_v35, %v4006_v44  ;;  %5129 = vmatpush.bf16.msra.mxu0 %v9471_v24  ;;  %5143 = vmatpush.bf16.msra.mxu1 %v9599_v25  ;;  %v9806_v17 = vld [vmem:[#allocation6 + $0x388] sm:$0xf]  ;;  %v11343_v44 = vld [vmem:[#allocation6 + $0x394] sm:$0xf0]  ;;  %v9391_v34 = vor.u32 %v11239_v21, %v9390_v20  ;;  %v9440_v21 = vld [vmem:[#allocation6 + $0xb8] sm:$0xf0] }
 0x3bc   : > { %v9518_v24 = vld [vmem:[#allocation6 + $0x148] sm:$0xf]  ;;  %v11271_v25 = vld [vmem:[#allocation6 + $0x154] sm:$0xf0]  ;;  %v9807_v27 = vor.u32 %v11343_v44, %v9806_v17  ;;  %v9743_v20 = vor.u32 %v11327_v19, %v9742_v15  ;;  %v11265_v15 = vld [vmem:[#allocation6 + $0x12c] sm:$0xf] }
 0x3bd   : > { %v4233_v0 = vmax.f32 %v4211_v40, 0.0  ;;  %v4234_v54 = vmax.f32 %v4225_v43, 0.0  ;;  %v9519_v35 = vor.u32 %v11271_v25, %v9518_v24  ;;  %v9663_v40 = vor.u32 %v11307_v32, %v9662_v31  ;;  %v11281_v24 = vld [vmem:[#allocation6 + $0x1ac] sm:$0xf]  ;;  %v9568_v25 = vld [vmem:[#allocation6 + $0x1b8] sm:$0xf0] }
 0x3be   : > { %v9791_v43 = vor.u32 %v11339_v46, %v9790_v33  ;;  %v11317_v31 = vld [vmem:[#allocation6 + $0x2cc] sm:$0xf]  ;;  %v9712_v32 = vld [vmem:[#allocation6 + $0x2d8] sm:$0xf0] }
 0x3bf   : > { %v13371_v61 = vpack.c.bf16 %v4233_v0, %v4229_v53  ;;  %v13373_v63 = vpack.c.bf16 %v4234_v54, %v4230_v57  ;;  %5130 = vmatpush.bf16.msra.mxu0 %v9455_v36  ;;  %5144 = vmatpush.bf16.msra.mxu1 %v9583_v47  ;;  %v9374_v36 = vld [vmem:[#allocation6 + $0x28] sm:$0xf]  ;;  %v11231_v57 = vld [vmem:[#allocation6 + $0x14] sm:$0xf0]  ;;  %v11349_v33 = vld [vmem:[#allocation6 + $0x3cc] sm:$0xf] }
 0x3c0   : > { %v9646_v47 = vld [vmem:[#allocation6 + $0x248] sm:$0xf]  ;;  %v9375_v11 = vor.u32 %v11235_v51, %v9374_v36  ;;  %v11263_v54 = vld [vmem:[#allocation6 + $0x114] sm:$0xf0]  ;;  %v9840_v46 = vld [vmem:[#allocation6 + $0x3d8] sm:$0xf0] }
 0x3c1   : > { %5053 = vmatmul.bf16.vlgmr.msra.gmra.mxu2 %v13371_v61  ;;  %5067 = vmatmul.bf16.vlgmr.msra.gmra.mxu3 %v13373_v63  ;;  %v9358_v53 = vld [vmem:[#allocation6 + $0x8] sm:$0xf]  ;;  %v11245_v36 = vld [vmem:[#allocation6 + $0x8c] sm:$0xf]  ;;  %v9424_v51 = vld [vmem:[#allocation6 + $0x98] sm:$0xf0] }
 0x3c2   : > { %5157 = vmatpush.bf16.msra.mxu2 %v9727_v55  ;;  %5171 = vmatpush.bf16.msra.mxu3 %v9855_v56  ;;  %v9486_v0 = vld [vmem:[#allocation6 + $0x108] sm:$0xf]  ;;  %v11257_v55 = vld [vmem:[#allocation6 + $0xec] sm:$0xf]  ;;  %v9472_v56 = vld [vmem:[#allocation6 + $0xf8] sm:$0xf0]  ;;  %v9359_v30 = vor.u32 %v11231_v57, %v9358_v53 }
 0x3c3   : > { %5131 = vmatpush.bf16.msra.mxu0 %v9439_v58  ;;  %5145 = vmatpush.bf16.msra.mxu1 %v9567_v1  ;;  %v9647_v58 = vor.u32 %v11303_v48, %v9646_v47  ;;  %v9600_v1 = vld [vmem:[#allocation6 + $0x1f8] sm:$0xf0]  ;;  %v9487_v6 = vor.u32 %v11263_v54, %v9486_v0  ;;  %v11313_v47 = vld [vmem:[#allocation6 + $0x2ac] sm:$0xf] }
 0x3c4   : > { %v9696_v48 = vld [vmem:[#allocation6 + $0x2b8] sm:$0xf0]  ;;  %v11241_v53 = vld [vmem:[#allocation6 + $0x6c] sm:$0xf] }
 0x3c5   : > { %v9408_v57 = vld [vmem:[#allocation6 + $0x78] sm:$0xf0]  ;;  %v11273_v0 = vld [vmem:[#allocation6 + $0x16c] sm:$0xf] }
 0x3c6   : > { %5158 = vmatpush.bf16.msra.mxu2 %v9711_v7  ;;  %5172 = vmatpush.bf16.msra.mxu3 %v9839_v8  ;;  %v9475_v7 = vor.u32 %v11257_v55, %v9472_v56  ;;  %v9603_v8 = vor.u32 %v11289_v60, %v9600_v1  ;;  %v9536_v54 = vld [vmem:[#allocation6 + $0x178] sm:$0xf0]  ;;  %v9699_v55 = vor.u32 %v11313_v47, %v9696_v48  ;;  %v11341_v60 = vld [vmem:[#allocation6 + $0x38c] sm:$0xf]  ;;  %v10030_v47 = vld [vmem:[#allocation7 + $0x150] sm:$0xf] }
 0x3c7   : > { %5132 = vmatpush.bf16.msra.mxu0 %v9423_v9  ;;  %5146 = vmatpush.bf16.msra.mxu1 %v9551_v10  ;;  %v9456_v9 = vld [vmem:[#allocation6 + $0xd8] sm:$0xf0]  ;;  %v11285_v10 = vld [vmem:[#allocation6 + $0x1cc] sm:$0xf]  ;;  %v9827_v56 = vor.u32 %v11345_v49, %v9824_v50  ;;  %v9411_v3 = vor.u32 %v11241_v53, %v9408_v57  ;;  %v9539_v4 = vor.u32 %v11273_v0, %v9536_v54 }
 0x3c8   : > { %v9459_v17 = vor.u32 %v11253_v62, %v9456_v9  ;;  %v9587_v44 = vor.u32 %v11285_v10, %v9584_v12  ;;  %v9808_v1 = vld [vmem:[#allocation6 + $0x398] sm:$0xf0]  ;;  %v11305_v62 = vld [vmem:[#allocation6 + $0x26c] sm:$0xf] }
 0x3c9   : > { %v9664_v9 = vld [vmem:[#allocation6 + $0x278] sm:$0xf0]  ;;  %v11337_v10 = vld [vmem:[#allocation6 + $0x36c] sm:$0xf] }
 0x3ca   : > { %5159 = vmatpush.bf16.msra.mxu2 %v9695_v45  ;;  %5173 = vmatpush.bf16.msra.mxu3 %v9823_v2  ;;  %v11321_v45 = vld [vmem:[#allocation6 + $0x2ec] sm:$0xf]  ;;  %v9728_v2 = vld [vmem:[#allocation6 + $0x2f8] sm:$0xf0] }
 0x3cb   : > { %5081 = vmatmul.bf16.vlgmr.msrb.gmra.mxu0 %v13365_v28  ;;  %5095 = vmatmul.bf16.vlgmr.msrb.gmra.mxu1 %v13367_v29  ;;  %v9504_v19 = vld [vmem:[#allocation6 + $0x138] sm:$0xf0]  ;;  %v11457_v53 = vld [vmem:[#allocation7 + $0x328] sm:$0xf0] }
 0x3cc   : > { %5133 = vmatpush.bf16.msra.mxu0 %v9407_v18  ;;  %5147 = vmatpush.bf16.msra.mxu1 %v9535_v13  ;;  %v11249_v18 = vld [vmem:[#allocation6 + $0xac] sm:$0xf]  ;;  %v9615_v13 = vor.u32 %v11295_v42, %v9614_v26  ;;  %v9376_v42 = vld [vmem:[#allocation6 + $0x38] sm:$0xf0] }
 0x3cd   : > { %v11233_v26 = vld [vmem:[#allocation6 + $0x2c] sm:$0xf]  ;;  %v9616_v57 = vld [vmem:[#allocation6 + $0x218] sm:$0xf0] }
 0x3ce   : > { %5160 = vmatpush.bf16.msra.mxu2 %v9679_v22  ;;  %5174 = vmatpush.bf16.msra.mxu3 %v9807_v27  ;;  %v9731_v22 = vor.u32 %v11321_v45, %v9728_v2  ;;  %v9859_v27 = vor.u32 %v11353_v41, %v9856_v16  ;;  %v9667_v45 = vor.u32 %v11305_v62, %v9664_v9  ;;  %v11301_v41 = vld [vmem:[#allocation6 + $0x24c] sm:$0xf]  ;;  %v9648_v16 = vld [vmem:[#allocation6 + $0x258] sm:$0xf0]  ;;  %v9946_v62 = vld [vmem:[#allocation7 + $0xa8] sm:$0xf] }
 0x3cf   : > { %v11325_v0 = vld [vmem:[#allocation6 + $0x30c] sm:$0xf]  ;;  %v9744_v54 = vld [vmem:[#allocation6 + $0x318] sm:$0xf0]  ;;  %v11380_v9 = vld [vmem:[#allocation7 + $0xc0] sm:$0xf0] }
 0x3d0   : > { %5134 = vmatpush.bf16.msra.mxu0 %v9391_v34  ;;  %5148 = vmatpush.bf16.msra.mxu1 %v9519_v35  ;;  %v9443_v34 = vor.u32 %v11249_v18, %v9440_v21  ;;  %v9571_v35 = vor.u32 %v11281_v24, %v9568_v25  ;;  %v9379_v18 = vor.u32 %v11233_v26, %v9376_v42  ;;  %v9360_v21 = vld [vmem:[#allocation6 + $0x18] sm:$0xf0]  ;;  %v11261_v24 = vld [vmem:[#allocation6 + $0x10c] sm:$0xf]  ;;  %v9890_v26 = vld [vmem:[#allocation7 + $0x38] sm:$0xf] }
 0x3d1   : > { %5109 = vmatmul.bf16.vlgmr.msrb.gmra.mxu2 %v13371_v61  ;;  %5123 = vmatmul.bf16.vlgmr.msrb.gmra.mxu3 %v13373_v63  ;;  %v9488_v25 = vld [vmem:[#allocation6 + $0x118] sm:$0xf0]  ;;  %v11366_v42 = vld [vmem:[#allocation7 + $0x50] sm:$0xf0] }
 0x3d2   : > { %5161 = vmatpush.bf16.msra.mxu2 %v9663_v40  ;;  %5175 = vmatpush.bf16.msra.mxu3 %v9791_v43  ;;  %v9715_v40 = vor.u32 %v11317_v31, %v9712_v32  ;;  %v9843_v43 = vor.u32 %v11349_v33, %v9840_v46  ;;  %v9651_v31 = vor.u32 %v11301_v41, %v9648_v16  ;;  %v11408_v33 = vld [vmem:[#allocation7 + $0x1a0] sm:$0xf0]  ;;  %v10282_v46 = vld [vmem:[#allocation7 + $0x348] sm:$0xf] }
 0x3d3   : > { %v10170_v16 = vld [vmem:[#allocation7 + $0x268] sm:$0xf] }
 0x3d4   : > { %5135 = vmatpush.bf16.msra.mxu0 %v9375_v11  ;;  %5149 = vmatpush.bf16.msra.mxu1 %v9503_v52  ;;  %v9427_v11 = vor.u32 %v11245_v36, %v9424_v51  ;;  %v9555_v52 = vor.u32 %v11277_v38, %v9552_v39  ;;  %v11329_v36 = vld [vmem:[#allocation6 + $0x32c] sm:$0xf]  ;;  %v9760_v51 = vld [vmem:[#allocation6 + $0x338] sm:$0xf0]  ;;  %v9491_v39 = vor.u32 %v11261_v24, %v9488_v25 }
 0x3d5   : > { %v9763_v50 = vor.u32 %v11329_v36, %v9760_v51  ;;  %v10114_v51 = vld [vmem:[#allocation7 + $0x1f8] sm:$0xf] }
 0x3d6   : > { %5162 = vmatpush.bf16.msra.mxu2 %v9647_v58  ;;  %5176 = vmatpush.bf16.msra.mxu3 %v9775_v59  ;;  %v11309_v58 = vld [vmem:[#allocation6 + $0x28c] sm:$0xf]  ;;  %v9680_v59 = vld [vmem:[#allocation6 + $0x298] sm:$0xf0] }
 0x3d8   : > { %5136 = vmatpush.bf16.msra.mxu0 %v9359_v30  ;;  %5150 = vmatpush.bf16.msra.mxu1 %v9487_v6  ;;  %v11269_v30 = vld [vmem:[#allocation6 + $0x14c] sm:$0xf]  ;;  %v9520_v6 = vld [vmem:[#allocation6 + $0x158] sm:$0xf0] }
 0x3d9   : > { %v9523_v12 = vor.u32 %v11269_v30, %v9520_v6  ;;  %v11387_v6 = vld [vmem:[#allocation7 + $0xf8] sm:$0xf0] }
 0x3da   : > { %5163 = vmatpush.bf16.msra.mxu2 %v9631_v37  ;;  %5177 = vmatpush.bf16.msra.mxu3 %v9759_v23  ;;  %v9792_v37 = vld [vmem:[#allocation6 + $0x378] sm:$0xf0]  ;;  %v9395_v23 = vor.u32 %v11237_v5, %v9392_v14  ;;  %v9974_v14 = vld [vmem:[#allocation7 + $0xe0] sm:$0xf] }
 0x3db   : > { %5137 = vmatmul.bf16.vlgmr.msra.gmra.mxu0 %v13365_v28  ;;  %5151 = vmatmul.bf16.vlgmr.msra.gmra.mxu1 %v13367_v29  ;;  %v9795_v2 = vor.u32 %v11337_v10, %v9792_v37  ;;  %v9947_v10 = vor.u32 %v11380_v9, %v9946_v62  ;;  %v9918_v37 = vld [vmem:[#allocation7 + $0x70] sm:$0xf]  ;;  %v11485_v62 = vld [vmem:[#allocation7 + $0x408] sm:$0xf0] }
 0x3dc   : > { %5185 = vmatpush.bf16.msrb.mxu0 %v9475_v7  ;;  %5199 = vmatpush.bf16.msrb.mxu1 %v9603_v8  ;;  %v9683_v7 = vor.u32 %v11309_v58, %v9680_v59  ;;  %v9811_v8 = vor.u32 %v11341_v60, %v9808_v1  ;;  %v9747_v59 = vor.u32 %v11325_v0, %v9744_v54  ;;  %v10002_v60 = vld [vmem:[#allocation7 + $0x118] sm:$0xf]  ;;  %v11394_v1 = vld [vmem:[#allocation7 + $0x130] sm:$0xf0]  ;;  %v11499_v0 = vld [vmem:[#allocation7 + $0x478] sm:$0xf0] }
 0x3dd   : > { %v10003_v5 = vor.u32 %v11394_v1, %v10002_v60  ;;  %v11377_v54 = vld [vmem:[#allocation7 + $0xac] sm:$0xf]  ;;  %v10284_v60 = vld [vmem:[#allocation7 + $0x364] sm:$0xf0] }
 0x3de   : > { %5164 = vmatpush.bf16.msra.mxu2 %v9615_v13  ;;  %5178 = vmatpush.bf16.msra.mxu3 %v9743_v20  ;;  %v9507_v13 = vor.u32 %v11265_v15, %v9504_v19  ;;  %v11229_v20 = vld [vmem:[#allocation6 + $0xc] sm:$0xf]  ;;  %v9891_v15 = vor.u32 %v11366_v42, %v9890_v26  ;;  %v11359_v19 = vld [vmem:[#allocation7 + $0x18] sm:$0xf0]  ;;  %v10228_v26 = vld [vmem:[#allocation7 + $0x2f4] sm:$0xf0] }
 0x3df   : > { %v9363_v38 = vor.u32 %v11229_v20, %v9360_v21  ;;  %v11398_v20 = vld [vmem:[#allocation7 + $0x154] sm:$0xf]  ;;  %v10032_v21 = vld [vmem:[#allocation7 + $0x16c] sm:$0xf0] }
 0x3e0   : > { %5186 = vmatpush.bf16.msrb.mxu0 %v9459_v17  ;;  %5200 = vmatpush.bf16.msrb.mxu1 %v9587_v44  ;;  %v11333_v17 = vld [vmem:[#allocation6 + $0x34c] sm:$0xf]  ;;  %v9776_v44 = vld [vmem:[#allocation6 + $0x358] sm:$0xf0]  ;;  %v10035_v25 = vor.u32 %v11398_v20, %v10032_v21  ;;  %v11576_v21 = vld [vmem:[#allocation7 + $0x6e0] sm:$0xf0] }
 0x3e1   : > { %5165 = vmatmul.bf16.vlgmr.msra.gmra.mxu2 %v13371_v61  ;;  %5179 = vmatmul.bf16.vlgmr.msra.gmra.mxu3 %v13373_v63  ;;  %v9779_v32 = vor.u32 %v11333_v17, %v9776_v44  ;;  %v11436_v17 = vld [vmem:[#allocation7 + $0x280] sm:$0xf0]  ;;  %v10506_v44 = vld [vmem:[#allocation7 + $0x508] sm:$0xf] }
 0x3e2   : > { %5213 = vmatpush.bf16.msrb.mxu2 %v9731_v22  ;;  %5227 = vmatpush.bf16.msrb.mxu3 %v9859_v27  ;;  %v11297_v22 = vld [vmem:[#allocation6 + $0x22c] sm:$0xf]  ;;  %v10058_v27 = vld [vmem:[#allocation7 + $0x188] sm:$0xf] }
 0x3e4   : > { %5187 = vmatpush.bf16.msrb.mxu0 %v9443_v34  ;;  %5201 = vmatpush.bf16.msrb.mxu1 %v9571_v35  ;;  %v11464_v34 = vld [vmem:[#allocation7 + $0x360] sm:$0xf0]  ;;  %v9632_v35 = vld [vmem:[#allocation6 + $0x238] sm:$0xf0] }
 0x3e5   : > { %v10283_v48 = vor.u32 %v11464_v34, %v10282_v46  ;;  %v9635_v49 = vor.u32 %v11297_v22, %v9632_v35  ;;  %v10142_v22 = vld [vmem:[#allocation7 + $0x230] sm:$0xf]  ;;  %v11391_v34 = vld [vmem:[#allocation7 + $0x11c] sm:$0xf]  ;;  %v10004_v35 = vld [vmem:[#allocation7 + $0x134] sm:$0xf0] }
 0x3e6   : > { %5214 = vmatpush.bf16.msrb.mxu2 %v9715_v40  ;;  %5228 = vmatpush.bf16.msrb.mxu3 %v9843_v43  ;;  %v11293_v40 = vld [vmem:[#allocation6 + $0x20c] sm:$0xf]  ;;  %v10059_v43 = vor.u32 %v11408_v33, %v10058_v27  ;;  %v10007_v36 = vor.u32 %v11391_v34, %v10004_v35  ;;  %v10702_v35 = vld [vmem:[#allocation7 + $0x690] sm:$0xf] }
 0x3e7   : > { %v9619_v58 = vor.u32 %v11293_v40, %v9616_v57  ;;  %v11429_v27 = vld [vmem:[#allocation7 + $0x248] sm:$0xf0] }
 0x3e8   : > { %5188 = vmatpush.bf16.msrb.mxu0 %v9427_v11  ;;  %5202 = vmatpush.bf16.msrb.mxu1 %v9555_v52  ;;  %v11401_v11 = vld [vmem:[#allocation7 + $0x168] sm:$0xf0]  ;;  %v10254_v52 = vld [vmem:[#allocation7 + $0x310] sm:$0xf] }
 0x3e9   : > { %v11513_v33 = vld [vmem:[#allocation7 + $0x4e8] sm:$0xf0] }
 0x3ea   : > { %5215 = vmatpush.bf16.msrb.mxu2 %v9699_v55  ;;  %5229 = vmatpush.bf16.msrb.mxu3 %v9827_v56  ;;  %v10031_v55 = vor.u32 %v11401_v11, %v10030_v47  ;;  %v10255_v56 = vor.u32 %v11457_v53, %v10254_v52  ;;  %v11384_v47 = vld [vmem:[#allocation7 + $0xe4] sm:$0xf]  ;;  %v10086_v11 = vld [vmem:[#allocation7 + $0x1c0] sm:$0xf]  ;;  %v11415_v52 = vld [vmem:[#allocation7 + $0x1d8] sm:$0xf0] }
 0x3eb   : > { %v10422_v53 = vld [vmem:[#allocation7 + $0x460] sm:$0xf]  ;;  %v10087_v57 = vor.u32 %v11415_v52, %v10086_v11  ;;  %v11562_v11 = vld [vmem:[#allocation7 + $0x670] sm:$0xf0] }
 0x3ec   : > { %5189 = vmatpush.bf16.msrb.mxu0 %v9411_v3  ;;  %5203 = vmatpush.bf16.msrb.mxu1 %v9539_v4  ;;  %v10226_v3 = vld [vmem:[#allocation7 + $0x2d8] sm:$0xf]  ;;  %v11450_v4 = vld [vmem:[#allocation7 + $0x2f0] sm:$0xf0] }
 0x3ed   : > { %v10227_v30 = vor.u32 %v11450_v4, %v10226_v3  ;;  %v10394_v3 = vld [vmem:[#allocation7 + $0x428] sm:$0xf]  ;;  %v11492_v4 = vld [vmem:[#allocation7 + $0x440] sm:$0xf0] }
 0x3ee   : > { %5216 = vmatpush.bf16.msrb.mxu2 %v9683_v7  ;;  %5230 = vmatpush.bf16.msrb.mxu3 %v9811_v8  ;;  %v10198_v7 = vld [vmem:[#allocation7 + $0x2a0] sm:$0xf]  ;;  %v11443_v8 = vld [vmem:[#allocation7 + $0x2b8] sm:$0xf0] }
 0x3f0   : > { %5190 = vmatpush.bf16.msrb.mxu0 %v9395_v23  ;;  %5204 = vmatpush.bf16.msrb.mxu1 %v9523_v12  ;;  %v11373_v23 = vld [vmem:[#allocation7 + $0x88] sm:$0xf0] }
 0x3f1   : > { %v9919_v12 = vor.u32 %v11373_v23, %v9918_v37  ;;  %v9892_v37 = vld [vmem:[#allocation7 + $0x54] sm:$0xf0]  ;;  %v11447_v23 = vld [vmem:[#allocation7 + $0x2dc] sm:$0xf] }
 0x3f2   : > { %5217 = vmatpush.bf16.msrb.mxu2 %v9667_v45  ;;  %5231 = vmatpush.bf16.msrb.mxu3 %v9795_v2  ;;  %v11405_v45 = vld [vmem:[#allocation7 + $0x18c] sm:$0xf]  ;;  %v10060_v2 = vld [vmem:[#allocation7 + $0x1a4] sm:$0xf0]  ;;  %v10231_v42 = vor.u32 %v11447_v23, %v10228_v26 }
 0x3f3   : > { %v10063_v41 = vor.u32 %v11405_v45, %v10060_v2  ;;  %v9864_v45 = vld [vmem:[#allocation7 + $0x1c] sm:$0xf0]  ;;  %v11440_v2 = vld [vmem:[#allocation7 + $0x2a4] sm:$0xf]  ;;  %v11489_v23 = vld [vmem:[#allocation7 + $0x42c] sm:$0xf] }
 0x3f4   : > { %5191 = vmatpush.bf16.msrb.mxu0 %v9379_v18  ;;  %5205 = vmatpush.bf16.msrb.mxu1 %v9507_v13  ;;  %v10171_v18 = vor.u32 %v11436_v17, %v10170_v16  ;;  %v11520_v13 = vld [vmem:[#allocation7 + $0x520] sm:$0xf0]  ;;  %v10200_v16 = vld [vmem:[#allocation7 + $0x2bc] sm:$0xf0] }
 0x3f5   : > { %v10507_v24 = vor.u32 %v11520_v13, %v10506_v44  ;;  %v10203_v17 = vor.u32 %v11440_v2, %v10200_v16  ;;  %v10310_v44 = vld [vmem:[#allocation7 + $0x380] sm:$0xf]  ;;  %v10730_v13 = vld [vmem:[#allocation7 + $0x6c8] sm:$0xf]  ;;  %v10368_v16 = vld [vmem:[#allocation7 + $0x40c] sm:$0xf0] }
 0x3f6   : > { %5218 = vmatpush.bf16.msrb.mxu2 %v9651_v31  ;;  %5232 = vmatpush.bf16.msrb.mxu3 %v9779_v32  ;;  %v10478_v31 = vld [vmem:[#allocation7 + $0x4d0] sm:$0xf]  ;;  %v10143_v32 = vor.u32 %v11429_v27, %v10142_v22  ;;  %v10731_v27 = vor.u32 %v11576_v21, %v10730_v13 }
 0x3f7   : > { %v10479_v46 = vor.u32 %v11513_v33, %v10478_v31  ;;  %v10508_v33 = vld [vmem:[#allocation7 + $0x524] sm:$0xf0] }
 0x3f8   : > { %5192 = vmatpush.bf16.msrb.mxu0 %v9363_v38  ;;  %5206 = vmatpush.bf16.msrb.mxu1 %v9491_v39  ;;  %v11422_v38 = vld [vmem:[#allocation7 + $0x210] sm:$0xf0]  ;;  %v10450_v39 = vld [vmem:[#allocation7 + $0x498] sm:$0xf] }
 0x3f9   : > { %v10115_v40 = vor.u32 %v11422_v38, %v10114_v51  ;;  %v11426_v38 = vld [vmem:[#allocation7 + $0x234] sm:$0xf] }
 0x3fa   : > { %5219 = vmatpush.bf16.msrb.mxu2 %v9635_v49  ;;  %5233 = vmatpush.bf16.msrb.mxu3 %v9763_v50 }
 0x3fb   : > { %5193 = vmatmul.bf16.vlgmr.msrb.gmra.mxu0 %v13365_v28  ;;  %5207 = vmatmul.bf16.vlgmr.msrb.gmra.mxu1 %v13367_v29  ;;  %v9975_v28 = vor.u32 %v11387_v6, %v9974_v14  ;;  %v10199_v29 = vor.u32 %v11443_v8, %v10198_v7  ;;  %v11370_v14 = vld [vmem:[#allocation7 + $0x74] sm:$0xf]  ;;  %v10256_v8 = vld [vmem:[#allocation7 + $0x32c] sm:$0xf0] }
 0x3fc   : > { %6677 = vmatpush.bf16.msra.mxu0 %v10059_v43  ;;  %6691 = vmatpush.bf16.msra.mxu1 %v10283_v48  ;;  %v11506_v43 = vld [vmem:[#allocation7 + $0x4b0] sm:$0xf0]  ;;  %v9976_v48 = vld [vmem:[#allocation7 + $0xfc] sm:$0xf0] }
 0x3fd   : > { %v10451_v49 = vor.u32 %v11506_v43, %v10450_v39  ;;  %v9979_v50 = vor.u32 %v11384_v47, %v9976_v48  ;;  %v11454_v6 = vld [vmem:[#allocation7 + $0x314] sm:$0xf]  ;;  %v10144_v39 = vld [vmem:[#allocation7 + $0x24c] sm:$0xf0]  ;;  %v13392_v48 = vld [vmem:[%s13480_s11] sm:$0xf] }
 0x3fe   : > { %5220 = vmatpush.bf16.msrb.mxu2 %v9619_v58  ;;  %5234 = vmatpush.bf16.msrb.mxu3 %v9747_v59  ;;  %v11461_v59 = vld [vmem:[#allocation7 + $0x34c] sm:$0xf]  ;;  %v10147_v43 = vor.u32 %v11426_v38, %v10144_v39  ;;  %v10480_v47 = vld [vmem:[#allocation7 + $0x4ec] sm:$0xf0] }
 0x3ff   : > { %v10287_v1 = vor.u32 %v11461_v59, %v10284_v60  ;;  %v10646_v60 = vld [vmem:[#allocation7 + $0x620] sm:$0xf] }
 0x400   : > { %6678 = vmatpush.bf16.msra.mxu0 %v10031_v55  ;;  %6692 = vmatpush.bf16.msra.mxu1 %v10255_v56  ;;  %v9948_v55 = vld [vmem:[#allocation7 + $0xc4] sm:$0xf0]  ;;  %v10423_v56 = vor.u32 %v11499_v0, %v10422_v53  ;;  %v11419_v53 = vld [vmem:[#allocation7 + $0x1fc] sm:$0xf] }
 0x401   : > { %5221 = vmatmul.bf16.vlgmr.msrb.gmra.mxu2 %v13371_v61  ;;  %5235 = vmatmul.bf16.vlgmr.msrb.gmra.mxu3 %v13373_v63  ;;  %v9862_v61 = vld [vmem:[#allocation7] sm:$0xf]  ;;  %v9951_v58 = vor.u32 %v11377_v54, %v9948_v55  ;;  %v11503_v0 = vld [vmem:[#allocation7 + $0x49c] sm:$0xf]  ;;  %v4369_v54 = vperm.slane %v13392_v48, 0 }
 0x402   : > { %v9863_v63 = vor.u32 %v11359_v19, %v9862_v61  ;;  %6705 = vmatpush.bf16.msra.mxu2 %v10507_v24  ;;  %v11478_v61 = vld [vmem:[#allocation7 + $0x3d0] sm:$0xf0]  ;;  %v11433_v24 = vld [vmem:[#allocation7 + $0x26c] sm:$0xf]  ;;  %6719 = vmatpush.bf16.msra.mxu3 %v10731_v27 }
 0x404   : > { %6679 = vmatpush.bf16.msra.mxu0 %v10003_v5  ;;  %6693 = vmatpush.bf16.msra.mxu1 %v10227_v30  ;;  %v10395_v5 = vor.u32 %v11492_v4, %v10394_v3  ;;  %v9920_v30 = vld [vmem:[#allocation7 + $0x8c] sm:$0xf0]  ;;  %v11412_v4 = vld [vmem:[#allocation7 + $0x1c4] sm:$0xf] }
 0x405   : > { %v9923_v7 = vor.u32 %v11370_v14, %v9920_v30  ;;  %v11496_v14 = vld [vmem:[#allocation7 + $0x464] sm:$0xf] }
 0x406   : > { %6706 = vmatpush.bf16.msra.mxu2 %v10479_v46 }
 0x408   : > { %6680 = vmatpush.bf16.msra.mxu0 %v9975_v28  ;;  %6694 = vmatpush.bf16.msra.mxu1 %v10199_v29  ;;  %v10259_v28 = vor.u32 %v11454_v6, %v10256_v8  ;;  %v10366_v29 = vld [vmem:[#allocation7 + $0x3f0] sm:$0xf]  ;;  %v10424_v8 = vld [vmem:[#allocation7 + $0x47c] sm:$0xf0] }
 0x409   : > { %v10367_v9 = vor.u32 %v11485_v62, %v10366_v29  ;;  %v10427_v62 = vor.u32 %v11496_v14, %v10424_v8 }
 0x40a   : > { %6707 = vmatpush.bf16.msra.mxu2 %v10451_v49 }
 0x40c   : > { %6681 = vmatpush.bf16.msra.mxu0 %v9947_v10  ;;  %6695 = vmatpush.bf16.msra.mxu1 %v10171_v18  ;;  %v11363_v10 = vld [vmem:[#allocation7 + $0x3c] sm:$0xf] }
 0x40d   : > { %v11471_v18 = vld [vmem:[#allocation7 + $0x398] sm:$0xf0] }
 0x40e   : > { %6708 = vmatpush.bf16.msra.mxu2 %v10423_v56  ;;  %v10311_v20 = vor.u32 %v11471_v18, %v10310_v44 }
 0x410   : > { %6682 = vmatpush.bf16.msra.mxu0 %v9919_v12  ;;  %6696 = vmatpush.bf16.msra.mxu1 %v10143_v32  ;;  %v9895_v12 = vor.u32 %v11363_v10, %v9892_v37  ;;  %v11517_v32 = vld [vmem:[#allocation7 + $0x50c] sm:$0xf]  ;;  %v11548_v10 = vld [vmem:[#allocation7 + $0x600] sm:$0xf0] }
 0x411   : > { %v10511_v46 = vor.u32 %v11517_v32, %v10508_v33  ;;  %v10340_v32 = vld [vmem:[#allocation7 + $0x3d4] sm:$0xf0]  ;;  %v4370_v33 = vperm.slane %v13392_v48, 1 }
 0x412   : > { %6709 = vmatpush.bf16.msra.mxu2 %v10395_v5  ;;  %v10088_v5 = vld [vmem:[#allocation7 + $0x1dc] sm:$0xf0] }
 0x414   : > { %6683 = vmatpush.bf16.msra.mxu0 %v9891_v15  ;;  %6697 = vmatpush.bf16.msra.mxu1 %v10115_v40  ;;  %v10338_v15 = vld [vmem:[#allocation7 + $0x3b8] sm:$0xf]  ;;  %v11510_v40 = vld [vmem:[#allocation7 + $0x4d4] sm:$0xf] }
 0x415   : > { %v10339_v19 = vor.u32 %v11478_v61, %v10338_v15  ;;  %v10483_v49 = vor.u32 %v11510_v40, %v10480_v47  ;;  %v10534_v40 = vld [vmem:[#allocation7 + $0x540] sm:$0xf] }
 0x416   : > { %6710 = vmatpush.bf16.msra.mxu2 %v10367_v9  ;;  %v10618_v9 = vld [vmem:[#allocation7 + $0x5e8] sm:$0xf] }
 0x417   : > { %v10619_v37 = vor.u32 %v11548_v10, %v10618_v9  ;;  %v9982_v9 = vld [vmem:[#allocation7 + $0xe8] sm:$0xf] }
 0x418   : > { %6684 = vmatpush.bf16.msra.mxu0 %v9863_v63  ;;  %6698 = vmatpush.bf16.msra.mxu1 %v10087_v57  ;;  %v11356_v63 = vld [vmem:[#allocation7 + $0x4] sm:$0xf]  ;;  %v10116_v57 = vld [vmem:[#allocation7 + $0x214] sm:$0xf0] }
 0x419   : > { %v10119_v56 = vor.u32 %v11419_v53, %v10116_v57 }
 0x41a   : > { %6711 = vmatpush.bf16.msra.mxu2 %v10339_v19 }
 0x41c   : > { %6733 = vmatpush.bf16.msrb.mxu0 %v10063_v41  ;;  %6747 = vmatpush.bf16.msrb.mxu1 %v10287_v1  ;;  %v9867_v41 = vor.u32 %v11356_v63, %v9864_v45  ;;  %v11555_v1 = vld [vmem:[#allocation7 + $0x638] sm:$0xf0]  ;;  %v10590_v63 = vld [vmem:[#allocation7 + $0x5b0] sm:$0xf]  ;;  %v11541_v45 = vld [vmem:[#allocation7 + $0x5c8] sm:$0xf0] }
 0x41d   : > { %v10647_v3 = vor.u32 %v11555_v1, %v10646_v60  ;;  %v10591_v2 = vor.u32 %v11541_v45, %v10590_v63  ;;  %v9954_v45 = vld [vmem:[#allocation7 + $0xb0] sm:$0xf] }
 0x41e   : > { %6712 = vmatpush.bf16.msra.mxu2 %v10311_v20 }
 0x420   : > { %6734 = vmatpush.bf16.msrb.mxu0 %v10035_v25  ;;  %6748 = vmatpush.bf16.msrb.mxu1 %v10259_v28  ;;  %v10172_v25 = vld [vmem:[#allocation7 + $0x284] sm:$0xf0] }
 0x421   : > { %v10175_v31 = vor.u32 %v11433_v24, %v10172_v25  ;;  %v10562_v25 = vld [vmem:[#allocation7 + $0x578] sm:$0xf] }
 0x422   : > { %6761 = vmatpush.bf16.msrb.mxu2 %v10511_v46 }
 0x424   : > { %6735 = vmatpush.bf16.msrb.mxu0 %v10007_v36  ;;  %6749 = vmatpush.bf16.msrb.mxu1 %v10231_v42  ;;  %v11569_v36 = vld [vmem:[#allocation7 + $0x6a8] sm:$0xf0] }
 0x425   : > { %v10703_v51 = vor.u32 %v11569_v36, %v10702_v35  ;;  %v11409_v35 = vld [vmem:[#allocation7 + $0x1a8] sm:$0xf0] }
 0x426   : > { %6762 = vmatpush.bf16.msrb.mxu2 %v10483_v49 }
 0x427   : > { %6720 = vmatpush.bf16.msra.mxu3 %v10703_v51 }
 0x428   : > { %6736 = vmatpush.bf16.msrb.mxu0 %v9979_v50  ;;  %6750 = vmatpush.bf16.msrb.mxu1 %v10203_v17  ;;  %v10674_v50 = vld [vmem:[#allocation7 + $0x658] sm:$0xf] }
 0x429   : > { %v10675_v52 = vor.u32 %v11562_v11, %v10674_v50  ;;  %v11468_v50 = vld [vmem:[#allocation7 + $0x384] sm:$0xf]  ;;  %v10312_v11 = vld [vmem:[#allocation7 + $0x39c] sm:$0xf0] }
 0x42b   : > { %6721 = vmatpush.bf16.msra.mxu3 %v10675_v52  ;;  %v11573_v52 = vld [vmem:[#allocation7 + $0x6cc] sm:$0xf] }
 0x42c   : > { %6737 = vmatpush.bf16.msrb.mxu0 %v9951_v58  ;;  %6751 = vmatpush.bf16.msrb.mxu1 %v10175_v31  ;;  %v10452_v58 = vld [vmem:[#allocation7 + $0x4b4] sm:$0xf0]  ;;  %v11475_v31 = vld [vmem:[#allocation7 + $0x3bc] sm:$0xf] }
 0x42d   : > { %v10455_v59 = vor.u32 %v11503_v0, %v10452_v58  ;;  %v10343_v36 = vor.u32 %v11475_v31, %v10340_v32  ;;  %v10038_v0 = vld [vmem:[#allocation7 + $0x158] sm:$0xf]  ;;  %v11374_v32 = vld [vmem:[#allocation7 + $0x90] sm:$0xf0] }
 0x42e   : > { %v9926_v31 = vld [vmem:[#allocation7 + $0x78] sm:$0xf] }
 0x42f   : > { %6763 = vmatpush.bf16.msrb.mxu2 %v10455_v59  ;;  %6722 = vmatpush.bf16.msra.mxu3 %v10647_v3  ;;  %v10010_v3 = vld [vmem:[#allocation7 + $0x120] sm:$0xf] }
 0x430   : > { %6738 = vmatpush.bf16.msrb.mxu0 %v9923_v7  ;;  %6752 = vmatpush.bf16.msrb.mxu1 %v10147_v43  ;;  %v10091_v7 = vor.u32 %v11412_v4, %v10088_v5  ;;  %v11527_v43 = vld [vmem:[#allocation7 + $0x558] sm:$0xf0] }
 0x431   : > { %v10535_v49 = vor.u32 %v11527_v43, %v10534_v40 }
 0x433   : > { %6764 = vmatpush.bf16.msrb.mxu2 %v10427_v62  ;;  %6723 = vmatpush.bf16.msra.mxu3 %v10619_v37  ;;  %v11388_v37 = vld [vmem:[#allocation7 + $0x100] sm:$0xf0] }
 0x434   : > { %6739 = vmatpush.bf16.msrb.mxu0 %v9895_v12  ;;  %6753 = vmatpush.bf16.msrb.mxu1 %v10119_v56  ;;  %v10396_v12 = vld [vmem:[#allocation7 + $0x444] sm:$0xf0]  ;;  %v9983_v63 = vor.u32 %v11388_v37, %v9982_v9 }
 0x435   : > { %v10399_v15 = vor.u32 %v11489_v23, %v10396_v12  ;;  %v10732_v56 = vld [vmem:[#allocation7 + $0x6e4] sm:$0xf0]  ;;  %v11559_v23 = vld [vmem:[#allocation7 + $0x65c] sm:$0xf]  ;;  %v10676_v12 = vld [vmem:[#allocation7 + $0x674] sm:$0xf0] }
 0x436   : > { %v10735_v60 = vor.u32 %v11573_v52, %v10732_v56  ;;  %v10234_v52 = vld [vmem:[#allocation7 + $0x2e0] sm:$0xf] }
 0x437   : > { %v5026_v22 = vpop.f32.mrf.mxu0  ;;  %v5040_v34 = vpop.f32.mrf.mxu1  ;;  %6765 = vmatpush.bf16.msrb.mxu2 %v10399_v15  ;;  %6724 = vmatpush.bf16.msra.mxu3 %v10591_v2  ;;  %v10679_v15 = vor.u32 %v11559_v23, %v10676_v12  ;;  %v11381_v2 = vld [vmem:[#allocation7 + $0xc8] sm:$0xf0] }
 0x438   : > { %6740 = vmatpush.bf16.msrb.mxu0 %v9867_v41  ;;  %v5027_v30 = vadd.f32 %v5026_v22, %v4369_v54  ;;  %6754 = vmatpush.bf16.msrb.mxu1 %v10091_v7  ;;  %v11482_v41 = vld [vmem:[#allocation7 + $0x3f4] sm:$0xf]  ;;  %v10704_v7 = vld [vmem:[#allocation7 + $0x6ac] sm:$0xf0] }
 0x439   : > { %v10371_v44 = vor.u32 %v11482_v41, %v10368_v16  ;;  %v11534_v22 = vld [vmem:[#allocation7 + $0x590] sm:$0xf0]  ;;  %v10290_v41 = vld [vmem:[#allocation7 + $0x350] sm:$0xf] }
 0x43a   : > { %v5041_v26 = vadd.f32 %v5040_v34, %v5027_v30  ;;  %v10563_v27 = vor.u32 %v11534_v22, %v10562_v25  ;;  %v10066_v34 = vld [vmem:[#allocation7 + $0x190] sm:$0xf]  ;;  %v11395_v30 = vld [vmem:[#allocation7 + $0x138] sm:$0xf0]  ;;  %v9955_v22 = vor.u32 %v11381_v2, %v9954_v45  ;;  %v10536_v45 = vld [vmem:[#allocation7 + $0x55c] sm:$0xf0] }
 0x43b   : > { %6766 = vmatpush.bf16.msrb.mxu2 %v10371_v44  ;;  %v10067_v47 = vor.u32 %v11409_v35, %v10066_v34  ;;  %v10011_v62 = vor.u32 %v11395_v30, %v10010_v3  ;;  %v11552_v44 = vld [vmem:[#allocation7 + $0x624] sm:$0xf]  ;;  %v11458_v34 = vld [vmem:[#allocation7 + $0x330] sm:$0xf0]  ;;  %v11545_v35 = vld [vmem:[#allocation7 + $0x5ec] sm:$0xf] }
 0x43c   : > { %6725 = vmatpush.bf16.msra.mxu3 %v10563_v27  ;;  %v9870_v3 = vld [vmem:[#allocation7 + $0x8] sm:$0xf]  ;;  %v11444_v30 = vld [vmem:[#allocation7 + $0x2c0] sm:$0xf0] }
 0x43f   : > { %v5028_v55 = vpop.f32.mrf.mxu0  ;;  %v5042_v6 = vpop.f32.mrf.mxu1  ;;  %6767 = vmatpush.bf16.msrb.mxu2 %v10343_v36  ;;  %v10620_v36 = vld [vmem:[#allocation7 + $0x604] sm:$0xf0] }
 0x440   : > { %v5029_v42 = vadd.f32 %v5028_v55, %v4369_v54  ;;  %v11402_v54 = vld [vmem:[#allocation7 + $0x170] sm:$0xf0]  ;;  %v10315_v55 = vor.u32 %v11468_v50, %v10312_v11  ;;  %6726 = vmatpush.bf16.msra.mxu3 %v10535_v49  ;;  %v9898_v50 = vld [vmem:[#allocation7 + $0x40] sm:$0xf]  ;;  %v11367_v11 = vld [vmem:[#allocation7 + $0x58] sm:$0xf0] }
 0x441   : > { %v10039_v1 = vor.u32 %v11402_v54, %v10038_v0  ;;  %v11538_v0 = vld [vmem:[#allocation7 + $0x5b4] sm:$0xf]  ;;  %v10592_v54 = vld [vmem:[#allocation7 + $0x5cc] sm:$0xf0] }
 0x442   : > { %v5043_v17 = vadd.f32 %v5042_v6, %v5029_v42  ;;  %v11566_v6 = vld [vmem:[#allocation7 + $0x694] sm:$0xf] }
 0x443   : > { %6768 = vmatpush.bf16.msrb.mxu2 %v10315_v55  ;;  %v10707_v8 = vor.u32 %v11566_v6, %v10704_v7  ;;  %v11531_v6 = vld [vmem:[#allocation7 + $0x57c] sm:$0xf]  ;;  %v10564_v7 = vld [vmem:[#allocation7 + $0x594] sm:$0xf0] }
 0x444   : > { %v5054_v28 = vpop.f32.mrf.mxu2  ;;  %v5068_v29 = vpop.f32.mrf.mxu3  ;;  %6775 = vmatpush.bf16.msrb.mxu3 %v10735_v60  ;;  %v9899_v60 = vor.u32 %v11367_v11, %v9898_v50  ;;  %v9984_v50 = vld [vmem:[#allocation7 + $0x104] sm:$0xf0]  ;;  %v4372_v11 = vperm.slane %v13392_v48, 3 }
 0x445   : > { %v5055_v19 = vadd.f32 %v5054_v28, %v5041_v26 }
 0x447   : > { %v5069_v20 = vadd.f32 %v5068_v29, %v5055_v19 }
 0x448   : > { %v5082_v61 = vpop.f32.mrf.mxu0  ;;  %v5096_v21 = vpop.f32.mrf.mxu1  ;;  %6776 = vmatpush.bf16.msrb.mxu3 %v10707_v8 }
 0x449   : > { %v5241_v38 = vmax.f32 %v5069_v20, 0.0  ;;  %v5083_v53 = vadd.f32 %v5082_v61, %v4370_v33 }
 0x44b   : > { %v5097_v4 = vadd.f32 %v5096_v21, %v5083_v53  ;;  %v11451_v53 = vld [vmem:[#allocation7 + $0x2f8] sm:$0xf0] }
 0x44c   : > { %v5056_v18 = vpop.f32.mrf.mxu2  ;;  %v5070_v13 = vpop.f32.mrf.mxu3  ;;  %6777 = vmatpush.bf16.msrb.mxu3 %v10679_v15 }
 0x44d   : > { %v5057_v24 = vadd.f32 %v5056_v18, %v5043_v17  ;;  %v11465_v17 = vld [vmem:[#allocation7 + $0x368] sm:$0xf0]  ;;  %v10648_v18 = vld [vmem:[#allocation7 + $0x63c] sm:$0xf0] }
 0x44e   : > { %v10651_v20 = vor.u32 %v11552_v44, %v10648_v18  ;;  %v10291_v27 = vor.u32 %v11465_v17, %v10290_v41  ;;  %v11521_v41 = vld [vmem:[#allocation7 + $0x528] sm:$0xf0]  ;;  %v10040_v17 = vld [vmem:[#allocation7 + $0x174] sm:$0xf0] }
 0x44f   : > { %v5071_v46 = vadd.f32 %v5070_v13, %v5057_v24  ;;  %v4371_v13 = vperm.slane %v13392_v48, 2 }
 0x450   : > { %v5084_v51 = vpop.f32.mrf.mxu0  ;;  %v5098_v14 = vpop.f32.mrf.mxu1  ;;  %6778 = vmatpush.bf16.msrb.mxu3 %v10651_v20 }
 0x451   : > { %v5245_v39 = vmax.f32 %v5071_v46, 0.0  ;;  %v5085_v5 = vadd.f32 %v5084_v51, %v4370_v33  ;;  %v10262_v33 = vld [vmem:[#allocation7 + $0x318] sm:$0xf] }
 0x452   : > { %v10263_v49 = vor.u32 %v11458_v34, %v10262_v33  ;;  %v11392_v33 = vld [vmem:[#allocation7 + $0x124] sm:$0xf]  ;;  %v10012_v34 = vld [vmem:[#allocation7 + $0x13c] sm:$0xf0] }
 0x453   : > { %v13396_v57 = vpack.c.bf16 %v5245_v39, %v5241_v38  ;;  %v5099_v10 = vadd.f32 %v5098_v14, %v5085_v5  ;;  %v10623_v39 = vor.u32 %v11545_v35, %v10620_v36  ;;  %v10206_v5 = vld [vmem:[#allocation7 + $0x2a8] sm:$0xf] }
 0x454   : > { %v5110_v58 = vpop.f32.mrf.mxu2  ;;  %v5124_v59 = vpop.f32.mrf.mxu3  ;;  %v10207_v12 = vor.u32 %v11444_v30, %v10206_v5  ;;  %v10402_v30 = vld [vmem:[#allocation7 + $0x430] sm:$0xf] }
 0x455   : > { %6685 = vmatmul.bf16.vlgmr.msra.gmra.mxu0 %v13396_v57  ;;  %v5111_v28 = vadd.f32 %v5110_v58, %v5097_v4  ;;  %6779 = vmatpush.bf16.msrb.mxu3 %v10623_v39  ;;  %v10595_v58 = vor.u32 %v11538_v0, %v10592_v54  ;;  %v11360_v4 = vld [vmem:[#allocation7 + $0x20] sm:$0xf0]  ;;  %v10122_v39 = vld [vmem:[#allocation7 + $0x200] sm:$0xf]  ;;  %v10094_v54 = vld [vmem:[#allocation7 + $0x1c8] sm:$0xf] }
 0x456   : > { %6789 = vmatpush.bf16.msra.mxu0 %v10067_v47  ;;  %v9927_v47 = vor.u32 %v11374_v32, %v9926_v31  ;;  %v11514_v32 = vld [vmem:[#allocation7 + $0x4f0] sm:$0xf0] }
 0x457   : > { %v5125_v61 = vadd.f32 %v5124_v59, %v5111_v28  ;;  %v11406_v28 = vld [vmem:[#allocation7 + $0x194] sm:$0xf] }
 0x458   : > { %v5138_v29 = vpop.f32.mrf.mxu0  ;;  %v5152_v24 = vpop.f32.mrf.mxu1 }
 0x459   : > { %v5242_v21 = vmax.f32 %v5125_v61, 0.0  ;;  %v5139_v51 = vadd.f32 %v5138_v29, %v4371_v13  ;;  %6780 = vmatpush.bf16.msrb.mxu3 %v10595_v58  ;;  %v10068_v29 = vld [vmem:[#allocation7 + $0x1ac] sm:$0xf0]  ;;  %v11500_v58 = vld [vmem:[#allocation7 + $0x480] sm:$0xf0] }
 0x45a   : > { %6790 = vmatpush.bf16.msra.mxu0 %v10039_v1  ;;  %v10235_v1 = vor.u32 %v11451_v53, %v10234_v52  ;;  %v10071_v61 = vor.u32 %v11406_v28, %v10068_v29  ;;  %v11493_v28 = vld [vmem:[#allocation7 + $0x448] sm:$0xf0]  ;;  %v11371_v29 = vld [vmem:[#allocation7 + $0x7c] sm:$0xf] }
 0x45b   : > { %v5153_v55 = vadd.f32 %v5152_v24, %v5139_v51 }
 0x45c   : > { %v5112_v26 = vpop.f32.mrf.mxu2  ;;  %v5126_v42 = vpop.f32.mrf.mxu3 }
 0x45d   : > { %v5113_v19 = vadd.f32 %v5112_v26, %v5099_v10  ;;  %v9871_v10 = vor.u32 %v11360_v4, %v9870_v3  ;;  %v10178_v26 = vld [vmem:[#allocation7 + $0x270] sm:$0xf]  ;;  %v11462_v3 = vld [vmem:[#allocation7 + $0x354] sm:$0xf] }
 0x45e   : > { %6791 = vmatpush.bf16.msra.mxu0 %v10011_v62  ;;  %v10567_v62 = vor.u32 %v11531_v6, %v10564_v7  ;;  %v10292_v4 = vld [vmem:[#allocation7 + $0x36c] sm:$0xf0] }
 0x45f   : > { %v5127_v16 = vadd.f32 %v5126_v42, %v5113_v19  ;;  %v11437_v42 = vld [vmem:[#allocation7 + $0x288] sm:$0xf0]  ;;  %v10514_v19 = vld [vmem:[#allocation7 + $0x510] sm:$0xf] }
 0x460   : > { %v5140_v38 = vpop.f32.mrf.mxu0  ;;  %v5154_v14 = vpop.f32.mrf.mxu1  ;;  %6781 = vmatpush.bf16.msrb.mxu3 %v10567_v62  ;;  %v10179_v20 = vor.u32 %v11437_v42, %v10178_v26  ;;  %v9928_v62 = vld [vmem:[#allocation7 + $0x94] sm:$0xf0] }
 0x461   : > { %v5246_v25 = vmax.f32 %v5127_v16, 0.0  ;;  %v5141_v56 = vadd.f32 %v5140_v38, %v4371_v13  ;;  %v11399_v16 = vld [vmem:[#allocation7 + $0x15c] sm:$0xf]  ;;  %v10015_v38 = vor.u32 %v11392_v33, %v10012_v34  ;;  %v9931_v26 = vor.u32 %v11371_v29, %v9928_v62  ;;  %v10374_v42 = vld [vmem:[#allocation7 + $0x3f8] sm:$0xf] }
 0x462   : > { %6792 = vmatpush.bf16.msra.mxu0 %v9983_v63  ;;  %v11524_v63 = vld [vmem:[#allocation7 + $0x544] sm:$0xf]  ;;  %v10043_v24 = vor.u32 %v11399_v16, %v10040_v17  ;;  %v10236_v16 = vld [vmem:[#allocation7 + $0x2fc] sm:$0xf0]  ;;  %v10208_v34 = vld [vmem:[#allocation7 + $0x2c4] sm:$0xf0] }
 0x463   : > { %v13400_v46 = vpack.c.bf16 %v5246_v25, %v5242_v21  ;;  %v5155_v8 = vadd.f32 %v5154_v14, %v5141_v56  ;;  %v10539_v44 = vor.u32 %v11524_v63, %v10536_v45  ;;  %v10515_v21 = vor.u32 %v11521_v41, %v10514_v19  ;;  %v10150_v25 = vld [vmem:[#allocation7 + $0x238] sm:$0xf]  ;;  %v10430_v56 = vld [vmem:[#allocation7 + $0x468] sm:$0xf]  ;;  %v11486_v63 = vld [vmem:[#allocation7 + $0x410] sm:$0xf0] }
 0x464   : > { %v5166_v40 = vpop.f32.mrf.mxu2  ;;  %v5180_v43 = vpop.f32.mrf.mxu3  ;;  %v10431_v48 = vor.u32 %v11500_v58, %v10430_v56  ;;  %v11364_v45 = vld [vmem:[#allocation7 + $0x44] sm:$0xf]  ;;  %v11518_v56 = vld [vmem:[#allocation7 + $0x514] sm:$0xf]  ;;  %v10516_v58 = vld [vmem:[#allocation7 + $0x52c] sm:$0xf0] }
 0x465   : > { %6699 = vmatmul.bf16.vlgmr.msra.gmra.mxu1 %v13400_v46  ;;  %6741 = vmatmul.bf16.vlgmr.msrb.gmra.mxu0 %v13396_v57  ;;  %v5167_v59 = vadd.f32 %v5166_v40, %v5153_v55  ;;  %v11423_v40 = vld [vmem:[#allocation7 + $0x218] sm:$0xf0]  ;;  %v11416_v55 = vld [vmem:[#allocation7 + $0x1e0] sm:$0xf0]  ;;  %v10152_v29 = vld [vmem:[#allocation7 + $0x254] sm:$0xf0] }
 0x466   : > { %6793 = vmatpush.bf16.msra.mxu0 %v9955_v22  ;;  %6803 = vmatpush.bf16.msra.mxu1 %v10291_v27  ;;  %v11430_v22 = vld [vmem:[#allocation7 + $0x250] sm:$0xf0]  ;;  %v10486_v27 = vld [vmem:[#allocation7 + $0x4d8] sm:$0xf]  ;;  %v10123_v52 = vor.u32 %v11423_v40, %v10122_v39  ;;  %v10095_v5 = vor.u32 %v11416_v55, %v10094_v54  ;;  %v11448_v41 = vld [vmem:[#allocation7 + $0x2e4] sm:$0xf] }
 0x467   : > { %v5181_v37 = vadd.f32 %v5180_v43, %v5167_v59  ;;  %6782 = vmatpush.bf16.msrb.mxu3 %v10539_v44  ;;  %v10151_v36 = vor.u32 %v11430_v22, %v10150_v25  ;;  %v10487_v51 = vor.u32 %v11514_v32, %v10486_v27  ;;  %v10458_v43 = vld [vmem:[#allocation7 + $0x4a0] sm:$0xf]  ;;  %v11378_v59 = vld [vmem:[#allocation7 + $0xb4] sm:$0xf]  ;;  %v10239_v25 = vor.u32 %v11448_v41, %v10236_v16  ;;  %v11357_v22 = vld [vmem:[#allocation7 + $0xc] sm:$0xf] }
 0x468   : > { %v9872_v27 = vld [vmem:[#allocation7 + $0x24] sm:$0xf0]  ;;  %v11441_v32 = vld [vmem:[#allocation7 + $0x2ac] sm:$0xf]  ;;  %v11434_v54 = vld [vmem:[#allocation7 + $0x274] sm:$0xf] }
 0x469   : > { %v5243_v18 = vmax.f32 %v5181_v37, 0.0  ;;  %v11455_v37 = vld [vmem:[#allocation7 + $0x31c] sm:$0xf]  ;;  %v10180_v55 = vld [vmem:[#allocation7 + $0x28c] sm:$0xf0] }
 0x46a   : > { %6794 = vmatpush.bf16.msra.mxu0 %v9927_v47  ;;  %6804 = vmatpush.bf16.msra.mxu1 %v10263_v49  ;;  %v11507_v47 = vld [vmem:[#allocation7 + $0x4b8] sm:$0xf0]  ;;  %v11385_v49 = vld [vmem:[#allocation7 + $0xec] sm:$0xf]  ;;  %v9990_v41 = vld [vmem:[#allocation7 + $0xf0] sm:$0xf] }
 0x46b   : > { %v10459_v53 = vor.u32 %v11507_v47, %v10458_v43  ;;  %v9987_v0 = vor.u32 %v11385_v49, %v9984_v50  ;;  %v9875_v43 = vor.u32 %v11357_v22, %v9872_v27  ;;  %v10318_v47 = vld [vmem:[#allocation7 + $0x388] sm:$0xf]  ;;  %v11472_v49 = vld [vmem:[#allocation7 + $0x3a0] sm:$0xf0]  ;;  %v11511_v62 = vld [vmem:[#allocation7 + $0x4dc] sm:$0xf] }
 0x46c   : > { %v5168_v9 = vpop.f32.mrf.mxu2  ;;  %v5182_v15 = vpop.f32.mrf.mxu3  ;;  %v11389_v16 = vld [vmem:[#allocation7 + $0x108] sm:$0xf0]  ;;  %v10432_v27 = vld [vmem:[#allocation7 + $0x484] sm:$0xf0] }
 0x46d   : > { %v5169_v23 = vadd.f32 %v5168_v9, %v5155_v8  ;;  %v10295_v8 = vor.u32 %v11462_v3, %v10292_v4  ;;  %v11403_v3 = vld [vmem:[#allocation7 + $0x178] sm:$0xf0]  ;;  %v10319_v4 = vor.u32 %v11472_v49, %v10318_v47  ;;  %v11497_v22 = vld [vmem:[#allocation7 + $0x46c] sm:$0xf]  ;;  %v11490_v49 = vld [vmem:[#allocation7 + $0x434] sm:$0xf] }
 0x46e   : > { %6795 = vmatpush.bf16.msra.mxu0 %v9899_v60  ;;  %6805 = vmatpush.bf16.msra.mxu1 %v10235_v1  ;;  %v9956_v60 = vld [vmem:[#allocation7 + $0xcc] sm:$0xf0] }
 0x46f   : > { %v5183_v2 = vadd.f32 %v5182_v15, %v5169_v23  ;;  %v9959_v14 = vor.u32 %v11378_v59, %v9956_v60  ;;  %v10264_v23 = vld [vmem:[#allocation7 + $0x334] sm:$0xf0] }
 0x470   : > { %v10267_v19 = vor.u32 %v11455_v37, %v10264_v23  ;;  %v11396_v37 = vld [vmem:[#allocation7 + $0x140] sm:$0xf0] }
 0x471   : > { %v5247_v13 = vmax.f32 %v5183_v2, 0.0  ;;  %v9900_v2 = vld [vmem:[#allocation7 + $0x5c] sm:$0xf0] }
 0x472   : > { %6796 = vmatpush.bf16.msra.mxu0 %v9871_v10  ;;  %6806 = vmatpush.bf16.msra.mxu1 %v10207_v12  ;;  %v10403_v12 = vor.u32 %v11493_v28, %v10402_v30  ;;  %v10519_v30 = vor.u32 %v11518_v56, %v10516_v58  ;;  %v10598_v56 = vld [vmem:[#allocation7 + $0x5b8] sm:$0xf]  ;;  %v11542_v58 = vld [vmem:[#allocation7 + $0x5d0] sm:$0xf0] }
 0x473   : > { %v13404_v31 = vpack.c.bf16 %v5247_v13, %v5243_v18  ;;  %v10375_v18 = vor.u32 %v11486_v63, %v10374_v42  ;;  %v9903_v13 = vor.u32 %v11364_v45, %v9900_v2  ;;  %v10682_v42 = vld [vmem:[#allocation7 + $0x660] sm:$0xf]  ;;  %v11504_v45 = vld [vmem:[#allocation7 + $0x4a4] sm:$0xf] }
 0x474   : > { %v10124_v63 = vld [vmem:[#allocation7 + $0x21c] sm:$0xf0] }
 0x475   : > { %6755 = vmatmul.bf16.vlgmr.msrb.gmra.mxu1 %v13400_v46  ;;  %6797 = vmatmul.bf16.vlgmr.msra.gmra.mxu0 %v13396_v57  ;;  %v10460_v2 = vld [vmem:[#allocation7 + $0x4bc] sm:$0xf0] }
 0x476   : > { %6845 = vmatpush.bf16.msrb.mxu0 %v10071_v61  ;;  %6713 = vmatmul.bf16.vlgmr.msra.gmra.mxu2 %v13404_v31 }
 0x477   : > { %6807 = vmatpush.bf16.msra.mxu1 %v10179_v20  ;;  %6817 = vmatpush.bf16.msra.mxu2 %v10515_v21  ;;  %v10346_v20 = vld [vmem:[#allocation7 + $0x3c0] sm:$0xf]  ;;  %v11479_v21 = vld [vmem:[#allocation7 + $0x3d8] sm:$0xf0] }
 0x478   : > { %v5194_v35 = vpop.f32.mrf.mxu0  ;;  %v5208_v1 = vpop.f32.mrf.mxu1  ;;  %v10347_v40 = vor.u32 %v11479_v21, %v10346_v20  ;;  %v11556_v20 = vld [vmem:[#allocation7 + $0x640] sm:$0xf0]  ;;  %v11413_v21 = vld [vmem:[#allocation7 + $0x1cc] sm:$0xf] }
 0x479   : > { %v5195_v6 = vadd.f32 %v5194_v35, %v4372_v11  ;;  %v10074_v35 = vld [vmem:[#allocation7 + $0x198] sm:$0xf] }
 0x47a   : > { %6846 = vmatpush.bf16.msrb.mxu0 %v10043_v24 }
 0x47b   : > { %6808 = vmatpush.bf16.msra.mxu1 %v10151_v36  ;;  %6818 = vmatpush.bf16.msra.mxu2 %v10487_v51  ;;  %v5209_v15 = vadd.f32 %v5208_v1, %v5195_v6  ;;  %v11410_v36 = vld [vmem:[#allocation7 + $0x1b0] sm:$0xf0]  ;;  %v10046_v1 = vld [vmem:[#allocation7 + $0x160] sm:$0xf]  ;;  %v10710_v6 = vld [vmem:[#allocation7 + $0x698] sm:$0xf] }
 0x47c   : > { %v10047_v28 = vor.u32 %v11403_v3, %v10046_v1  ;;  %v11483_v1 = vld [vmem:[#allocation7 + $0x3fc] sm:$0xf]  ;;  %v10376_v3 = vld [vmem:[#allocation7 + $0x414] sm:$0xf0] }
 0x47e   : > { %6847 = vmatpush.bf16.msrb.mxu0 %v10015_v38 }
 0x47f   : > { %6809 = vmatpush.bf16.msra.mxu1 %v10123_v52  ;;  %6819 = vmatpush.bf16.msra.mxu2 %v10459_v53  ;;  %v10075_v52 = vor.u32 %v11410_v36, %v10074_v35  ;;  %v10738_v53 = vld [vmem:[#allocation7 + $0x6d0] sm:$0xf]  ;;  %v11466_v35 = vld [vmem:[#allocation7 + $0x370] sm:$0xf0] }
 0x480   : > { %v5196_v7 = vpop.f32.mrf.mxu0  ;;  %v5210_v44 = vpop.f32.mrf.mxu1 }
 0x481   : > { %v5197_v61 = vadd.f32 %v5196_v7, %v4372_v11  ;;  %v10211_v11 = vor.u32 %v11441_v32, %v10208_v34  ;;  %v11570_v7 = vld [vmem:[#allocation7 + $0x6b0] sm:$0xf0]  ;;  %v9962_v32 = vld [vmem:[#allocation7 + $0xb8] sm:$0xf] }
 0x482   : > { %6848 = vmatpush.bf16.msrb.mxu0 %v9987_v0  ;;  %v11577_v0 = vld [vmem:[#allocation7 + $0x6e8] sm:$0xf0]  ;;  %v10711_v23 = vor.u32 %v11570_v7, %v10710_v6  ;;  %v10298_v34 = vld [vmem:[#allocation7 + $0x358] sm:$0xf]  ;;  %v10599_v6 = vor.u32 %v11542_v58, %v10598_v56  ;;  %v10379_v7 = vor.u32 %v11483_v1, %v10376_v3  ;;  %v10130_v58 = vld [vmem:[#allocation7 + $0x208] sm:$0xf] }
 0x483   : > { %6810 = vmatpush.bf16.msra.mxu1 %v10095_v5  ;;  %6820 = vmatpush.bf16.msra.mxu2 %v10431_v48  ;;  %v5211_v24 = vadd.f32 %v5210_v44, %v5197_v61  ;;  %v10739_v5 = vor.u32 %v11577_v0, %v10738_v53  ;;  %v11420_v61 = vld [vmem:[#allocation7 + $0x204] sm:$0xf]  ;;  %v10654_v44 = vld [vmem:[#allocation7 + $0x628] sm:$0xf]  ;;  %v10299_v47 = vor.u32 %v11466_v35, %v10298_v34  ;;  %v10270_v53 = vld [vmem:[#allocation7 + $0x320] sm:$0xf] }
 0x484   : > { %v5222_v9 = vpop.f32.mrf.mxu2  ;;  %v5236_v10 = vpop.f32.mrf.mxu3  ;;  %v10655_v36 = vor.u32 %v11556_v20, %v10654_v44  ;;  %v11459_v0 = vld [vmem:[#allocation7 + $0x338] sm:$0xf0]  ;;  %v11574_v44 = vld [vmem:[#allocation7 + $0x6d4] sm:$0xf]  ;;  %v10186_v20 = vld [vmem:[#allocation7 + $0x278] sm:$0xf] }
 0x485   : > { %v5223_v17 = vadd.f32 %v5222_v9, %v5209_v15  ;;  %v10488_v9 = vld [vmem:[#allocation7 + $0x4f4] sm:$0xf0]  ;;  %v11563_v15 = vld [vmem:[#allocation7 + $0x678] sm:$0xf0]  ;;  %v11508_v1 = vld [vmem:[#allocation7 + $0x4c0] sm:$0xf0] }
 0x486   : > { %6849 = vmatpush.bf16.msrb.mxu0 %v9959_v14  ;;  %6811 = vmatmul.bf16.vlgmr.msra.gmra.mxu1 %v13400_v46  ;;  %v10183_v14 = vor.u32 %v11434_v54, %v10180_v55  ;;  %v11386_v3 = vld [vmem:[#allocation7 + $0xf4] sm:$0xf] }
 0x487   : > { %6859 = vmatpush.bf16.msrb.mxu1 %v10295_v8  ;;  %6769 = vmatmul.bf16.vlgmr.msrb.gmra.mxu2 %v13404_v31  ;;  %v5237_v51 = vadd.f32 %v5236_v10, %v5223_v17  ;;  %v11427_v8 = vld [vmem:[#allocation7 + $0x23c] sm:$0xf]  ;;  %v10018_v10 = vld [vmem:[#allocation7 + $0x128] sm:$0xf]  ;;  %v10683_v17 = vor.u32 %v11563_v15, %v10682_v42 }
 0x488   : > { %6821 = vmatpush.bf16.msra.mxu2 %v10403_v12  ;;  %v10155_v12 = vor.u32 %v11427_v8, %v10152_v29  ;;  %v10570_v8 = vld [vmem:[#allocation7 + $0x580] sm:$0xf]  ;;  %v11407_v15 = vld [vmem:[#allocation7 + $0x19c] sm:$0xf] }
 0x489   : > { %v5244_v59 = vmax.f32 %v5237_v51, 0.0 }
 0x48a   : > { %6850 = vmatpush.bf16.msrb.mxu0 %v9931_v26  ;;  %v10491_v26 = vor.u32 %v11511_v62, %v10488_v9  ;;  %v11476_v9 = vld [vmem:[#allocation7 + $0x3c4] sm:$0xf] }
 0x48b   : > { %6860 = vmatpush.bf16.msrb.mxu1 %v10267_v19  ;;  %v10019_v19 = vor.u32 %v11396_v37, %v10018_v10  ;;  %v10348_v10 = vld [vmem:[#allocation7 + $0x3dc] sm:$0xf0]  ;;  %v9878_v37 = vld [vmem:[#allocation7 + $0x10] sm:$0xf] }
 0x48c   : > { %v5224_v33 = vpop.f32.mrf.mxu2  ;;  %v5238_v39 = vpop.f32.mrf.mxu3  ;;  %6822 = vmatpush.bf16.msra.mxu2 %v10375_v18  ;;  %v10127_v18 = vor.u32 %v11420_v61, %v10124_v63  ;;  %v10076_v61 = vld [vmem:[#allocation7 + $0x1b4] sm:$0xf0]  ;;  %v10542_v63 = vld [vmem:[#allocation7 + $0x548] sm:$0xf] }
 0x48d   : > { %v5225_v38 = vadd.f32 %v5224_v33, %v5211_v24  ;;  %v10096_v24 = vld [vmem:[#allocation7 + $0x1e4] sm:$0xf0]  ;;  %v11382_v33 = vld [vmem:[#allocation7 + $0xd0] sm:$0xf0] }
 0x48e   : > { %6851 = vmatpush.bf16.msrb.mxu0 %v9903_v13  ;;  %v10463_v13 = vor.u32 %v11504_v45, %v10460_v2  ;;  %v10099_v51 = vor.u32 %v11413_v21, %v10096_v24  ;;  %v11528_v45 = vld [vmem:[#allocation7 + $0x560] sm:$0xf0]  ;;  %v11469_v2 = vld [vmem:[#allocation7 + $0x38c] sm:$0xf]  ;;  %v11438_v21 = vld [vmem:[#allocation7 + $0x290] sm:$0xf0] }
 0x48f   : > { %v5239_v50 = vadd.f32 %v5238_v39, %v5225_v38  ;;  %6861 = vmatpush.bf16.msrb.mxu1 %v10239_v25  ;;  %v9991_v25 = vor.u32 %v11389_v16, %v9990_v41  ;;  %v10435_v38 = vor.u32 %v11497_v22, %v10432_v27  ;;  %v10626_v39 = vld [vmem:[#allocation7 + $0x5f0] sm:$0xf]  ;;  %v10522_v24 = vld [vmem:[#allocation7 + $0x518] sm:$0xf]  ;;  %v11522_v22 = vld [vmem:[#allocation7 + $0x530] sm:$0xf0]  ;;  %v10187_v35 = vor.u32 %v11438_v21, %v10186_v20 }
 0x490   : > { %6823 = vmatpush.bf16.msra.mxu2 %v10347_v40  ;;  %v11549_v40 = vld [vmem:[#allocation7 + $0x608] sm:$0xf0]  ;;  %v11400_v27 = vld [vmem:[#allocation7 + $0x164] sm:$0xf]  ;;  %v11539_v20 = vld [vmem:[#allocation7 + $0x5bc] sm:$0xf] }
 0x491   : > { %v5248_v60 = vmax.f32 %v5239_v50, 0.0  ;;  %v10404_v50 = vld [vmem:[#allocation7 + $0x44c] sm:$0xf0]  ;;  %v10627_v54 = vor.u32 %v11549_v40, %v10626_v39  ;;  %v10158_v40 = vld [vmem:[#allocation7 + $0x240] sm:$0xf] }
 0x492   : > { %6852 = vmatpush.bf16.msrb.mxu0 %v9875_v43  ;;  %v9963_v43 = vor.u32 %v11382_v33, %v9962_v32  ;;  %v10407_v55 = vor.u32 %v11490_v49, %v10404_v50  ;;  %v10048_v32 = vld [vmem:[#allocation7 + $0x17c] sm:$0xf0]  ;;  %v11515_v49 = vld [vmem:[#allocation7 + $0x4f8] sm:$0xf0]  ;;  %v11393_v50 = vld [vmem:[#allocation7 + $0x12c] sm:$0xf] }
 0x493   : > { %v13412_v48 = vpack.c.bf16 %v5248_v60, %v5244_v59  ;;  %6862 = vmatpush.bf16.msrb.mxu1 %v10211_v11  ;;  %v9934_v11 = vld [vmem:[#allocation7 + $0x80] sm:$0xf]  ;;  %v10271_v60 = vor.u32 %v11459_v0, %v10270_v53  ;;  %v10051_v39 = vor.u32 %v11400_v27, %v10048_v32  ;;  %v11560_v0 = vld [vmem:[#allocation7 + $0x664] sm:$0xf]  ;;  %v10600_v21 = vld [vmem:[#allocation7 + $0x5d4] sm:$0xf0] }
 0x494   : > { %6824 = vmatpush.bf16.msra.mxu2 %v10319_v4  ;;  %v9906_v4 = vld [vmem:[#allocation7 + $0x48] sm:$0xf]  ;;  %v11487_v32 = vld [vmem:[#allocation7 + $0x418] sm:$0xf0] }
 0x495   : > { %6727 = vmatmul.bf16.vlgmr.msra.gmra.mxu3 %v13412_v48  ;;  %6853 = vmatmul.bf16.vlgmr.msrb.gmra.mxu0 %v13396_v57 }
 0x496   : > { %6901 = vmatpush.bf16.msra.mxu0 %v10075_v52  ;;  %6831 = vmatpush.bf16.msra.mxu3 %v10739_v5  ;;  %v11375_v52 = vld [vmem:[#allocation7 + $0x98] sm:$0xf0]  ;;  %v11368_v5 = vld [vmem:[#allocation7 + $0x60] sm:$0xf0] }
 0x497   : > { %6863 = vmatpush.bf16.msrb.mxu1 %v10183_v14  ;;  %6825 = vmatmul.bf16.vlgmr.msra.gmra.mxu2 %v13404_v31  ;;  %v9935_v59 = vor.u32 %v11375_v52, %v9934_v11  ;;  %v10242_v14 = vld [vmem:[#allocation7 + $0x2e8] sm:$0xf]  ;;  %v9907_v29 = vor.u32 %v11368_v5, %v9906_v4  ;;  %v9992_v4 = vld [vmem:[#allocation7 + $0x10c] sm:$0xf0] }
 0x498   : > { %6873 = vmatpush.bf16.msrb.mxu2 %v10519_v30  ;;  %v11452_v30 = vld [vmem:[#allocation7 + $0x300] sm:$0xf0]  ;;  %v10020_v11 = vld [vmem:[#allocation7 + $0x144] sm:$0xf0] }
 0x499   : > { %v10243_v62 = vor.u32 %v11452_v30, %v10242_v14  ;;  %v10023_v56 = vor.u32 %v11393_v50, %v10020_v11  ;;  %v11553_v30 = vld [vmem:[#allocation7 + $0x62c] sm:$0xf]  ;;  %v11358_v11 = vld [vmem:[#allocation7 + $0x14] sm:$0xf] }
 0x49a   : > { %6902 = vmatpush.bf16.msra.mxu0 %v10047_v28  ;;  %6832 = vmatpush.bf16.msra.mxu3 %v10711_v23  ;;  %v11535_v28 = vld [vmem:[#allocation7 + $0x598] sm:$0xf0]  ;;  %v11361_v23 = vld [vmem:[#allocation7 + $0x28] sm:$0xf0] }
 0x49b   : > { %6864 = vmatpush.bf16.msrb.mxu1 %v10155_v12  ;;  %v10214_v12 = vld [vmem:[#allocation7 + $0x2b0] sm:$0xf]  ;;  %v10571_v42 = vor.u32 %v11535_v28, %v10570_v8  ;;  %v9879_v41 = vor.u32 %v11361_v23, %v9878_v37  ;;  %v9995_v8 = vor.u32 %v11386_v3, %v9992_v4  ;;  %v9964_v37 = vld [vmem:[#allocation7 + $0xd4] sm:$0xf0]  ;;  %v11578_v4 = vld [vmem:[#allocation7 + $0x6f0] sm:$0xf0] }
 0x49c   : > { %6874 = vmatpush.bf16.msrb.mxu2 %v10491_v26  ;;  %v11445_v26 = vld [vmem:[#allocation7 + $0x2c8] sm:$0xf0]  ;;  %v10102_v28 = vld [vmem:[#allocation7 + $0x1d0] sm:$0xf]  ;;  %v10746_v3 = vld [vmem:[#allocation7 + $0x6d8] sm:$0xf] }
 0x49d   : > { %v10215_v16 = vor.u32 %v11445_v26, %v10214_v12  ;;  %v11463_v12 = vld [vmem:[#allocation7 + $0x35c] sm:$0xf]  ;;  %v10300_v26 = vld [vmem:[#allocation7 + $0x374] sm:$0xf0] }
 0x49e   : > { %6903 = vmatpush.bf16.msra.mxu0 %v10019_v19  ;;  %6833 = vmatpush.bf16.msra.mxu3 %v10683_v17  ;;  %v10351_v19 = vor.u32 %v11476_v9, %v10348_v10  ;;  %v10320_v17 = vld [vmem:[#allocation7 + $0x3a4] sm:$0xf0]  ;;  %v11501_v9 = vld [vmem:[#allocation7 + $0x488] sm:$0xf0]  ;;  %v11379_v10 = vld [vmem:[#allocation7 + $0xbc] sm:$0xf] }
 0x49f   : > { %6865 = vmatpush.bf16.msrb.mxu1 %v10127_v18  ;;  %v10740_v18 = vld [vmem:[#allocation7 + $0x6ec] sm:$0xf0]  ;;  %v10323_v33 = vor.u32 %v11469_v2, %v10320_v17  ;;  %v10303_v2 = vor.u32 %v11463_v12, %v10300_v26  ;;  %v9936_v17 = vld [vmem:[#allocation7 + $0x9c] sm:$0xf0]  ;;  %v11571_v26 = vld [vmem:[#allocation7 + $0x6b8] sm:$0xf0] }
 0x4a0   : > { %6875 = vmatpush.bf16.msrb.mxu2 %v10463_v13  ;;  %v10079_v13 = vor.u32 %v11407_v15, %v10076_v61  ;;  %v10743_v34 = vor.u32 %v11574_v44, %v10740_v18  ;;  %v11546_v15 = vld [vmem:[#allocation7 + $0x5f4] sm:$0xf]  ;;  %v10628_v61 = vld [vmem:[#allocation7 + $0x60c] sm:$0xf0]  ;;  %v11456_v18 = vld [vmem:[#allocation7 + $0x324] sm:$0xf] }
 0x4a1   : > { %v10631_v44 = vor.u32 %v11546_v15, %v10628_v61  ;;  %v10718_v12 = vld [vmem:[#allocation7 + $0x6a0] sm:$0xf]  ;;  %v11428_v61 = vld [vmem:[#allocation7 + $0x244] sm:$0xf] }
 0x4a2   : > { %6904 = vmatpush.bf16.msra.mxu0 %v9991_v25  ;;  %6834 = vmatpush.bf16.msra.mxu3 %v10655_v36  ;;  %v10543_v25 = vor.u32 %v11528_v45, %v10542_v63  ;;  %v11567_v36 = vld [vmem:[#allocation7 + $0x69c] sm:$0xf]  ;;  %v9967_v63 = vor.u32 %v11379_v10, %v9964_v37  ;;  %v10410_v45 = vld [vmem:[#allocation7 + $0x438] sm:$0xf]  ;;  %v10054_v10 = vld [vmem:[#allocation7 + $0x168] sm:$0xf] }
 0x4a3   : > { %6866 = vmatpush.bf16.msrb.mxu1 %v10099_v51  ;;  %v10712_v51 = vld [vmem:[#allocation7 + $0x6b4] sm:$0xf0]  ;;  %v11404_v37 = vld [vmem:[#allocation7 + $0x180] sm:$0xf0] }
 0x4a4   : > { %6876 = vmatpush.bf16.msrb.mxu2 %v10435_v38  ;;  %v10523_v38 = vor.u32 %v11522_v22, %v10522_v24  ;;  %v10715_v52 = vor.u32 %v11567_v36, %v10712_v51  ;;  %v10382_v22 = vld [vmem:[#allocation7 + $0x400] sm:$0xf]  ;;  %v11449_v36 = vld [vmem:[#allocation7 + $0x2ec] sm:$0xf]  ;;  %v10244_v51 = vld [vmem:[#allocation7 + $0x304] sm:$0xf0] }
 0x4a5   : > { %6783 = vmatmul.bf16.vlgmr.msrb.gmra.mxu3 %v13412_v48  ;;  %v10247_v50 = vor.u32 %v11449_v36, %v10244_v51  ;;  %v11557_v36 = vld [vmem:[#allocation7 + $0x648] sm:$0xf0] }
 0x4a6   : > { %6905 = vmatpush.bf16.msra.mxu0 %v9963_v43  ;;  %6835 = vmatpush.bf16.msra.mxu3 %v10627_v54  ;;  %v11431_v43 = vld [vmem:[#allocation7 + $0x258] sm:$0xf0]  ;;  %v10684_v54 = vld [vmem:[#allocation7 + $0x67c] sm:$0xf0] }
 0x4a7   : > { %6915 = vmatpush.bf16.msra.mxu1 %v10299_v47  ;;  %v10494_v47 = vld [vmem:[#allocation7 + $0x4e0] sm:$0xf]  ;;  %v10159_v53 = vor.u32 %v11431_v43, %v10158_v40  ;;  %v10687_v5 = vor.u32 %v11560_v0, %v10684_v54  ;;  %v10383_v40 = vor.u32 %v11487_v32, %v10382_v22  ;;  %v10216_v54 = vld [vmem:[#allocation7 + $0x2cc] sm:$0xf0]  ;;  %v11505_v22 = vld [vmem:[#allocation7 + $0x4ac] sm:$0xf] }
 0x4a8   : > { %6867 = vmatmul.bf16.vlgmr.msrb.gmra.mxu1 %v13400_v46  ;;  %6877 = vmatpush.bf16.msrb.mxu2 %v10407_v55  ;;  %v10495_v55 = vor.u32 %v11515_v49, %v10494_v47  ;;  %v10354_v47 = vld [vmem:[#allocation7 + $0x3c8] sm:$0xf]  ;;  %v11480_v49 = vld [vmem:[#allocation7 + $0x3e0] sm:$0xf0] }
 0x4aa   : > { %6906 = vmatpush.bf16.msra.mxu0 %v9935_v59  ;;  %6836 = vmatpush.bf16.msra.mxu3 %v10599_v6  ;;  %v11424_v59 = vld [vmem:[#allocation7 + $0x220] sm:$0xf0]  ;;  %v10656_v6 = vld [vmem:[#allocation7 + $0x644] sm:$0xf0] }
 0x4ab   : > { %6916 = vmatpush.bf16.msra.mxu1 %v10271_v60  ;;  %v10466_v60 = vld [vmem:[#allocation7 + $0x4a8] sm:$0xf]  ;;  %v10131_v14 = vor.u32 %v11424_v59, %v10130_v58  ;;  %v10659_v23 = vor.u32 %v11553_v30, %v10656_v6  ;;  %v11525_v58 = vld [vmem:[#allocation7 + $0x54c] sm:$0xf]  ;;  %v10326_v30 = vld [vmem:[#allocation7 + $0x390] sm:$0xf] }
 0x4ac   : > { %6878 = vmatpush.bf16.msrb.mxu2 %v10379_v7  ;;  %v10467_v7 = vor.u32 %v11508_v1, %v10466_v60  ;;  %v10544_v59 = vld [vmem:[#allocation7 + $0x564] sm:$0xf0]  ;;  %v10355_v60 = vor.u32 %v11480_v49, %v10354_v47  ;;  %v11473_v6 = vld [vmem:[#allocation7 + $0x3a8] sm:$0xf0]  ;;  %v11498_v47 = vld [vmem:[#allocation7 + $0x474] sm:$0xf] }
 0x4ad   : > { %v10440_v49 = vld [vmem:[#allocation7 + $0x48c] sm:$0xf0] }
 0x4ae   : > { %6907 = vmatpush.bf16.msra.mxu0 %v9907_v29  ;;  %6837 = vmatpush.bf16.msra.mxu3 %v10571_v42  ;;  %v11417_v29 = vld [vmem:[#allocation7 + $0x1e8] sm:$0xf0] }
 0x4af   : > { %6917 = vmatpush.bf16.msra.mxu1 %v10243_v62  ;;  %v10438_v62 = vld [vmem:[#allocation7 + $0x470] sm:$0xf]  ;;  %v10103_v42 = vor.u32 %v11417_v29, %v10102_v28  ;;  %v10188_v28 = vld [vmem:[#allocation7 + $0x294] sm:$0xf0]  ;;  %v11519_v29 = vld [vmem:[#allocation7 + $0x51c] sm:$0xf] }
 0x4b0   : > { %6879 = vmatpush.bf16.msrb.mxu2 %v10351_v19  ;;  %v10439_v19 = vor.u32 %v11501_v9, %v10438_v62  ;;  %v10524_v62 = vld [vmem:[#allocation7 + $0x534] sm:$0xf0]  ;;  %v10747_v9 = vor.u32 %v11578_v4, %v10746_v3  ;;  %v9942_v4 = vld [vmem:[#allocation7 + $0x88] sm:$0xf] }
 0x4b1   : > { %v10527_v15 = vor.u32 %v11519_v29, %v10524_v62  ;;  %v10412_v3 = vld [vmem:[#allocation7 + $0x454] sm:$0xf0] }
 0x4b2   : > { %6908 = vmatpush.bf16.msra.mxu0 %v9879_v41  ;;  %6838 = vmatpush.bf16.msra.mxu3 %v10543_v25  ;;  %v11494_v41 = vld [vmem:[#allocation7 + $0x450] sm:$0xf0] }
 0x4b3   : > { %6918 = vmatpush.bf16.msra.mxu1 %v10215_v16  ;;  %v11372_v16 = vld [vmem:[#allocation7 + $0x84] sm:$0xf]  ;;  %v10411_v24 = vor.u32 %v11494_v41, %v10410_v45  ;;  %v10719_v41 = vor.u32 %v11571_v26, %v10718_v12  ;;  %v11369_v12 = vld [vmem:[#allocation7 + $0x68] sm:$0xf0]  ;;  %v10250_v26 = vld [vmem:[#allocation7 + $0x2f0] sm:$0xf] }
 0x4b4   : > { %6880 = vmatpush.bf16.msrb.mxu2 %v10323_v33  ;;  %v9939_v25 = vor.u32 %v11372_v16, %v9936_v17  ;;  %v11365_v33 = vld [vmem:[#allocation7 + $0x4c] sm:$0xf]  ;;  %v11512_v45 = vld [vmem:[#allocation7 + $0x4e4] sm:$0xf]  ;;  %v10026_v16 = vld [vmem:[#allocation7 + $0x130] sm:$0xf] }
 0x4b5   : > { %6909 = vmatmul.bf16.vlgmr.msra.gmra.mxu0 %v13396_v57  ;;  %6839 = vmatmul.bf16.vlgmr.msra.gmra.mxu3 %v13412_v48  ;;  %v11397_v17 = vld [vmem:[#allocation7 + $0x148] sm:$0xf0] }
 0x4b6   : > { %6957 = vmatpush.bf16.msrb.mxu0 %v10079_v13  ;;  %6887 = vmatpush.bf16.msrb.mxu3 %v10743_v34  ;;  %v10272_v13 = vld [vmem:[#allocation7 + $0x33c] sm:$0xf0]  ;;  %v9908_v34 = vld [vmem:[#allocation7 + $0x64] sm:$0xf0] }
 0x4b7   : > { %6919 = vmatpush.bf16.msra.mxu1 %v10187_v35  ;;  %6881 = vmatmul.bf16.vlgmr.msrb.gmra.mxu2 %v13404_v31  ;;  %v10275_v27 = vor.u32 %v11456_v18, %v10272_v13  ;;  %v10603_v35 = vor.u32 %v11539_v20, %v10600_v21  ;;  %v9911_v43 = vor.u32 %v11365_v33, %v9908_v34  ;;  %v11564_v18 = vld [vmem:[#allocation7 + $0x680] sm:$0xf0]  ;;  %v11421_v21 = vld [vmem:[#allocation7 + $0x20c] sm:$0xf]  ;;  %v9998_v33 = vld [vmem:[#allocation7 + $0xf8] sm:$0xf] }
 0x4b8   : > { %6929 = vmatpush.bf16.msra.mxu2 %v10523_v38  ;;  %v11532_v38 = vld [vmem:[#allocation7 + $0x584] sm:$0xf]  ;;  %v11390_v34 = vld [vmem:[#allocation7 + $0x110] sm:$0xf0] }
 0x4ba   : > { %6958 = vmatpush.bf16.msrb.mxu0 %v10051_v39  ;;  %6888 = vmatpush.bf16.msrb.mxu3 %v10715_v52  ;;  %v10572_v39 = vld [vmem:[#allocation7 + $0x59c] sm:$0xf0]  ;;  %v9880_v52 = vld [vmem:[#allocation7 + $0x2c] sm:$0xf0] }
 0x4bb   : > { %6920 = vmatpush.bf16.msra.mxu1 %v10159_v53  ;;  %v11442_v53 = vld [vmem:[#allocation7 + $0x2b4] sm:$0xf]  ;;  %v10575_v0 = vor.u32 %v11532_v38, %v10572_v39  ;;  %v9883_v1 = vor.u32 %v11358_v11, %v9880_v52  ;;  %v11383_v52 = vld [vmem:[#allocation7 + $0xd8] sm:$0xf0] }
 0x4bc   : > { %6930 = vmatpush.bf16.msra.mxu2 %v10495_v55  ;;  %v10082_v55 = vld [vmem:[#allocation7 + $0x1a0] sm:$0xf]  ;;  %v11414_v39 = vld [vmem:[#allocation7 + $0x1d4] sm:$0xf] }
 0x4be   : > { %6959 = vmatpush.bf16.msrb.mxu0 %v10023_v56  ;;  %6889 = vmatpush.bf16.msrb.mxu3 %v10687_v5  ;;  %v11411_v56 = vld [vmem:[#allocation7 + $0x1b8] sm:$0xf0]  ;;  %v10219_v5 = vor.u32 %v11442_v53, %v10216_v54  ;;  %v10306_v53 = vld [vmem:[#allocation7 + $0x360] sm:$0xf]  ;;  %v10634_v54 = vld [vmem:[#allocation7 + $0x5f8] sm:$0xf] }
 0x4bf   : > { %6921 = vmatpush.bf16.msra.mxu1 %v10131_v14  ;;  %v10083_v14 = vor.u32 %v11411_v56, %v10082_v55  ;;  %v11550_v55 = vld [vmem:[#allocation7 + $0x610] sm:$0xf0] }
 0x4c0   : > { %6931 = vmatpush.bf16.msra.mxu2 %v10467_v7  ;;  %v11435_v7 = vld [vmem:[#allocation7 + $0x27c] sm:$0xf] }
 0x4c2   : > { %6960 = vmatpush.bf16.msrb.mxu0 %v9995_v8  ;;  %6890 = vmatpush.bf16.msrb.mxu3 %v10659_v23  ;;  %v10547_v8 = vor.u32 %v11525_v58, %v10544_v59  ;;  %v10327_v23 = vor.u32 %v11473_v6, %v10326_v30  ;;  %v10443_v58 = vor.u32 %v11498_v47, %v10440_v49  ;;  %v10278_v30 = vld [vmem:[#allocation7 + $0x328] sm:$0xf]  ;;  %v11460_v6 = vld [vmem:[#allocation7 + $0x340] sm:$0xf0]  ;;  %v10720_v49 = vld [vmem:[#allocation7 + $0x6bc] sm:$0xf0] }
 0x4c3   : > { %6922 = vmatpush.bf16.msra.mxu1 %v10103_v42  ;;  %v10191_v42 = vor.u32 %v11435_v7, %v10188_v28  ;;  %v10606_v7 = vld [vmem:[#allocation7 + $0x5c0] sm:$0xf]  ;;  %v10279_v62 = vor.u32 %v11460_v6, %v10278_v30  ;;  %v11568_v47 = vld [vmem:[#allocation7 + $0x6a4] sm:$0xf]  ;;  %v11554_v30 = vld [vmem:[#allocation7 + $0x634] sm:$0xf] }
 0x4c4   : > { %6932 = vmatpush.bf16.msra.mxu2 %v10439_v19  ;;  %v10055_v19 = vor.u32 %v11404_v37, %v10054_v10  ;;  %v10384_v10 = vld [vmem:[#allocation7 + $0x41c] sm:$0xf0]  ;;  %v9914_v37 = vld [vmem:[#allocation7 + $0x50] sm:$0xf] }
 0x4c5   : > { %v10664_v6 = vld [vmem:[#allocation7 + $0x64c] sm:$0xf0] }
 0x4c6   : > { %6961 = vmatpush.bf16.msrb.mxu0 %v9967_v63  ;;  %6891 = vmatpush.bf16.msrb.mxu3 %v10631_v44  ;;  %v10160_v63 = vld [vmem:[#allocation7 + $0x25c] sm:$0xf0]  ;;  %v10690_v44 = vld [vmem:[#allocation7 + $0x668] sm:$0xf] }
 0x4c7   : > { %6971 = vmatpush.bf16.msrb.mxu1 %v10303_v2  ;;  %v10496_v2 = vld [vmem:[#allocation7 + $0x4fc] sm:$0xf0]  ;;  %v10163_v13 = vor.u32 %v11428_v61, %v10160_v63  ;;  %v10691_v32 = vor.u32 %v11564_v18, %v10690_v44  ;;  %v11536_v61 = vld [vmem:[#allocation7 + $0x5a0] sm:$0xf0]  ;;  %v9915_v63 = vor.u32 %v11369_v12, %v9914_v37  ;;  %v11362_v44 = vld [vmem:[#allocation7 + $0x30] sm:$0xf0] }
 0x4c8   : > { %6923 = vmatmul.bf16.vlgmr.msra.gmra.mxu1 %v13400_v46  ;;  %6933 = vmatpush.bf16.msra.mxu2 %v10411_v24  ;;  %v10499_v20 = vor.u32 %v11512_v45, %v10496_v2  ;;  %v10027_v24 = vor.u32 %v11397_v17, %v10026_v16  ;;  %v11477_v2 = vld [vmem:[#allocation7 + $0x3cc] sm:$0xf]  ;;  %v9886_v16 = vld [vmem:[#allocation7 + $0x18] sm:$0xf] }
 0x4c9   : > { %v10222_v18 = vld [vmem:[#allocation7 + $0x2b8] sm:$0xf] }
 0x4ca   : > { %6962 = vmatpush.bf16.msrb.mxu0 %v9939_v25  ;;  %6892 = vmatpush.bf16.msrb.mxu3 %v10603_v35  ;;  %v10132_v25 = vld [vmem:[#allocation7 + $0x224] sm:$0xf0]  ;;  %v10662_v35 = vld [vmem:[#allocation7 + $0x630] sm:$0xf]  ;;  %v10636_v37 = vld [vmem:[#allocation7 + $0x614] sm:$0xf0] }
 0x4cb   : > { %6972 = vmatpush.bf16.msrb.mxu1 %v10275_v27  ;;  %v10468_v27 = vld [vmem:[#allocation7 + $0x4c4] sm:$0xf0]  ;;  %v10135_v51 = vor.u32 %v11421_v21, %v10132_v25  ;;  %v10663_v11 = vor.u32 %v11557_v36, %v10662_v35  ;;  %v11529_v21 = vld [vmem:[#allocation7 + $0x568] sm:$0xf0]  ;;  %v11575_v25 = vld [vmem:[#allocation7 + $0x6dc] sm:$0xf] }
 0x4cc   : > { %6934 = vmatpush.bf16.msra.mxu2 %v10383_v40  ;;  %v10471_v38 = vor.u32 %v11505_v22, %v10468_v27  ;;  %v10104_v40 = vld [vmem:[#allocation7 + $0x1ec] sm:$0xf0]  ;;  %v10748_v22 = vld [vmem:[#allocation7 + $0x6f4] sm:$0xf0]  ;;  %v9887_v27 = vor.u32 %v11362_v44, %v9886_v16  ;;  %v10194_v35 = vld [vmem:[#allocation7 + $0x280] sm:$0xf] }
 0x4cd   : > { %v10107_v56 = vor.u32 %v11414_v39, %v10104_v40  ;;  %v11523_v39 = vld [vmem:[#allocation7 + $0x538] sm:$0xf0]  ;;  %v10751_v40 = vor.u32 %v11575_v25, %v10748_v22  ;;  %v11533_v16 = vld [vmem:[#allocation7 + $0x58c] sm:$0xf]  ;;  %v10754_v22 = vld [vmem:[#allocation7 + $0x6e0] sm:$0xf] }
 0x4ce   : > { %6963 = vmatpush.bf16.msrb.mxu0 %v9911_v43  ;;  %6893 = vmatpush.bf16.msrb.mxu3 %v10575_v0  ;;  %v9999_v43 = vor.u32 %v11390_v34, %v9998_v33  ;;  %v11467_v0 = vld [vmem:[#allocation7 + $0x378] sm:$0xf0]  ;;  %v11470_v33 = vld [vmem:[#allocation7 + $0x394] sm:$0xf]  ;;  %v10328_v34 = vld [vmem:[#allocation7 + $0x3ac] sm:$0xf0] }
 0x4cf   : > { %6973 = vmatpush.bf16.msrb.mxu1 %v10247_v50  ;;  %v9970_v50 = vld [vmem:[#allocation7 + $0xc0] sm:$0xf] }
 0x4d0   : > { %6935 = vmatpush.bf16.msra.mxu2 %v10355_v60  ;;  %v9971_v59 = vor.u32 %v11383_v52, %v9970_v50  ;;  %v10307_v60 = vor.u32 %v11467_v0, %v10306_v53  ;;  %v10166_v52 = vld [vmem:[#allocation7 + $0x248] sm:$0xf]  ;;  %v11432_v53 = vld [vmem:[#allocation7 + $0x260] sm:$0xf0] }
 0x4d1   : > { %v10502_v0 = vld [vmem:[#allocation7 + $0x4e8] sm:$0xf] }
 0x4d2   : > { %6964 = vmatpush.bf16.msrb.mxu0 %v9883_v1  ;;  %6894 = vmatpush.bf16.msrb.mxu3 %v10547_v8  ;;  %v11491_v1 = vld [vmem:[#allocation7 + $0x43c] sm:$0xf] }
 0x4d3   : > { %6974 = vmatpush.bf16.msrb.mxu1 %v10219_v5  ;;  %v10635_v5 = vor.u32 %v11550_v55, %v10634_v54  ;;  %v11543_v8 = vld [vmem:[#allocation7 + $0x5d8] sm:$0xf0]  ;;  %v10415_v28 = vor.u32 %v11491_v1, %v10412_v3  ;;  %v11516_v54 = vld [vmem:[#allocation7 + $0x500] sm:$0xf0]  ;;  %v10723_v55 = vor.u32 %v11568_v47, %v10720_v49  ;;  %v10138_v1 = vld [vmem:[#allocation7 + $0x210] sm:$0xf] }
 0x4d4   : > { %6936 = vmatpush.bf16.msra.mxu2 %v10327_v23  ;;  %v10607_v23 = vor.u32 %v11543_v8, %v10606_v7  ;;  %v11425_v3 = vld [vmem:[#allocation7 + $0x228] sm:$0xf0]  ;;  %v10110_v8 = vld [vmem:[#allocation7 + $0x1d8] sm:$0xf]  ;;  %v10698_v47 = vld [vmem:[#allocation7 + $0x670] sm:$0xf] }
 0x4d5   : > { %6965 = vmatmul.bf16.vlgmr.msrb.gmra.mxu0 %v13396_v57  ;;  %6895 = vmatmul.bf16.vlgmr.msrb.gmra.mxu3 %v13412_v48  ;;  %v11565_v49 = vld [vmem:[#allocation7 + $0x688] sm:$0xf0] }
 0x4d6   : > { %7013 = vmatpush.bf16.msra.mxu0 %v10083_v14  ;;  %6943 = vmatpush.bf16.msra.mxu3 %v10747_v9  ;;  %v11376_v14 = vld [vmem:[#allocation7 + $0xa0] sm:$0xf0] }
 0x4d7   : > { %6975 = vmatpush.bf16.msrb.mxu1 %v10191_v42  ;;  %6937 = vmatmul.bf16.vlgmr.msra.gmra.mxu2 %v13404_v31  ;;  %v9943_v29 = vor.u32 %v11376_v14, %v9942_v4  ;;  %v11484_v9 = vld [vmem:[#allocation7 + $0x404] sm:$0xf]  ;;  %v11453_v42 = vld [vmem:[#allocation7 + $0x308] sm:$0xf0]  ;;  %v10474_v4 = vld [vmem:[#allocation7 + $0x4b0] sm:$0xf] }
 0x4d8   : > { %6985 = vmatpush.bf16.msrb.mxu2 %v10527_v15  ;;  %v10578_v15 = vld [vmem:[#allocation7 + $0x588] sm:$0xf]  ;;  %v10251_v45 = vor.u32 %v11453_v42, %v10250_v26  ;;  %v10418_v26 = vld [vmem:[#allocation7 + $0x440] sm:$0xf]  ;;  %v11495_v42 = vld [vmem:[#allocation7 + $0x458] sm:$0xf0] }
 0x4d9   : > { %v10579_v17 = vor.u32 %v11536_v61, %v10578_v15  ;;  %v11540_v61 = vld [vmem:[#allocation7 + $0x5c4] sm:$0xf] }
 0x4da   : > { %7014 = vmatpush.bf16.msra.mxu0 %v10055_v19  ;;  %6944 = vmatpush.bf16.msra.mxu3 %v10719_v41  ;;  %v10387_v19 = vor.u32 %v11484_v9, %v10384_v10  ;;  %v10356_v41 = vld [vmem:[#allocation7 + $0x3e4] sm:$0xf0]  ;;  %v10667_v9 = vor.u32 %v11554_v30, %v10664_v6  ;;  %v11547_v10 = vld [vmem:[#allocation7 + $0x5fc] sm:$0xf] }
 0x4db   : > { %6976 = vmatpush.bf16.msrb.mxu1 %v10163_v13  ;;  %v11446_v13 = vld [vmem:[#allocation7 + $0x2d0] sm:$0xf0]  ;;  %v10639_v15 = vor.u32 %v11547_v10, %v10636_v37 }
 0x4dc   : > { %6986 = vmatpush.bf16.msrb.mxu2 %v10499_v20  ;;  %v10550_v20 = vld [vmem:[#allocation7 + $0x550] sm:$0xf] }
 0x4dd   : > { %v10551_v36 = vor.u32 %v11529_v21, %v10550_v20  ;;  %v11526_v21 = vld [vmem:[#allocation7 + $0x554] sm:$0xf] }
 0x4de   : > { %7015 = vmatpush.bf16.msra.mxu0 %v10027_v24  ;;  %6945 = vmatpush.bf16.msra.mxu3 %v10691_v32  ;;  %v10359_v24 = vor.u32 %v11477_v2, %v10356_v41  ;;  %v10223_v32 = vor.u32 %v11446_v13, %v10222_v18  ;;  %v11488_v2 = vld [vmem:[#allocation7 + $0x420] sm:$0xf0]  ;;  %v10362_v18 = vld [vmem:[#allocation7 + $0x3d0] sm:$0xf]  ;;  %v11481_v13 = vld [vmem:[#allocation7 + $0x3e8] sm:$0xf0] }
 0x4df   : > { %6977 = vmatpush.bf16.msrb.mxu1 %v10135_v51  ;;  %v11439_v51 = vld [vmem:[#allocation7 + $0x298] sm:$0xf0]  ;;  %v10363_v25 = vor.u32 %v11481_v13, %v10362_v18 }
 0x4e0   : > { %6987 = vmatpush.bf16.msrb.mxu2 %v10471_v38  ;;  %v10530_v38 = vld [vmem:[#allocation7 + $0x520] sm:$0xf]  ;;  %v10195_v50 = vor.u32 %v11439_v51, %v10194_v35  ;;  %v10726_v51 = vld [vmem:[#allocation7 + $0x6a8] sm:$0xf] }
 0x4e2   : > { %7016 = vmatpush.bf16.msra.mxu0 %v9999_v43  ;;  %6946 = vmatpush.bf16.msra.mxu3 %v10663_v11  ;;  %v10331_v43 = vor.u32 %v11470_v33, %v10328_v34  ;;  %v10531_v11 = vor.u32 %v11523_v39, %v10530_v38  ;;  %v11474_v33 = vld [vmem:[#allocation7 + $0x3b0] sm:$0xf0]  ;;  %v11572_v38 = vld [vmem:[#allocation7 + $0x6c0] sm:$0xf0]  ;;  %v6700_v39 = vpop.f32.mrf.mxu1 }
 0x4e3   : > { %6978 = vmatpush.bf16.msrb.mxu1 %v10107_v56  ;;  %v11561_v56 = vld [vmem:[#allocation7 + $0x66c] sm:$0xf] }
 0x4e4   : > { %6988 = vmatpush.bf16.msrb.mxu2 %v10443_v58  ;;  %v10692_v58 = vld [vmem:[#allocation7 + $0x684] sm:$0xf0] }
 0x4e5   : > { %v10695_v14 = vor.u32 %v11561_v56, %v10692_v58 }
 0x4e6   : > { %7017 = vmatpush.bf16.msra.mxu0 %v9971_v59  ;;  %6947 = vmatpush.bf16.msra.mxu3 %v10635_v5  ;;  %v10167_v59 = vor.u32 %v11432_v53, %v10166_v52  ;;  %v11509_v5 = vld [vmem:[#allocation7 + $0x4c8] sm:$0xf0]  ;;  %v10670_v53 = vld [vmem:[#allocation7 + $0x638] sm:$0xf] }
 0x4e7   : > { %7027 = vmatpush.bf16.msra.mxu1 %v10307_v60  ;;  %v10503_v60 = vor.u32 %v11516_v54, %v10502_v0  ;;  %v10475_v7 = vor.u32 %v11509_v5, %v10474_v4  ;;  %v11558_v0 = vld [vmem:[#allocation7 + $0x650] sm:$0xf0] }
 0x4e8   : > { %6979 = vmatmul.bf16.vlgmr.msrb.gmra.mxu1 %v13400_v46  ;;  %6989 = vmatpush.bf16.msrb.mxu2 %v10415_v28  ;;  %v11418_v28 = vld [vmem:[#allocation7 + $0x1f0] sm:$0xf0] }
 0x4ea   : > { %7018 = vmatpush.bf16.msra.mxu0 %v9943_v29  ;;  %6948 = vmatpush.bf16.msra.mxu3 %v10607_v23  ;;  %v10446_v29 = vld [vmem:[#allocation7 + $0x478] sm:$0xf]  ;;  %v10111_v23 = vor.u32 %v11418_v28, %v10110_v8  ;;  %v6702_v58 = vpop.f32.mrf.mxu1 }
 0x4eb   : > { %7028 = vmatpush.bf16.msra.mxu1 %v10279_v62  ;;  %v11502_v62 = vld [vmem:[#allocation7 + $0x490] sm:$0xf0] }
 0x4ec   : > { %6990 = vmatpush.bf16.msrb.mxu2 %v10387_v19  ;;  %v10447_v12 = vor.u32 %v11502_v62, %v10446_v29  ;;  %v10608_v19 = vld [vmem:[#allocation7 + $0x5dc] sm:$0xf0]  ;;  %v10586_v29 = vld [vmem:[#allocation7 + $0x590] sm:$0xf]  ;;  %v11537_v62 = vld [vmem:[#allocation7 + $0x5a8] sm:$0xf0] }
 0x4ed   : > { %v10611_v41 = vor.u32 %v11540_v61, %v10608_v19  ;;  %v10587_v37 = vor.u32 %v11537_v62, %v10586_v29 }
 0x4ee   : > { %7019 = vmatpush.bf16.msra.mxu0 %v9915_v63  ;;  %6949 = vmatpush.bf16.msra.mxu3 %v10579_v17  ;;  %v10419_v63 = vor.u32 %v11495_v42, %v10418_v26  ;;  %v10580_v17 = vld [vmem:[#allocation7 + $0x5a4] sm:$0xf0]  ;;  %v10558_v42 = vld [vmem:[#allocation7 + $0x558] sm:$0xf] }
 0x4ef   : > { %7029 = vmatpush.bf16.msra.mxu1 %v10251_v45  ;;  %v10390_v45 = vld [vmem:[#allocation7 + $0x408] sm:$0xf]  ;;  %v10583_v20 = vor.u32 %v11533_v16, %v10580_v17 }
 0x4f0   : > { %6991 = vmatpush.bf16.msrb.mxu2 %v10359_v24  ;;  %v10391_v44 = vor.u32 %v11488_v2, %v10390_v45  ;;  %v10552_v24 = vld [vmem:[#allocation7 + $0x56c] sm:$0xf0] }
 0x4f1   : > { %v10555_v34 = vor.u32 %v11526_v21, %v10552_v24 }
 0x4f2   : > { %7020 = vmatpush.bf16.msra.mxu0 %v9887_v27  ;;  %6950 = vmatpush.bf16.msra.mxu3 %v10551_v36  ;;  %v11579_v27 = vld [vmem:[#allocation7 + $0x6f8] sm:$0xf0]  ;;  %v6756_v10 = vpop.f32.mrf.mxu1 }
 0x4f3   : > { %7030 = vmatpush.bf16.msra.mxu1 %v10223_v32  ;;  %v10334_v32 = vld [vmem:[#allocation7 + $0x398] sm:$0xf]  ;;  %v10755_v35 = vor.u32 %v11579_v27, %v10754_v22 }
 0x4f4   : > { %6992 = vmatpush.bf16.msrb.mxu2 %v10331_v43  ;;  %v10335_v36 = vor.u32 %v11474_v33, %v10334_v32 }
 0x4f5   : > { %7021 = vmatmul.bf16.vlgmr.msra.gmra.mxu0 %v13396_v57  ;;  %6951 = vmatmul.bf16.vlgmr.msra.gmra.mxu3 %v13412_v48  ;;  %v10139_v57 = vor.u32 %v11425_v3, %v10138_v1 }
 0x4f6   : > { %6999 = vmatpush.bf16.msrb.mxu3 %v10751_v40  ;;  %v10727_v40 = vor.u32 %v11572_v38, %v10726_v51 }
 0x4f7   : > { %7031 = vmatpush.bf16.msra.mxu1 %v10195_v50  ;;  %6993 = vmatmul.bf16.vlgmr.msrb.gmra.mxu2 %v13404_v31  ;;  %v13434_v50 = vld [vmem:[%s13502_s14] sm:$0xff] }
 0x4f8   : > { %7041 = vmatpush.bf16.msra.mxu2 %v10531_v11  ;;  %v10699_v11 = vor.u32 %v11565_v49, %v10698_v47  ;;  %v5511_v52 = vperm.slane %v13434_v50, 0  ;;  %v5513_v38 = vperm.slane %v13434_v50, 2 }
 0x4f9   : > { %v6714_v43 = vpop.f32.mrf.mxu2 }
 0x4fa   : > { %7000 = vmatpush.bf16.msrb.mxu3 %v10723_v55  ;;  %v10671_v55 = vor.u32 %v11558_v0, %v10670_v53  ;;  %v6758_v18 = vpop.f32.mrf.mxu1 }
 0x4fb   : > { %7032 = vmatpush.bf16.msra.mxu1 %v10167_v59  ;;  %v10642_v59 = vld [vmem:[#allocation7 + $0x600] sm:$0xf] }
 0x4fc   : > { %7042 = vmatpush.bf16.msra.mxu2 %v10503_v60  ;;  %v11551_v60 = vld [vmem:[#allocation7 + $0x618] sm:$0xf0] }
 0x4fd   : > { %v10643_v4 = vor.u32 %v11551_v60, %v10642_v59 }
 0x4fe   : > { %7001 = vmatpush.bf16.msrb.mxu3 %v10695_v14  ;;  %v10614_v14 = vld [vmem:[#allocation7 + $0x5c8] sm:$0xf] }
 0x4ff   : > { %7033 = vmatpush.bf16.msra.mxu1 %v10139_v57 }
 0x500   : > { %7043 = vmatpush.bf16.msra.mxu2 %v10475_v7 }
 0x501   : > { %v6716_v3 = vpop.f32.mrf.mxu2 }
 0x502   : > { %7002 = vmatpush.bf16.msrb.mxu3 %v10667_v9 }
 0x503   : > { %7034 = vmatpush.bf16.msra.mxu1 %v10111_v23  ;;  %v5512_v23 = vperm.slane %v13434_v50, 1 }
 0x504   : > { %7044 = vmatpush.bf16.msra.mxu2 %v10447_v12 }
 0x506   : > { %7003 = vmatpush.bf16.msrb.mxu3 %v10639_v15  ;;  %7035 = vmatmul.bf16.vlgmr.msra.gmra.mxu1 %v13400_v46  ;;  %v6686_v46 = vpop.f32.mrf.mxu0  ;;  %v11530_v15 = vld [vmem:[#allocation7 + $0x570] sm:$0xf0] }
 0x507   : > { %v6687_v56 = vadd.f32 %v6686_v46, %v5511_v52 }
 0x508   : > { %7045 = vmatpush.bf16.msra.mxu2 %v10419_v63  ;;  %v10559_v63 = vor.u32 %v11530_v15, %v10558_v42 }
 0x509   : > { %v6701_v1 = vadd.f32 %v6700_v39, %v6687_v56 }
 0x50a   : > { %7004 = vmatpush.bf16.msrb.mxu3 %v10611_v41  ;;  %v6770_v26 = vpop.f32.mrf.mxu2 }
 0x50b   : > { %v6715_v5 = vadd.f32 %v6714_v43, %v6701_v1  ;;  %v6812_v43 = vpop.f32.mrf.mxu1 }
 0x50c   : > { %7046 = vmatpush.bf16.msra.mxu2 %v10391_v44 }
 0x50e   : > { %7005 = vmatpush.bf16.msrb.mxu3 %v10583_v20  ;;  %v6688_v54 = vpop.f32.mrf.mxu0 }
 0x50f   : > { %v6689_v7 = vadd.f32 %v6688_v54, %v5511_v52 }
 0x510   : > { %7047 = vmatpush.bf16.msra.mxu2 %v10363_v25 }
 0x511   : > { %v6703_v9 = vadd.f32 %v6702_v58, %v6689_v7 }
 0x512   : > { %7006 = vmatpush.bf16.msrb.mxu3 %v10555_v34  ;;  %v6772_v21 = vpop.f32.mrf.mxu2 }
 0x513   : > { %v6717_v12 = vadd.f32 %v6716_v3, %v6703_v9 }
 0x514   : > { %7048 = vmatpush.bf16.msra.mxu2 %v10335_v36 }
 0x515   : > { %7007 = vmatmul.bf16.vlgmr.msrb.gmra.mxu3 %v13412_v48 }
 0x516   : > { %7055 = vmatpush.bf16.msra.mxu3 %v10755_v35  ;;  %v6742_v8 = vpop.f32.mrf.mxu0 }
 0x517   : > { %7049 = vmatmul.bf16.vlgmr.msra.gmra.mxu2 %v13404_v31  ;;  %v11544_v31 = vld [vmem:[#allocation7 + $0x5e0] sm:$0xf0]  ;;  %v6743_v2 = vadd.f32 %v6742_v8, %v5512_v23 }
 0x518   : > { %v6728_v30 = vpop.f32.mrf.mxu3  ;;  %v10615_v57 = vor.u32 %v11544_v31, %v10614_v14 }
 0x519   : > { %v6729_v6 = vadd.f32 %v6728_v30, %v6715_v5  ;;  %v6757_v44 = vadd.f32 %v6756_v10, %v6743_v2 }
 0x51a   : > { %7056 = vmatpush.bf16.msra.mxu3 %v10727_v40  ;;  %v6826_v53 = vpop.f32.mrf.mxu2 }
 0x51b   : > { %v10756_v28 = vmul.f32 -1.442695, %v6729_v6  ;;  %v6771_v13 = vadd.f32 %v6770_v26, %v6757_v44 }
 0x51d   : > { %11647 = vpow2.f32 %v10756_v28  ;;  %v6814_v28 = vpop.f32.mrf.mxu1 }
 0x51e   : > { %7057 = vmatpush.bf16.msra.mxu3 %v10699_v11  ;;  %v6744_v17 = vpop.f32.mrf.mxu0 }
 0x51f   : > { %v6745_v22 = vadd.f32 %v6744_v17, %v5512_v23 }
 0x520   : > { %v6730_v61 = vpop.f32.mrf.mxu3 }
 0x521   : > { %v6731_v19 = vadd.f32 %v6730_v61, %v6717_v12  ;;  %v6759_v34 = vadd.f32 %v6758_v18, %v6745_v22 }
 0x522   : > { %7058 = vmatpush.bf16.msra.mxu3 %v10671_v55  ;;  %v6828_v26 = vpop.f32.mrf.mxu2 }
 0x523   : > { %v11648_v45 = vpop.eup %11647  ;;  %v10763_v41 = vmul.f32 -1.442695, %v6731_v19  ;;  %v6773_v36 = vadd.f32 %v6772_v21, %v6759_v34 }
 0x524   : > { %v7111_v16 = vadd.f32 1.0, %v11648_v45 }
 0x525   : > { %11649 = vpow2.f32 %v10763_v41 }
 0x526   : > { %7059 = vmatpush.bf16.msra.mxu3 %v10643_v4  ;;  %11651 = vrcp.f32 %v7111_v16  ;;  %v6798_v46 = vpop.f32.mrf.mxu0  ;;  %v7136_v39 = vand.u32 2147483648, %v7111_v16  ;;  %vm7130_vm5 = vweird.f32 %v7111_v16 }
 0x527   : > { %v6799_v55 = vadd.f32 %v6798_v46, %v5513_v38 }
 0x528   : > { %v6784_v20 = vpop.f32.mrf.mxu3  ;;  %v7137_v56 = vor.u32 1.1754944e-38, %v7136_v39  ;;  %v5514_v39 = vperm.slane %v13434_v50, 3 }
 0x529   : > { %v6785_v24 = vadd.f32 %v6784_v20, %v6771_v13  ;;  %v6813_v1 = vadd.f32 %v6812_v43, %v6799_v55 }
 0x52a   : > { %7060 = vmatpush.bf16.msra.mxu3 %v10615_v57 }
 0x52b   : > { %v11650_v25 = vpop.eup %11649  ;;  %v10757_v27 = vmul.f32 -1.442695, %v6785_v24  ;;  %v6827_v5 = vadd.f32 %v6826_v53, %v6813_v1 }
 0x52c   : > { %v11652_v32 = vpop.eup %11651  ;;  %v7118_v33 = vadd.f32 1.0, %v11650_v25 }
 0x52d   : > { %v7126_v35 = vmul.f32 %v11652_v32, %v7111_v16  ;;  %11653 = vpow2.f32 %v10757_v27  ;;  %vm7131_vm4 = vweird.f32 %v11652_v32 }
 0x52e   : > { %7061 = vmatpush.bf16.msra.mxu3 %v10587_v37  ;;  %11655 = vrcp.f32 %v7118_v33  ;;  %vm7132_vm6 = vmor %vm7130_vm5, %vm7131_vm4  ;;  %v7241_v14 = vand.u32 2147483648, %v7118_v33  ;;  %v6800_v31 = vpop.f32.mrf.mxu0  ;;  %v7239_v6 = vand.u32 2147483647, %v7118_v33  ;;  %vm7235_vm9 = vweird.f32 %v7118_v33 }
 0x52f   : > { %v7127_v51 = vsub.f32 1.0, %v7126_v35  ;;  %v6801_v9 = vadd.f32 %v6800_v31, %v5513_v38 }
 0x530   : > { %v6786_v40 = vpop.f32.mrf.mxu3  ;;  %v7242_v10 = vor.u32 1.1754944e-38, %v7241_v14  ;;  %vm7240_vm11 = vcmp.eq.f32.partialorder %v7239_v6, 8.507059e+37 }
 0x531   : > { %v7128_v47 = vmul.f32 %v11652_v32, %v7127_v51  ;;  %v6787_v49 = vadd.f32 %v6786_v40, %v6773_v36  ;;  %v6815_v15 = vadd.f32 %v6814_v28, %v6801_v9 }
 0x532   : > { %7062 = vmatpush.bf16.msra.mxu3 %v10559_v63 }
 0x533   : > { %v11654_v11 = vpop.eup %11653  ;;  %v7129_v52 = vadd.f32 %v11652_v32, %v7128_v47  ;;  %v10764_v0 = vmul.f32 -1.442695, %v6787_v49  ;;  %v6829_v63 = vadd.f32 %v6828_v26, %v6815_v15 }
 0x534   : > { %v11656_v54 = vpop.eup %11655  ;;  %v7112_v58 = vadd.f32 1.0, %v11654_v11 }
 0x535   : > { %7063 = vmatmul.bf16.vlgmr.msra.gmra.mxu3 %v13412_v48  ;;  %v7134_v48 = vand.u32 2147483647, %v7111_v16  ;;  %v7133_v59 = vsel %vm7132_vm6, %v11652_v32, %v7129_v52  ;;  %v7231_v60 = vmul.f32 %v11656_v54, %v7118_v33  ;;  %11657 = vpow2.f32 %v10764_v0 }
 0x536   : > { %11659 = vrcp.f32 %v7112_v58  ;;  %vm7236_vm8 = vweird.f32 %v11656_v54  ;;  %v7151_v45 = vand.u32 2147483648, %v7112_v58  ;;  %v7149_v41 = vand.u32 2147483647, %v7112_v58  ;;  %v6854_v51 = vpop.f32.mrf.mxu0 }
 0x537   : > { %vm7135_vm7 = vcmp.eq.f32.partialorder %v7134_v48, 8.507059e+37  ;;  %v7232_v4 = vsub.f32 1.0, %v7231_v60  ;;  %vm7237_vm10 = vmor %vm7235_vm9, %vm7236_vm8  ;;  %vm7145_vm13 = vweird.f32 %v7112_v58  ;;  %v6868_v48 = vpop.f32.mrf.mxu1  ;;  %v6855_v53 = vadd.f32 %v6854_v51, %v5514_v39 }
 0x538   : > { %v7138_v3 = vsel %vm7135_vm7, %v7137_v56, %v7133_v59  ;;  %v6840_v57 = vpop.f32.mrf.mxu3  ;;  %v7152_v13 = vor.u32 1.1754944e-38, %v7151_v45  ;;  %vm7150_vm15 = vcmp.eq.f32.partialorder %v7149_v41, 8.507059e+37 }
 0x539   : > { %7335 = vst [vmem:[%s13446_s27] sm:$0xff] %v7138_v3  ;;  %v7233_v30 = vmul.f32 %v11656_v54, %v7232_v4  ;;  %v6841_v7 = vadd.f32 %v6840_v57, %v6827_v5  ;;  %v6869_v55 = vadd.f32 %v6868_v48, %v6855_v53 }
 0x53a   : > { %v6882_v52 = vpop.f32.mrf.mxu2 }
 0x53b   : > { %v11658_v8 = vpop.eup %11657  ;;  %v7234_v29 = vadd.f32 %v11656_v54, %v7233_v30  ;;  %v10758_v23 = vmul.f32 -1.442695, %v6841_v7  ;;  %v6883_v1 = vadd.f32 %v6882_v52, %v6869_v55 }
 0x53c   : > { %v11660_v62 = vpop.eup %11659  ;;  %v7119_v37 = vadd.f32 1.0, %v11658_v8 }
 0x53d   : > { %v7238_v12 = vsel %vm7237_vm10, %v11656_v54, %v7234_v29  ;;  %v7141_v42 = vmul.f32 %v11660_v62, %v7112_v58  ;;  %vm7146_vm12 = vweird.f32 %v11660_v62 }
 0x53e   : > { %v7243_v61 = vsel %vm7240_vm11, %v7242_v10, %v7238_v12  ;;  %11661 = vrcp.f32 %v7119_v37  ;;  %vm7147_vm14 = vmor %vm7145_vm13, %vm7146_vm12  ;;  %v7256_v33 = vand.u32 2147483648, %v7119_v37  ;;  %v7254_v35 = vand.u32 2147483647, %v7119_v37  ;;  %v6856_v3 = vpop.f32.mrf.mxu0 }
 0x53f   : > { %7342 = vst [vmem:[%s13446_s27 + $0x38] sm:$0xff] %v7243_v61  ;;  %v7142_v19 = vsub.f32 1.0, %v7141_v42  ;;  %11663 = vpow2.f32 %v10758_v23  ;;  %vm7250_vm1 = vweird.f32 %v7119_v37  ;;  %v6870_v6 = vpop.f32.mrf.mxu1  ;;  %v6857_v8 = vadd.f32 %v6856_v3, %v5514_v39 }
 0x540   : > { %v6842_v16 = vpop.f32.mrf.mxu3  ;;  %v7257_v38 = vor.u32 1.1754944e-38, %v7256_v33  ;;  %vm7255_vm3 = vcmp.eq.f32.partialorder %v7254_v35, 8.507059e+37 }
 0x541   : > { %v7143_v2 = vmul.f32 %v11660_v62, %v7142_v19  ;;  %v6843_v17 = vadd.f32 %v6842_v16, %v6829_v63 }
 0x542   : > { %v6884_v10 = vpop.f32.mrf.mxu2 }
 0x543   : > { %v7144_v44 = vadd.f32 %v11660_v62, %v7143_v2  ;;  %v10765_v20 = vmul.f32 -1.442695, %v6843_v17 }
 0x544   : > { %v11662_v18 = vpop.eup %11661 }
 0x545   : > { %v11664_v21 = vpop.eup %11663  ;;  %v7148_v24 = vsel %vm7147_vm14, %v11660_v62, %v7144_v44  ;;  %v7246_v25 = vmul.f32 %v11662_v18, %v7119_v37  ;;  %11665 = vpow2.f32 %v10765_v20  ;;  %vm7251_vm0 = vweird.f32 %v11662_v18 }
 0x546   : > { %v7153_v22 = vsel %vm7150_vm15, %v7152_v13, %v7148_v24  ;;  %v7113_v27 = vadd.f32 1.0, %v11664_v21  ;;  %vm7252_vm2 = vmor %vm7250_vm1, %vm7251_vm0  ;;  %v6871_v37 = vadd.f32 %v6870_v6, %v6857_v8  ;;  %v6910_v16 = vpop.f32.mrf.mxu0  ;;  %v5515_v44 = vperm.slane %v13434_v50, 4 }
 0x547   : > { %7336 = vst [vmem:[%s13446_s27 + $0x8] sm:$0xff] %v7153_v22  ;;  %v7247_v32 = vsub.f32 1.0, %v7246_v25  ;;  %v6924_v13 = vpop.f32.mrf.mxu1 }
 0x548   : > { %11667 = vrcp.f32 %v7113_v27  ;;  %v7166_v54 = vand.u32 2147483648, %v7113_v27  ;;  %v7164_v58 = vand.u32 2147483647, %v7113_v27  ;;  %vm7160_vm5 = vweird.f32 %v7113_v27 }
 0x549   : > { %v7248_v34 = vmul.f32 %v11662_v18, %v7247_v32  ;;  %v6885_v26 = vadd.f32 %v6884_v10, %v6871_v37  ;;  %v6911_v25 = vadd.f32 %v6910_v16, %v5515_v44 }
 0x54a   : > { %v7167_v4 = vor.u32 1.1754944e-38, %v7166_v54  ;;  %vm7165_vm7 = vcmp.eq.f32.partialorder %v7164_v58, 8.507059e+37 }
 0x54b   : > { %v7249_v46 = vadd.f32 %v11662_v18, %v7248_v34  ;;  %v11666_v36 = vpop.eup %11665  ;;  %v6925_v33 = vadd.f32 %v6924_v13, %v6911_v25 }
 0x54c   : > { %v7120_v43 = vadd.f32 1.0, %v11666_v36 }
 0x54d   : > { %v7253_v40 = vsel %vm7252_vm2, %v11662_v18, %v7249_v46 }
 0x54e   : > { %v11668_v47 = vpop.eup %11667  ;;  %v7258_v49 = vsel %vm7255_vm3, %v7257_v38, %v7253_v40  ;;  %11669 = vrcp.f32 %v7120_v43  ;;  %v7271_v28 = vand.u32 2147483648, %v7120_v43  ;;  %v7269_v9 = vand.u32 2147483647, %v7120_v43  ;;  %v6912_v51 = vpop.f32.mrf.mxu0 }
 0x54f   : > { %7343 = vst [vmem:[%s13446_s27 + $0x40] sm:$0xff] %v7258_v49  ;;  %v7156_v11 = vmul.f32 %v11668_v47, %v7113_v27  ;;  %vm7161_vm4 = vweird.f32 %v11668_v47  ;;  %vm7265_vm9 = vweird.f32 %v7120_v43  ;;  %v6926_v48 = vpop.f32.mrf.mxu1 }
 0x550   : > { %vm7162_vm6 = vmor %vm7160_vm5, %vm7161_vm4  ;;  %v7272_v12 = vor.u32 1.1754944e-38, %v7271_v28  ;;  %vm7270_vm11 = vcmp.eq.f32.partialorder %v7269_v9, 8.507059e+37 }
 0x551   : > { %v7157_v0 = vsub.f32 1.0, %v7156_v11  ;;  %v6913_v11 = vadd.f32 %v6912_v51, %v5515_v44 }
 0x553   : > { %v7158_v56 = vmul.f32 %v11668_v47, %v7157_v0 }
 0x554   : > { %v11670_v59 = vpop.eup %11669 }
 0x555   : > { %v7159_v60 = vadd.f32 %v11668_v47, %v7158_v56  ;;  %v7261_v5 = vmul.f32 %v11670_v59, %v7120_v43  ;;  %vm7266_vm8 = vweird.f32 %v11670_v59  ;;  %v6927_v56 = vadd.f32 %v6926_v48, %v6913_v11 }
 0x556   : > { %vm7267_vm10 = vmor %vm7265_vm9, %vm7266_vm8  ;;  %v6966_v6 = vpop.f32.mrf.mxu0  ;;  %v5517_v11 = vperm.slane %v13434_v50, 6 }
 0x557   : > { %v7163_v31 = vsel %vm7162_vm6, %v11668_v47, %v7159_v60  ;;  %v7262_v7 = vsub.f32 1.0, %v7261_v5 }
 0x558   : > { %v6896_v14 = vpop.f32.mrf.mxu3  ;;  %v7168_v57 = vsel %vm7165_vm7, %v7167_v4, %v7163_v31 }
 0x559   : > { %v6897_v30 = vadd.f32 %v6896_v14, %v6883_v1  ;;  %7337 = vst [vmem:[%s13446_s27 + $0x10] sm:$0xff] %v7168_v57  ;;  %v7263_v62 = vmul.f32 %v11670_v59, %v7262_v7  ;;  %v5516_v7 = vperm.slane %v13434_v50, 5 }
 0x55a   : > { %v6938_v24 = vpop.f32.mrf.mxu2 }
 0x55b   : > { %v10759_v29 = vmul.f32 -1.442695, %v6897_v30  ;;  %v7264_v23 = vadd.f32 %v11670_v59, %v7263_v62  ;;  %v6939_v36 = vadd.f32 %v6938_v24, %v6925_v33  ;;  %v6967_v10 = vadd.f32 %v6966_v6, %v5516_v7 }
 0x55d   : > { %11671 = vpow2.f32 %v10759_v29  ;;  %v7268_v42 = vsel %vm7267_vm10, %v11670_v59, %v7264_v23 }
 0x55e   : > { %v7273_v61 = vsel %vm7270_vm11, %v7272_v12, %v7268_v42 }
 0x55f   : > { %7344 = vst [vmem:[%s13446_s27 + $0x48] sm:$0xff] %v7273_v61 }
 0x560   : > { %v6898_v15 = vpop.f32.mrf.mxu3 }
 0x561   : > { %v6899_v19 = vadd.f32 %v6898_v15, %v6885_v26  ;;  %v6968_v15 = vpop.f32.mrf.mxu0 }
 0x562   : > { %v6940_v55 = vpop.f32.mrf.mxu2 }
 0x563   : > { %v11672_v63 = vpop.eup %11671  ;;  %v10766_v45 = vmul.f32 -1.442695, %v6899_v19  ;;  %v6941_v60 = vadd.f32 %v6940_v55, %v6927_v56 }
 0x564   : > { %v7114_v2 = vadd.f32 1.0, %v11672_v63 }
 0x565   : > { %11673 = vpow2.f32 %v10766_v45  ;;  %v6980_v8 = vpop.f32.mrf.mxu1 }
 0x566   : > { %11675 = vrcp.f32 %v7114_v2  ;;  %v7181_v22 = vand.u32 2147483648, %v7114_v2  ;;  %v7179_v32 = vand.u32 2147483647, %v7114_v2  ;;  %vm7175_vm13 = vweird.f32 %v7114_v2 }
 0x567   : > { %v6981_v12 = vadd.f32 %v6980_v8, %v6967_v10 }
 0x568   : > { %v7182_v46 = vor.u32 1.1754944e-38, %v7181_v22  ;;  %vm7180_vm15 = vcmp.eq.f32.partialorder %v7179_v32, 8.507059e+37 }
 0x56b   : > { %v11674_v41 = vpop.eup %11673 }
 0x56c   : > { %v11676_v17 = vpop.eup %11675  ;;  %v7121_v18 = vadd.f32 1.0, %v11674_v41 }
 0x56d   : > { %v7171_v20 = vmul.f32 %v11676_v17, %v7114_v2  ;;  %vm7176_vm12 = vweird.f32 %v11676_v17  ;;  %v6982_v41 = vpop.f32.mrf.mxu1 }
 0x56e   : > { %11677 = vrcp.f32 %v7121_v18  ;;  %vm7177_vm14 = vmor %vm7175_vm13, %vm7176_vm12  ;;  %v7286_v52 = vand.u32 2147483648, %v7121_v18  ;;  %v7284_v54 = vand.u32 2147483647, %v7121_v18  ;;  %vm7280_vm1 = vweird.f32 %v7121_v18 }
 0x56f   : > { %v7172_v21 = vsub.f32 1.0, %v7171_v20 }
 0x570   : > { %v7287_v59 = vor.u32 1.1754944e-38, %v7286_v52  ;;  %vm7285_vm3 = vcmp.eq.f32.partialorder %v7284_v54, 8.507059e+37 }
 0x571   : > { %v7173_v27 = vmul.f32 %v11676_v17, %v7172_v21 }
 0x572   : > { %v7022_v48 = vpop.f32.mrf.mxu0 }
 0x573   : > { %v7174_v34 = vadd.f32 %v11676_v17, %v7173_v27  ;;  %v7023_v56 = vadd.f32 %v7022_v48, %v5517_v11 }
 0x574   : > { %v11678_v35 = vpop.eup %11677 }
 0x575   : > { %v7178_v38 = vsel %vm7177_vm14, %v11676_v17, %v7174_v34  ;;  %v7276_v39 = vmul.f32 %v11678_v35, %v7121_v18  ;;  %vm7281_vm0 = vweird.f32 %v11678_v35  ;;  %v6969_v18 = vadd.f32 %v6968_v15, %v5516_v7 }
 0x576   : > { %v7183_v43 = vsel %vm7180_vm15, %v7182_v46, %v7178_v38  ;;  %vm7282_vm2 = vmor %vm7280_vm1, %vm7281_vm0 }
 0x577   : > { %7338 = vst [vmem:[%s13446_s27 + $0x18] sm:$0xff] %v7183_v43  ;;  %v7277_v49 = vsub.f32 1.0, %v7276_v39  ;;  %v6983_v24 = vadd.f32 %v6982_v41, %v6969_v18 }
 0x578   : > { %v6952_v40 = vpop.f32.mrf.mxu3 }
 0x579   : > { %v6953_v47 = vadd.f32 %v6952_v40, %v6939_v36  ;;  %v7278_v0 = vmul.f32 %v11678_v35, %v7277_v49 }
 0x57a   : > { %v6994_v9 = vpop.f32.mrf.mxu2  ;;  %v7024_v50 = vpop.f32.mrf.mxu0 }
 0x57b   : > { %v10760_v53 = vmul.f32 -1.442695, %v6953_v47  ;;  %v7279_v58 = vadd.f32 %v11678_v35, %v7278_v0  ;;  %v6995_v19 = vadd.f32 %v6994_v9, %v6981_v12 }
 0x57d   : > { %11679 = vpow2.f32 %v10760_v53  ;;  %v7283_v1 = vsel %vm7282_vm2, %v11678_v35, %v7279_v58 }
 0x57e   : > { %v7288_v4 = vsel %vm7285_vm3, %v7287_v59, %v7283_v1 }
 0x57f   : > { %7345 = vst [vmem:[%s13446_s27 + $0x50] sm:$0xff] %v7288_v4 }
 0x580   : > { %v6954_v3 = vpop.f32.mrf.mxu3 }
 0x581   : > { %v6955_v5 = vadd.f32 %v6954_v3, %v6941_v60 }
 0x582   : > { %v6996_v22 = vpop.f32.mrf.mxu2 }
 0x583   : > { %v11680_v14 = vpop.eup %11679  ;;  %v10767_v31 = vmul.f32 -1.442695, %v6955_v5  ;;  %v6997_v34 = vadd.f32 %v6996_v22, %v6983_v24  ;;  %v7036_v53 = vpop.f32.mrf.mxu1 }
 0x584   : > { %v7115_v30 = vadd.f32 1.0, %v11680_v14  ;;  %v7037_v1 = vadd.f32 %v7036_v53, %v7023_v56 }
 0x585   : > { %11681 = vpow2.f32 %v10767_v31 }
 0x586   : > { %11683 = vrcp.f32 %v7115_v30  ;;  %v7196_v23 = vand.u32 2147483648, %v7115_v30  ;;  %v7194_v42 = vand.u32 2147483647, %v7115_v30  ;;  %vm7190_vm5 = vweird.f32 %v7115_v30 }
 0x588   : > { %v7197_v45 = vor.u32 1.1754944e-38, %v7196_v23  ;;  %vm7195_vm7 = vcmp.eq.f32.partialorder %v7194_v42, 8.507059e+37 }
 0x58b   : > { %v11682_v57 = vpop.eup %11681  ;;  %v7038_v8 = vpop.f32.mrf.mxu1 }
 0x58c   : > { %v11684_v28 = vpop.eup %11683  ;;  %v7122_v29 = vadd.f32 1.0, %v11682_v57 }
 0x58d   : > { %v7186_v62 = vmul.f32 %v11684_v28, %v7115_v30  ;;  %vm7191_vm4 = vweird.f32 %v11684_v28 }
 0x58e   : > { %11685 = vrcp.f32 %v7122_v29  ;;  %vm7192_vm6 = vmor %vm7190_vm5, %vm7191_vm4  ;;  %v7301_v25 = vand.u32 2147483648, %v7122_v29  ;;  %v7299_v32 = vand.u32 2147483647, %v7122_v29  ;;  %vm7295_vm9 = vweird.f32 %v7122_v29 }
 0x58f   : > { %v7187_v37 = vsub.f32 1.0, %v7186_v62 }
 0x590   : > { %v7302_v35 = vor.u32 1.1754944e-38, %v7301_v25  ;;  %vm7300_vm11 = vcmp.eq.f32.partialorder %v7299_v32, 8.507059e+37 }
 0x591   : > { %v7188_v26 = vmul.f32 %v11684_v28, %v7187_v37 }
 0x593   : > { %v7189_v61 = vadd.f32 %v11684_v28, %v7188_v26 }
 0x594   : > { %v11686_v63 = vpop.eup %11685 }
 0x595   : > { %v7193_v16 = vsel %vm7192_vm6, %v11684_v28, %v7189_v61  ;;  %v7291_v17 = vmul.f32 %v11686_v63, %v7122_v29  ;;  %vm7296_vm8 = vweird.f32 %v11686_v63  ;;  %v7025_v29 = vadd.f32 %v7024_v50, %v5517_v11 }
 0x596   : > { %v7198_v13 = vsel %vm7195_vm7, %v7197_v45, %v7193_v16  ;;  %vm7297_vm10 = vmor %vm7295_vm9, %vm7296_vm8 }
 0x597   : > { %7339 = vst [vmem:[%s13446_s27 + $0x20] sm:$0xff] %v7198_v13  ;;  %v7292_v20 = vsub.f32 1.0, %v7291_v17  ;;  %v7039_v12 = vadd.f32 %v7038_v8, %v7025_v29 }
 0x598   : > { %v7008_v2 = vpop.f32.mrf.mxu3 }
 0x599   : > { %v7009_v44 = vadd.f32 %v7008_v2, %v6995_v19  ;;  %v7293_v27 = vmul.f32 %v11686_v63, %v7292_v20 }
 0x59a   : > { %v7050_v55 = vpop.f32.mrf.mxu2 }
 0x59b   : > { %v10761_v21 = vmul.f32 -1.442695, %v7009_v44  ;;  %v7294_v33 = vadd.f32 %v11686_v63, %v7293_v27  ;;  %v7051_v14 = vadd.f32 %v7050_v55, %v7037_v1 }
 0x59d   : > { %11687 = vpow2.f32 %v10761_v21  ;;  %v7298_v36 = vsel %vm7297_vm10, %v11686_v63, %v7294_v33 }
 0x59e   : > { %v7303_v38 = vsel %vm7300_vm11, %v7302_v35, %v7298_v36 }
 0x59f   : > { %7346 = vst [vmem:[%s13446_s27 + $0x58] sm:$0xff] %v7303_v38 }
 0x5a0   : > { %v7010_v46 = vpop.f32.mrf.mxu3 }
 0x5a1   : > { %v7011_v51 = vadd.f32 %v7010_v46, %v6997_v34 }
 0x5a2   : > { %v7052_v23 = vpop.f32.mrf.mxu2 }
 0x5a3   : > { %v11688_v39 = vpop.eup %11687  ;;  %v10768_v40 = vmul.f32 -1.442695, %v7011_v51  ;;  %v7053_v15 = vadd.f32 %v7052_v23, %v7039_v12 }
 0x5a4   : > { %v7116_v43 = vadd.f32 1.0, %v11688_v39 }
 0x5a5   : > { %11689 = vpow2.f32 %v10768_v40 }
 0x5a6   : > { %11691 = vrcp.f32 %v7116_v43  ;;  %v7211_v58 = vand.u32 2147483648, %v7116_v43  ;;  %v7209_v60 = vand.u32 2147483647, %v7116_v43  ;;  %vm7205_vm13 = vweird.f32 %v7116_v43 }
 0x5a8   : > { %v7212_v5 = vor.u32 1.1754944e-38, %v7211_v58  ;;  %vm7210_vm15 = vcmp.eq.f32.partialorder %v7209_v60, 8.507059e+37 }
 0x5ab   : > { %v11690_v47 = vpop.eup %11689 }
 0x5ac   : > { %v11692_v49 = vpop.eup %11691  ;;  %v7123_v52 = vadd.f32 1.0, %v11690_v47 }
 0x5ad   : > { %v7201_v0 = vmul.f32 %v11692_v49, %v7116_v43  ;;  %vm7206_vm12 = vweird.f32 %v11692_v49 }
 0x5ae   : > { %11693 = vrcp.f32 %v7123_v52  ;;  %vm7207_vm14 = vmor %vm7205_vm13, %vm7206_vm12  ;;  %v7316_v62 = vand.u32 2147483648, %v7123_v52  ;;  %v7314_v37 = vand.u32 2147483647, %v7123_v52  ;;  %vm7310_vm1 = vweird.f32 %v7123_v52 }
 0x5af   : > { %v7202_v54 = vsub.f32 1.0, %v7201_v0 }
 0x5b0   : > { %v7317_v42 = vor.u32 1.1754944e-38, %v7316_v62  ;;  %vm7315_vm3 = vcmp.eq.f32.partialorder %v7314_v37, 8.507059e+37 }
 0x5b1   : > { %v7203_v59 = vmul.f32 %v11692_v49, %v7202_v54 }
 0x5b3   : > { %v7204_v3 = vadd.f32 %v11692_v49, %v7203_v59 }
 0x5b4   : > { %v11694_v4 = vpop.eup %11693 }
 0x5b5   : > { %v7208_v31 = vsel %vm7207_vm14, %v11692_v49, %v7204_v3  ;;  %v7306_v30 = vmul.f32 %v11694_v4, %v7123_v52  ;;  %vm7311_vm0 = vweird.f32 %v11694_v4 }
 0x5b6   : > { %v7213_v57 = vsel %vm7210_vm15, %v7212_v5, %v7208_v31  ;;  %vm7312_vm2 = vmor %vm7310_vm1, %vm7311_vm0 }
 0x5b7   : > { %7340 = vst [vmem:[%s13446_s27 + $0x28] sm:$0xff] %v7213_v57  ;;  %v7307_v28 = vsub.f32 1.0, %v7306_v30 }
 0x5b8   : > { %v7064_v6 = vpop.f32.mrf.mxu3 }
 0x5b9   : > { %v7065_v7 = vadd.f32 %v7064_v6, %v7051_v14  ;;  %v7308_v10 = vmul.f32 %v11694_v4, %v7307_v28 }
 0x5bb   : > { %v10762_v9 = vmul.f32 -1.442695, %v7065_v7  ;;  %v7309_v26 = vadd.f32 %v11694_v4, %v7308_v10 }
 0x5bd   : > { %11695 = vpow2.f32 %v10762_v9  ;;  %v7313_v61 = vsel %vm7312_vm2, %v11694_v4, %v7309_v26 }
 0x5be   : > { %v7318_v63 = vsel %vm7315_vm3, %v7317_v42, %v7313_v61 }
 0x5bf   : > { %7347 = vst [vmem:[%s13446_s27 + $0x60] sm:$0xff] %v7318_v63 }
 0x5c0   : > { %v7066_v19 = vpop.f32.mrf.mxu3 }
 0x5c1   : > { %v7067_v45 = vadd.f32 %v7066_v19, %v7053_v15 }
 0x5c3   : > { %v11696_v2 = vpop.eup %11695  ;;  %v10769_v41 = vmul.f32 -1.442695, %v7067_v45 }
 0x5c4   : > { %v7117_v16 = vadd.f32 1.0, %v11696_v2 }
 0x5c5   : > { %11697 = vpow2.f32 %v10769_v41 }
 0x5c6   : > { %11699 = vrcp.f32 %v7117_v16  ;;  %v7226_v21 = vand.u32 2147483648, %v7117_v16  ;;  %v7224_v25 = vand.u32 2147483647, %v7117_v16  ;;  %vm7220_vm5 = vweird.f32 %v7117_v16 }
 0x5c8   : > { %v7227_v32 = vor.u32 1.1754944e-38, %v7226_v21  ;;  %vm7225_vm7 = vcmp.eq.f32.partialorder %v7224_v25, 8.507059e+37 }
 0x5cb   : > { %v11698_v17 = vpop.eup %11697 }
 0x5cc   : > { %v11700_v44 = vpop.eup %11699  ;;  %v7124_v18 = vadd.f32 1.0, %v11698_v17 }
 0x5cd   : > { %v7216_v13 = vmul.f32 %v11700_v44, %v7117_v16  ;;  %vm7221_vm4 = vweird.f32 %v11700_v44 }
 0x5ce   : > { %11701 = vrcp.f32 %v7124_v18  ;;  %vm7222_vm6 = vmor %vm7220_vm5, %vm7221_vm4  ;;  %v7331_v36 = vand.u32 2147483648, %v7124_v18  ;;  %v7329_v38 = vand.u32 2147483647, %v7124_v18  ;;  %vm7325_vm9 = vweird.f32 %v7124_v18 }
 0x5cf   : > { %v7217_v20 = vsub.f32 1.0, %v7216_v13 }
 0x5d0   : > { %v7332_v40 = vor.u32 1.1754944e-38, %v7331_v36  ;;  %vm7330_vm11 = vcmp.eq.f32.partialorder %v7329_v38, 8.507059e+37 }
 0x5d1   : > { %v7218_v24 = vmul.f32 %v11700_v44, %v7217_v20 }
 0x5d3   : > { %v7219_v22 = vadd.f32 %v11700_v44, %v7218_v24 }
 0x5d4   : > { %v11702_v27 = vpop.eup %11701 }
 0x5d5   : > { %v7223_v33 = vsel %vm7222_vm6, %v11700_v44, %v7219_v22  ;;  %v7321_v34 = vmul.f32 %v11702_v27, %v7124_v18  ;;  %vm7326_vm8 = vweird.f32 %v11702_v27 }
 0x5d6   : > { %v7228_v35 = vsel %vm7225_vm7, %v7227_v32, %v7223_v33  ;;  %vm7327_vm10 = vmor %vm7325_vm9, %vm7326_vm8 }
 0x5d7   : > { %7341 = vst [vmem:[%s13446_s27 + $0x30] sm:$0xff] %v7228_v35  ;;  %v7322_v46 = vsub.f32 1.0, %v7321_v34 }
 0x5d9   : > { %v7323_v51 = vmul.f32 %v11702_v27, %v7322_v46 }
 0x5db   : > { %v7324_v39 = vadd.f32 %v11702_v27, %v7323_v51 }
 0x5dd   : > { %v7328_v43 = vsel %vm7327_vm10, %v11702_v27, %v7324_v39 }
 0x5de   : > { %v7333_v47 = vsel %vm7330_vm11, %v7332_v40, %v7328_v43 }
 0x5df   : > { %7348 = vst [vmem:[%s13446_s27 + $0x68] sm:$0xff] %v7333_v47 }
 0x5e0 PF: > { %s29_s18 = sadd.s32 1, %s11842_s18  }
 0x5e1   : > { %p26_p7 = scmp.ge.s32.totalorder %s29_s18, 4  }
 0x5e3   :  { %28 = sbr.rel (!%p26_p7) target bundleno = 9 (0x9), region = 138 }
 0x5e8   :  { %7402 = vsyncpa [#allocation3], 1 }
 0x5e9   :  { %7404 = vsyncpa [#allocation3 + $0x1], 1 }
 0x5ea   :  { %7405 = vsyncpa [#allocation5], 1 }
 0x5eb   :  { %7406 = vsyncpa [#allocation8], 1 }

</bundles_post_ra>
